<compile_context>
chip_gen: v5e
topology: v5e:2x2
jax: 0.10.0
libtpu: 0.0.40
codegen_flags: <defaults>
</compile_context>

<pallas_src>
import functools

import jax
import jax.numpy as jnp
from jax.experimental import pallas as pl
from jax.experimental.pallas import tpu as pltpu

POS_FEAT_DIM = 128
DINO_FEAT_DIM = 128
N_EMB = POS_FEAT_DIM + DINO_FEAT_DIM

# Layer dims (from nn.Sequential definitions in PointToken.__init__)
POS_DIMS = [3, 64, 128, 128, POS_FEAT_DIM]
DINO_DIMS = [1024, 512, 256, 128, DINO_FEAT_DIM]
IN_DIM = 3 + DINO_DIMS[0]      # 1027 channel rows of pcd
POS_K_PAD = 8                  # pos layer-1 contraction padded 3 -> 8 (sublane aligned)


def point_token_kernel(x_ref, *refs):
    # refs = 8 pos-mlp params (w1T,b1,...,w4T,b4), 8 dino-mlp params, out_ref
    # Weights are pre-transposed to (d_out, d_in) bf16; biases are (d_out, 1) f32.
    pos_params = refs[0:8]
    dino_params = refs[8:16]
    out_ref = refs[16]

    x = x_ref[...]                                   # (1027, tn) f32 column tile

    def tail(h, params, start_layer):
        # Layers start_layer..3: h <- W^T @ h + b, ReLU after all but the last.
        for layer in range(start_layer, 4):
            wt = params[2 * layer][...]              # (d_out, d_in) bf16
            b = params[2 * layer + 1][...]           # (d_out, 1)   f32
            h = jnp.dot(wt, h.astype(jnp.bfloat16),
                        preferred_element_type=jnp.float32) + b
            if layer < 3:
                h = jnp.maximum(h, 0.0)
        return h

    # ---- pos MLP (3 -> 64 -> 128 -> 128 -> 128) ----
    # Layer 1 uses the padded (64, 8) weight against the aligned first 8 rows of x
    # (rows 3:8 hit zero weight columns), avoiding any awkward K=3 / offset slices.
    x8b = x[0:POS_K_PAD, :].astype(jnp.bfloat16)     # aligned sublane slice
    p = jnp.dot(pos_params[0][...], x8b,
                preferred_element_type=jnp.float32) + pos_params[1][...]
    p = jnp.maximum(p, 0.0)
    p = tail(p, pos_params, 1)                       # (128, tn) f32

    # ---- dino MLP (1024 -> 512 -> 256 -> 128 -> 128) ----
    # Layer 1 weight is zero-padded to K=1027 so it consumes the full tile directly
    # (no misaligned [3:1027] sublane slice of x).
    xb = x.astype(jnp.bfloat16)
    d = jnp.dot(dino_params[0][...], xb,
                preferred_element_type=jnp.float32) + dino_params[1][...]
    d = jnp.maximum(d, 0.0)
    d = tail(d, dino_params, 1)                      # (128, tn) f32

    # Output tile is (256, tn): rows 0:128 = pos features, 128:256 = dino features.
    out_ref[:POS_FEAT_DIM, :] = p.astype(out_ref.dtype)
    out_ref[POS_FEAT_DIM:, :] = d.astype(out_ref.dtype)


def init_params(key):
    """Deterministic synthetic weights (PyTorch-Linear-style uniform init).

    Returns 16 arrays in row-major layout: w (d_in, d_out), b (1, d_out);
    first 8 for pos_mlp, last 8 for dino_feat_mlp.
    """
    params = []
    for dims in (POS_DIMS, DINO_DIMS):
        for d_in, d_out in zip(dims[:-1], dims[1:]):
            key, kw, kb = jax.random.split(key, 3)
            bound = 1.0 / (d_in ** 0.5)
            w = jax.random.uniform(kw, (d_in, d_out), jnp.float32, -bound, bound)
            b = jax.random.uniform(kb, (1, d_out), jnp.float32, -bound, bound)
            params.append(w)
            params.append(b)
    return params


def prepare_params(params):
    """Convert row-major params into kernel layout (done once, outside the kernel).

    - transpose weights to (d_out, d_in) and cast to bf16 for the MXU
    - zero-pad pos layer-1 K from 3 to 8 and dino layer-1 K from 1024 to 1027
      (3 leading zero columns) so in-kernel row slices stay sublane-aligned
    - biases become (d_out, 1) f32 (broadcast over the lane/point axis)
    """
    pos, dino = params[:8], params[8:]
    kparams = []

    # pos layer 1: (3, 64) -> (64, 8) padded
    pw1t = jnp.zeros((POS_DIMS[1], POS_K_PAD), jnp.float32).at[:, :3].set(pos[0].T)
    kparams.append(pw1t.astype(jnp.bfloat16))
    kparams.append(pos[1].T.astype(jnp.float32))
    for layer in range(1, 4):
        kparams.append(pos[2 * layer].T.astype(jnp.bfloat16))
        kparams.append(pos[2 * layer + 1].T.astype(jnp.float32))

    # dino layer 1: (1024, 512) -> (512, 1027) padded (cols 0:3 are zero)
    dw1t = jnp.zeros((DINO_DIMS[1], IN_DIM), jnp.float32).at[:, 3:].set(dino[0].T)
    kparams.append(dw1t.astype(jnp.bfloat16))
    kparams.append(dino[1].T.astype(jnp.float32))
    for layer in range(1, 4):
        kparams.append(dino[2 * layer].T.astype(jnp.bfloat16))
        kparams.append(dino[2 * layer + 1].T.astype(jnp.float32))

    return kparams


@functools.partial(jax.jit, static_argnames=("tn",))
def point_token_forward(pcd, kparams, *, tn=512):
    """pcd: (B, 1027, N) float32  ->  token: (B, 256, N) float32."""
    B, D, N = pcd.shape
    assert D == IN_DIM
    tn = min(tn, N)
    assert N % tn == 0 and tn % 128 == 0, "N must be a multiple of tn (tn % 128 == 0)"

    grid = (B, N // tn)

    # Column-tiled specs over the point axis; weights fully VMEM-resident (bf16,
    # small enough that the default double-buffering is harmless).
    x_spec = pl.BlockSpec((None, D, tn), lambda b, j: (b, 0, j))
    out_spec = pl.BlockSpec((None, N_EMB, tn), lambda b, j: (b, 0, j))
    param_specs = [pl.BlockSpec(p.shape, lambda b, j: (0, 0)) for p in kparams]

    return pl.pallas_call(
        point_token_kernel,
        out_shape=jax.ShapeDtypeStruct((B, N_EMB, N), jnp.float32),
        grid_spec=pltpu.PrefetchScalarGridSpec(
            num_scalar_prefetch=0,
            grid=grid,
            in_specs=[x_spec] + param_specs,
            out_specs=out_spec,
        ),
        compiler_params=pltpu.CompilerParams(
            dimension_semantics=("parallel", "parallel"),
            # Headroom for tn=512 tiles on v5e (16 MiB default scoped limit);
            # still well under v7x's 64 MiB physical VMEM.
            vmem_limit_bytes=48 * 1024 * 1024,
        ),
    )(pcd, *kparams)


def reference_forward(pcd, params):
    """Pure-JAX f32 reference identical to the PyTorch forward."""
    B, D, N = pcd.shape
    x = jnp.transpose(pcd, (0, 2, 1)).reshape(B * N, D)

    def mlp(h, ps):
        for layer in range(4):
            w, b = ps[2 * layer], ps[2 * layer + 1]
            h = h @ w + b[0]
            if layer < 3:
                h = jnp.maximum(h, 0.0)
        return h

    pos_feat = mlp(x[:, :3], params[:8])
    dino_feat = mlp(x[:, 3:], params[8:])
    token = jnp.concatenate([pos_feat, dino_feat], axis=1)
    return jnp.transpose(token.reshape(B, N, N_EMB), (0, 2, 1))


def reference_forward_bf16(pcd, params):
    """Reference mirroring the kernel's numerics: bf16 MXU inputs, f32 accumulation."""
    B, D, N = pcd.shape
    x = jnp.transpose(pcd, (0, 2, 1)).reshape(B * N, D)

    def mlp(h, ps):
        for layer in range(4):
            w, b = ps[2 * layer], ps[2 * layer + 1]
            h = jnp.dot(h.astype(jnp.bfloat16), w.astype(jnp.bfloat16),
                        preferred_element_type=jnp.float32) + b[0]
            if layer < 3:
                h = jnp.maximum(h, 0.0)
        return h

    pos_feat = mlp(x[:, :3], params[:8])
    dino_feat = mlp(x[:, 3:], params[8:])
    token = jnp.concatenate([pos_feat, dino_feat], axis=1)
    return jnp.transpose(token.reshape(B, N, N_EMB), (0, 2, 1))


if __name__ == "__main__":
    key = jax.random.PRNGKey(0)
    kparam_key, kx = jax.random.split(key)

    params = init_params(kparam_key)
    kparams = prepare_params(params)

    # Small example: B=2, N=512 points, D = 3 (xyz) + 1024 (dino feature).
    # tn=128 keeps the demo tiny while exercising a (2, 4) grid.
    B, N = 2, 512
    pcd = jax.random.normal(kx, (B, IN_DIM, N), jnp.float32)

    out = point_token_forward(pcd, kparams, tn=128)
    out = jax.block_until_ready(out)
    assert out.shape == (B, N_EMB, N), out.shape

    # Tight check against a reference with identical bf16-input / f32-accum numerics.
    ref16 = reference_forward_bf16(pcd, params)
    assert jnp.allclose(out, ref16, atol=1e-2, rtol=1e-2), (
        float(jnp.max(jnp.abs(out - ref16))))

    # Looser check against the full-f32 PyTorch-equivalent reference (bf16 MXU inputs
    # introduce ~1e-2-level deviations, as anticipated in the perf review).
    ref32 = reference_forward(pcd, params)
    assert jnp.allclose(out, ref32, atol=1e-1, rtol=1e-1), (
        float(jnp.max(jnp.abs(out - ref32))))

    print("KERNEL_OK")
</pallas_src>

<mosaic_0001>
module attributes {stable_mosaic.version = 11 : i64} {
  func.func @point_token_kernel(%arg0: i32, %arg1: i32, %arg2: memref<1x1027x128xf32, #tpu.memory_space<vmem>>, %arg3: memref<64x8xbf16, #tpu.memory_space<vmem>>, %arg4: memref<64x1xf32, #tpu.memory_space<vmem>>, %arg5: memref<128x64xbf16, #tpu.memory_space<vmem>>, %arg6: memref<128x1xf32, #tpu.memory_space<vmem>>, %arg7: memref<128x128xbf16, #tpu.memory_space<vmem>>, %arg8: memref<128x1xf32, #tpu.memory_space<vmem>>, %arg9: memref<128x128xbf16, #tpu.memory_space<vmem>>, %arg10: memref<128x1xf32, #tpu.memory_space<vmem>>, %arg11: memref<512x1027xbf16, #tpu.memory_space<vmem>>, %arg12: memref<512x1xf32, #tpu.memory_space<vmem>>, %arg13: memref<256x512xbf16, #tpu.memory_space<vmem>>, %arg14: memref<256x1xf32, #tpu.memory_space<vmem>>, %arg15: memref<128x256xbf16, #tpu.memory_space<vmem>>, %arg16: memref<128x1xf32, #tpu.memory_space<vmem>>, %arg17: memref<128x128xbf16, #tpu.memory_space<vmem>>, %arg18: memref<128x1xf32, #tpu.memory_space<vmem>>, %arg19: memref<1x256x128xf32, #tpu.memory_space<vmem>>) attributes {dimension_semantics = [#tpu.dimension_semantics<parallel>, #tpu.dimension_semantics<parallel>], iteration_bounds = array<i64: 2, 4>, scalar_prefetch = 0 : i64, scratch_operands = 0 : i64, tpu.core_type = #tpu.core_type<tc>, window_params = [{transform_indices = @transform_0, window_bounds = array<i64: 1, 1027, 128>}, {pipeline_mode = #tpu.pipeline_mode<synchronous>, transform_indices = @transform_1, window_bounds = array<i64: 64, 8>}, {pipeline_mode = #tpu.pipeline_mode<synchronous>, transform_indices = @transform_2, window_bounds = array<i64: 64, 1>}, {pipeline_mode = #tpu.pipeline_mode<synchronous>, transform_indices = @transform_3, window_bounds = array<i64: 128, 64>}, {pipeline_mode = #tpu.pipeline_mode<synchronous>, transform_indices = @transform_4, window_bounds = array<i64: 128, 1>}, {pipeline_mode = #tpu.pipeline_mode<synchronous>, transform_indices = @transform_5, window_bounds = array<i64: 128, 128>}, {pipeline_mode = #tpu.pipeline_mode<synchronous>, transform_indices = @transform_6, window_bounds = array<i64: 128, 1>}, {pipeline_mode = #tpu.pipeline_mode<synchronous>, transform_indices = @transform_7, window_bounds = array<i64: 128, 128>}, {pipeline_mode = #tpu.pipeline_mode<synchronous>, transform_indices = @transform_8, window_bounds = array<i64: 128, 1>}, {pipeline_mode = #tpu.pipeline_mode<synchronous>, transform_indices = @transform_9, window_bounds = array<i64: 512, 1027>}, {pipeline_mode = #tpu.pipeline_mode<synchronous>, transform_indices = @transform_10, window_bounds = array<i64: 512, 1>}, {pipeline_mode = #tpu.pipeline_mode<synchronous>, transform_indices = @transform_11, window_bounds = array<i64: 256, 512>}, {pipeline_mode = #tpu.pipeline_mode<synchronous>, transform_indices = @transform_12, window_bounds = array<i64: 256, 1>}, {pipeline_mode = #tpu.pipeline_mode<synchronous>, transform_indices = @transform_13, window_bounds = array<i64: 128, 256>}, {pipeline_mode = #tpu.pipeline_mode<synchronous>, transform_indices = @transform_14, window_bounds = array<i64: 128, 1>}, {pipeline_mode = #tpu.pipeline_mode<synchronous>, transform_indices = @transform_15, window_bounds = array<i64: 128, 128>}, {pipeline_mode = #tpu.pipeline_mode<synchronous>, transform_indices = @transform_16, window_bounds = array<i64: 128, 1>}, {transform_indices = @transform_17, window_bounds = array<i64: 1, 256, 128>}]} {
    %c0 = arith.constant 0 : index
    %c0_0 = arith.constant 0 : index
    %c0_1 = arith.constant 0 : index
    %0 = vector.load %arg2[%c0, %c0_0, %c0_1] : memref<1x1027x128xf32, #tpu.memory_space<vmem>>, vector<1x1027x128xf32>
    %1 = vector.shape_cast %0 : vector<1x1027x128xf32> to vector<1027x128xf32>
    %2 = vector.extract_strided_slice %1 {offsets = [0, 0], sizes = [8, 128], strides = [1, 1]} : vector<1027x128xf32> to vector<8x128xf32>
    %3 = arith.truncf %2 : vector<8x128xf32> to vector<8x128xbf16>
    %c0_2 = arith.constant 0 : index
    %c0_3 = arith.constant 0 : index
    %4 = vector.load %arg3[%c0_2, %c0_3] : memref<64x8xbf16, #tpu.memory_space<vmem>>, vector<64x8xbf16>
    %cst = arith.constant dense<0.000000e+00> : vector<64x128xf32>
    %5 = tpu.matmul %4, %3, %cst {dimension_numbers = #tpu.dot_dimension_numbers<[1], [0], [0], [1], [0, 0, 1, 1], [], []>} : vector<64x8xbf16>, vector<8x128xbf16>, vector<64x128xf32> -> vector<64x128xf32>
    %c0_4 = arith.constant 0 : index
    %c0_5 = arith.constant 0 : index
    %6 = vector.load %arg4[%c0_4, %c0_5] : memref<64x1xf32, #tpu.memory_space<vmem>>, vector<64x1xf32>
    %7 = vector.broadcast %6 : vector<64x1xf32> to vector<64x128xf32>
    %8 = arith.addf %5, %7 : vector<64x128xf32>
    %cst_6 = arith.constant 0.000000e+00 : f32
    %9 = vector.broadcast %cst_6 : f32 to vector<64x128xf32>
    %10 = arith.maximumf %8, %9 : vector<64x128xf32>
    %c0_7 = arith.constant 0 : index
    %c0_8 = arith.constant 0 : index
    %11 = vector.load %arg5[%c0_7, %c0_8] : memref<128x64xbf16, #tpu.memory_space<vmem>>, vector<128x64xbf16>
    %c0_9 = arith.constant 0 : index
    %c0_10 = arith.constant 0 : index
    %12 = vector.load %arg6[%c0_9, %c0_10] : memref<128x1xf32, #tpu.memory_space<vmem>>, vector<128x1xf32>
    %13 = arith.truncf %10 : vector<64x128xf32> to vector<64x128xbf16>
    %cst_11 = arith.constant dense<0.000000e+00> : vector<128x128xf32>
    %14 = tpu.matmul %11, %13, %cst_11 {dimension_numbers = #tpu.dot_dimension_numbers<[1], [0], [0], [1], [0, 0, 1, 1], [], []>} : vector<128x64xbf16>, vector<64x128xbf16>, vector<128x128xf32> -> vector<128x128xf32>
    %15 = vector.broadcast %12 : vector<128x1xf32> to vector<128x128xf32>
    %16 = arith.addf %14, %15 : vector<128x128xf32>
    %cst_12 = arith.constant 0.000000e+00 : f32
    %17 = vector.broadcast %cst_12 : f32 to vector<128x128xf32>
    %18 = arith.maximumf %16, %17 : vector<128x128xf32>
    %c0_13 = arith.constant 0 : index
    %c0_14 = arith.constant 0 : index
    %19 = vector.load %arg7[%c0_13, %c0_14] : memref<128x128xbf16, #tpu.memory_space<vmem>>, vector<128x128xbf16>
    %c0_15 = arith.constant 0 : index
    %c0_16 = arith.constant 0 : index
    %20 = vector.load %arg8[%c0_15, %c0_16] : memref<128x1xf32, #tpu.memory_space<vmem>>, vector<128x1xf32>
    %21 = arith.truncf %18 : vector<128x128xf32> to vector<128x128xbf16>
    %cst_17 = arith.constant dense<0.000000e+00> : vector<128x128xf32>
    %22 = tpu.matmul %19, %21, %cst_17 {dimension_numbers = #tpu.dot_dimension_numbers<[1], [0], [0], [1], [0, 0, 1, 1], [], []>} : vector<128x128xbf16>, vector<128x128xbf16>, vector<128x128xf32> -> vector<128x128xf32>
    %23 = vector.broadcast %20 : vector<128x1xf32> to vector<128x128xf32>
    %24 = arith.addf %22, %23 : vector<128x128xf32>
    %cst_18 = arith.constant 0.000000e+00 : f32
    %25 = vector.broadcast %cst_18 : f32 to vector<128x128xf32>
    %26 = arith.maximumf %24, %25 : vector<128x128xf32>
    %c0_19 = arith.constant 0 : index
    %c0_20 = arith.constant 0 : index
    %27 = vector.load %arg9[%c0_19, %c0_20] : memref<128x128xbf16, #tpu.memory_space<vmem>>, vector<128x128xbf16>
    %c0_21 = arith.constant 0 : index
    %c0_22 = arith.constant 0 : index
    %28 = vector.load %arg10[%c0_21, %c0_22] : memref<128x1xf32, #tpu.memory_space<vmem>>, vector<128x1xf32>
    %29 = arith.truncf %26 : vector<128x128xf32> to vector<128x128xbf16>
    %cst_23 = arith.constant dense<0.000000e+00> : vector<128x128xf32>
    %30 = tpu.matmul %27, %29, %cst_23 {dimension_numbers = #tpu.dot_dimension_numbers<[1], [0], [0], [1], [0, 0, 1, 1], [], []>} : vector<128x128xbf16>, vector<128x128xbf16>, vector<128x128xf32> -> vector<128x128xf32>
    %31 = vector.broadcast %28 : vector<128x1xf32> to vector<128x128xf32>
    %32 = arith.addf %30, %31 : vector<128x128xf32>
    %33 = arith.truncf %1 : vector<1027x128xf32> to vector<1027x128xbf16>
    %c0_24 = arith.constant 0 : index
    %c0_25 = arith.constant 0 : index
    %34 = vector.load %arg11[%c0_24, %c0_25] : memref<512x1027xbf16, #tpu.memory_space<vmem>>, vector<512x1027xbf16>
    %cst_26 = arith.constant dense<0.000000e+00> : vector<512x128xf32>
    %35 = tpu.matmul %34, %33, %cst_26 {dimension_numbers = #tpu.dot_dimension_numbers<[1], [0], [0], [1], [0, 0, 1, 1], [], []>} : vector<512x1027xbf16>, vector<1027x128xbf16>, vector<512x128xf32> -> vector<512x128xf32>
    %c0_27 = arith.constant 0 : index
    %c0_28 = arith.constant 0 : index
    %36 = vector.load %arg12[%c0_27, %c0_28] : memref<512x1xf32, #tpu.memory_space<vmem>>, vector<512x1xf32>
    %37 = vector.broadcast %36 : vector<512x1xf32> to vector<512x128xf32>
    %38 = arith.addf %35, %37 : vector<512x128xf32>
    %cst_29 = arith.constant 0.000000e+00 : f32
    %39 = vector.broadcast %cst_29 : f32 to vector<512x128xf32>
    %40 = arith.maximumf %38, %39 : vector<512x128xf32>
    %c0_30 = arith.constant 0 : index
    %c0_31 = arith.constant 0 : index
    %41 = vector.load %arg13[%c0_30, %c0_31] : memref<256x512xbf16, #tpu.memory_space<vmem>>, vector<256x512xbf16>
    %c0_32 = arith.constant 0 : index
    %c0_33 = arith.constant 0 : index
    %42 = vector.load %arg14[%c0_32, %c0_33] : memref<256x1xf32, #tpu.memory_space<vmem>>, vector<256x1xf32>
    %43 = arith.truncf %40 : vector<512x128xf32> to vector<512x128xbf16>
    %cst_34 = arith.constant dense<0.000000e+00> : vector<256x128xf32>
    %44 = tpu.matmul %41, %43, %cst_34 {dimension_numbers = #tpu.dot_dimension_numbers<[1], [0], [0], [1], [0, 0, 1, 1], [], []>} : vector<256x512xbf16>, vector<512x128xbf16>, vector<256x128xf32> -> vector<256x128xf32>
    %45 = vector.broadcast %42 : vector<256x1xf32> to vector<256x128xf32>
    %46 = arith.addf %44, %45 : vector<256x128xf32>
    %cst_35 = arith.constant 0.000000e+00 : f32
    %47 = vector.broadcast %cst_35 : f32 to vector<256x128xf32>
    %48 = arith.maximumf %46, %47 : vector<256x128xf32>
    %c0_36 = arith.constant 0 : index
    %c0_37 = arith.constant 0 : index
    %49 = vector.load %arg15[%c0_36, %c0_37] : memref<128x256xbf16, #tpu.memory_space<vmem>>, vector<128x256xbf16>
    %c0_38 = arith.constant 0 : index
    %c0_39 = arith.constant 0 : index
    %50 = vector.load %arg16[%c0_38, %c0_39] : memref<128x1xf32, #tpu.memory_space<vmem>>, vector<128x1xf32>
    %51 = arith.truncf %48 : vector<256x128xf32> to vector<256x128xbf16>
    %cst_40 = arith.constant dense<0.000000e+00> : vector<128x128xf32>
    %52 = tpu.matmul %49, %51, %cst_40 {dimension_numbers = #tpu.dot_dimension_numbers<[1], [0], [0], [1], [0, 0, 1, 1], [], []>} : vector<128x256xbf16>, vector<256x128xbf16>, vector<128x128xf32> -> vector<128x128xf32>
    %53 = vector.broadcast %50 : vector<128x1xf32> to vector<128x128xf32>
    %54 = arith.addf %52, %53 : vector<128x128xf32>
    %cst_41 = arith.constant 0.000000e+00 : f32
    %55 = vector.broadcast %cst_41 : f32 to vector<128x128xf32>
    %56 = arith.maximumf %54, %55 : vector<128x128xf32>
    %c0_42 = arith.constant 0 : index
    %c0_43 = arith.constant 0 : index
    %57 = vector.load %arg17[%c0_42, %c0_43] : memref<128x128xbf16, #tpu.memory_space<vmem>>, vector<128x128xbf16>
    %c0_44 = arith.constant 0 : index
    %c0_45 = arith.constant 0 : index
    %58 = vector.load %arg18[%c0_44, %c0_45] : memref<128x1xf32, #tpu.memory_space<vmem>>, vector<128x1xf32>
    %59 = arith.truncf %56 : vector<128x128xf32> to vector<128x128xbf16>
    %cst_46 = arith.constant dense<0.000000e+00> : vector<128x128xf32>
    %60 = tpu.matmul %57, %59, %cst_46 {dimension_numbers = #tpu.dot_dimension_numbers<[1], [0], [0], [1], [0, 0, 1, 1], [], []>} : vector<128x128xbf16>, vector<128x128xbf16>, vector<128x128xf32> -> vector<128x128xf32>
    %61 = vector.broadcast %58 : vector<128x1xf32> to vector<128x128xf32>
    %62 = arith.addf %60, %61 : vector<128x128xf32>
    %c0_47 = arith.constant 0 : index
    %c0_48 = arith.constant 0 : index
    %c0_49 = arith.constant 0 : index
    %63 = vector.load %arg19[%c0_47, %c0_48, %c0_49] : memref<1x256x128xf32, #tpu.memory_space<vmem>>, vector<1x128x128xf32>
    %64 = vector.shape_cast %63 : vector<1x128x128xf32> to vector<128x128xf32>
    %65 = vector.shape_cast %32 : vector<128x128xf32> to vector<1x128x128xf32>
    tpu.vector_store %arg19[%c0_47, %c0_48, %c0_49], %65 {strides = array<i32>} : memref<1x256x128xf32, #tpu.memory_space<vmem>>, vector<1x128x128xf32>,
    %c0_50 = arith.constant 0 : index
    %c128 = arith.constant 128 : index
    %c0_51 = arith.constant 0 : index
    %66 = vector.load %arg19[%c0_50, %c128, %c0_51] : memref<1x256x128xf32, #tpu.memory_space<vmem>>, vector<1x128x128xf32>
    %67 = vector.shape_cast %66 : vector<1x128x128xf32> to vector<128x128xf32>
    %68 = vector.shape_cast %62 : vector<128x128xf32> to vector<1x128x128xf32>
    tpu.vector_store %arg19[%c0_50, %c128, %c0_51], %68 {strides = array<i32>} : memref<1x256x128xf32, #tpu.memory_space<vmem>>, vector<1x128x128xf32>,
    return
  }
  func.func @transform_0(%arg0: i32, %arg1: i32) -> (i32, i32, i32) {
    %c0_i32 = arith.constant 0 : i32
    %c0_i32_0 = arith.constant 0 : i32
    return %arg0, %c0_i32, %arg1 : i32, i32, i32
  }
  func.func @transform_1(%arg0: i32, %arg1: i32) -> (i32, i32) {
    %c0_i32 = arith.constant 0 : i32
    %c0_i32_0 = arith.constant 0 : i32
    %c0_i32_1 = arith.constant 0 : i32
    return %c0_i32, %c0_i32_0 : i32, i32
  }
  func.func @transform_2(%arg0: i32, %arg1: i32) -> (i32, i32) {
    %c0_i32 = arith.constant 0 : i32
    %c0_i32_0 = arith.constant 0 : i32
    %c0_i32_1 = arith.constant 0 : i32
    return %c0_i32, %c0_i32_0 : i32, i32
  }
  func.func @transform_3(%arg0: i32, %arg1: i32) -> (i32, i32) {
    %c0_i32 = arith.constant 0 : i32
    %c0_i32_0 = arith.constant 0 : i32
    %c0_i32_1 = arith.constant 0 : i32
    return %c0_i32, %c0_i32_0 : i32, i32
  }
  func.func @transform_4(%arg0: i32, %arg1: i32) -> (i32, i32) {
    %c0_i32 = arith.constant 0 : i32
    %c0_i32_0 = arith.constant 0 : i32
    %c0_i32_1 = arith.constant 0 : i32
    return %c0_i32, %c0_i32_0 : i32, i32
  }
  func.func @transform_5(%arg0: i32, %arg1: i32) -> (i32, i32) {
    %c0_i32 = arith.constant 0 : i32
    %c0_i32_0 = arith.constant 0 : i32
    %c0_i32_1 = arith.constant 0 : i32
    return %c0_i32, %c0_i32_0 : i32, i32
  }
  func.func @transform_6(%arg0: i32, %arg1: i32) -> (i32, i32) {
    %c0_i32 = arith.constant 0 : i32
    %c0_i32_0 = arith.constant 0 : i32
    %c0_i32_1 = arith.constant 0 : i32
    return %c0_i32, %c0_i32_0 : i32, i32
  }
  func.func @transform_7(%arg0: i32, %arg1: i32) -> (i32, i32) {
    %c0_i32 = arith.constant 0 : i32
    %c0_i32_0 = arith.constant 0 : i32
    %c0_i32_1 = arith.constant 0 : i32
    return %c0_i32, %c0_i32_0 : i32, i32
  }
  func.func @transform_8(%arg0: i32, %arg1: i32) -> (i32, i32) {
    %c0_i32 = arith.constant 0 : i32
    %c0_i32_0 = arith.constant 0 : i32
    %c0_i32_1 = arith.constant 0 : i32
    return %c0_i32, %c0_i32_0 : i32, i32
  }
  func.func @transform_9(%arg0: i32, %arg1: i32) -> (i32, i32) {
    %c0_i32 = arith.constant 0 : i32
    %c0_i32_0 = arith.constant 0 : i32
    %c0_i32_1 = arith.constant 0 : i32
    return %c0_i32, %c0_i32_0 : i32, i32
  }
  func.func @transform_10(%arg0: i32, %arg1: i32) -> (i32, i32) {
    %c0_i32 = arith.constant 0 : i32
    %c0_i32_0 = arith.constant 0 : i32
    %c0_i32_1 = arith.constant 0 : i32
    return %c0_i32, %c0_i32_0 : i32, i32
  }
  func.func @transform_11(%arg0: i32, %arg1: i32) -> (i32, i32) {
    %c0_i32 = arith.constant 0 : i32
    %c0_i32_0 = arith.constant 0 : i32
    %c0_i32_1 = arith.constant 0 : i32
    return %c0_i32, %c0_i32_0 : i32, i32
  }
  func.func @transform_12(%arg0: i32, %arg1: i32) -> (i32, i32) {
    %c0_i32 = arith.constant 0 : i32
    %c0_i32_0 = arith.constant 0 : i32
    %c0_i32_1 = arith.constant 0 : i32
    return %c0_i32, %c0_i32_0 : i32, i32
  }
  func.func @transform_13(%arg0: i32, %arg1: i32) -> (i32, i32) {
    %c0_i32 = arith.constant 0 : i32
    %c0_i32_0 = arith.constant 0 : i32
    %c0_i32_1 = arith.constant 0 : i32
    return %c0_i32, %c0_i32_0 : i32, i32
  }
  func.func @transform_14(%arg0: i32, %arg1: i32) -> (i32, i32) {
    %c0_i32 = arith.constant 0 : i32
    %c0_i32_0 = arith.constant 0 : i32
    %c0_i32_1 = arith.constant 0 : i32
    return %c0_i32, %c0_i32_0 : i32, i32
  }
  func.func @transform_15(%arg0: i32, %arg1: i32) -> (i32, i32) {
    %c0_i32 = arith.constant 0 : i32
    %c0_i32_0 = arith.constant 0 : i32
    %c0_i32_1 = arith.constant 0 : i32
    return %c0_i32, %c0_i32_0 : i32, i32
  }
  func.func @transform_16(%arg0: i32, %arg1: i32) -> (i32, i32) {
    %c0_i32 = arith.constant 0 : i32
    %c0_i32_0 = arith.constant 0 : i32
    %c0_i32_1 = arith.constant 0 : i32
    return %c0_i32, %c0_i32_0 : i32, i32
  }
  func.func @transform_17(%arg0: i32, %arg1: i32) -> (i32, i32, i32) {
    %c0_i32 = arith.constant 0 : i32
    %c0_i32_0 = arith.constant 0 : i32
    return %arg0, %c0_i32, %arg1 : i32, i32, i32
  }
}

</mosaic_0001>

<bundles_post_ra>
// kernel: point_token_forward.1
= control target key start
LH: loop header
LB: loop body
LE: loop exit
PB: predicated region body
PF: predicated region fallthrough
CT: control target
= control target key end

     0   :  { %s15534_s0 = inlined_call_operand.vmem [shape: f32[2,1027,512], index: 0, kind: input, shape index: {}]   ;;  %s15535_s1 = inlined_call_operand.vmem [shape: bf16[64,8], index: 1, kind: input, shape index: {}]   ;;  %s15536_s2 = inlined_call_operand.vmem [shape: f32[64,1], index: 2, kind: input, shape index: {}]   ;;  %s15537_s3 = inlined_call_operand.vmem [shape: bf16[128,64], index: 3, kind: input, shape index: {}]   ;;  %s15538_s4 = inlined_call_operand.vmem [shape: f32[128,1], index: 4, kind: input, shape index: {}]   ;;  %s15539_s5 = inlined_call_operand.vmem [shape: bf16[128,128], index: 5, kind: input, shape index: {}]   ;;  %s15540_s6 = inlined_call_operand.vmem [shape: f32[128,1], index: 6, kind: input, shape index: {}]   ;;  %s15541_s7 = inlined_call_operand.vmem [shape: bf16[128,128], index: 7, kind: input, shape index: {}]   ;;  %s15542_s8 = inlined_call_operand.vmem [shape: f32[128,1], index: 8, kind: input, shape index: {}]   ;;  %s15543_s9 = inlined_call_operand.vmem [shape: bf16[512,1027], index: 9, kind: input, shape index: {}]   ;;  %s15544_s10 = inlined_call_operand.vmem [shape: f32[512,1], index: 10, kind: input, shape index: {}]   ;;  %s15545_s11 = inlined_call_operand.vmem [shape: bf16[256,512], index: 11, kind: input, shape index: {}]   ;;  %s15546_s12 = inlined_call_operand.vmem [shape: f32[256,1], index: 12, kind: input, shape index: {}]   ;;  %s15547_s13 = inlined_call_operand.vmem [shape: bf16[128,256], index: 13, kind: input, shape index: {}]   ;;  %s15548_s14 = inlined_call_operand.vmem [shape: f32[128,1], index: 14, kind: input, shape index: {}]   ;;  %s15549_s15 = inlined_call_operand.vmem [shape: bf16[128,128], index: 15, kind: input, shape index: {}]   ;;  %s15550_s16 = inlined_call_operand.vmem [shape: f32[128,1], index: 16, kind: input, shape index: {}]   ;;  %s15551_s17 = inlined_call_operand.hbm [shape: f32[2,256,512], index: 17, kind: output, shape index: {}]  }
   0x1   :  { %15564 = sst [smem:[#allocation109_spill]] %s15534_s0 }
   0x2   :  { %15565 = sst [smem:[#allocation110_spill]] %s15535_s1 }
   0x3   :  { %15566 = sst [smem:[#allocation111_spill]] %s15536_s2 }
   0x4   :  { %15567 = sst [smem:[#allocation112_spill]] %s15537_s3 }
   0x5   :  { %15568 = sst [smem:[#allocation113_spill]] %s15538_s4 }
   0x6   :  { %15569 = sst [smem:[#allocation114_spill]] %s15539_s5 }
   0x7   :  { %15570 = sst [smem:[#allocation115_spill]] %s15540_s6 }
   0x8   :  { %15571 = sst [smem:[#allocation116_spill]] %s15549_s15 }
   0x9   :  { %15572 = sst [smem:[#allocation117_spill]] %s15551_s17 }
   0xa   :  { %22 = vsyncpa [#allocation4], 0 }
   0xb   :  { %24 = vsyncpa [#allocation4 + $0x1], 0  ;;  %s9995_s24 = smov 0   ;;  %s9997_s25 = smov 0  }
   0xc   :  { %s9999_s26 = smov 0   ;;  %s10001_s27 = smov 0  }
   0xd   :  { %s10003_s28 = smov 0   ;;  %s10005_s29 = smov 0  }
   0xe   :  { %s10007_s0 = smov 0   ;;  %s10009_s30 = smov 0  }
   0xf LB: > { %15573 = sst [smem:[#allocation6_spill]] %s9870_s24  ;;  %s7634_s18 = sadd.s32 4294967295, %s9898_s30   ;;  %s9898_s30 = sphi %s10009_s30, %s30_s30   ;;  %s9894_s0 = sphi %s10007_s0, %s15982_s0   ;;  %s9890_s29 = sphi %s10005_s29, %s15981_s29   ;;  %s9886_s28 = sphi %s10003_s28, %s15980_s28   ;;  %s9882_s27 = sphi %s10001_s27, %s15979_s27   ;;  %s9878_s26 = sphi %s9999_s26, %s15985_s26   ;;  %s9874_s25 = sphi %s9997_s25, %s15984_s25   ;;  %s9870_s24 = sphi %s9995_s24, %s15983_s24  }
  0x10   : > { %15574 = sst [smem:[#allocation7_spill]] %s9882_s27  ;;  %s7635_s19 = sadd.s32 4294967294, %s9898_s30  }
  0x11   : > { %15575 = sst [smem:[#allocation8_spill]] %s9886_s28  ;;  %s39_s1 = sadd.s32 1, %s9890_s29 }
  0x12   : > { %15576 = sst [smem:[#allocation9_spill]] %s9890_s29  ;;  %p40_p0 = scmp.ge.s32.totalorder %s39_s1, 4 }
  0x13   : > { %15577 = sst [smem:[#allocation10_spill]] %s9894_s0  ;;  %s42_s20 = sadd.s32 1, %s9894_s0 }
  0x14   : > { %p58_p1 = scmp.ne.s32.totalorder %s9878_s26, %s9874_s25  ;;  %p59_p2 = scmp.eq.s32.totalorder %s9898_s30, 0 }
  0x15   : > { %s15987_s1 = smov (%p40_p0, %s39_s1), 0  ;;  %s15989_s20 = smov (!%p40_p0, %s42_s20), %s9894_s0 }
  0x16   : > { %15578 = sst [smem:[#allocation11_spill]] %s15987_s1  ;;  %s47_s21 = ssub.s32 %s9890_s29, %s15987_s1 }
  0x17   : > { %p10047_p3 = por %p59_p2, %p58_p1  ;;  %p44_p4 = scmp.ge.s32.totalorder %s15989_s20, 2 }
  0x18   : > { %p426_p5 = scmp.eq.s32.totalorder %s7634_s18, 7  ;;  %p431_p6 = scmp.ne.s32.totalorder %s9874_s25, %s9870_s24 }
  0x19   : > { %p432_p7 = scmp.eq.s32.totalorder %s7635_s19, 7  ;;  %s15991_s20 = smov (%p44_p4, %s15989_s20), 0 }
  0x1a   : > { %15580 = sst [smem:[#allocation12_spill]] %s15991_s20  ;;  %p10055_p8 = por %p426_p5, %p58_p1 }
  0x1b   : > { %p10059_p9 = por %p432_p7, %p431_p6  ;;  %s46_s1 = ssub.s32 %s9894_s0, %s15991_s20 }
  0x1c   : > { %s15581_s23 = scalar_select %p10055_p8, 1, 0 }
  0x1d   : > { %s15583_s17 = scalar_select %p10059_p9, 1, 0 }
  0x1e   : > { %15582 = sst [smem:[#allocation13_spill]] %s15581_s23  ;;  %s48_s27 = sor.u32 %s47_s21, %s46_s1 }
  0x1f   : > { %15584 = sst [smem:[#allocation14_spill]] %s15583_s17  ;;  %s51_s28 = sadd.s32 1, %s9878_s26 }
  0x20   : > { %p49_p10 = scmp.eq.s32.totalorder %s48_s27, 0  ;;  %p7637_p11 = scmp.ge.s32.totalorder %s9898_s30, 8 }
  0x22   : > { %s10067_s15 = scalar_select %p49_p10, %s9878_s26, %s51_s28  }
  0x23   : > { %496 = sbr.rel (%p7637_p11) target bundleno = 178 (0xb2), region = 80 }
  0x28   : > { %499 = sbr.rel (!%p10047_p3) target bundleno = 178 (0xb2), region = 84  ;;  %s501_s18 = sand.u32 (%p10047_p3), 1, %s9878_s26  }
  0x29   : > { %s9723_s19 = smul.u32 (%p10047_p3), 516, %s9894_s0  ;;  %s15585_s21 = sld [smem:[#allocation109_spill]] (%p10047_p3) }
  0x2a   : > { %s9722_s24 = smul.u32 (%p10047_p3), 1032, %s501_s18 }
  0x2b   : > { %s505_s23 = sadd.s32 (%p10047_p3), %s9890_s29, %s9723_s19 }
  0x2c   : > { %s7638_s17 = sshll.u32 (%p10047_p3), %s505_s23, 3  ;;  %s10083_s28 = scalar_lea.vmem (%p10047_p3), [#allocation2], %s9722_s24 }
  0x2f   : > { %s10078_s27 = scalar_lea.vmem %s15585_s21, %s7638_s17 }
  0x30   : > { %v792_v0 = vld [vmem:[%s10078_s27] sm:$0xff] }
  0x31   : > { %v794_v1 = vld [vmem:[%s10078_s27 + $0x20] sm:$0xff]  ;;  %793 = vst [vmem:[%s10083_s28] sm:$0xff] %v792_v0 }
  0x32   : > { %v796_v2 = vld [vmem:[%s10078_s27 + $0x40] sm:$0xff]  ;;  %795 = vst [vmem:[%s10083_s28 + $0x8] sm:$0xff] %v794_v1 }
  0x33   : > { %v798_v3 = vld [vmem:[%s10078_s27 + $0x60] sm:$0xff]  ;;  %797 = vst [vmem:[%s10083_s28 + $0x10] sm:$0xff] %v796_v2 }
  0x34   : > { %v800_v4 = vld [vmem:[%s10078_s27 + $0x80] sm:$0xff]  ;;  %799 = vst [vmem:[%s10083_s28 + $0x18] sm:$0xff] %v798_v3 }
  0x35   : > { %v802_v5 = vld [vmem:[%s10078_s27 + $0xa0] sm:$0xff]  ;;  %801 = vst [vmem:[%s10083_s28 + $0x20] sm:$0xff] %v800_v4 }
  0x36   : > { %v804_v6 = vld [vmem:[%s10078_s27 + $0xc0] sm:$0xff]  ;;  %803 = vst [vmem:[%s10083_s28 + $0x28] sm:$0xff] %v802_v5 }
  0x37   : > { %v806_v7 = vld [vmem:[%s10078_s27 + $0xe0] sm:$0xff]  ;;  %805 = vst [vmem:[%s10083_s28 + $0x30] sm:$0xff] %v804_v6 }
  0x38   : > { %v808_v8 = vld [vmem:[%s10078_s27 + $0x100] sm:$0xff]  ;;  %807 = vst [vmem:[%s10083_s28 + $0x38] sm:$0xff] %v806_v7 }
  0x39   : > { %v810_v9 = vld [vmem:[%s10078_s27 + $0x120] sm:$0xff]  ;;  %809 = vst [vmem:[%s10083_s28 + $0x40] sm:$0xff] %v808_v8 }
  0x3a   : > { %v812_v10 = vld [vmem:[%s10078_s27 + $0x140] sm:$0xff]  ;;  %811 = vst [vmem:[%s10083_s28 + $0x48] sm:$0xff] %v810_v9 }
  0x3b   : > { %v814_v11 = vld [vmem:[%s10078_s27 + $0x160] sm:$0xff]  ;;  %813 = vst [vmem:[%s10083_s28 + $0x50] sm:$0xff] %v812_v10 }
  0x3c   : > { %v816_v12 = vld [vmem:[%s10078_s27 + $0x180] sm:$0xff]  ;;  %815 = vst [vmem:[%s10083_s28 + $0x58] sm:$0xff] %v814_v11 }
  0x3d   : > { %v818_v13 = vld [vmem:[%s10078_s27 + $0x1a0] sm:$0xff]  ;;  %817 = vst [vmem:[%s10083_s28 + $0x60] sm:$0xff] %v816_v12 }
  0x3e   : > { %v820_v14 = vld [vmem:[%s10078_s27 + $0x1c0] sm:$0xff]  ;;  %819 = vst [vmem:[%s10083_s28 + $0x68] sm:$0xff] %v818_v13 }
  0x3f   : > { %v822_v15 = vld [vmem:[%s10078_s27 + $0x1e0] sm:$0xff]  ;;  %821 = vst [vmem:[%s10083_s28 + $0x70] sm:$0xff] %v820_v14 }
  0x40   : > { %v824_v16 = vld [vmem:[%s10078_s27 + $0x200] sm:$0xff]  ;;  %823 = vst [vmem:[%s10083_s28 + $0x78] sm:$0xff] %v822_v15 }
  0x41   : > { %v826_v17 = vld [vmem:[%s10078_s27 + $0x220] sm:$0xff]  ;;  %825 = vst [vmem:[%s10083_s28 + $0x80] sm:$0xff] %v824_v16 }
  0x42   : > { %v828_v18 = vld [vmem:[%s10078_s27 + $0x240] sm:$0xff]  ;;  %827 = vst [vmem:[%s10083_s28 + $0x88] sm:$0xff] %v826_v17 }
  0x43   : > { %v830_v19 = vld [vmem:[%s10078_s27 + $0x260] sm:$0xff]  ;;  %829 = vst [vmem:[%s10083_s28 + $0x90] sm:$0xff] %v828_v18 }
  0x44   : > { %v832_v20 = vld [vmem:[%s10078_s27 + $0x280] sm:$0xff]  ;;  %831 = vst [vmem:[%s10083_s28 + $0x98] sm:$0xff] %v830_v19 }
  0x45   : > { %v834_v21 = vld [vmem:[%s10078_s27 + $0x2a0] sm:$0xff]  ;;  %833 = vst [vmem:[%s10083_s28 + $0xa0] sm:$0xff] %v832_v20 }
  0x46   : > { %v836_v22 = vld [vmem:[%s10078_s27 + $0x2c0] sm:$0xff]  ;;  %835 = vst [vmem:[%s10083_s28 + $0xa8] sm:$0xff] %v834_v21 }
  0x47   : > { %v838_v23 = vld [vmem:[%s10078_s27 + $0x2e0] sm:$0xff]  ;;  %837 = vst [vmem:[%s10083_s28 + $0xb0] sm:$0xff] %v836_v22 }
  0x48   : > { %v840_v24 = vld [vmem:[%s10078_s27 + $0x300] sm:$0xff]  ;;  %839 = vst [vmem:[%s10083_s28 + $0xb8] sm:$0xff] %v838_v23 }
  0x49   : > { %v842_v25 = vld [vmem:[%s10078_s27 + $0x320] sm:$0xff]  ;;  %841 = vst [vmem:[%s10083_s28 + $0xc0] sm:$0xff] %v840_v24 }
  0x4a   : > { %v844_v26 = vld [vmem:[%s10078_s27 + $0x340] sm:$0xff]  ;;  %843 = vst [vmem:[%s10083_s28 + $0xc8] sm:$0xff] %v842_v25 }
  0x4b   : > { %v846_v27 = vld [vmem:[%s10078_s27 + $0x360] sm:$0xff]  ;;  %845 = vst [vmem:[%s10083_s28 + $0xd0] sm:$0xff] %v844_v26 }
  0x4c   : > { %v848_v28 = vld [vmem:[%s10078_s27 + $0x380] sm:$0xff]  ;;  %847 = vst [vmem:[%s10083_s28 + $0xd8] sm:$0xff] %v846_v27 }
  0x4d   : > { %v850_v29 = vld [vmem:[%s10078_s27 + $0x3a0] sm:$0xff]  ;;  %849 = vst [vmem:[%s10083_s28 + $0xe0] sm:$0xff] %v848_v28 }
  0x4e   : > { %v852_v30 = vld [vmem:[%s10078_s27 + $0x3c0] sm:$0xff]  ;;  %851 = vst [vmem:[%s10083_s28 + $0xe8] sm:$0xff] %v850_v29 }
  0x4f   : > { %v854_v31 = vld [vmem:[%s10078_s27 + $0x3e0] sm:$0xff]  ;;  %853 = vst [vmem:[%s10083_s28 + $0xf0] sm:$0xff] %v852_v30 }
  0x50   : > { %v856_v32 = vld [vmem:[%s10078_s27 + $0x400] sm:$0xff]  ;;  %855 = vst [vmem:[%s10083_s28 + $0xf8] sm:$0xff] %v854_v31 }
  0x51   : > { %v858_v33 = vld [vmem:[%s10078_s27 + $0x420] sm:$0xff]  ;;  %857 = vst [vmem:[%s10083_s28 + $0x100] sm:$0xff] %v856_v32 }
  0x52   : > { %v860_v34 = vld [vmem:[%s10078_s27 + $0x440] sm:$0xff]  ;;  %859 = vst [vmem:[%s10083_s28 + $0x108] sm:$0xff] %v858_v33 }
  0x53   : > { %v862_v35 = vld [vmem:[%s10078_s27 + $0x460] sm:$0xff]  ;;  %861 = vst [vmem:[%s10083_s28 + $0x110] sm:$0xff] %v860_v34 }
  0x54   : > { %v864_v36 = vld [vmem:[%s10078_s27 + $0x480] sm:$0xff]  ;;  %863 = vst [vmem:[%s10083_s28 + $0x118] sm:$0xff] %v862_v35 }
  0x55   : > { %v866_v37 = vld [vmem:[%s10078_s27 + $0x4a0] sm:$0xff]  ;;  %865 = vst [vmem:[%s10083_s28 + $0x120] sm:$0xff] %v864_v36 }
  0x56   : > { %v868_v38 = vld [vmem:[%s10078_s27 + $0x4c0] sm:$0xff]  ;;  %867 = vst [vmem:[%s10083_s28 + $0x128] sm:$0xff] %v866_v37 }
  0x57   : > { %v870_v39 = vld [vmem:[%s10078_s27 + $0x4e0] sm:$0xff]  ;;  %869 = vst [vmem:[%s10083_s28 + $0x130] sm:$0xff] %v868_v38 }
  0x58   : > { %v872_v40 = vld [vmem:[%s10078_s27 + $0x500] sm:$0xff]  ;;  %871 = vst [vmem:[%s10083_s28 + $0x138] sm:$0xff] %v870_v39 }
  0x59   : > { %v874_v41 = vld [vmem:[%s10078_s27 + $0x520] sm:$0xff]  ;;  %873 = vst [vmem:[%s10083_s28 + $0x140] sm:$0xff] %v872_v40 }
  0x5a   : > { %v876_v42 = vld [vmem:[%s10078_s27 + $0x540] sm:$0xff]  ;;  %875 = vst [vmem:[%s10083_s28 + $0x148] sm:$0xff] %v874_v41 }
  0x5b   : > { %v878_v43 = vld [vmem:[%s10078_s27 + $0x560] sm:$0xff]  ;;  %877 = vst [vmem:[%s10083_s28 + $0x150] sm:$0xff] %v876_v42 }
  0x5c   : > { %v880_v44 = vld [vmem:[%s10078_s27 + $0x580] sm:$0xff]  ;;  %879 = vst [vmem:[%s10083_s28 + $0x158] sm:$0xff] %v878_v43 }
  0x5d   : > { %v882_v45 = vld [vmem:[%s10078_s27 + $0x5a0] sm:$0xff]  ;;  %881 = vst [vmem:[%s10083_s28 + $0x160] sm:$0xff] %v880_v44 }
  0x5e   : > { %v884_v46 = vld [vmem:[%s10078_s27 + $0x5c0] sm:$0xff]  ;;  %883 = vst [vmem:[%s10083_s28 + $0x168] sm:$0xff] %v882_v45 }
  0x5f   : > { %v886_v47 = vld [vmem:[%s10078_s27 + $0x5e0] sm:$0xff]  ;;  %885 = vst [vmem:[%s10083_s28 + $0x170] sm:$0xff] %v884_v46 }
  0x60   : > { %v888_v48 = vld [vmem:[%s10078_s27 + $0x600] sm:$0xff]  ;;  %887 = vst [vmem:[%s10083_s28 + $0x178] sm:$0xff] %v886_v47 }
  0x61   : > { %v890_v49 = vld [vmem:[%s10078_s27 + $0x620] sm:$0xff]  ;;  %889 = vst [vmem:[%s10083_s28 + $0x180] sm:$0xff] %v888_v48 }
  0x62   : > { %v892_v50 = vld [vmem:[%s10078_s27 + $0x640] sm:$0xff]  ;;  %891 = vst [vmem:[%s10083_s28 + $0x188] sm:$0xff] %v890_v49 }
  0x63   : > { %v894_v51 = vld [vmem:[%s10078_s27 + $0x660] sm:$0xff]  ;;  %893 = vst [vmem:[%s10083_s28 + $0x190] sm:$0xff] %v892_v50 }
  0x64   : > { %v896_v52 = vld [vmem:[%s10078_s27 + $0x680] sm:$0xff]  ;;  %895 = vst [vmem:[%s10083_s28 + $0x198] sm:$0xff] %v894_v51 }
  0x65   : > { %v898_v53 = vld [vmem:[%s10078_s27 + $0x6a0] sm:$0xff]  ;;  %897 = vst [vmem:[%s10083_s28 + $0x1a0] sm:$0xff] %v896_v52 }
  0x66   : > { %v900_v54 = vld [vmem:[%s10078_s27 + $0x6c0] sm:$0xff]  ;;  %899 = vst [vmem:[%s10083_s28 + $0x1a8] sm:$0xff] %v898_v53 }
  0x67   : > { %v902_v55 = vld [vmem:[%s10078_s27 + $0x6e0] sm:$0xff]  ;;  %901 = vst [vmem:[%s10083_s28 + $0x1b0] sm:$0xff] %v900_v54 }
  0x68   : > { %v904_v56 = vld [vmem:[%s10078_s27 + $0x700] sm:$0xff]  ;;  %903 = vst [vmem:[%s10083_s28 + $0x1b8] sm:$0xff] %v902_v55 }
  0x69   : > { %v906_v57 = vld [vmem:[%s10078_s27 + $0x720] sm:$0xff]  ;;  %905 = vst [vmem:[%s10083_s28 + $0x1c0] sm:$0xff] %v904_v56 }
  0x6a   : > { %v908_v58 = vld [vmem:[%s10078_s27 + $0x740] sm:$0xff]  ;;  %907 = vst [vmem:[%s10083_s28 + $0x1c8] sm:$0xff] %v906_v57 }
  0x6b   : > { %v910_v59 = vld [vmem:[%s10078_s27 + $0x760] sm:$0xff]  ;;  %909 = vst [vmem:[%s10083_s28 + $0x1d0] sm:$0xff] %v908_v58 }
  0x6c   : > { %v912_v60 = vld [vmem:[%s10078_s27 + $0x780] sm:$0xff]  ;;  %911 = vst [vmem:[%s10083_s28 + $0x1d8] sm:$0xff] %v910_v59 }
  0x6d   : > { %v914_v61 = vld [vmem:[%s10078_s27 + $0x7a0] sm:$0xff]  ;;  %913 = vst [vmem:[%s10083_s28 + $0x1e0] sm:$0xff] %v912_v60 }
  0x6e   : > { %v916_v62 = vld [vmem:[%s10078_s27 + $0x7c0] sm:$0xff]  ;;  %915 = vst [vmem:[%s10083_s28 + $0x1e8] sm:$0xff] %v914_v61 }
  0x6f   : > { %v918_v63 = vld [vmem:[%s10078_s27 + $0x7e0] sm:$0xff]  ;;  %917 = vst [vmem:[%s10083_s28 + $0x1f0] sm:$0xff] %v916_v62 }
  0x70   : > { %v920_v0 = vld [vmem:[%s10078_s27 + $0x800] sm:$0xff]  ;;  %919 = vst [vmem:[%s10083_s28 + $0x1f8] sm:$0xff] %v918_v63 }
  0x71   : > { %v922_v1 = vld [vmem:[%s10078_s27 + $0x820] sm:$0xff]  ;;  %921 = vst [vmem:[%s10083_s28 + $0x200] sm:$0xff] %v920_v0 }
  0x72   : > { %v924_v2 = vld [vmem:[%s10078_s27 + $0x840] sm:$0xff]  ;;  %923 = vst [vmem:[%s10083_s28 + $0x208] sm:$0xff] %v922_v1 }
  0x73   : > { %v926_v3 = vld [vmem:[%s10078_s27 + $0x860] sm:$0xff]  ;;  %925 = vst [vmem:[%s10083_s28 + $0x210] sm:$0xff] %v924_v2 }
  0x74   : > { %v928_v4 = vld [vmem:[%s10078_s27 + $0x880] sm:$0xff]  ;;  %927 = vst [vmem:[%s10083_s28 + $0x218] sm:$0xff] %v926_v3 }
  0x75   : > { %v930_v5 = vld [vmem:[%s10078_s27 + $0x8a0] sm:$0xff]  ;;  %929 = vst [vmem:[%s10083_s28 + $0x220] sm:$0xff] %v928_v4 }
  0x76   : > { %v932_v6 = vld [vmem:[%s10078_s27 + $0x8c0] sm:$0xff]  ;;  %931 = vst [vmem:[%s10083_s28 + $0x228] sm:$0xff] %v930_v5 }
  0x77   : > { %v934_v7 = vld [vmem:[%s10078_s27 + $0x8e0] sm:$0xff]  ;;  %933 = vst [vmem:[%s10083_s28 + $0x230] sm:$0xff] %v932_v6 }
  0x78   : > { %v936_v8 = vld [vmem:[%s10078_s27 + $0x900] sm:$0xff]  ;;  %935 = vst [vmem:[%s10083_s28 + $0x238] sm:$0xff] %v934_v7 }
  0x79   : > { %v938_v9 = vld [vmem:[%s10078_s27 + $0x920] sm:$0xff]  ;;  %937 = vst [vmem:[%s10083_s28 + $0x240] sm:$0xff] %v936_v8 }
  0x7a   : > { %v940_v10 = vld [vmem:[%s10078_s27 + $0x940] sm:$0xff]  ;;  %939 = vst [vmem:[%s10083_s28 + $0x248] sm:$0xff] %v938_v9 }
  0x7b   : > { %v942_v11 = vld [vmem:[%s10078_s27 + $0x960] sm:$0xff]  ;;  %941 = vst [vmem:[%s10083_s28 + $0x250] sm:$0xff] %v940_v10 }
  0x7c   : > { %v944_v12 = vld [vmem:[%s10078_s27 + $0x980] sm:$0xff]  ;;  %943 = vst [vmem:[%s10083_s28 + $0x258] sm:$0xff] %v942_v11 }
  0x7d   : > { %v946_v13 = vld [vmem:[%s10078_s27 + $0x9a0] sm:$0xff]  ;;  %945 = vst [vmem:[%s10083_s28 + $0x260] sm:$0xff] %v944_v12 }
  0x7e   : > { %v948_v14 = vld [vmem:[%s10078_s27 + $0x9c0] sm:$0xff]  ;;  %947 = vst [vmem:[%s10083_s28 + $0x268] sm:$0xff] %v946_v13 }
  0x7f   : > { %v950_v15 = vld [vmem:[%s10078_s27 + $0x9e0] sm:$0xff]  ;;  %949 = vst [vmem:[%s10083_s28 + $0x270] sm:$0xff] %v948_v14 }
  0x80   : > { %v952_v16 = vld [vmem:[%s10078_s27 + $0xa00] sm:$0xff]  ;;  %951 = vst [vmem:[%s10083_s28 + $0x278] sm:$0xff] %v950_v15 }
  0x81   : > { %v954_v17 = vld [vmem:[%s10078_s27 + $0xa20] sm:$0xff]  ;;  %953 = vst [vmem:[%s10083_s28 + $0x280] sm:$0xff] %v952_v16 }
  0x82   : > { %v956_v18 = vld [vmem:[%s10078_s27 + $0xa40] sm:$0xff]  ;;  %955 = vst [vmem:[%s10083_s28 + $0x288] sm:$0xff] %v954_v17 }
  0x83   : > { %v958_v19 = vld [vmem:[%s10078_s27 + $0xa60] sm:$0xff]  ;;  %957 = vst [vmem:[%s10083_s28 + $0x290] sm:$0xff] %v956_v18 }
  0x84   : > { %v960_v20 = vld [vmem:[%s10078_s27 + $0xa80] sm:$0xff]  ;;  %959 = vst [vmem:[%s10083_s28 + $0x298] sm:$0xff] %v958_v19 }
  0x85   : > { %v962_v21 = vld [vmem:[%s10078_s27 + $0xaa0] sm:$0xff]  ;;  %961 = vst [vmem:[%s10083_s28 + $0x2a0] sm:$0xff] %v960_v20 }
  0x86   : > { %v964_v22 = vld [vmem:[%s10078_s27 + $0xac0] sm:$0xff]  ;;  %963 = vst [vmem:[%s10083_s28 + $0x2a8] sm:$0xff] %v962_v21 }
  0x87   : > { %v966_v23 = vld [vmem:[%s10078_s27 + $0xae0] sm:$0xff]  ;;  %965 = vst [vmem:[%s10083_s28 + $0x2b0] sm:$0xff] %v964_v22 }
  0x88   : > { %v968_v24 = vld [vmem:[%s10078_s27 + $0xb00] sm:$0xff]  ;;  %967 = vst [vmem:[%s10083_s28 + $0x2b8] sm:$0xff] %v966_v23 }
  0x89   : > { %v970_v25 = vld [vmem:[%s10078_s27 + $0xb20] sm:$0xff]  ;;  %969 = vst [vmem:[%s10083_s28 + $0x2c0] sm:$0xff] %v968_v24 }
  0x8a   : > { %v972_v26 = vld [vmem:[%s10078_s27 + $0xb40] sm:$0xff]  ;;  %971 = vst [vmem:[%s10083_s28 + $0x2c8] sm:$0xff] %v970_v25 }
  0x8b   : > { %v974_v27 = vld [vmem:[%s10078_s27 + $0xb60] sm:$0xff]  ;;  %973 = vst [vmem:[%s10083_s28 + $0x2d0] sm:$0xff] %v972_v26 }
  0x8c   : > { %v976_v28 = vld [vmem:[%s10078_s27 + $0xb80] sm:$0xff]  ;;  %975 = vst [vmem:[%s10083_s28 + $0x2d8] sm:$0xff] %v974_v27 }
  0x8d   : > { %v978_v29 = vld [vmem:[%s10078_s27 + $0xba0] sm:$0xff]  ;;  %977 = vst [vmem:[%s10083_s28 + $0x2e0] sm:$0xff] %v976_v28 }
  0x8e   : > { %v980_v30 = vld [vmem:[%s10078_s27 + $0xbc0] sm:$0xff]  ;;  %979 = vst [vmem:[%s10083_s28 + $0x2e8] sm:$0xff] %v978_v29 }
  0x8f   : > { %v982_v31 = vld [vmem:[%s10078_s27 + $0xbe0] sm:$0xff]  ;;  %981 = vst [vmem:[%s10083_s28 + $0x2f0] sm:$0xff] %v980_v30 }
  0x90   : > { %v984_v32 = vld [vmem:[%s10078_s27 + $0xc00] sm:$0xff]  ;;  %983 = vst [vmem:[%s10083_s28 + $0x2f8] sm:$0xff] %v982_v31 }
  0x91   : > { %v986_v33 = vld [vmem:[%s10078_s27 + $0xc20] sm:$0xff]  ;;  %985 = vst [vmem:[%s10083_s28 + $0x300] sm:$0xff] %v984_v32 }
  0x92   : > { %v988_v34 = vld [vmem:[%s10078_s27 + $0xc40] sm:$0xff]  ;;  %987 = vst [vmem:[%s10083_s28 + $0x308] sm:$0xff] %v986_v33 }
  0x93   : > { %v990_v35 = vld [vmem:[%s10078_s27 + $0xc60] sm:$0xff]  ;;  %989 = vst [vmem:[%s10083_s28 + $0x310] sm:$0xff] %v988_v34 }
  0x94   : > { %v992_v36 = vld [vmem:[%s10078_s27 + $0xc80] sm:$0xff]  ;;  %991 = vst [vmem:[%s10083_s28 + $0x318] sm:$0xff] %v990_v35 }
  0x95   : > { %v994_v37 = vld [vmem:[%s10078_s27 + $0xca0] sm:$0xff]  ;;  %993 = vst [vmem:[%s10083_s28 + $0x320] sm:$0xff] %v992_v36 }
  0x96   : > { %v996_v38 = vld [vmem:[%s10078_s27 + $0xcc0] sm:$0xff]  ;;  %995 = vst [vmem:[%s10083_s28 + $0x328] sm:$0xff] %v994_v37 }
  0x97   : > { %v998_v39 = vld [vmem:[%s10078_s27 + $0xce0] sm:$0xff]  ;;  %997 = vst [vmem:[%s10083_s28 + $0x330] sm:$0xff] %v996_v38 }
  0x98   : > { %v1000_v40 = vld [vmem:[%s10078_s27 + $0xd00] sm:$0xff]  ;;  %999 = vst [vmem:[%s10083_s28 + $0x338] sm:$0xff] %v998_v39 }
  0x99   : > { %v1002_v41 = vld [vmem:[%s10078_s27 + $0xd20] sm:$0xff]  ;;  %1001 = vst [vmem:[%s10083_s28 + $0x340] sm:$0xff] %v1000_v40 }
  0x9a   : > { %v1004_v42 = vld [vmem:[%s10078_s27 + $0xd40] sm:$0xff]  ;;  %1003 = vst [vmem:[%s10083_s28 + $0x348] sm:$0xff] %v1002_v41 }
  0x9b   : > { %v1006_v43 = vld [vmem:[%s10078_s27 + $0xd60] sm:$0xff]  ;;  %1005 = vst [vmem:[%s10083_s28 + $0x350] sm:$0xff] %v1004_v42 }
  0x9c   : > { %v1008_v44 = vld [vmem:[%s10078_s27 + $0xd80] sm:$0xff]  ;;  %1007 = vst [vmem:[%s10083_s28 + $0x358] sm:$0xff] %v1006_v43 }
  0x9d   : > { %v1010_v45 = vld [vmem:[%s10078_s27 + $0xda0] sm:$0xff]  ;;  %1009 = vst [vmem:[%s10083_s28 + $0x360] sm:$0xff] %v1008_v44 }
  0x9e   : > { %v1012_v46 = vld [vmem:[%s10078_s27 + $0xdc0] sm:$0xff]  ;;  %1011 = vst [vmem:[%s10083_s28 + $0x368] sm:$0xff] %v1010_v45 }
  0x9f   : > { %v1014_v47 = vld [vmem:[%s10078_s27 + $0xde0] sm:$0xff]  ;;  %1013 = vst [vmem:[%s10083_s28 + $0x370] sm:$0xff] %v1012_v46 }
  0xa0   : > { %v1016_v48 = vld [vmem:[%s10078_s27 + $0xe00] sm:$0xff]  ;;  %1015 = vst [vmem:[%s10083_s28 + $0x378] sm:$0xff] %v1014_v47 }
  0xa1   : > { %v1018_v49 = vld [vmem:[%s10078_s27 + $0xe20] sm:$0xff]  ;;  %1017 = vst [vmem:[%s10083_s28 + $0x380] sm:$0xff] %v1016_v48 }
  0xa2   : > { %v1020_v50 = vld [vmem:[%s10078_s27 + $0xe40] sm:$0xff]  ;;  %1019 = vst [vmem:[%s10083_s28 + $0x388] sm:$0xff] %v1018_v49 }
  0xa3   : > { %v1022_v51 = vld [vmem:[%s10078_s27 + $0xe60] sm:$0xff]  ;;  %1021 = vst [vmem:[%s10083_s28 + $0x390] sm:$0xff] %v1020_v50 }
  0xa4   : > { %v1024_v52 = vld [vmem:[%s10078_s27 + $0xe80] sm:$0xff]  ;;  %1023 = vst [vmem:[%s10083_s28 + $0x398] sm:$0xff] %v1022_v51 }
  0xa5   : > { %v1026_v53 = vld [vmem:[%s10078_s27 + $0xea0] sm:$0xff]  ;;  %1025 = vst [vmem:[%s10083_s28 + $0x3a0] sm:$0xff] %v1024_v52 }
  0xa6   : > { %v1028_v54 = vld [vmem:[%s10078_s27 + $0xec0] sm:$0xff]  ;;  %1027 = vst [vmem:[%s10083_s28 + $0x3a8] sm:$0xff] %v1026_v53 }
  0xa7   : > { %v1030_v55 = vld [vmem:[%s10078_s27 + $0xee0] sm:$0xff]  ;;  %1029 = vst [vmem:[%s10083_s28 + $0x3b0] sm:$0xff] %v1028_v54 }
  0xa8   : > { %v1032_v56 = vld [vmem:[%s10078_s27 + $0xf00] sm:$0xff]  ;;  %1031 = vst [vmem:[%s10083_s28 + $0x3b8] sm:$0xff] %v1030_v55 }
  0xa9   : > { %v1034_v57 = vld [vmem:[%s10078_s27 + $0xf20] sm:$0xff]  ;;  %1033 = vst [vmem:[%s10083_s28 + $0x3c0] sm:$0xff] %v1032_v56 }
  0xaa   : > { %v1036_v58 = vld [vmem:[%s10078_s27 + $0xf40] sm:$0xff]  ;;  %1035 = vst [vmem:[%s10083_s28 + $0x3c8] sm:$0xff] %v1034_v57 }
  0xab   : > { %v1038_v59 = vld [vmem:[%s10078_s27 + $0xf60] sm:$0xff]  ;;  %1037 = vst [vmem:[%s10083_s28 + $0x3d0] sm:$0xff] %v1036_v58 }
  0xac   : > { %v1040_v60 = vld [vmem:[%s10078_s27 + $0xf80] sm:$0xff]  ;;  %1039 = vst [vmem:[%s10083_s28 + $0x3d8] sm:$0xff] %v1038_v59 }
  0xad   : > { %v1042_v61 = vld [vmem:[%s10078_s27 + $0xfa0] sm:$0xff]  ;;  %1041 = vst [vmem:[%s10083_s28 + $0x3e0] sm:$0xff] %v1040_v60 }
  0xae   : > { %v1044_v62 = vld [vmem:[%s10078_s27 + $0xfc0] sm:$0xff]  ;;  %1043 = vst [vmem:[%s10083_s28 + $0x3e8] sm:$0xff] %v1042_v61 }
  0xaf   : > { %v1046_v63 = vld [vmem:[%s10078_s27 + $0xfe0] sm:$0xff]  ;;  %1045 = vst [vmem:[%s10083_s28 + $0x3f0] sm:$0xff] %v1044_v62 }
  0xb0   : > { %v1048_v0 = vld [vmem:[%s10078_s27 + $0x1000] sm:$0xff]  ;;  %1047 = vst [vmem:[%s10083_s28 + $0x3f8] sm:$0xff] %v1046_v63 }
  0xb1   : > { %1049 = vst [vmem:[%s10083_s28 + $0x400] sm:$0xff] %v1048_v0 }
  0xb2 PF: > { %p7639_p12 = scmp.ge.s32.totalorder %s9898_s30, 1  ;;  %p1054_p13 = scmp.lt.s32.totalorder %s9898_s30, 9 }
  0xb4   : > { %p1055_p0 = pnand %p7639_p12, %p1054_p13 }
  0xb6   : > { %1058 = sbr.rel (%p1055_p0) target bundleno = 3159 (0xc57), region = 122 }
  0xbb   : > { %s15586_s2 = sld [smem:[#allocation111_spill]]  ;;  %s10352_s19 = sand.u32 1, %s9874_s25   ;;  %v9900_v4 = vmov 0   ;;  %vm1332_vm0 = vcmask 1043456   ;;  %vm1319_vm1 = vcmask 64512   ;;  %v2468_v48 = vld [vmem:[%s15544_s10 + $0x70] sm:$0xff] }
  0xbc   : > { %9803 = vset.pattern.permute.xlu2 %v9900_v4  ;;  %9802 = vset.pattern.permute.xlu1 %v9900_v4  ;;  %s9724_s1 = smul.u32 1032, %s10352_s19  ;;  %s15588_s4 = sld [smem:[#allocation113_spill]]  ;;  %v2469_v49 = vld [vmem:[%s15544_s10 + $0x78] sm:$0xff]  ;;  %v2467_v51 = vld [vmem:[%s15544_s10 + $0x68] sm:$0xff]  ;;  %v2464_v52 = vld [vmem:[%s15544_s10 + $0x50] sm:$0xff]  ;;  %vm1529_vm2 = vcmask 523264  }
  0xbd   : > { %9801 = vset.pattern.permute.xlu0 %v9900_v4  ;;  %s15589_s6 = sld [smem:[#allocation115_spill]]  ;;  %v2466_v53 = vld [vmem:[%s15544_s10 + $0x60] sm:$0xff]  ;;  %v2463_v55 = vld [vmem:[%s15544_s10 + $0x48] sm:$0xff]  ;;  %v2465_v56 = vld [vmem:[%s15544_s10 + $0x58] sm:$0xff]  ;;  %s7640_s20 = sshll.u32 %s10352_s19, 8  ;;  %vm4375_vm3 = vcmask 1040384  }
  0xbe   : > { %s10355_s21 = scalar_lea.vmem [#allocation2], %s9724_s1  ;;  %s15587_s1 = sld [smem:[#allocation110_spill]]  ;;  %v2462_v54 = vld [vmem:[%s15544_s10 + $0x40] sm:$0xff]  ;;  %v2461_v57 = vld [vmem:[%s15544_s10 + $0x38] sm:$0xff]  ;;  %v2460_v59 = vld [vmem:[%s15544_s10 + $0x30] sm:$0xff]  ;;  %vm4376_vm4 = vcmask 1041408  }
  0xbf   : > { %v10358_v5 = vld [vmem:[%s10355_s21] sm:$0xff]  ;;  %v2456_v60 = vld [vmem:[%s15544_s10 + $0x10] sm:$0xff]  ;;  %v2457_v61 = vld [vmem:[%s15544_s10 + $0x18] sm:$0xff]  ;;  %s15590_s3 = sld [smem:[#allocation112_spill]]  ;;  %s12339_s18 = scalar_lea.vmem [#allocation3], %s7640_s20  ;;  %vm4278_vm5 = vcmask 23552  }
  0xc0   : > { %v1242_v6 = vpack.c.bf16 %v10358_v5, %v10358_v5  ;;  %v2458_v58 = vld [vmem:[%s15544_s10 + $0x20] sm:$0xff]  ;;  %v2459_v62 = vld [vmem:[%s15544_s10 + $0x28] sm:$0xff]  ;;  %v2500_v4 = vld [vmem:[%s15544_s10 + $0x170] sm:$0xff]  ;;  %s15608_s5 = sld [smem:[#allocation114_spill]]  ;;  %s7548_s28 = sshll.u32 %s12339_s18, 4  ;;  %s7549_s28 = int_to_ptr.vmem [resolvable:$true] %s7548_s28 }
  0xc1   : > { %v1257_v1 = vld [vmem:[%s15586_s2 + $0x30] sm:$0xff]  ;;  %v1255_v2 = vld [vmem:[%s15586_s2 + $0x20] sm:$0xff]  ;;  %v1256_v8 = vld [vmem:[%s15586_s2 + $0x28] sm:$0xff]  ;;  %s15973_s17 = sld [smem:[#allocation8_spill]] }
  0xc2   : > { %v1253_v3 = vld [vmem:[%s15586_s2 + $0x10] sm:$0xff]  ;;  %1281 = vperm.xlu1 %9802, %v1255_v2   ;;  %1291 = vperm.xlu0 %9801, %v1257_v1   ;;  %v1334_v7 = vsel %vm1332_vm0, %v1242_v6, 0  ;;  %v1258_v9 = vld [vmem:[%s15586_s2 + $0x38] sm:$0xff]  ;;  %v1252_v12 = vld [vmem:[%s15586_s2 + $0x8] sm:$0xff]  ;;  %s15974_s24 = sld [smem:[#allocation7_spill]] }
  0xc3   : > { %1271 = vperm.xlu2 %9803, %v1253_v3   ;;  %1343 = vmatpush.bf16.msra.mxu0 %v1334_v7  ;;  %v1254_v10 = vld [vmem:[%s15586_s2 + $0x18] sm:$0xff]  ;;  %v1403_v13 = vld [vmem:[%s15588_s4 + $0x70] sm:$0xff]  ;;  %v1251_v14 = vld [vmem:[%s15586_s2] sm:$0xff]  ;;  %s15975_s2 = sld [smem:[#allocation117_spill]] }
  0xc4   : > { %v9306_v11 = vld [vmem:[%s15587_s1] sm:$0xff]  ;;  %v1402_v16 = vld [vmem:[%s15588_s4 + $0x68] sm:$0xff]  ;;  %v1404_v17 = vld [vmem:[%s15588_s4 + $0x78] sm:$0xff] }
  0xc5   : > { %v1401_v15 = vld [vmem:[%s15588_s4 + $0x60] sm:$0xff]  ;;  %v9307_v18 = vld [vmem:[%s15587_s1 + $0x8] sm:$0xff]  ;;  %v1400_v19 = vld [vmem:[%s15588_s4 + $0x58] sm:$0xff] }
  0xc6   : > { %7657 = vmatmul.msk.bf16.vlgmr.msra.gmra.mxu0 %vm1319_vm1, %v9306_v11  ;;  %v1397_v20 = vld [vmem:[%s15588_s4 + $0x40] sm:$0xff]  ;;  %v1399_v21 = vld [vmem:[%s15588_s4 + $0x50] sm:$0xff]  ;;  %v1396_v23 = vld [vmem:[%s15588_s4 + $0x38] sm:$0xff] }
  0xc7   : > { %v1395_v22 = vld [vmem:[%s15588_s4 + $0x30] sm:$0xff]  ;;  %v1398_v24 = vld [vmem:[%s15588_s4 + $0x48] sm:$0xff]  ;;  %v1393_v28 = vld [vmem:[%s15588_s4 + $0x20] sm:$0xff]  ;;  %s9302_s20 = sshll.u32 %s15973_s17, 7  ;;  %s7535_s17 = scalar_lea.sflag [#allocation4], %s10352_s19 }
  0xc8   : > { %v9308_v25 = vld [vmem:[%s15587_s1 + $0x10] sm:$0xff]  ;;  %v1394_v26 = vld [vmem:[%s15588_s4 + $0x28] sm:$0xff]  ;;  %v1389_v29 = vld [vmem:[%s15588_s4] sm:$0xff]  ;;  %s7545_s22 = sadd.s32 %s15974_s24, %s9302_s20 }
  0xc9   : > { %v1391_v27 = vld [vmem:[%s15588_s4 + $0x10] sm:$0xff]  ;;  %v1390_v30 = vld [vmem:[%s15588_s4 + $0x8] sm:$0xff]  ;;  %v1392_v31 = vld [vmem:[%s15588_s4 + $0x18] sm:$0xff]  ;;  %s9303_s23 = sshll.u32 %s7545_s22, 3 }
  0xca   : > { %1286 = vperm.xlu1 %9802, %v1256_v8   ;;  %1296 = vperm.xlu0 %9801, %v1258_v9   ;;  %v9309_v32 = vld [vmem:[%s15587_s1 + $0x18] sm:$0xff]  ;;  %v1647_v34 = vld [vmem:[%s15589_s6 + $0x60] sm:$0xff]  ;;  %v1649_v35 = vld [vmem:[%s15589_s6 + $0x70] sm:$0xff]  ;;  %s7547_s27 = scalar_lea.hbm %s15975_s2, %s9303_s23  ;;  %s9824_s23 = scalar_lea.hbm %s15975_s2, 2048 }
  0xcb   : > { %1276 = vperm.xlu2 %9803, %v1254_v10   ;;  %v1650_v33 = vld [vmem:[%s15589_s6 + $0x78] sm:$0xff]  ;;  %v1645_v36 = vld [vmem:[%s15589_s6 + $0x50] sm:$0xff]  ;;  %v1648_v38 = vld [vmem:[%s15589_s6 + $0x68] sm:$0xff] }
  0xcc   : > { %v1646_v37 = vld [vmem:[%s15589_s6 + $0x58] sm:$0xff]  ;;  %v1644_v39 = vld [vmem:[%s15589_s6 + $0x48] sm:$0xff]  ;;  %v1641_v40 = vld [vmem:[%s15589_s6 + $0x30] sm:$0xff] }
  0xcd   : > { %v1643_v41 = vld [vmem:[%s15589_s6 + $0x40] sm:$0xff]  ;;  %v1640_v43 = vld [vmem:[%s15589_s6 + $0x28] sm:$0xff]  ;;  %v1642_v44 = vld [vmem:[%s15589_s6 + $0x38] sm:$0xff] }
  0xce   : > { %v1639_v42 = vld [vmem:[%s15589_s6 + $0x20] sm:$0xff]  ;;  %v1638_v45 = vld [vmem:[%s15589_s6 + $0x18] sm:$0xff]  ;;  %v1637_v47 = vld [vmem:[%s15589_s6 + $0x10] sm:$0xff] }
  0xcf   : > { %v1635_v46 = vld [vmem:[%s15589_s6] sm:$0xff]  ;;  %v1636_v50 = vld [vmem:[%s15589_s6 + $0x8] sm:$0xff]  ;;  %v2484_v1 = vld [vmem:[%s15544_s10 + $0xf0] sm:$0xff] }
  0xd0   : > { %v2455_v0 = vld [vmem:[%s15544_s10 + $0x8] sm:$0xff]  ;;  %v2454_v2 = vld [vmem:[%s15544_s10] sm:$0xff]  ;;  %v2501_v6 = vld [vmem:[%s15544_s10 + $0x178] sm:$0xff] }
  0xd1   : > { %v2485_v7 = vld [vmem:[%s15544_s10 + $0xf8] sm:$0xff]  ;;  %v2483_v9 = vld [vmem:[%s15544_s10 + $0xe8] sm:$0xff]  ;;  %v2498_v10 = vld [vmem:[%s15544_s10 + $0x160] sm:$0xff] }
  0xd2   : > { %1266 = vperm.xlu1 %9802, %v1252_v12   ;;  %1261 = vperm.xlu0 %9801, %v1251_v14   ;;  %v2482_v11 = vld [vmem:[%s15544_s10 + $0xe0] sm:$0xff]  ;;  %v2481_v14 = vld [vmem:[%s15544_s10 + $0xd8] sm:$0xff] }
  0xd3   : > { %1481 = vperm.xlu2 %9803, %v1403_v13   ;;  %v2480_v13 = vld [vmem:[%s15544_s10 + $0xd0] sm:$0xff] }
  0xd6   : > { %7658 = vmatmul.msk.bf16.gmra.mxu0 %vm1319_vm1, %v9307_v18  ;;  %v2516_v18 = vld [vmem:[%s15544_s10 + $0x1f0] sm:$0xff] }
  0xda   : > { %1471 = vperm.xlu1 %9802, %v1401_v15   ;;  %1486 = vperm.xlu0 %9801, %v1404_v17   ;;  %v2499_v15 = vld [vmem:[%s15544_s10 + $0x168] sm:$0xff]  ;;  %v2497_v17 = vld [vmem:[%s15544_s10 + $0x158] sm:$0xff] }
  0xdb   : > { %1476 = vperm.xlu2 %9803, %v1402_v16  }
  0xe2   : > { %1466 = vperm.xlu1 %9802, %v1400_v19   ;;  %1461 = vperm.xlu0 %9801, %v1399_v21   ;;  %v2496_v19 = vld [vmem:[%s15544_s10 + $0x150] sm:$0xff] }
  0xe3   : > { %1451 = vperm.xlu2 %9803, %v1397_v20  }
  0xe6   : > { %7659 = vmatmul.msk.bf16.gmra.mxu0 %vm1319_vm1, %v9308_v25  ;;  %v2517_v25 = vld [vmem:[%s15544_s10 + $0x1f8] sm:$0xff] }
  0xea   : > { %1441 = vperm.xlu1 %9802, %v1395_v22   ;;  %1456 = vperm.xlu0 %9801, %v1398_v24   ;;  %v2479_v24 = vld [vmem:[%s15544_s10 + $0xc8] sm:$0xff] }
  0xeb   : > { %1446 = vperm.xlu2 %9803, %v1396_v23   ;;  %v2478_v23 = vld [vmem:[%s15544_s10 + $0xc0] sm:$0xff] }
  0xf2   : > { %1436 = vperm.xlu1 %9802, %v1394_v26   ;;  %1431 = vperm.xlu0 %9801, %v1393_v28  }
  0xf3   : > { %1421 = vperm.xlu2 %9803, %v1391_v27  }
  0xf6   : > { %7660 = vmatmul.msk.bf16.gmra.mxu0 %vm1319_vm1, %v9309_v32  ;;  %v2494_v32 = vld [vmem:[%s15544_s10 + $0x140] sm:$0xff] }
  0xfa   : > { %1411 = vperm.xlu1 %9802, %v1389_v29   ;;  %1426 = vperm.xlu0 %9801, %v1392_v31   ;;  %v2495_v29 = vld [vmem:[%s15544_s10 + $0x148] sm:$0xff]  ;;  %v2514_v31 = vld [vmem:[%s15544_s10 + $0x1e0] sm:$0xff] }
  0xfb   : > { %1416 = vperm.xlu2 %9803, %v1390_v30  }
 0x102   : > { %1736 = vperm.xlu1 %9802, %v1650_v33   ;;  %1731 = vperm.xlu0 %9801, %v1649_v35  }
 0x103   : > { %1721 = vperm.xlu2 %9803, %v1647_v34  }
 0x10a   : > { %1711 = vperm.xlu1 %9802, %v1645_v36   ;;  %1726 = vperm.xlu0 %9801, %v1648_v38  }
 0x10b   : > { %1716 = vperm.xlu2 %9803, %v1646_v37  }
 0x112   : > { %1706 = vperm.xlu1 %9802, %v1644_v39   ;;  %1701 = vperm.xlu0 %9801, %v1643_v41  }
 0x113   : > { %1691 = vperm.xlu2 %9803, %v1641_v40  }
 0x11a   : > { %1681 = vperm.xlu1 %9802, %v1639_v42   ;;  %1696 = vperm.xlu0 %9801, %v1642_v44   ;;  %v2476_v44 = vld [vmem:[%s15544_s10 + $0xb0] sm:$0xff] }
 0x11b   : > { %1686 = vperm.xlu2 %9803, %v1640_v43  }
 0x11d   : > { %v1272_v27 = vpop.permute.xlu2 %1271 }
 0x122   : > { %1676 = vperm.xlu1 %9802, %v1638_v45   ;;  %1671 = vperm.xlu0 %9801, %v1637_v47   ;;  %v2477_v47 = vld [vmem:[%s15544_s10 + $0xb8] sm:$0xff] }
 0x123   : > { %1661 = vperm.xlu2 %9803, %v1635_v46  }
 0x125   : > { %v1277_v40 = vpop.permute.xlu2 %1276 }
 0x12a   : > { %2590 = vperm.xlu1 %9802, %v2468_v48   ;;  %1666 = vperm.xlu0 %9801, %v1636_v50   ;;  %v2515_v48 = vld [vmem:[%s15544_s10 + $0x1e8] sm:$0xff] }
 0x12b   : > { %2595 = vperm.xlu2 %9803, %v2469_v49  }
 0x132   : > { %2585 = vperm.xlu1 %9802, %v2467_v51   ;;  %2580 = vperm.xlu0 %9801, %v2466_v53  }
 0x133   : > { %2570 = vperm.xlu2 %9803, %v2464_v52  }
 0x134   : > { %v1282_v21 = vpop.permute.xlu1 %1281  ;;  %v1292_v22 = vpop.permute.xlu0 %1291 }
 0x13a   : > { %2560 = vperm.xlu1 %9802, %v2462_v54   ;;  %2575 = vperm.xlu0 %9801, %v2465_v56  }
 0x13b   : > { %2565 = vperm.xlu2 %9803, %v2463_v55  }
 0x13c   : > { %v1287_v28 = vpop.permute.xlu1 %1286  ;;  %v1297_v33 = vpop.permute.xlu0 %1296 }
 0x142   : > { %2555 = vperm.xlu1 %9802, %v2461_v57   ;;  %2550 = vperm.xlu0 %9801, %v2460_v59   ;;  %v1128_v59 = vld [vmem:[%s10355_s21 + $0x78] sm:$0xff] }
 0x143   : > { %2540 = vperm.xlu2 %9803, %v2458_v58   ;;  %v10531_v63 = vpop.f32.mrf.mxu0  ;;  %v1127_v58 = vld [vmem:[%s10355_s21 + $0x70] sm:$0xff] }
 0x144   : > { %v1267_v49 = vpop.permute.xlu1 %1266  ;;  %v1262_v53 = vpop.permute.xlu0 %1261 }
 0x145   : > { %v1346_v54 = vadd.f32 %v10531_v63, %v1262_v53  ;;  %v2492_v63 = vld [vmem:[%s15544_s10 + $0x130] sm:$0xff] }
 0x14a   : > { %2530 = vperm.xlu1 %9802, %v2456_v60   ;;  %2545 = vperm.xlu0 %9801, %v2459_v62   ;;  %v2493_v60 = vld [vmem:[%s15544_s10 + $0x138] sm:$0xff]  ;;  %v2512_v62 = vld [vmem:[%s15544_s10 + $0x1d0] sm:$0xff] }
 0x14b   : > { %2535 = vperm.xlu2 %9803, %v2457_v61   ;;  %v10542_v3 = vpop.f32.mrf.mxu0  ;;  %v1365_v61 = vmax.f32 %v1346_v54, 0.0  ;;  %v2506_v54 = vld [vmem:[%s15544_s10 + $0x1a0] sm:$0xff] }
 0x14c   : > { %v1348_v50 = vadd.f32 %v10542_v3, %v1267_v49  ;;  %v1126_v3 = vld [vmem:[%s10355_s21 + $0x68] sm:$0xff] }
 0x14d   : > { %v1142_v49 = vld [vmem:[%s10355_s21 + $0xe8] sm:$0xff] }
 0x14e   : > { %v1366_v56 = vmax.f32 %v1348_v50, 0.0 }
 0x152   : > { %2525 = vperm.xlu1 %9802, %v2455_v0   ;;  %2520 = vperm.xlu0 %9801, %v2454_v2   ;;  %v2076_v0 = vpack.c.bf16 %v1128_v59, %v1127_v58  ;;  %v1125_v2 = vld [vmem:[%s10355_s21 + $0x60] sm:$0xff] }
 0x153   : > { %2670 = vperm.xlu2 %9803, %v2484_v1   ;;  %v1350_v8 = vpop.f32.mrf.mxu0  ;;  %v1405_v1 = vpack.c.bf16 %v1366_v56, %v1365_v61  ;;  %v2486_v56 = vld [vmem:[%s15544_s10 + $0x100] sm:$0xff]  ;;  %v9347_v58 = vld [vmem:[%s15543_s9 + $0x68] sm:$0xf0] }
 0x154   : > { %v1351_v45 = vadd.f32 %v1350_v8, %v1272_v27  ;;  %v1123_v8 = vld [vmem:[%s10355_s21 + $0x50] sm:$0xff]  ;;  %v1137_v59 = vld [vmem:[%s10355_s21 + $0xc0] sm:$0xff] }
 0x156   : > { %v1367_v55 = vmax.f32 %v1351_v45, 0.0  ;;  %v2470_v45 = vld [vmem:[%s15544_s10 + $0x80] sm:$0xff] }
 0x15a   : > { %2750 = vperm.xlu1 %9802, %v2500_v4   ;;  %2675 = vperm.xlu0 %9801, %v2485_v7   ;;  %v9310_v4 = vld [vmem:[%s15590_s3] sm:$0xff]  ;;  %v2075_v7 = vpack.c.bf16 %v1126_v3, %v1125_v2  ;;  %v2504_v3 = vld [vmem:[%s15544_s10 + $0x190] sm:$0xff] }
 0x15b   : > { %2755 = vperm.xlu2 %9803, %v2501_v6   ;;  %v1352_v12 = vpop.f32.mrf.mxu0  ;;  %v9312_v6 = vld [vmem:[%s15590_s3 + $0x10] sm:$0xff] }
 0x15c   : > { %v1353_v41 = vadd.f32 %v1352_v12, %v1277_v40  ;;  %v2513_v12 = vld [vmem:[%s15544_s10 + $0x1d8] sm:$0xff]  ;;  %v9314_v40 = vld [vmem:[%s15590_s3 + $0x20] sm:$0xff] }
 0x15e   : > { %v1368_v51 = vmax.f32 %v1353_v41, 0.0 }
 0x160   : > { %v1406_v57 = vpack.c.bf16 %v1368_v51, %v1367_v55  ;;  %v1139_v51 = vld [vmem:[%s10355_s21 + $0xd0] sm:$0xff]  ;;  %v2487_v55 = vld [vmem:[%s15544_s10 + $0x108] sm:$0xff] }
 0x162   : > { %2665 = vperm.xlu1 %9802, %v2483_v9   ;;  %2660 = vperm.xlu0 %9801, %v2482_v11   ;;  %v1124_v9 = vld [vmem:[%s10355_s21 + $0x58] sm:$0xff]  ;;  %v2475_v11 = vld [vmem:[%s15544_s10 + $0xa8] sm:$0xff] }
 0x163   : > { %2740 = vperm.xlu2 %9803, %v2498_v10   ;;  %v1355_v16 = vpop.f32.mrf.mxu0  ;;  %v2474_v10 = vld [vmem:[%s15544_s10 + $0xa0] sm:$0xff] }
 0x164   : > { %v1356_v37 = vadd.f32 %v1355_v16, %v1282_v21  ;;  %v2490_v21 = vld [vmem:[%s15544_s10 + $0x120] sm:$0xff] }
 0x166   : > { %v1369_v46 = vmax.f32 %v1356_v37, 0.0  ;;  %v2489_v37 = vld [vmem:[%s15544_s10 + $0x118] sm:$0xff] }
 0x16a   : > { %2650 = vperm.xlu1 %9802, %v2480_v13   ;;  %2745 = vperm.xlu0 %9801, %v2499_v15   ;;  %v2074_v13 = vpack.c.bf16 %v1124_v9, %v1123_v8  ;;  %v1122_v15 = vld [vmem:[%s10355_s21 + $0x48] sm:$0xff] }
 0x16b   : > { %2655 = vperm.xlu2 %9803, %v2481_v14   ;;  %v1357_v20 = vpop.f32.mrf.mxu0  ;;  %v1121_v14 = vld [vmem:[%s10355_s21 + $0x40] sm:$0xff]  ;;  %v1134_v8 = vld [vmem:[%s10355_s21 + $0xa8] sm:$0xff] }
 0x16c   : > { %v1358_v35 = vadd.f32 %v1357_v20, %v1287_v28  ;;  %v2073_v16 = vpack.c.bf16 %v1122_v15, %v1121_v14  ;;  %v2510_v20 = vld [vmem:[%s15544_s10 + $0x1c0] sm:$0xff]  ;;  %v1115_v28 = vld [vmem:[%s10355_s21 + $0x10] sm:$0xff]  ;;  %v2503_v14 = vld [vmem:[%s15544_s10 + $0x188] sm:$0xff] }
 0x16d   : > { %v2502_v15 = vld [vmem:[%s15544_s10 + $0x180] sm:$0xff] }
 0x16e   : > { %v1370_v42 = vmax.f32 %v1358_v35, 0.0 }
 0x170   : > { %v1407_v52 = vpack.c.bf16 %v1370_v42, %v1369_v46  ;;  %v1143_v42 = vld [vmem:[%s10355_s21 + $0xf0] sm:$0xff]  ;;  %v2471_v46 = vld [vmem:[%s15544_s10 + $0x88] sm:$0xff] }
 0x172   : > { %2735 = vperm.xlu1 %9802, %v2497_v17   ;;  %2730 = vperm.xlu0 %9801, %v2496_v19   ;;  %v1119_v17 = vld [vmem:[%s10355_s21 + $0x30] sm:$0xff]  ;;  %v2491_v19 = vld [vmem:[%s15544_s10 + $0x128] sm:$0xff] }
 0x173   : > { %2830 = vperm.xlu2 %9803, %v2516_v18   ;;  %v1360_v26 = vpop.f32.mrf.mxu0  ;;  %v1120_v18 = vld [vmem:[%s10355_s21 + $0x38] sm:$0xff] }
 0x174   : > { %v1361_v30 = vadd.f32 %v1360_v26, %v1292_v22  ;;  %v2072_v22 = vpack.c.bf16 %v1120_v18, %v1119_v17  ;;  %v9313_v26 = vld [vmem:[%s15590_s3 + $0x18] sm:$0xff]  ;;  %v9356_v17 = vld [vmem:[%s15543_s9 + $0xb0] sm:$0xf0]  ;;  %v1129_v18 = vld [vmem:[%s10355_s21 + $0x80] sm:$0xff] }
 0x176   : > { %v1371_v38 = vmax.f32 %v1361_v30, 0.0  ;;  %v2472_v30 = vld [vmem:[%s15544_s10 + $0x90] sm:$0xff] }
 0x17a   : > { %2640 = vperm.xlu1 %9802, %v2478_v23   ;;  %2835 = vperm.xlu0 %9801, %v2517_v25   ;;  %v1117_v23 = vld [vmem:[%s10355_s21 + $0x20] sm:$0xff] }
 0x17b   : > { %2645 = vperm.xlu2 %9803, %v2479_v24   ;;  %v1362_v34 = vpop.f32.mrf.mxu0  ;;  %v1118_v24 = vld [vmem:[%s10355_s21 + $0x28] sm:$0xff] }
 0x17c   : > { %v1363_v36 = vadd.f32 %v1362_v34, %v1297_v33  ;;  %v9311_v25 = vld [vmem:[%s15590_s3 + $0x8] sm:$0xff]  ;;  %v2071_v27 = vpack.c.bf16 %v1118_v24, %v1117_v23  ;;  %v10767_v23 = vpop.permute.xlu2 %1481  ;;  %v6061_v24 = vld [vmem:[%s15546_s12 + $0xf0] sm:$0xff] }
 0x17d   : > { %v1114_v34 = vld [vmem:[%s10355_s21 + $0x8] sm:$0xff] }
 0x17e   : > { %v1372_v39 = vmax.f32 %v1363_v36, 0.0  ;;  %v2069_v35 = vpack.c.bf16 %v1114_v34, %v10358_v5  ;;  %v2508_v36 = vld [vmem:[%s15544_s10 + $0x1b0] sm:$0xff]  ;;  %v9338_v5 = vld [vmem:[%s15543_s9 + $0x20] sm:$0xf0] }
 0x180   : > { %v1408_v43 = vpack.c.bf16 %v1372_v39, %v1371_v38  ;;  %v2488_v38 = vld [vmem:[%s15544_s10 + $0x110] sm:$0xff]  ;;  %v7767_v39 = vld [vmem:[%s15543_s9] sm:$0xf] }
 0x181   : > { %v7768_v41 = vor.u32 %v9338_v5, %v7767_v39  ;;  %v6041_v39 = vld [vmem:[%s15546_s12 + $0x50] sm:$0xff]  ;;  %v6042_v5 = vld [vmem:[%s15546_s12 + $0x58] sm:$0xff] }
 0x182   : > { %2725 = vperm.xlu1 %9802, %v2495_v29   ;;  %2720 = vperm.xlu0 %9801, %v2494_v32   ;;  %v1116_v29 = vld [vmem:[%s10355_s21 + $0x18] sm:$0xff]  ;;  %v2511_v32 = vld [vmem:[%s15544_s10 + $0x1c8] sm:$0xff] }
 0x183   : > { %2820 = vperm.xlu2 %9803, %v2514_v31   ;;  %1558 = vmatpush.bf16.msrb.mxu0 %v1408_v43  ;;  %v2473_v31 = vld [vmem:[%s15544_s10 + $0x98] sm:$0xff]  ;;  %v2070_v33 = vpack.c.bf16 %v1116_v29, %v1115_v28  ;;  %v10781_v28 = vpop.permute.xlu0 %1486  ;;  %v6059_v29 = vld [vmem:[%s15546_s12 + $0xe0] sm:$0xff] }
 0x184   : > { %9710 = vmatpush.bf16.msra.mxu1 %v1408_v43  ;;  %v1144_v43 = vld [vmem:[%s10355_s21 + $0xf8] sm:$0xff]  ;;  %v10798_v34 = vpop.permute.xlu2 %1476 }
 0x187   : > { %1559 = vmatpush.bf16.msrb.mxu0 %v1407_v52 }
 0x188   : > { %9711 = vmatpush.bf16.msra.mxu1 %v1407_v52  ;;  %v1140_v52 = vld [vmem:[%s10355_s21 + $0xd8] sm:$0xff] }
 0x189   : > { %v2082_v53 = vpack.c.bf16 %v1140_v52, %v1139_v51 }
 0x18a   : > { %2630 = vperm.xlu1 %9802, %v2476_v44   ;;  %2825 = vperm.xlu0 %9801, %v2515_v48   ;;  %v2084_v44 = vpack.c.bf16 %v1144_v43, %v1143_v42  ;;  %v1141_v48 = vld [vmem:[%s10355_s21 + $0xe0] sm:$0xff] }
 0x18b   : > { %2635 = vperm.xlu2 %9803, %v2477_v47   ;;  %1560 = vmatpush.bf16.msrb.mxu0 %v1406_v57  ;;  %v2509_v47 = vld [vmem:[%s15544_s10 + $0x1b8] sm:$0xff]  ;;  %v2083_v50 = vpack.c.bf16 %v1142_v49, %v1141_v48  ;;  %v6039_v43 = vld [vmem:[%s15546_s12 + $0x40] sm:$0xff] }
 0x18c   : > { %9712 = vmatpush.bf16.msra.mxu1 %v1406_v57  ;;  %v7803_v57 = vld [vmem:[%s15543_s9 + $0x48] sm:$0xf]  ;;  %v9374_v48 = vld [vmem:[%s15543_s9 + $0x140] sm:$0xf0] }
 0x18d   : > { %v9334_v49 = vld [vmem:[%s15543_s9 + $0x4] sm:$0xf] }
 0x18f   : > { %1561 = vmatpush.bf16.msrb.mxu0 %v1405_v1 }
 0x190   : > { %9713 = vmatpush.bf16.msra.mxu1 %v1405_v1  ;;  %v1136_v1 = vld [vmem:[%s10355_s21 + $0xb8] sm:$0xff] }
 0x192   : > { %2715 = vperm.xlu1 %9802, %v2493_v60   ;;  %2710 = vperm.xlu0 %9801, %v2492_v63   ;;  %v1138_v60 = vld [vmem:[%s10355_s21 + $0xc8] sm:$0xff]  ;;  %v7804_v63 = vor.u32 %v9347_v58, %v7803_v57 }
 0x193   : > { %2810 = vperm.xlu2 %9803, %v2512_v62   ;;  %4382 = vmatpush.bf16.msra.mxu0 %v2076_v0  ;;  %v2081_v61 = vpack.c.bf16 %v1138_v60, %v1137_v59  ;;  %v9315_v62 = vld [vmem:[%s15590_s3 + $0x28] sm:$0xff]  ;;  %v1135_v0 = vld [vmem:[%s10355_s21 + $0xb0] sm:$0xff] }
 0x194   : > { %7693 = vmatmul.msk.bf16.vlgmr.msrb.gmra.mxu0 %vm1529_vm2, %v9310_v4  ;;  %7695 = vmatmul.msk.bf16.vlgmr.msra.gmra.mxu1 %vm1529_vm2, %v9312_v6  ;;  %v2080_v2 = vpack.c.bf16 %v1136_v1, %v1135_v0  ;;  %v2505_v4 = vld [vmem:[%s15544_s10 + $0x198] sm:$0xff]  ;;  %v2507_v6 = vld [vmem:[%s15544_s10 + $0x1a8] sm:$0xff]  ;;  %v6053_v59 = vld [vmem:[%s15546_s12 + $0xb0] sm:$0xff] }
 0x195   : > { %4551 = vmatpush.bf16.msrb.mxu1 %v2084_v44  ;;  %v6040_v57 = vld [vmem:[%s15546_s12 + $0x48] sm:$0xff] }
 0x196   : > { %v9383_v0 = vld [vmem:[%s15543_s9 + $0x188] sm:$0xf0] }
 0x197   : > { %4383 = vmatpush.bf16.msra.mxu0 %v2075_v7  ;;  %v1133_v7 = vld [vmem:[%s10355_s21 + $0xa0] sm:$0xff] }
 0x198   : > { %v2079_v9 = vpack.c.bf16 %v1134_v8, %v1133_v7  ;;  %v9343_v1 = vld [vmem:[%s15543_s9 + $0x4c] sm:$0xf]  ;;  %v6035_v8 = vld [vmem:[%s15546_s12 + $0x20] sm:$0xff] }
 0x199   : > { %4552 = vmatpush.bf16.msrb.mxu1 %v2083_v50  ;;  %v7769_v50 = vld [vmem:[%s15543_s9 + $0x24] sm:$0xf0] }
 0x19a   : > { %2620 = vperm.xlu1 %9802, %v2474_v10   ;;  %2815 = vperm.xlu0 %9801, %v2513_v12   ;;  %v1131_v10 = vld [vmem:[%s10355_s21 + $0x90] sm:$0xff]  ;;  %v7772_v52 = vor.u32 %v9334_v49, %v7769_v50  ;;  %v6031_v49 = vld [vmem:[%s15546_s12] sm:$0xff] }
 0x19b   : > { %2625 = vperm.xlu2 %9803, %v2475_v11   ;;  %4384 = vmatpush.bf16.msra.mxu0 %v2074_v13  ;;  %v1132_v11 = vld [vmem:[%s10355_s21 + $0x98] sm:$0xff]  ;;  %v6045_v13 = vld [vmem:[%s15546_s12 + $0x70] sm:$0xff] }
 0x19c   : > { %v2078_v12 = vpack.c.bf16 %v1132_v11, %v1131_v10  ;;  %v6054_v10 = vld [vmem:[%s15546_s12 + $0xb8] sm:$0xff] }
 0x19d   : > { %4553 = vmatpush.bf16.msrb.mxu1 %v2082_v53  ;;  %v8019_v50 = vld [vmem:[%s15543_s9 + $0x1f8] sm:$0xf] }
 0x19f   : > { %4385 = vmatpush.bf16.msra.mxu0 %v2073_v16  ;;  %v7839_v16 = vld [vmem:[%s15543_s9 + $0x90] sm:$0xf] }
 0x1a1   : > { %4554 = vmatpush.bf16.msrb.mxu1 %v2081_v61  ;;  %v6038_v61 = vld [vmem:[%s15546_s12 + $0x38] sm:$0xff] }
 0x1a2   : > { %2705 = vperm.xlu1 %9802, %v2491_v19   ;;  %2700 = vperm.xlu0 %9801, %v2490_v21   ;;  %v1130_v19 = vld [vmem:[%s10355_s21 + $0x88] sm:$0xff] }
 0x1a3   : > { %2800 = vperm.xlu2 %9803, %v2510_v20   ;;  %4386 = vmatpush.bf16.msra.mxu0 %v2072_v22  ;;  %v2077_v20 = vpack.c.bf16 %v1130_v19, %v1129_v18  ;;  %v9316_v21 = vld [vmem:[%s15590_s3 + $0x30] sm:$0xff]  ;;  %v7840_v22 = vor.u32 %v9356_v17, %v7839_v16  ;;  %v6051_v16 = vld [vmem:[%s15546_s12 + $0xa0] sm:$0xff] }
 0x1a4   : > { %7694 = vmatmul.msk.bf16.gmra.mxu0 %vm1529_vm2, %v9311_v25  ;;  %7696 = vmatmul.msk.bf16.gmra.mxu1 %vm1529_vm2, %v9313_v26  ;;  %v6062_v25 = vld [vmem:[%s15546_s12 + $0xf8] sm:$0xff]  ;;  %v7983_v17 = vld [vmem:[%s15543_s9 + $0x1b0] sm:$0xf]  ;;  %v9392_v18 = vld [vmem:[%s15543_s9 + $0x1d0] sm:$0xf0] }
 0x1a5   : > { %4555 = vmatpush.bf16.msrb.mxu1 %v2080_v2  ;;  %v6046_v26 = vld [vmem:[%s15546_s12 + $0x78] sm:$0xff]  ;;  %v7805_v2 = vld [vmem:[%s15543_s9 + $0x6c] sm:$0xf0]  ;;  %v9352_v19 = vld [vmem:[%s15543_s9 + $0x94] sm:$0xf] }
 0x1a6   : > { %v7808_v7 = vor.u32 %v9343_v1, %v7805_v2  ;;  %v6048_v1 = vld [vmem:[%s15546_s12 + $0x88] sm:$0xff] }
 0x1a7   : > { %4387 = vmatpush.bf16.msra.mxu0 %v2071_v27  ;;  %v10779_v27 = vpop.permute.xlu1 %1471 }
 0x1a9   : > { %4556 = vmatpush.bf16.msrb.mxu1 %v2079_v9  ;;  %v6036_v9 = vld [vmem:[%s15546_s12 + $0x28] sm:$0xff] }
 0x1aa   : > { %2610 = vperm.xlu1 %9802, %v2472_v30   ;;  %2805 = vperm.xlu0 %9801, %v2511_v32   ;;  %v6044_v30 = vld [vmem:[%s15546_s12 + $0x68] sm:$0xff]  ;;  %v7875_v32 = vld [vmem:[%s15543_s9 + $0xd8] sm:$0xf] }
 0x1ab   : > { %2615 = vperm.xlu2 %9803, %v2473_v31   ;;  %4388 = vmatpush.bf16.msra.mxu0 %v2070_v33  ;;  %v6043_v31 = vld [vmem:[%s15546_s12 + $0x60] sm:$0xff]  ;;  %v9365_v33 = vld [vmem:[%s15543_s9 + $0xf8] sm:$0xf0] }
 0x1ad   : > { %4557 = vmatpush.bf16.msrb.mxu1 %v2078_v12 }
 0x1af   : > { %4389 = vmatpush.bf16.msra.mxu0 %v2069_v35  ;;  %v10800_v35 = vpop.permute.xlu1 %1466 }
 0x1b1   : > { %4558 = vmatpush.bf16.msrb.mxu1 %v2077_v20  ;;  %v7841_v20 = vld [vmem:[%s15543_s9 + $0xb4] sm:$0xf0] }
 0x1b2   : > { %2695 = vperm.xlu1 %9802, %v2489_v37   ;;  %2690 = vperm.xlu0 %9801, %v2488_v38   ;;  %v7876_v37 = vor.u32 %v9365_v33, %v7875_v32  ;;  %v10805_v38 = vpop.permute.xlu0 %1461  ;;  %v6050_v32 = vld [vmem:[%s15546_s12 + $0x98] sm:$0xff] }
 0x1b3   : > { %2790 = vperm.xlu2 %9803, %v2508_v36   ;;  %v9317_v36 = vld [vmem:[%s15590_s3 + $0x38] sm:$0xff]  ;;  %s7550_s3 = sshll.u32 %s7547_s27, 4  ;;  %s7551_s3 = int_to_ptr.hbm [resolvable:$true] %s7550_s3 }
 0x1b4   : > { %7697 = vmatmul.msk.bf16.gmra.mxu1 %vm1529_vm2, %v9314_v40  ;;  %4390 = vmatmul.bf16.vlgmr.msra.gmra.mxu0 %v7768_v41  ;;  %v6060_v40 = vld [vmem:[%s15546_s12 + $0xe8] sm:$0xff]  ;;  %v10817_v41 = vpop.permute.xlu2 %1451  ;;  %v6034_v33 = vld [vmem:[%s15546_s12 + $0x18] sm:$0xff]  ;;  %s9818_s24 = sshra.s32 %s7551_s3, 4  ;;  %s9819_s24 = int_to_ptr.hbm [resolvable:$true] %s9818_s24 }
 0x1b5   : > { %s9820_s20 = scalar_lea.hbm %s9819_s24, 256  ;;  %p9825_p4 = scmp.lt.s32.totalorder %s9819_s24, %s15975_s2 }
 0x1b6   : > { %p9821_p1 = scmp.ne.s32.totalorder %s9819_s24, %s9820_s20  ;;  %p9826_p5 = scmp.lt.s32.totalorder %s9824_s23, %s9820_s20 }
 0x1b7   : > { %v10819_v42 = vpop.permute.xlu1 %1441 }
 0x1b8   : > { %p9822_p2 = pnand %p9821_p1, %p10055_p8  ;;  %p9827_p6 = por %p9826_p5, %p9825_p4 }
 0x1ba   : > { %2600 = vperm.xlu1 %9802, %v2470_v45   ;;  %2795 = vperm.xlu0 %9801, %v2509_v47   ;;  %v10824_v44 = vpop.permute.xlu0 %1456  ;;  %v6058_v45 = vld [vmem:[%s15546_s12 + $0xd8] sm:$0xff]  ;;  %v7911_v47 = vld [vmem:[%s15543_s9 + $0x120] sm:$0xf]  ;;  %p9823_p3 = pneg %p9822_p2 }
 0x1bb   : > { %2605 = vperm.xlu2 %9803, %v2471_v46   ;;  %v6057_v46 = vld [vmem:[%s15546_s12 + $0xd0] sm:$0xff]  ;;  %v7912_v51 = vor.u32 %v9374_v48, %v7911_v47  ;;  %v6032_v48 = vld [vmem:[%s15546_s12 + $0x8] sm:$0xff] }
 0x1bc   : > { %v10844_v53 = vpop.permute.xlu2 %1446  ;;  %p9828_p7 = pnand %p9827_p6, %p9823_p3 }
 0x1c2   : > { %2685 = vperm.xlu1 %9802, %v2487_v55   ;;  %2680 = vperm.xlu0 %9801, %v2486_v56   ;;  %v6055_v55 = vld [vmem:[%s15546_s12 + $0xc0] sm:$0xff]  ;;  %v6056_v56 = vld [vmem:[%s15546_s12 + $0xc8] sm:$0xff]  ;;  %v1432_v58 = vpop.permute.xlu0 %1431 }
 0x1c3   : > { %2780 = vperm.xlu2 %9803, %v2506_v54   ;;  %v10846_v54 = vpop.permute.xlu1 %1436 }
 0x1c4   : > { %7698 = vmatmul.msk.bf16.gmra.mxu1 %vm1529_vm2, %v9315_v62  ;;  %4395 = vmatmul.bf16.gmra.mxu0 %v7804_v63  ;;  %v10860_v60 = vpop.permute.xlu2 %1421  ;;  %v6037_v62 = vld [vmem:[%s15546_s12 + $0x30] sm:$0xff]  ;;  %v7947_v63 = vld [vmem:[%s15543_s9 + $0x168] sm:$0xf] }
 0x1ca   : > { %2770 = vperm.xlu1 %9802, %v2504_v3   ;;  %2785 = vperm.xlu0 %9801, %v2507_v6   ;;  %v7948_v6 = vor.u32 %v9383_v0, %v7947_v63  ;;  %v6993_v63 = vld [vmem:[%s15548_s14 + $0x70] sm:$0xff]  ;;  %v6994_v0 = vld [vmem:[%s15548_s14 + $0x78] sm:$0xff] }
 0x1cb   : > { %2775 = vperm.xlu2 %9803, %v2505_v4   ;;  %v10880_v3 = vpop.permute.xlu1 %1411  ;;  %v10882_v4 = vpop.permute.xlu0 %1426 }
 0x1cc   : > { %v10893_v11 = vpop.permute.xlu2 %1416 }
 0x1d2   : > { %2765 = vperm.xlu1 %9802, %v2503_v14   ;;  %2760 = vperm.xlu0 %9801, %v2502_v15   ;;  %v6033_v14 = vld [vmem:[%s15546_s12 + $0x10] sm:$0xff]  ;;  %v6052_v15 = vld [vmem:[%s15546_s12 + $0xa8] sm:$0xff] }
 0x1d3   : > { %6167 = vperm.xlu2 %9803, %v6045_v13   ;;  %v10895_v12 = vpop.permute.xlu1 %1736  ;;  %v10897_v13 = vpop.permute.xlu0 %1731 }
 0x1d4   : > { %7699 = vmatmul.msk.bf16.gmra.mxu1 %vm1529_vm2, %v9316_v21  ;;  %4400 = vmatmul.bf16.gmra.mxu0 %v7840_v22  ;;  %15591 = vst [vmem:[#allocation15_spill] sm:$0xff] %v10895_v12  ;;  %v10920_v21 = vpop.permute.xlu2 %1721  ;;  %v7984_v22 = vor.u32 %v9392_v18, %v7983_v17  ;;  %v6992_v17 = vld [vmem:[%s15548_s14 + $0x68] sm:$0xff]  ;;  %v8055_v18 = vld [vmem:[%s15543_s9 + $0x240] sm:$0xf] }
 0x1d5   : > { %15592 = vst [vmem:[#allocation16_spill] sm:$0xff] %v10897_v13 }
 0x1d6   : > { %15593 = vst [vmem:[#allocation17_spill] sm:$0xff] %v10920_v21 }
 0x1da   : > { %6247 = vperm.xlu1 %9802, %v6061_v24   ;;  %6172 = vperm.xlu0 %9801, %v6046_v26   ;;  %v7844_v24 = vor.u32 %v9352_v19, %v7841_v20  ;;  %v9370_v19 = vld [vmem:[%s15543_s9 + $0x124] sm:$0xf]  ;;  %v7913_v20 = vld [vmem:[%s15543_s9 + $0x144] sm:$0xf0] }
 0x1db   : > { %6252 = vperm.xlu2 %9803, %v6062_v25  }
 0x1e2   : > { %6162 = vperm.xlu1 %9802, %v6044_v30   ;;  %6157 = vperm.xlu0 %9801, %v6043_v31   ;;  %v10926_v30 = vpop.permute.xlu0 %1726  ;;  %v6049_v31 = vld [vmem:[%s15546_s12 + $0x90] sm:$0xff] }
 0x1e3   : > { %6237 = vperm.xlu2 %9803, %v6059_v29   ;;  %v10924_v29 = vpop.permute.xlu1 %1711  ;;  %15595 = vst [vmem:[#allocation19_spill] sm:$0xff] %v10926_v30 }
 0x1e4   : > { %7700 = vmatmul.msk.bf16.gmra.mxu1 %vm1529_vm2, %v9317_v36  ;;  %4405 = vmatmul.bf16.gmra.mxu0 %v7876_v37  ;;  %15594 = vst [vmem:[#allocation18_spill] sm:$0xff] %v10924_v29 }
 0x1ea   : > { %6147 = vperm.xlu1 %9802, %v6041_v39   ;;  %6242 = vperm.xlu0 %9801, %v6060_v40  }
 0x1eb   : > { %6152 = vperm.xlu2 %9803, %v6042_v5   ;;  %v10939_v5 = vpop.permute.xlu2 %1716 }
 0x1ec   : > { %15596 = vst [vmem:[#allocation20_spill] sm:$0xff] %v10939_v5 }
 0x1f2   : > { %6232 = vperm.xlu1 %9802, %v6058_v45   ;;  %6227 = vperm.xlu0 %9801, %v6057_v46   ;;  %v10945_v45 = vpop.permute.xlu1 %1706 }
 0x1f3   : > { %6137 = vperm.xlu2 %9803, %v6039_v43   ;;  %v6047_v43 = vld [vmem:[%s15546_s12 + $0x80] sm:$0xff]  ;;  %15597 = vst [vmem:[#allocation21_spill] sm:$0xff] %v10945_v45 }
 0x1f4   : > { %4410 = vmatmul.bf16.gmra.mxu0 %v7912_v51  ;;  %4559 = vmatmul.bf16.vlgmr.msrb.gmra.mxu1 %v7772_v52  ;;  %v9401_v51 = vld [vmem:[%s15543_s9 + $0x218] sm:$0xf0]  ;;  %v1876_v45 = vld [vmem:[%s15542_s8 + $0x40] sm:$0xff] }
 0x1f5   : > { %v9361_v52 = vld [vmem:[%s15543_s9 + $0xdc] sm:$0xf] }
 0x1fa   : > { %6217 = vperm.xlu1 %9802, %v6055_v55   ;;  %6142 = vperm.xlu0 %9801, %v6040_v57   ;;  %v10965_v55 = vpop.permute.xlu0 %1701  ;;  %v8020_v57 = vor.u32 %v9401_v51, %v8019_v50  ;;  %v10982_v2 = vpop.permute.xlu1 %1681  ;;  %v6983_v51 = vld [vmem:[%s15548_s14 + $0x20] sm:$0xff] }
 0x1fb   : > { %6222 = vperm.xlu2 %9803, %v6056_v56   ;;  %15598 = vst [vmem:[#allocation22_spill] sm:$0xff] %v10965_v55 }
 0x1fc   : > { %15600 = vst [vmem:[#allocation24_spill] sm:$0xff] %v10982_v2 }
 0x202   : > { %6132 = vperm.xlu1 %9802, %v6038_v61   ;;  %6127 = vperm.xlu0 %9801, %v6037_v62   ;;  %v10971_v62 = vpop.permute.xlu2 %1691 }
 0x203   : > { %6207 = vperm.xlu2 %9803, %v6053_v59   ;;  %15599 = vst [vmem:[#allocation23_spill] sm:$0xff] %v10971_v62 }
 0x204   : > { %4415 = vmatmul.bf16.gmra.mxu0 %v7948_v6  ;;  %4564 = vmatmul.bf16.gmra.mxu1 %v7808_v7  ;;  %v10984_v6 = vpop.permute.xlu0 %1696 }
 0x205   : > { %15601 = vst [vmem:[#allocation25_spill] sm:$0xff] %v10984_v6 }
 0x20a   : > { %6117 = vperm.xlu1 %9802, %v6035_v8   ;;  %6212 = vperm.xlu0 %9801, %v6054_v10  }
 0x20b   : > { %6122 = vperm.xlu2 %9803, %v6036_v9  }
 0x211   : > { %v10922_v25 = vpop.f32.mrf.mxu0  ;;  %v1573_v26 = vpop.f32.mrf.mxu1 }
 0x212   : > { %6202 = vperm.xlu1 %9802, %v6052_v15   ;;  %6197 = vperm.xlu0 %9801, %v6051_v16   ;;  %v1574_v36 = vadd.f32 %v1573_v26, %v1432_v58  ;;  %v11015_v26 = vpop.permute.xlu1 %1676 }
 0x213   : > { %6107 = vperm.xlu2 %9803, %v6033_v14   ;;  %v6989_v14 = vld [vmem:[%s15548_s14 + $0x50] sm:$0xff]  ;;  %15603 = vst [vmem:[#allocation27_spill] sm:$0xff] %v11015_v26 }
 0x214   : > { %4420 = vmatmul.bf16.gmra.mxu0 %v7984_v22  ;;  %4569 = vmatmul.bf16.gmra.mxu1 %v7844_v24  ;;  %v1607_v46 = vmax.f32 %v1574_v36, 0.0  ;;  %v11011_v22 = vpop.permute.xlu2 %1686 }
 0x215   : > { %15602 = vst [vmem:[#allocation26_spill] sm:$0xff] %v11011_v22 }
 0x219   : > { %v10937_v37 = vpop.f32.mrf.mxu0  ;;  %v1575_v39 = vpop.f32.mrf.mxu1 }
 0x21a   : > { %6187 = vperm.xlu1 %9802, %v6049_v31   ;;  %6112 = vperm.xlu0 %9801, %v6034_v33   ;;  %v1576_v40 = vadd.f32 %v1575_v39, %v10846_v54  ;;  %v7877_v54 = vld [vmem:[%s15543_s9 + $0xfc] sm:$0xf0]  ;;  %v11021_v39 = vpop.permute.xlu0 %1671  ;;  %v11038_v50 = vpop.permute.xlu1 %2590 }
 0x21b   : > { %6192 = vperm.xlu2 %9803, %v6050_v32   ;;  %v7880_v58 = vor.u32 %v9361_v52, %v7877_v54  ;;  %v7916_v32 = vor.u32 %v9370_v19, %v7913_v20  ;;  %15604 = vst [vmem:[#allocation28_spill] sm:$0xff] %v11021_v39  ;;  %v6986_v54 = vld [vmem:[%s15548_s14 + $0x38] sm:$0xff]  ;;  %v1868_v20 = vld [vmem:[%s15542_s8] sm:$0xff] }
 0x21c   : > { %v1608_v47 = vmax.f32 %v1576_v40, 0.0  ;;  %v6987_v40 = vld [vmem:[%s15548_s14 + $0x40] sm:$0xff] }
 0x21e   : > { %v10967_v56 = vpack.c.bf16 %v1608_v47, %v1607_v46  ;;  %v6990_v46 = vld [vmem:[%s15548_s14 + $0x58] sm:$0xff]  ;;  %v11032_v47 = vpop.permute.xlu2 %1661 }
 0x221   : > { %v10969_v59 = vpop.f32.mrf.mxu0  ;;  %v1578_v61 = vpop.f32.mrf.mxu1 }
 0x222   : > { %6102 = vperm.xlu1 %9802, %v6032_v48   ;;  %6097 = vperm.xlu0 %9801, %v6031_v49   ;;  %v1579_v7 = vadd.f32 %v1578_v61, %v10819_v42  ;;  %v6991_v42 = vld [vmem:[%s15548_s14 + $0x60] sm:$0xff]  ;;  %v11043_v52 = vpop.permute.xlu0 %1666  ;;  %v9419_v61 = vld [vmem:[%s15543_s9 + $0x2a8] sm:$0xf0] }
 0x223   : > { %6177 = vperm.xlu2 %9803, %v6047_v43   ;;  %v6988_v43 = vld [vmem:[%s15548_s14 + $0x48] sm:$0xff] }
 0x224   : > { %4425 = vmatmul.bf16.gmra.mxu0 %v8020_v57  ;;  %4574 = vmatmul.bf16.gmra.mxu1 %v7880_v58  ;;  %v1609_v15 = vmax.f32 %v1579_v7, 0.0  ;;  %v6985_v57 = vld [vmem:[%s15548_s14 + $0x30] sm:$0xff]  ;;  %v8091_v58 = vld [vmem:[%s15543_s9 + $0x288] sm:$0xf] }
 0x229   : > { %v10987_v8 = vpop.f32.mrf.mxu0  ;;  %v1580_v9 = vpop.f32.mrf.mxu1 }
 0x22a   : > { %7083 = vperm.xlu1 %9802, %v6993_v63   ;;  %6182 = vperm.xlu0 %9801, %v6048_v1   ;;  %v1581_v10 = vadd.f32 %v1580_v9, %v10844_v53  ;;  %v9410_v53 = vld [vmem:[%s15543_s9 + $0x260] sm:$0xf0]  ;;  %v9379_v63 = vld [vmem:[%s15543_s9 + $0x16c] sm:$0xf]  ;;  %v8092_v1 = vor.u32 %v9419_v61, %v8091_v58 }
 0x22b   : > { %7088 = vperm.xlu2 %9803, %v6994_v0   ;;  %v8056_v31 = vor.u32 %v9410_v53, %v8055_v18  ;;  %v7949_v0 = vld [vmem:[%s15543_s9 + $0x18c] sm:$0xf0]  ;;  %v11080_v18 = vpop.permute.xlu0 %2580 }
 0x22c   : > { %v1610_v16 = vmax.f32 %v1581_v10, 0.0  ;;  %v7952_v7 = vor.u32 %v9379_v63, %v7949_v0 }
 0x22e   : > { %v11013_v24 = vpack.c.bf16 %v1610_v16, %v1609_v15  ;;  %v11069_v15 = vpop.permute.xlu1 %2585  ;;  %v6981_v16 = vld [vmem:[%s15548_s14 + $0x10] sm:$0xff] }
 0x231   : > { %v11017_v33 = vpop.f32.mrf.mxu1  ;;  %v11019_v36 = vpop.f32.mrf.mxu0 }
 0x232   : > { %7078 = vperm.xlu1 %9802, %v6992_v17   ;;  %7073 = vperm.xlu0 %9801, %v6991_v42   ;;  %v6982_v17 = vld [vmem:[%s15548_s14 + $0x18] sm:$0xff]  ;;  %v6984_v42 = vld [vmem:[%s15548_s14 + $0x28] sm:$0xff] }
 0x233   : > { %7063 = vperm.xlu2 %9803, %v6989_v14   ;;  %v11067_v14 = vpop.permute.xlu2 %2595  ;;  %v11111_v58 = vpop.permute.xlu0 %2575 }
 0x234   : > { %4430 = vmatmul.bf16.gmra.mxu0 %v8056_v31  ;;  %4579 = vmatmul.bf16.gmra.mxu1 %v7916_v32  ;;  %v6980_v32 = vld [vmem:[%s15548_s14 + $0x8] sm:$0xff] }
 0x239   : > { %v11034_v48 = vpop.f32.mrf.mxu1  ;;  %v11036_v49 = vpop.f32.mrf.mxu0 }
 0x23a   : > { %7053 = vperm.xlu1 %9802, %v6987_v40   ;;  %7068 = vperm.xlu0 %9801, %v6990_v46   ;;  %v6979_v40 = vld [vmem:[%s15548_s14] sm:$0xff]  ;;  %v9428_v46 = vld [vmem:[%s15543_s9 + $0x2f0] sm:$0xf0] }
 0x23b   : > { %7058 = vperm.xlu2 %9803, %v6988_v43   ;;  %v11089_v31 = vpop.permute.xlu2 %2570  ;;  %v8127_v43 = vld [vmem:[%s15543_s9 + $0x2d0] sm:$0xf] }
 0x23c   : > { %v8128_v61 = vor.u32 %v9428_v46, %v8127_v43  ;;  %v11130_v43 = vpop.permute.xlu0 %2550  ;;  %v1874_v46 = vld [vmem:[%s15542_s8 + $0x30] sm:$0xff] }
 0x241   : > { %v11063_v9 = vpop.f32.mrf.mxu1  ;;  %v11065_v10 = vpop.f32.mrf.mxu0 }
 0x242   : > { %7048 = vperm.xlu1 %9802, %v6986_v54   ;;  %7043 = vperm.xlu0 %9801, %v6985_v57   ;;  %v7985_v54 = vld [vmem:[%s15543_s9 + $0x1d4] sm:$0xf0]  ;;  %v11109_v57 = vpop.permute.xlu1 %2560  ;;  %v1589_v12 = vadd.f32 %v11063_v9, %v10805_v38  ;;  %v1882_v38 = vld [vmem:[%s15542_s8 + $0x70] sm:$0xff]  ;;  %v1584_v9 = vadd.f32 %v11017_v33, %v10817_v41 }
 0x243   : > { %7033 = vperm.xlu2 %9803, %v6983_v51   ;;  %v9388_v51 = vld [vmem:[%s15543_s9 + $0x1b4] sm:$0xf] }
 0x244   : > { %4435 = vmatmul.bf16.gmra.mxu0 %v8092_v1  ;;  %4584 = vmatmul.bf16.gmra.mxu1 %v7952_v7  ;;  %v7988_v63 = vor.u32 %v9388_v51, %v7985_v54  ;;  %v1870_v7 = vld [vmem:[%s15542_s8 + $0x10] sm:$0xff]  ;;  %v1873_v51 = vld [vmem:[%s15542_s8 + $0x28] sm:$0xff]  ;;  %v1872_v54 = vld [vmem:[%s15542_s8 + $0x20] sm:$0xff]  ;;  %v11162_v6 = vpop.permute.xlu0 %2545  ;;  %v1611_v41 = vmax.f32 %v1584_v9, 0.0 }
 0x249   : > { %v11082_v53 = vpop.f32.mrf.mxu1  ;;  %v11084_v19 = vpop.f32.mrf.mxu0 }
 0x24a   : > { %7023 = vperm.xlu1 %9802, %v6981_v16   ;;  %7038 = vperm.xlu0 %9801, %v6984_v42   ;;  %v1871_v16 = vld [vmem:[%s15542_s8 + $0x18] sm:$0xff]  ;;  %v11124_v42 = vpop.permute.xlu2 %2565 }
 0x24b   : > { %7028 = vperm.xlu2 %9803, %v6982_v17   ;;  %v1869_v17 = vld [vmem:[%s15542_s8 + $0x8] sm:$0xff] }
 0x251   : > { %v1593_v0 = vpop.f32.mrf.mxu1  ;;  %v11113_v1 = vpop.f32.mrf.mxu0 }
 0x252   : > { %7018 = vperm.xlu1 %9802, %v6980_v32   ;;  %7013 = vperm.xlu0 %9801, %v6979_v40  }
 0x253   : > { %1894 = vperm.xlu2 %9803, %v1868_v20   ;;  %v11126_v20 = vpop.permute.xlu1 %2555 }
 0x254   : > { %4440 = vmatmul.bf16.gmra.mxu0 %v8128_v61  ;;  %4589 = vmatmul.bf16.gmra.mxu1 %v7988_v63  ;;  %v8163_v61 = vld [vmem:[%s15543_s9 + $0x318] sm:$0xf]  ;;  %v9437_v63 = vld [vmem:[%s15543_s9 + $0x338] sm:$0xf0] }
 0x255   : > { %v8164_v39 = vor.u32 %v9437_v63, %v8163_v61 }
 0x259   : > { %v1595_v32 = vpop.f32.mrf.mxu1  ;;  %v11128_v40 = vpop.f32.mrf.mxu0 }
 0x25a   : > { %1904 = vperm.xlu1 %9802, %v1870_v7   ;;  %1899 = vperm.xlu0 %9801, %v1869_v17   ;;  %v9397_v7 = vld [vmem:[%s15543_s9 + $0x1fc] sm:$0xf]  ;;  %v11153_v17 = vpop.permute.xlu2 %2540 }
 0x25b   : > { %1909 = vperm.xlu2 %9803, %v1871_v16   ;;  %v8021_v16 = vld [vmem:[%s15543_s9 + $0x21c] sm:$0xf0]  ;;  %v11157_v62 = vpop.permute.xlu1 %2530 }
 0x25c   : > { %v8024_v26 = vor.u32 %v9397_v7, %v8021_v16  ;;  %v1596_v7 = vadd.f32 %v1595_v32, %v10798_v34  ;;  %v1880_v16 = vld [vmem:[%s15542_s8 + $0x60] sm:$0xff]  ;;  %v1594_v34 = vadd.f32 %v1593_v0, %v10779_v27 }
 0x25d   : > { %v9446_v32 = vld [vmem:[%s15543_s9 + $0x380] sm:$0xf0] }
 0x25e   : > { %v1616_v5 = vmax.f32 %v1596_v7, 0.0  ;;  %v1615_v30 = vmax.f32 %v1594_v34, 0.0  ;;  %v7303_v34 = vld [vmem:[%s15550_s16 + $0x10] sm:$0xff] }
 0x261   : > { %v1598_v2 = vpop.f32.mrf.mxu1  ;;  %v11155_v22 = vpop.f32.mrf.mxu0 }
 0x262   : > { %1919 = vperm.xlu1 %9802, %v1873_v51   ;;  %1914 = vperm.xlu0 %9801, %v1872_v54   ;;  %v1875_v51 = vld [vmem:[%s15542_s8 + $0x38] sm:$0xff]  ;;  %v1599_v54 = vadd.f32 %v1598_v2, %v10767_v23  ;;  %v11173_v61 = vpop.permute.xlu2 %2535  ;;  %v1878_v2 = vld [vmem:[%s15542_s8 + $0x50] sm:$0xff] }
 0x263   : > { %1924 = vperm.xlu2 %9803, %v1874_v46   ;;  %v1877_v46 = vld [vmem:[%s15542_s8 + $0x48] sm:$0xff]  ;;  %v2526_v55 = vpop.permute.xlu1 %2525  ;;  %v1879_v23 = vld [vmem:[%s15542_s8 + $0x58] sm:$0xff] }
 0x264   : > { %4445 = vmatmul.bf16.gmra.mxu0 %v8164_v39  ;;  %4594 = vmatmul.bf16.gmra.mxu1 %v8024_v26  ;;  %v1617_v29 = vmax.f32 %v1599_v54, 0.0 }
 0x269   : > { %v1600_v26 = vpop.f32.mrf.mxu1  ;;  %v11171_v39 = vpop.f32.mrf.mxu0 }
 0x26a   : > { %1934 = vperm.xlu1 %9802, %v1876_v45   ;;  %1929 = vperm.xlu0 %9801, %v1875_v51   ;;  %v1601_v63 = vadd.f32 %v1600_v26, %v10781_v28  ;;  %v8199_v28 = vld [vmem:[%s15543_s9 + $0x360] sm:$0xf]  ;;  %v8057_v51 = vld [vmem:[%s15543_s9 + $0x264] sm:$0xf0]  ;;  %v2521_v26 = vpop.permute.xlu0 %2520  ;;  %v11210_v7 = vpop.permute.xlu2 %2670 }
 0x26b   : > { %1939 = vperm.xlu2 %9803, %v1877_v46   ;;  %v9406_v46 = vld [vmem:[%s15543_s9 + $0x244] sm:$0xf]  ;;  %v4392_v27 = vadd.f32 %v11019_v36, %v2521_v26  ;;  %v8200_v0 = vor.u32 %v9446_v32, %v8199_v28  ;;  %v1657_v36 = vpack.c.bf16 %v1616_v5, %v1615_v30  ;;  %v1881_v30 = vld [vmem:[%s15542_s8 + $0x68] sm:$0xff]  ;;  %v11223_v5 = vpop.permute.xlu1 %2750 }
 0x26c   : > { %v1618_v45 = vmax.f32 %v1601_v63, 0.0  ;;  %v1591_v63 = vadd.f32 %v11082_v53, %v10800_v35  ;;  %v8060_v21 = vor.u32 %v9406_v46, %v8057_v51  ;;  %v1586_v35 = vadd.f32 %v11034_v48, %v10824_v44  ;;  %v1883_v44 = vld [vmem:[%s15542_s8 + $0x78] sm:$0xff]  ;;  %15605 = vst [vmem:[#allocation29_spill] sm:$0xff] %v11223_v5  ;;  %v7302_v32 = vld [vmem:[%s15550_s16 + $0x8] sm:$0xff] }
 0x26d   : > { %v9455_v46 = vld [vmem:[%s15543_s9 + $0x3c8] sm:$0xf0] }
 0x26e   : > { %v1658_v54 = vpack.c.bf16 %v1618_v45, %v1617_v29  ;;  %v1614_v53 = vmax.f32 %v1591_v63, 0.0  ;;  %v9415_v51 = vld [vmem:[%s15543_s9 + $0x28c] sm:$0xf]  ;;  %v1571_v63 = vadd.f32 %v10987_v8, %v10882_v4 }
 0x270   : > { %1787 = vmatpush.bf16.msra.mxu2 %v1658_v54  ;;  %9714 = vmatpush.bf16.msra.mxu3 %v1658_v54  ;;  %v8093_v54 = vld [vmem:[%s15543_s9 + $0x2ac] sm:$0xf0] }
 0x271   : > { %v11204_v13 = vpop.f32.mrf.mxu0  ;;  %v4560_v29 = vpop.f32.mrf.mxu1 }
 0x272   : > { %1949 = vperm.xlu1 %9802, %v1879_v23   ;;  %1944 = vperm.xlu0 %9801, %v1878_v2   ;;  %v11206_v45 = vadd.f32 %v4560_v29, %v4392_v27  ;;  %v4394_v23 = vadd.f32 %v11036_v49, %v2526_v55  ;;  %v7301_v55 = vld [vmem:[%s15550_s16] sm:$0xff]  ;;  %v8235_v49 = vld [vmem:[%s15543_s9 + $0x3a8] sm:$0xf]  ;;  %v11251_v26 = vpop.permute.xlu2 %2755 }
 0x273   : > { %1954 = vperm.xlu2 %9803, %v1880_v16   ;;  %v1613_v16 = vmax.f32 %v1589_v12, 0.0  ;;  %15606 = vst [vmem:[#allocation30_spill] sm:$0xff] %v11251_v26  ;;  %v11255_v27 = vpop.permute.xlu1 %2665  ;;  %v8236_v29 = vor.u32 %v9455_v46, %v8235_v49  ;;  %v4402_v49 = vadd.f32 %v11113_v1, %v11153_v17  ;;  %v7311_v1 = vld [vmem:[%s15550_s16 + $0x50] sm:$0xff]  ;;  %v7312_v17 = vld [vmem:[%s15550_s16 + $0x58] sm:$0xff] }
 0x274   : > { %4450 = vmatmul.bf16.gmra.mxu0 %v8200_v0  ;;  %4599 = vmatmul.bf16.gmra.mxu1 %v8060_v21  ;;  %v1612_v21 = vmax.f32 %v1586_v35, 0.0  ;;  %v4397_v0 = vadd.f32 %v11065_v10, %v11157_v62  ;;  %v8096_v35 = vor.u32 %v9415_v51, %v8093_v54  ;;  %v1606_v62 = vmax.f32 %v1571_v63, 0.0  ;;  %v7305_v10 = vld [vmem:[%s15550_s16 + $0x20] sm:$0xff] }
 0x275   : > { %1788 = vmatpush.bf16.msra.mxu2 %v1657_v36  ;;  %9715 = vmatpush.bf16.msra.mxu3 %v1657_v36  ;;  %v1656_v48 = vpack.c.bf16 %v1614_v53, %v1613_v16  ;;  %v1569_v53 = vadd.f32 %v10969_v59, %v10860_v60  ;;  %v1564_v60 = vadd.f32 %v10922_v25, %v10880_v3 }
 0x276   : > { %v1655_v28 = vpack.c.bf16 %v1612_v21, %v1611_v41  ;;  %v4399_v3 = vadd.f32 %v11084_v19, %v11173_v61  ;;  %v9323_v19 = vld [vmem:[%s15608_s5 + $0x28] sm:$0xff]  ;;  %v7308_v61 = vld [vmem:[%s15550_s16 + $0x38] sm:$0xff]  ;;  %v8271_v41 = vld [vmem:[%s15543_s9 + $0x3f0] sm:$0xf] }
 0x277   : > { %v1605_v59 = vmax.f32 %v1569_v53, 0.0  ;;  %v1603_v25 = vmax.f32 %v1564_v60, 0.0  ;;  %v7310_v53 = vld [vmem:[%s15550_s16 + $0x48] sm:$0xff] }
 0x278   : > { %v9319_v60 = vld [vmem:[%s15608_s5 + $0x8] sm:$0xff] }
 0x279   : > { %1789 = vmatpush.bf16.msra.mxu2 %v1656_v48  ;;  %9716 = vmatpush.bf16.msra.mxu3 %v1656_v48  ;;  %v11226_v12 = vpop.f32.mrf.mxu0  ;;  %v4562_v33 = vpop.f32.mrf.mxu1  ;;  %v1652_v9 = vpack.c.bf16 %v1606_v62, %v1605_v59  ;;  %v9324_v59 = vld [vmem:[%s15608_s5 + $0x30] sm:$0xff] }
 0x27a   : > { %1964 = vperm.xlu1 %9802, %v1882_v38   ;;  %1959 = vperm.xlu0 %9801, %v1881_v30   ;;  %v11228_v2 = vadd.f32 %v4562_v33, %v4394_v23  ;;  %v1566_v38 = vadd.f32 %v10937_v37, %v10893_v11  ;;  %v7304_v11 = vld [vmem:[%s15550_s16 + $0x18] sm:$0xff]  ;;  %v11282_v16 = vpop.permute.xlu2 %2740  ;;  %v9318_v23 = vld [vmem:[%s15608_s5] sm:$0xff]  ;;  %v9464_v33 = vld [vmem:[%s15543_s9 + $0x410] sm:$0xf0] }
 0x27b   : > { %1969 = vperm.xlu2 %9803, %v1883_v44   ;;  %15607 = vst [vmem:[#allocation31_spill] sm:$0xff] %v11282_v16  ;;  %v11288_v30 = vpop.permute.xlu1 %2650  ;;  %v8272_v46 = vor.u32 %v9464_v33, %v8271_v41 }
 0x27c   : > { %v1604_v37 = vmax.f32 %v1566_v38, 0.0 }
 0x27d   : > { %1790 = vmatpush.bf16.msra.mxu2 %v1655_v28  ;;  %9717 = vmatpush.bf16.msra.mxu3 %v1655_v28  ;;  %v9424_v28 = vld [vmem:[%s15543_s9 + $0x2d4] sm:$0xf] }
 0x27e   : > { %v1651_v48 = vpack.c.bf16 %v1604_v37, %v1603_v25  ;;  %v9473_v37 = vld [vmem:[%s15543_s9 + $0x458] sm:$0xf0] }
 0x281   : > { %1791 = vmatpush.bf16.msra.mxu2 %v11013_v24  ;;  %9718 = vmatpush.bf16.msra.mxu3 %v11013_v24  ;;  %v11263_v36 = vpop.f32.mrf.mxu0  ;;  %v4565_v4 = vpop.f32.mrf.mxu1  ;;  %v7306_v24 = vld [vmem:[%s15550_s16 + $0x28] sm:$0xff] }
 0x282   : > { %7332 = vperm.xlu1 %9802, %v7302_v32   ;;  %7327 = vperm.xlu0 %9801, %v7301_v55   ;;  %v11265_v8 = vadd.f32 %v4565_v4, %v4397_v0  ;;  %v7309_v32 = vld [vmem:[%s15550_s16 + $0x40] sm:$0xff]  ;;  %v7307_v55 = vld [vmem:[%s15550_s16 + $0x30] sm:$0xff]  ;;  %v11323_v0 = vpop.permute.xlu2 %2655  ;;  %v4404_v4 = vadd.f32 %v11128_v40, %v11162_v6  ;;  %v7314_v40 = vld [vmem:[%s15550_s16 + $0x68] sm:$0xff] }
 0x283   : > { %7337 = vperm.xlu2 %9803, %v7303_v34   ;;  %v8129_v34 = vld [vmem:[%s15543_s9 + $0x2f4] sm:$0xf0]  ;;  %v7315_v6 = vld [vmem:[%s15550_s16 + $0x70] sm:$0xff] }
 0x284   : > { %4455 = vmatmul.bf16.gmra.mxu0 %v8236_v29  ;;  %4604 = vmatmul.bf16.gmra.mxu1 %v8096_v35  ;;  %v8132_v51 = vor.u32 %v9424_v28, %v8129_v34  ;;  %v11327_v35 = vpop.permute.xlu1 %2735 }
 0x285   : > { %1792 = vmatpush.bf16.msra.mxu2 %v10967_v56  ;;  %9719 = vmatpush.bf16.msra.mxu3 %v10967_v56  ;;  %15609 = vst [vmem:[#allocation32_spill] sm:$0xff] %v11327_v35 }
 0x289   : > { %1793 = vmatpush.bf16.msra.mxu2 %v1652_v9  ;;  %9720 = vmatpush.bf16.msra.mxu3 %v1652_v9  ;;  %v11286_v56 = vpop.f32.mrf.mxu0  ;;  %v4567_v44 = vpop.f32.mrf.mxu1  ;;  %v9433_v9 = vld [vmem:[%s15543_s9 + $0x31c] sm:$0xf] }
 0x28a   : > { %7347 = vperm.xlu1 %9802, %v7305_v10   ;;  %7342 = vperm.xlu0 %9801, %v7304_v11   ;;  %v11290_v21 = vadd.f32 %v4567_v44, %v4399_v3  ;;  %v8307_v11 = vld [vmem:[%s15543_s9 + $0x438] sm:$0xf]  ;;  %v8165_v3 = vld [vmem:[%s15543_s9 + $0x33c] sm:$0xf0] }
 0x28b   : > { %7352 = vperm.xlu2 %9803, %v7306_v24   ;;  %v11350_v24 = vpop.permute.xlu2 %2830  ;;  %v7313_v44 = vld [vmem:[%s15550_s16 + $0x60] sm:$0xff]  ;;  %v8308_v41 = vor.u32 %v9473_v37, %v8307_v11  ;;  %v8168_v33 = vor.u32 %v9433_v9, %v8165_v3  ;;  %v9320_v11 = vld [vmem:[%s15608_s5 + $0x10] sm:$0xff]  ;;  %v8201_v3 = vld [vmem:[%s15543_s9 + $0x384] sm:$0xf0] }
 0x28c   : > { %15610 = vst [vmem:[#allocation33_spill] sm:$0xff] %v11350_v24  ;;  %v11370_v25 = vpop.permute.xlu1 %2640  ;;  %v9482_v37 = vld [vmem:[%s15543_s9 + $0x4a0] sm:$0xf0] }
 0x28d   : > { %1794 = vmatpush.bf16.msra.mxu2 %v1651_v48  ;;  %9721 = vmatpush.bf16.msra.mxu3 %v1651_v48  ;;  %v1159_v48 = vld [vmem:[%s10355_s21 + $0x170] sm:$0xff]  ;;  %v9442_v9 = vld [vmem:[%s15543_s9 + $0x364] sm:$0xf] }
 0x290   : > { %1795 = vmatmul.bf16.vlgmr.msra.gmra.mxu2 %v9318_v23  ;;  %1820 = vmatmul.bf16.vlgmr.msra.gmra.mxu3 %v9323_v19  ;;  %v1160_v23 = vld [vmem:[%s10355_s21 + $0x178] sm:$0xff] }
 0x291   : > { %v11321_v54 = vpop.f32.mrf.mxu0  ;;  %v4570_v63 = vpop.f32.mrf.mxu1  ;;  %v2092_v19 = vpack.c.bf16 %v1160_v23, %v1159_v48  ;;  %v1152_v48 = vld [vmem:[%s10355_s21 + $0x138] sm:$0xff] }
 0x292   : > { %7362 = vperm.xlu1 %9802, %v7308_v61   ;;  %7357 = vperm.xlu0 %9801, %v7307_v55   ;;  %v11325_v29 = vadd.f32 %v4570_v63, %v4402_v49  ;;  %v4407_v61 = vadd.f32 %v11155_v22, %v11130_v43  ;;  %v1157_v55 = vld [vmem:[%s10355_s21 + $0x160] sm:$0xff]  ;;  %v1158_v49 = vld [vmem:[%s10355_s21 + $0x168] sm:$0xff]  ;;  %v1155_v43 = vld [vmem:[%s10355_s21 + $0x150] sm:$0xff] }
 0x293   : > { %7367 = vperm.xlu2 %9803, %v7309_v32   ;;  %4720 = vmatpush.bf16.msrb.mxu2 %v2092_v19  ;;  %v2091_v22 = vpack.c.bf16 %v1158_v49, %v1157_v55  ;;  %v7316_v63 = vld [vmem:[%s15550_s16 + $0x78] sm:$0xff] }
 0x294   : > { %4460 = vmatmul.bf16.gmra.mxu0 %v8272_v46  ;;  %4609 = vmatmul.bf16.gmra.mxu1 %v8132_v51  ;;  %v1156_v46 = vld [vmem:[%s10355_s21 + $0x158] sm:$0xff]  ;;  %v11387_v51 = vpop.permute.xlu2 %2645 }
 0x297   : > { %4721 = vmatpush.bf16.msrb.mxu2 %v2091_v22 }
 0x299   : > { %v11340_v38 = vpop.f32.mrf.mxu0  ;;  %v4572_v62 = vpop.f32.mrf.mxu1 }
 0x29a   : > { %7377 = vperm.xlu1 %9802, %v7311_v1   ;;  %7372 = vperm.xlu0 %9801, %v7310_v53   ;;  %v11342_v10 = vadd.f32 %v4572_v62, %v4404_v4  ;;  %v2090_v1 = vpack.c.bf16 %v1156_v46, %v1155_v43  ;;  %v4409_v53 = vadd.f32 %v11171_v39, %v11126_v20  ;;  %v9325_v20 = vld [vmem:[%s15608_s5 + $0x38] sm:$0xff]  ;;  %v8343_v39 = vld [vmem:[%s15543_s9 + $0x480] sm:$0xf]  ;;  %v1150_v46 = vld [vmem:[%s10355_s21 + $0x128] sm:$0xff] }
 0x29b   : > { %7382 = vperm.xlu2 %9803, %v7312_v17   ;;  %v11392_v17 = vpop.permute.xlu1 %2725  ;;  %v1149_v43 = vld [vmem:[%s10355_s21 + $0x120] sm:$0xff] }
 0x29c   : > { %15611 = vst [vmem:[#allocation34_spill] sm:$0xff] %v11392_v17  ;;  %4722 = vmatpush.bf16.msrb.mxu2 %v2090_v1  ;;  %v11422_v19 = vpop.permute.xlu2 %2820 }
 0x29d   : > { %15612 = vst [vmem:[#allocation35_spill] sm:$0xff] %v11422_v19 }
 0x2a0   : > { %1800 = vmatmul.bf16.gmra.mxu2 %v9319_v60  ;;  %1825 = vmatmul.bf16.gmra.mxu3 %v9324_v59  ;;  %v1153_v59 = vld [vmem:[%s10355_s21 + $0x140] sm:$0xff] }
 0x2a1   : > { %v11379_v28 = vpop.f32.mrf.mxu0  ;;  %v4575_v34 = vpop.f32.mrf.mxu1 }
 0x2a2   : > { %7392 = vperm.xlu1 %9802, %v7314_v40   ;;  %7387 = vperm.xlu0 %9801, %v7313_v44   ;;  %v11381_v32 = vadd.f32 %v4575_v34, %v4407_v61  ;;  %v1151_v44 = vld [vmem:[%s10355_s21 + $0x130] sm:$0xff]  ;;  %v4412_v61 = vadd.f32 %v11204_v13, %v11109_v57  ;;  %v2087_v13 = vpack.c.bf16 %v1150_v46, %v1149_v43 }
 0x2a3   : > { %7397 = vperm.xlu2 %9803, %v7315_v6   ;;  %v1154_v6 = vld [vmem:[%s10355_s21 + $0x148] sm:$0xff]  ;;  %v2088_v23 = vpack.c.bf16 %v1152_v48, %v1151_v44  ;;  %v11428_v49 = vpop.permute.xlu1 %2630  ;;  %v1147_v57 = vld [vmem:[%s10355_s21 + $0x110] sm:$0xff]  ;;  %v11463_v48 = vpop.permute.xlu0 %2675 }
 0x2a4   : > { %4465 = vmatmul.bf16.gmra.mxu0 %v8308_v41  ;;  %4614 = vmatmul.bf16.gmra.mxu1 %v8168_v33  ;;  %v2089_v40 = vpack.c.bf16 %v1154_v6, %v1153_v59  ;;  %v8344_v41 = vor.u32 %v9482_v37, %v8343_v39  ;;  %v8204_v33 = vor.u32 %v9442_v9, %v8201_v3  ;;  %v11440_v6 = vpop.permute.xlu2 %2635  ;;  %v9321_v9 = vld [vmem:[%s15608_s5 + $0x18] sm:$0xff]  ;;  %v9451_v3 = vld [vmem:[%s15543_s9 + $0x3ac] sm:$0xf]  ;;  %v8237_v44 = vld [vmem:[%s15543_s9 + $0x3cc] sm:$0xf0] }
 0x2a6   : > { %4723 = vmatpush.bf16.msrb.mxu2 %v2089_v40 }
 0x2a9   : > { %v11396_v4 = vpop.f32.mrf.mxu0  ;;  %v4577_v62 = vpop.f32.mrf.mxu1 }
 0x2aa   : > { %7402 = vperm.xlu0 %9801, %v7316_v63   ;;  %v11398_v60 = vadd.f32 %v4577_v62, %v4409_v53  ;;  %4724 = vmatpush.bf16.msrb.mxu2 %v2088_v23  ;;  %v1148_v63 = vld [vmem:[%s10355_s21 + $0x118] sm:$0xff]  ;;  %v4414_v53 = vadd.f32 %v11226_v12, %v11124_v42  ;;  %v8379_v42 = vld [vmem:[%s15543_s9 + $0x4c8] sm:$0xf]  ;;  %v9491_v12 = vld [vmem:[%s15543_s9 + $0x4e8] sm:$0xf0]  ;;  %v4417_v23 = vadd.f32 %v11263_v36, %v11089_v31 }
 0x2ab   : > { %v2086_v1 = vpack.c.bf16 %v1148_v63, %v1147_v57  ;;  %v11446_v37 = vpop.permute.xlu1 %2715  ;;  %v4419_v57 = vadd.f32 %v11286_v56, %v11111_v58  ;;  %v11479_v36 = vpop.permute.xlu0 %2660  ;;  %v9460_v58 = vld [vmem:[%s15543_s9 + $0x3f4] sm:$0xf]  ;;  %v8273_v56 = vld [vmem:[%s15543_s9 + $0x414] sm:$0xf0]  ;;  %v4429_v35 = vadd.f32 %v11396_v4, %v11067_v14  ;;  %v9518_v14 = vld [vmem:[%s15543_s9 + $0x5c0] sm:$0xf0] }
 0x2ac   : > { %v11471_v46 = vpop.permute.xlu2 %2810  ;;  %v9478_v4 = vld [vmem:[%s15543_s9 + $0x484] sm:$0xf] }
 0x2ad   : > { %15613 = vst [vmem:[#allocation36_spill] sm:$0xff] %v11471_v46 }
 0x2ae   : > { %4725 = vmatpush.bf16.msrb.mxu2 %v2087_v13 }
 0x2b0   : > { %1805 = vmatmul.bf16.gmra.mxu2 %v9320_v11  ;;  %1830 = vmatmul.bf16.gmra.mxu3 %v9325_v20  ;;  %v1145_v11 = vld [vmem:[%s10355_s21 + $0x100] sm:$0xff]  ;;  %v1146_v20 = vld [vmem:[%s10355_s21 + $0x108] sm:$0xff] }
 0x2b1   : > { %v11426_v34 = vpop.f32.mrf.mxu0  ;;  %v4580_v55 = vpop.f32.mrf.mxu1  ;;  %v2085_v39 = vpack.c.bf16 %v1146_v20, %v1145_v11  ;;  %v9500_v11 = vld [vmem:[%s15543_s9 + $0x530] sm:$0xf0] }
 0x2b2   : > { %v11430_v22 = vadd.f32 %v4580_v55, %v4412_v61  ;;  %4726 = vmatpush.bf16.msrb.mxu2 %v2086_v1  ;;  %v8380_v61 = vor.u32 %v9491_v12, %v8379_v42  ;;  %v8276_v12 = vor.u32 %v9460_v58, %v8273_v56  ;;  %v8451_v58 = vld [vmem:[%s15543_s9 + $0x558] sm:$0xf]  ;;  %v8309_v56 = vld [vmem:[%s15543_s9 + $0x45c] sm:$0xf0] }
 0x2b3   : > { %v11473_v13 = vpop.permute.xlu1 %2620 }
 0x2b4   : > { %4470 = vmatmul.bf16.gmra.mxu0 %v8344_v41  ;;  %4619 = vmatmul.bf16.gmra.mxu1 %v8204_v33  ;;  %v8240_v41 = vor.u32 %v9451_v3, %v8237_v44  ;;  %v11498_v20 = vpop.permute.xlu2 %2625 }
 0x2b6   : > { %4727 = vmatpush.bf16.msrb.mxu2 %v2085_v39 }
 0x2b9   : > { %v11438_v62 = vpop.f32.mrf.mxu0  ;;  %v4582_v59 = vpop.f32.mrf.mxu1 }
 0x2ba   : > { %v11442_v40 = vadd.f32 %v4582_v59, %v4414_v53  ;;  %v9322_v53 = vld [vmem:[%s15608_s5 + $0x20] sm:$0xff]  ;;  %v8415_v59 = vld [vmem:[%s15543_s9 + $0x510] sm:$0xf] }
 0x2bb   : > { %v11500_v39 = vpop.permute.xlu1 %2705  ;;  %v8416_v42 = vor.u32 %v9500_v11, %v8415_v59 }
 0x2c0   : > { %1810 = vmatmul.bf16.gmra.mxu2 %v9321_v9  ;;  %v4422_v9 = vadd.f32 %v11321_v54, %v11080_v18  ;;  %v7775_v54 = vld [vmem:[%s15543_s9 + $0x8] sm:$0xf] }
 0x2c1   : > { %v11467_v33 = vpop.f32.mrf.mxu0  ;;  %v4585_v55 = vpop.f32.mrf.mxu1 }
 0x2c2   : > { %v11469_v43 = vadd.f32 %v4585_v55, %v4417_v23  ;;  %v4424_v55 = vadd.f32 %v11340_v38, %v11069_v15  ;;  %v9509_v15 = vld [vmem:[%s15543_s9 + $0x578] sm:$0xf0] }
 0x2c3   : > { %v2611_v59 = vpop.permute.xlu1 %2610  ;;  %v9469_v38 = vld [vmem:[%s15543_s9 + $0x43c] sm:$0xf] }
 0x2c4   : > { %4475 = vmatmul.bf16.gmra.mxu0 %v8380_v61  ;;  %4624 = vmatmul.bf16.gmra.mxu1 %v8240_v41  ;;  %v11508_v61 = vpop.permute.xlu0 %2745  ;;  %v11510_v41 = vpop.permute.xlu2 %2800 }
 0x2c5   : > { %15615 = vst [vmem:[#allocation38_spill] sm:$0xff] %v11508_v61 }
 0x2c6   : > { %15616 = vst [vmem:[#allocation39_spill] sm:$0xff] %v11510_v41 }
 0x2c9   : > { %v11477_v63 = vpop.f32.mrf.mxu0  ;;  %v4587_v31 = vpop.f32.mrf.mxu1 }
 0x2ca   : > { %v11481_v1 = vadd.f32 %v4587_v31, %v4419_v57  ;;  %v9339_v31 = vld [vmem:[%s15543_s9 + $0x28] sm:$0xf0] }
 0x2cb   : > { %v7776_v11 = vor.u32 %v9339_v31, %v7775_v54  ;;  %v11544_v26 = vpop.permute.xlu1 %2695 }
 0x2cc   : > { %v2616_v31 = vpop.permute.xlu2 %2615 }
 0x2d0   : > { %1815 = vmatmul.bf16.gmra.mxu2 %v9322_v53 }
 0x2d1   : > { %v11504_v3 = vpop.f32.mrf.mxu0  ;;  %v4590_v44 = vpop.f32.mrf.mxu1 }
 0x2d2   : > { %v11506_v23 = vadd.f32 %v4590_v44, %v4422_v9  ;;  %v11536_v9 = vpop.permute.xlu0 %2730  ;;  %v8312_v44 = vor.u32 %v9469_v38, %v8309_v56  ;;  %v8487_v38 = vld [vmem:[%s15543_s9 + $0x5a0] sm:$0xf] }
 0x2d4   : > { %15614 = vst [vmem:[#allocation37_spill] sm:$0xff] %v11506_v23  ;;  %4480 = vmatmul.bf16.gmra.mxu0 %v8416_v42  ;;  %4629 = vmatmul.bf16.gmra.mxu1 %v8276_v12  ;;  %v4427_v42 = vadd.f32 %v11379_v28, %v11038_v50  ;;  %v8452_v12 = vor.u32 %v9509_v15, %v8451_v58  ;;  %v7811_v28 = vld [vmem:[%s15543_s9 + $0x50] sm:$0xf]  ;;  %v11563_v56 = vpop.permute.xlu2 %2790 }
 0x2d5   : > { %15621 = vst [vmem:[#allocation44_spill] sm:$0xff] %v11563_v56 }
 0x2d9   : > { %v11514_v57 = vpop.f32.mrf.mxu0  ;;  %v4592_v18 = vpop.f32.mrf.mxu1 }
 0x2da   : > { %v11522_v53 = vadd.f32 %v4592_v18, %v4424_v55  ;;  %v11546_v61 = vpop.permute.xlu0 %2835 }
 0x2db   : > { %15619 = vst [vmem:[#allocation42_spill] sm:$0xff] %v11546_v61 }
 0x2dc   : > { %15617 = vst [vmem:[#allocation40_spill] sm:$0xff] %v11522_v53  ;;  %v2606_v24 = vpop.permute.xlu2 %2605 }
 0x2dd   : > { %v4434_v19 = vadd.f32 %v11438_v62, %v2606_v24  ;;  %v8523_v24 = vld [vmem:[%s15543_s9 + $0x5e8] sm:$0xf]  ;;  %v9527_v62 = vld [vmem:[%s15543_s9 + $0x608] sm:$0xf0] }
 0x2e0   : > { %4728 = vmatmul.bf16.vlgmr.msrb.gmra.mxu2 %v7776_v11  ;;  %v9348_v11 = vld [vmem:[%s15543_s9 + $0x70] sm:$0xf0] }
 0x2e1   : > { %v11540_v55 = vpop.f32.mrf.mxu0  ;;  %v4595_v18 = vpop.f32.mrf.mxu1  ;;  %v7812_v15 = vor.u32 %v9348_v11, %v7811_v28 }
 0x2e2   : > { %v11542_v54 = vadd.f32 %v4595_v18, %v4427_v42  ;;  %v2601_v42 = vpop.permute.xlu1 %2600  ;;  %v11577_v11 = vpop.permute.xlu0 %2720 }
 0x2e4   : > { %15618 = vst [vmem:[#allocation41_spill] sm:$0xff] %v11542_v54  ;;  %4485 = vmatmul.bf16.gmra.mxu0 %v8452_v12  ;;  %4634 = vmatmul.bf16.gmra.mxu1 %v8312_v44  ;;  %v4432_v12 = vadd.f32 %v11426_v34, %v2601_v42  ;;  %v8488_v44 = vor.u32 %v9518_v14, %v8487_v38  ;;  %v7847_v34 = vld [vmem:[%s15543_s9 + $0x98] sm:$0xf] }
 0x2e5   : > { %v8524_v42 = vor.u32 %v9527_v62, %v8523_v24  ;;  %v8559_v62 = vld [vmem:[%s15543_s9 + $0x630] sm:$0xf] }
 0x2e9   : > { %v11550_v17 = vpop.f32.mrf.mxu0  ;;  %v4597_v50 = vpop.f32.mrf.mxu1 }
 0x2ea   : > { %v11558_v58 = vadd.f32 %v4597_v50, %v4429_v35  ;;  %v8345_v35 = vld [vmem:[%s15543_s9 + $0x4a4] sm:$0xf0]  ;;  %v11592_v14 = vpop.permute.xlu0 %2825 }
 0x2eb   : > { %v8348_v18 = vor.u32 %v9478_v4, %v8345_v35  ;;  %15624 = vst [vmem:[#allocation47_spill] sm:$0xff] %v11592_v14  ;;  %v9487_v35 = vld [vmem:[%s15543_s9 + $0x4cc] sm:$0xf] }
 0x2ec   : > { %15620 = vst [vmem:[#allocation43_spill] sm:$0xff] %v11558_v58 }
 0x2f0   : > { %4733 = vmatmul.bf16.gmra.mxu2 %v7812_v15  ;;  %v9357_v15 = vld [vmem:[%s15543_s9 + $0xb8] sm:$0xf0] }
 0x2f1   : > { %v11575_v50 = vpop.f32.mrf.mxu0  ;;  %v4600_v28 = vpop.f32.mrf.mxu1  ;;  %v7848_v4 = vor.u32 %v9357_v15, %v7847_v34  ;;  %v4439_v15 = vadd.f32 %v11477_v63, %v2616_v31  ;;  %v9536_v63 = vld [vmem:[%s15543_s9 + $0x650] sm:$0xf0] }
 0x2f2   : > { %v11579_v61 = vadd.f32 %v4600_v28, %v4432_v12  ;;  %v11611_v34 = vpop.permute.xlu0 %2710  ;;  %v9496_v31 = vld [vmem:[%s15543_s9 + $0x514] sm:$0xf] }
 0x2f4   : > { %15622 = vst [vmem:[#allocation45_spill] sm:$0xff] %v11579_v61  ;;  %4490 = vmatmul.bf16.gmra.mxu0 %v8488_v44  ;;  %4639 = vmatmul.bf16.gmra.mxu1 %v8348_v18 }
 0x2f9   : > { %v11582_v46 = vpop.f32.mrf.mxu0  ;;  %v4602_v41 = vpop.f32.mrf.mxu1 }
 0x2fa   : > { %v11590_v38 = vadd.f32 %v4602_v41, %v4434_v19  ;;  %v8381_v19 = vld [vmem:[%s15543_s9 + $0x4ec] sm:$0xf0]  ;;  %v4437_v41 = vadd.f32 %v11467_v33, %v2611_v59  ;;  %v7883_v33 = vld [vmem:[%s15543_s9 + $0xe0] sm:$0xf]  ;;  %v9366_v59 = vld [vmem:[%s15543_s9 + $0x100] sm:$0xf0] }
 0x2fb   : > { %v8384_v12 = vor.u32 %v9487_v35, %v8381_v19  ;;  %v7884_v24 = vor.u32 %v9366_v59, %v7883_v33  ;;  %v8417_v35 = vld [vmem:[%s15543_s9 + $0x534] sm:$0xf0]  ;;  %v11636_v19 = vpop.permute.xlu0 %2815 }
 0x2fc   : > { %15623 = vst [vmem:[#allocation46_spill] sm:$0xff] %v11590_v38 }
 0x2fd   : > { %15627 = vst [vmem:[#allocation50_spill] sm:$0xff] %v11636_v19 }
 0x300   : > { %4738 = vmatmul.bf16.gmra.mxu2 %v7848_v4 }
 0x301   : > { %v11607_v44 = vpop.f32.mrf.mxu0  ;;  %v4605_v18 = vpop.f32.mrf.mxu1 }
 0x302   : > { %v11609_v28 = vadd.f32 %v4605_v18, %v4437_v41  ;;  %v8560_v41 = vor.u32 %v9536_v63, %v8559_v62 }
 0x304   : > { %15625 = vst [vmem:[#allocation48_spill] sm:$0xff] %v11609_v28  ;;  %4495 = vmatmul.bf16.gmra.mxu0 %v8524_v42  ;;  %4644 = vmatmul.bf16.gmra.mxu1 %v8384_v12  ;;  %v8420_v42 = vor.u32 %v9496_v31, %v8417_v35 }
 0x309   : > { %v11614_v14 = vpop.f32.mrf.mxu0  ;;  %v4607_v56 = vpop.f32.mrf.mxu1 }
 0x30a   : > { %v11622_v4 = vadd.f32 %v4607_v56, %v4439_v15  ;;  %v4442_v56 = vadd.f32 %v11504_v3, %v11473_v13  ;;  %v7919_v13 = vld [vmem:[%s15543_s9 + $0x128] sm:$0xf]  ;;  %v9375_v3 = vld [vmem:[%s15543_s9 + $0x148] sm:$0xf0] }
 0x30b   : > { %v7920_v35 = vor.u32 %v9375_v3, %v7919_v13 }
 0x30c   : > { %15626 = vst [vmem:[#allocation49_spill] sm:$0xff] %v11622_v4  ;;  %v4444_v4 = vadd.f32 %v11514_v57, %v11498_v20 }
 0x310   : > { %4743 = vmatmul.bf16.gmra.mxu2 %v7884_v24  ;;  %v11656_v24 = vpop.permute.xlu0 %2700 }
 0x311   : > { %v11640_v12 = vpop.f32.mrf.mxu0  ;;  %v4610_v18 = vpop.f32.mrf.mxu1 }
 0x312   : > { %v11642_v15 = vadd.f32 %v4610_v18, %v4442_v56  ;;  %v8595_v56 = vld [vmem:[%s15543_s9 + $0x678] sm:$0xf] }
 0x313   : > { %v1796_v33 = vpop.f32.mrf.mxu2  ;;  %v11644_v59 = vpop.f32.mrf.mxu3 }
 0x314   : > { %15628 = vst [vmem:[#allocation51_spill] sm:$0xff] %v11642_v15  ;;  %4500 = vmatmul.bf16.gmra.mxu0 %v8560_v41  ;;  %4649 = vmatmul.bf16.gmra.mxu1 %v8420_v42  ;;  %v1797_v62 = vadd.f32 %v1796_v33, %v11032_v47  ;;  %v9545_v41 = vld [vmem:[%s15543_s9 + $0x698] sm:$0xf0]  ;;  %v4447_v42 = vadd.f32 %v11540_v55, %v11428_v49 }
 0x315   : > { %v9505_v47 = vld [vmem:[%s15543_s9 + $0x55c] sm:$0xf]  ;;  %v8596_v18 = vor.u32 %v9545_v41, %v8595_v56  ;;  %v4449_v49 = vadd.f32 %v11550_v17, %v11440_v6  ;;  %v8631_v17 = vld [vmem:[%s15543_s9 + $0x6c0] sm:$0xf]  ;;  %v9554_v6 = vld [vmem:[%s15543_s9 + $0x6e0] sm:$0xf0] }
 0x318   : > { %v11686_v38 = vpop.permute.xlu0 %2805 }
 0x319   : > { %v11648_v19 = vpop.f32.mrf.mxu0  ;;  %v4612_v28 = vpop.f32.mrf.mxu1  ;;  %15631 = vst [vmem:[#allocation54_spill] sm:$0xff] %v11686_v38 }
 0x31a   : > { %v11659_v63 = vadd.f32 %v4612_v28, %v4444_v4  ;;  %v8453_v28 = vld [vmem:[%s15543_s9 + $0x57c] sm:$0xf0] }
 0x31b   : > { %v1798_v31 = vpop.f32.mrf.mxu2  ;;  %v11662_v57 = vpop.f32.mrf.mxu3  ;;  %v8456_v33 = vor.u32 %v9505_v47, %v8453_v28 }
 0x31c   : > { %15629 = vst [vmem:[#allocation52_spill] sm:$0xff] %v11659_v63  ;;  %v1799_v20 = vadd.f32 %v1798_v31, %v11043_v52  ;;  %v1836_v52 = vmax.f32 %v1797_v62, 0.0 }
 0x31e   : > { %v1837_v4 = vmax.f32 %v1799_v20, 0.0  ;;  %v7955_v20 = vld [vmem:[%s15543_s9 + $0x170] sm:$0xf] }
 0x320   : > { %4748 = vmatmul.bf16.gmra.mxu2 %v7920_v35  ;;  %v11678_v13 = vpack.c.bf16 %v1837_v4, %v1836_v52  ;;  %v9384_v35 = vld [vmem:[%s15543_s9 + $0x190] sm:$0xf0]  ;;  %v9514_v52 = vld [vmem:[%s15543_s9 + $0x5a4] sm:$0xf]  ;;  %v8489_v4 = vld [vmem:[%s15543_s9 + $0x5c4] sm:$0xf0] }
 0x321   : > { %v11680_v3 = vpop.f32.mrf.mxu0  ;;  %v4615_v31 = vpop.f32.mrf.mxu1  ;;  %v7956_v28 = vor.u32 %v9384_v35, %v7955_v20 }
 0x322   : > { %v11682_v63 = vadd.f32 %v4615_v31, %v4447_v42  ;;  %v11714_v42 = vpop.permute.xlu0 %2690  ;;  %v8492_v31 = vor.u32 %v9514_v52, %v8489_v4 }
 0x323   : > { %v11684_v15 = vpop.f32.mrf.mxu2  ;;  %v1826_v61 = vpop.f32.mrf.mxu3 }
 0x324   : > { %15630 = vst [vmem:[#allocation53_spill] sm:$0xff] %v11682_v63  ;;  %4505 = vmatmul.bf16.gmra.mxu0 %v8596_v18  ;;  %4654 = vmatmul.bf16.gmra.mxu1 %v8456_v33  ;;  %v4452_v18 = vadd.f32 %v11575_v50, %v11370_v25  ;;  %v8632_v33 = vor.u32 %v9554_v6, %v8631_v17  ;;  %v7991_v50 = vld [vmem:[%s15543_s9 + $0x1b8] sm:$0xf] }
 0x325   : > { %v4454_v63 = vadd.f32 %v11582_v46, %v11387_v51  ;;  %v15636_v6 = vld [vmem:[#allocation16_spill] sm:$0xff]  ;;  %v8667_v51 = vld [vmem:[%s15543_s9 + $0x708] sm:$0xf]  ;;  %v15637_v46 = vld [vmem:[#allocation19_spill] sm:$0xff] }
 0x329   : > { %v11690_v55 = vpop.f32.mrf.mxu0  ;;  %v4617_v62 = vpop.f32.mrf.mxu1 }
 0x32a   : > { %v11698_v56 = vadd.f32 %v4617_v62, %v4449_v49 }
 0x32b   : > { %v11700_v41 = vpop.f32.mrf.mxu2  ;;  %v1828_v47 = vpop.f32.mrf.mxu3 }
 0x32c   : > { %15632 = vst [vmem:[#allocation55_spill] sm:$0xff] %v11698_v56  ;;  %v11724_v56 = vpop.permute.xlu0 %2795 }
 0x32d   : > { %15634 = vst [vmem:[#allocation57_spill] sm:$0xff] %v11724_v56 }
 0x330   : > { %4753 = vmatmul.bf16.gmra.mxu2 %v7956_v28  ;;  %v9393_v28 = vld [vmem:[%s15543_s9 + $0x1d8] sm:$0xf0] }
 0x331   : > { %v11718_v49 = vpop.f32.mrf.mxu0  ;;  %v4620_v62 = vpop.f32.mrf.mxu1 }
 0x332   : > { %v11720_v20 = vadd.f32 %v4620_v62, %v4452_v18  ;;  %v15638_v62 = vld [vmem:[#allocation15_spill] sm:$0xff] }
 0x333   : > { %v11722_v35 = vpop.f32.mrf.mxu2  ;;  %v1831_v38 = vpop.f32.mrf.mxu3 }
 0x334   : > { %15633 = vst [vmem:[#allocation56_spill] sm:$0xff] %v11720_v20  ;;  %4510 = vmatmul.bf16.gmra.mxu0 %v8632_v33  ;;  %4659 = vmatmul.bf16.gmra.mxu1 %v8492_v31  ;;  %v1832_v52 = vadd.f32 %v1831_v38, %v15636_v6  ;;  %v7992_v33 = vor.u32 %v9393_v28, %v7991_v50  ;;  %v9563_v20 = vld [vmem:[%s15543_s9 + $0x728] sm:$0xf0]  ;;  %v11762_v23 = vpop.permute.xlu0 %2680 }
 0x335   : > { %v1829_v31 = vadd.f32 %v1828_v47, %v15637_v46  ;;  %v9523_v38 = vld [vmem:[%s15543_s9 + $0x5ec] sm:$0xf]  ;;  %v4457_v47 = vadd.f32 %v11607_v44, %v11288_v30 }
 0x336   : > { %v1850_v28 = vmax.f32 %v1832_v52, 0.0  ;;  %v11768_v52 = vpop.permute.xlu2 %2780 }
 0x337   : > { %v1849_v58 = vmax.f32 %v1829_v31, 0.0  ;;  %v1192_v31 = vld [vmem:[%s10355_s21 + $0x278] sm:$0xff] }
 0x339   : > { %v11728_v5 = vpop.f32.mrf.mxu0  ;;  %v4622_v25 = vpop.f32.mrf.mxu1 }
 0x33a   : > { %v11736_v17 = vadd.f32 %v4622_v25, %v4454_v63  ;;  %v8525_v63 = vld [vmem:[%s15543_s9 + $0x60c] sm:$0xf0]  ;;  %v15639_v25 = vld [vmem:[#allocation17_spill] sm:$0xff] }
 0x33b   : > { %v11739_v4 = vpop.f32.mrf.mxu2  ;;  %v1833_v18 = vpop.f32.mrf.mxu3  ;;  %v1827_v50 = vadd.f32 %v1826_v61, %v15639_v25  ;;  %v8528_v46 = vor.u32 %v9523_v38, %v8525_v63 }
 0x33c   : > { %15635 = vst [vmem:[#allocation58_spill] sm:$0xff] %v11736_v17  ;;  %v1834_v56 = vadd.f32 %v1833_v18, %v15638_v62  ;;  %v8668_v18 = vor.u32 %v9563_v20, %v8667_v51  ;;  %v15640_v62 = vld [vmem:[#allocation20_spill] sm:$0xff] }
 0x33d   : > { %v1824_v17 = vadd.f32 %v11662_v57, %v15640_v62  ;;  %v1848_v44 = vmax.f32 %v1827_v50, 0.0  ;;  %v1191_v51 = vld [vmem:[%s10355_s21 + $0x270] sm:$0xff] }
 0x33e   : > { %v1851_v6 = vmax.f32 %v1834_v56, 0.0  ;;  %v15642_v56 = vld [vmem:[#allocation18_spill] sm:$0xff]  ;;  %v2108_v63 = vpack.c.bf16 %v1192_v31, %v1191_v51  ;;  %v8561_v62 = vld [vmem:[%s15543_s9 + $0x654] sm:$0xf0] }
 0x33f   : > { %v1822_v30 = vadd.f32 %v11644_v59, %v15642_v56  ;;  %v1847_v57 = vmax.f32 %v1824_v17, 0.0  ;;  %v11782_v17 = vpop.permute.xlu1 %2685  ;;  %v11800_v56 = vpop.permute.xlu2 %2775 }
 0x340   : > { %4758 = vmatmul.bf16.gmra.mxu2 %v7992_v33  ;;  %v1891_v54 = vpack.c.bf16 %v1851_v6, %v1850_v28  ;;  %v1890_v33 = vpack.c.bf16 %v1849_v58, %v1848_v44  ;;  %v9402_v58 = vld [vmem:[%s15543_s9 + $0x220] sm:$0xf0]  ;;  %5058 = vmatpush.bf16.msrb.mxu0 %v2108_v63  ;;  %15645 = vst [vmem:[#allocation17_spill] sm:$0xff] %v11800_v56 }
 0x341   : > { %v11760_v16 = vpop.f32.mrf.mxu0  ;;  %v4625_v53 = vpop.f32.mrf.mxu1  ;;  %v1846_v38 = vmax.f32 %v1822_v30, 0.0  ;;  %v4462_v30 = vadd.f32 %v11640_v12, %v11479_v36  ;;  %v4464_v36 = vadd.f32 %v11648_v19, %v11255_v27 }
 0x342   : > { %v11764_v61 = vadd.f32 %v4625_v53, %v4457_v47  ;;  %2020 = vmatpush.bf16.msrb.mxu3 %v1891_v54  ;;  %v4459_v53 = vadd.f32 %v11614_v14, %v11323_v0  ;;  %v8027_v54 = vld [vmem:[%s15543_s9 + $0x200] sm:$0xf]  ;;  %v11786_v0 = vpop.permute.xlu0 %2785  ;;  %v8703_v47 = vld [vmem:[%s15543_s9 + $0x750] sm:$0xf] }
 0x343   : > { %v1811_v20 = vpop.f32.mrf.mxu2  ;;  %v1889_v25 = vpack.c.bf16 %v1847_v57, %v1846_v38  ;;  %15644 = vst [vmem:[#allocation15_spill] sm:$0xff] %v11786_v0  ;;  %v8028_v14 = vor.u32 %v9402_v58, %v8027_v54  ;;  %v8063_v54 = vld [vmem:[%s15543_s9 + $0x248] sm:$0xf]  ;;  %v9411_v58 = vld [vmem:[%s15543_s9 + $0x268] sm:$0xf0] }
 0x344   : > { %15641 = vst [vmem:[#allocation16_spill] sm:$0xff] %v11764_v61  ;;  %4515 = vmatmul.bf16.gmra.mxu0 %v8668_v18  ;;  %4664 = vmatmul.bf16.gmra.mxu1 %v8528_v46  ;;  %v9572_v18 = vld [vmem:[%s15543_s9 + $0x770] sm:$0xf0]  ;;  %v8064_v19 = vor.u32 %v9411_v58, %v8063_v54 }
 0x345   : > { %v9532_v46 = vld [vmem:[%s15543_s9 + $0x634] sm:$0xf]  ;;  %v8704_v44 = vor.u32 %v9572_v18, %v8703_v47 }
 0x346   : > { %2021 = vmatpush.bf16.msrb.mxu3 %v1890_v33  ;;  %v8564_v57 = vor.u32 %v9532_v46, %v8561_v62  ;;  %v15650_v62 = vld [vmem:[#allocation25_spill] sm:$0xff] }
 0x347   : > { %v11808_v63 = vpop.permute.xlu1 %2770 }
 0x349   : > { %v11774_v28 = vpop.f32.mrf.mxu0  ;;  %v4627_v59 = vpop.f32.mrf.mxu1 }
 0x34a   : > { %v11784_v50 = vadd.f32 %v4627_v59, %v4459_v53  ;;  %2022 = vmatpush.bf16.msrb.mxu3 %v1889_v25  ;;  %v11810_v53 = vpop.permute.xlu0 %2760  ;;  %v11812_v25 = vpop.permute.xlu2 %6167 }
 0x34b   : > { %v1813_v6 = vpop.f32.mrf.mxu2  ;;  %15647 = vst [vmem:[#allocation18_spill] sm:$0xff] %v11812_v25 }
 0x34c   : > { %15643 = vst [vmem:[#allocation19_spill] sm:$0xff] %v11784_v50 }
 0x350   : > { %4763 = vmatmul.bf16.gmra.mxu2 %v8028_v14  ;;  %v15648_v14 = vld [vmem:[#allocation22_spill] sm:$0xff] }
 0x351   : > { %v11804_v33 = vpop.f32.mrf.mxu0  ;;  %v4630_v51 = vpop.f32.mrf.mxu1 }
 0x352   : > { %v11806_v31 = vadd.f32 %v4630_v51, %v4462_v30  ;;  %v1814_v30 = vadd.f32 %v1813_v6, %v15650_v62  ;;  %v9581_v51 = vld [vmem:[%s15543_s9 + $0x7b8] sm:$0xf0]  ;;  %v11841_v6 = vpop.permute.xlu1 %2765  ;;  %v15654_v62 = vld [vmem:[#allocation26_spill] sm:$0xff]  ;;  %v11848_v25 = vpop.permute.xlu0 %6172 }
 0x353   : > { %v1816_v38 = vpop.f32.mrf.mxu2  ;;  %15652 = vst [vmem:[#allocation25_spill] sm:$0xff] %v11841_v6  ;;  %v11852_v61 = vpop.permute.xlu2 %6252 }
 0x354   : > { %15646 = vst [vmem:[#allocation20_spill] sm:$0xff] %v11806_v31  ;;  %4520 = vmatmul.bf16.gmra.mxu0 %v8704_v44  ;;  %4669 = vmatmul.bf16.gmra.mxu1 %v8564_v57  ;;  %v1817_v47 = vadd.f32 %v1816_v38, %v15648_v14  ;;  %v15651_v44 = vld [vmem:[#allocation21_spill] sm:$0xff]  ;;  %v8739_v57 = vld [vmem:[%s15543_s9 + $0x798] sm:$0xf]  ;;  %v9541_v38 = vld [vmem:[%s15543_s9 + $0x67c] sm:$0xf] }
 0x355   : > { %15655 = vst [vmem:[#allocation21_spill] sm:$0xff] %v11848_v25  ;;  %v1843_v0 = vmax.f32 %v1814_v30, 0.0 }
 0x356   : > { %v1844_v58 = vmax.f32 %v1817_v47, 0.0 }
 0x359   : > { %v11816_v12 = vpop.f32.mrf.mxu0  ;;  %v4632_v59 = vpop.f32.mrf.mxu1 }
 0x35a   : > { %v11825_v18 = vadd.f32 %v4632_v59, %v4464_v36  ;;  %v8597_v36 = vld [vmem:[%s15543_s9 + $0x69c] sm:$0xf0]  ;;  %v15653_v59 = vld [vmem:[#allocation23_spill] sm:$0xff] }
 0x35b   : > { %v1818_v46 = vpop.f32.mrf.mxu2  ;;  %v1812_v54 = vadd.f32 %v1811_v20, %v15653_v59  ;;  %v8600_v31 = vor.u32 %v9541_v38, %v8597_v36  ;;  %15656 = vst [vmem:[#allocation23_spill] sm:$0xff] %v11852_v61  ;;  %v15657_v20 = vld [vmem:[#allocation24_spill] sm:$0xff] }
 0x35c   : > { %15649 = vst [vmem:[#allocation22_spill] sm:$0xff] %v11825_v18  ;;  %v1819_v27 = vadd.f32 %v1818_v46, %v15651_v44  ;;  %v4467_v46 = vadd.f32 %v11680_v3, %v11210_v7  ;;  %v1809_v44 = vadd.f32 %v11739_v4, %v15654_v62  ;;  %v8740_v18 = vor.u32 %v9581_v51, %v8739_v57  ;;  %v15658_v4 = vld [vmem:[#allocation27_spill] sm:$0xff]  ;;  %v15659_v38 = vld [vmem:[#allocation28_spill] sm:$0xff] }
 0x35d   : > { %v1807_v47 = vadd.f32 %v11722_v35, %v15657_v20  ;;  %v1804_v30 = vadd.f32 %v11700_v41, %v15658_v4  ;;  %v1802_v36 = vadd.f32 %v11684_v15, %v15659_v38  ;;  %v11865_v35 = vpop.permute.xlu1 %6247  ;;  %v9420_v15 = vld [vmem:[%s15543_s9 + $0x2b0] sm:$0xf0]  ;;  %v9590_v20 = vld [vmem:[%s15543_s9 + $0x800] sm:$0xf0] }
 0x35e   : > { %v1845_v14 = vmax.f32 %v1819_v27, 0.0  ;;  %v1842_v27 = vmax.f32 %v1812_v54, 0.0  ;;  %15660 = vst [vmem:[#allocation26_spill] sm:$0xff] %v11865_v35 }
 0x35f   : > { %v1840_v59 = vmax.f32 %v1807_v47, 0.0  ;;  %v9550_v47 = vld [vmem:[%s15543_s9 + $0x6c4] sm:$0xf] }
 0x360   : > { %4768 = vmatmul.bf16.gmra.mxu2 %v8064_v19  ;;  %v1888_v56 = vpack.c.bf16 %v1845_v14, %v1844_v58  ;;  %v1841_v19 = vmax.f32 %v1809_v44, 0.0  ;;  %v1887_v51 = vpack.c.bf16 %v1843_v0, %v1842_v27  ;;  %v11877_v0 = vpop.permute.xlu0 %6157  ;;  %v8775_v44 = vld [vmem:[%s15543_s9 + $0x7e0] sm:$0xf]  ;;  %v8633_v27 = vld [vmem:[%s15543_s9 + $0x6e4] sm:$0xf0] }
 0x361   : > { %v11850_v50 = vpop.f32.mrf.mxu0  ;;  %v4635_v6 = vpop.f32.mrf.mxu1  ;;  %15661 = vst [vmem:[#allocation24_spill] sm:$0xff] %v11877_v0  ;;  %v8636_v4 = vor.u32 %v9550_v47, %v8633_v27  ;;  %v4477_v47 = vadd.f32 %v11760_v16, %v11714_v42  ;;  %v1189_v16 = vld [vmem:[%s10355_s21 + $0x260] sm:$0xff]  ;;  %v1190_v42 = vld [vmem:[%s10355_s21 + $0x268] sm:$0xff] }
 0x362   : > { %2023 = vmatpush.bf16.msrb.mxu3 %v1888_v56  ;;  %v11856_v7 = vadd.f32 %v4635_v6, %v4467_v46  ;;  %v4469_v56 = vadd.f32 %v11690_v55, %v11463_v48  ;;  %v1839_v6 = vmax.f32 %v1804_v30, 0.0  ;;  %v1886_v54 = vpack.c.bf16 %v1841_v19, %v1840_v59  ;;  %v11881_v55 = vpop.permute.xlu2 %6237 }
 0x363   : > { %v4729_v3 = vpop.f32.mrf.mxu2  ;;  %15662 = vst [vmem:[#allocation27_spill] sm:$0xff] %v11881_v55 }
 0x364   : > { %v11861_v57 = vadd.f32 %v4729_v3, %v11206_v45  ;;  %4525 = vmatmul.bf16.gmra.mxu0 %v8740_v18  ;;  %4674 = vmatmul.bf16.gmra.mxu1 %v8600_v31  ;;  %v8099_v45 = vld [vmem:[%s15543_s9 + $0x290] sm:$0xf]  ;;  %v1838_v31 = vmax.f32 %v1802_v36, 0.0  ;;  %v8776_v3 = vor.u32 %v9590_v20, %v8775_v44 }
 0x365   : > { %v8100_v62 = vor.u32 %v9420_v15, %v8099_v45  ;;  %v11905_v38 = vpop.permute.xlu1 %6162  ;;  %v8669_v44 = vld [vmem:[%s15543_s9 + $0x72c] sm:$0xf0] }
 0x366   : > { %2024 = vmatpush.bf16.msrb.mxu3 %v1887_v51  ;;  %v1885_v46 = vpack.c.bf16 %v1839_v6, %v1838_v31  ;;  %v9326_v51 = vld [vmem:[%s15541_s7] sm:$0xff]  ;;  %15663 = vst [vmem:[#allocation28_spill] sm:$0xff] %v11905_v38  ;;  %v4474_v6 = vadd.f32 %v11728_v5, %v11782_v17  ;;  %v8811_v17 = vld [vmem:[%s15543_s9 + $0x828] sm:$0xf] }
 0x369   : > { %v11869_v41 = vpop.f32.mrf.mxu0  ;;  %v4637_v58 = vpop.f32.mrf.mxu1 }
 0x36a   : > { %2025 = vmatpush.bf16.msrb.mxu3 %v1886_v54  ;;  %v11879_v18 = vadd.f32 %v4637_v58, %v4469_v56  ;;  %v11910_v56 = vpop.permute.xlu0 %6242 }
 0x36b   : > { %v4731_v48 = vpop.f32.mrf.mxu2  ;;  %15664 = vst [vmem:[#allocation59_spill] sm:$0xff] %v11910_v56 }
 0x36c   : > { %v11884_v14 = vadd.f32 %v4731_v48, %v11228_v2  ;;  %v4472_v2 = vadd.f32 %v11718_v49, %v11762_v23  ;;  %v11915_v49 = vpop.permute.xlu2 %6152 }
 0x36d   : > { %15665 = vst [vmem:[#allocation60_spill] sm:$0xff] %v11915_v49  ;;  %v11929_v31 = vpop.permute.xlu1 %6147  ;;  %v1188_v49 = vld [vmem:[%s10355_s21 + $0x258] sm:$0xff] }
 0x36e   : > { %2026 = vmatpush.bf16.msrb.mxu3 %v1885_v46  ;;  %15666 = vst [vmem:[#allocation61_spill] sm:$0xff] %v11929_v31  ;;  %v9599_v46 = vld [vmem:[%s15543_s9 + $0x848] sm:$0xf0]  ;;  %v1187_v31 = vld [vmem:[%s10355_s21 + $0x250] sm:$0xff] }
 0x36f   : > { %v8812_v27 = vor.u32 %v9599_v46, %v8811_v17  ;;  %v9438_v46 = vld [vmem:[%s15543_s9 + $0x340] sm:$0xf0]  ;;  %v2106_v0 = vpack.c.bf16 %v1188_v49, %v1187_v31  ;;  %v9331_v49 = vld [vmem:[%s15541_s7 + $0x28] sm:$0xff] }
 0x370   : > { %4773 = vmatmul.bf16.gmra.mxu2 %v8100_v62  ;;  %v9559_v62 = vld [vmem:[%s15543_s9 + $0x70c] sm:$0xf] }
 0x371   : > { %v11900_v30 = vpop.f32.mrf.mxu0  ;;  %v4640_v19 = vpop.f32.mrf.mxu1 }
 0x372   : > { %2027 = vmatpush.bf16.msrb.mxu3 %v11678_v13  ;;  %v11908_v36 = vadd.f32 %v4640_v19, %v4472_v2  ;;  %v8135_v13 = vld [vmem:[%s15543_s9 + $0x2d8] sm:$0xf]  ;;  %v8672_v2 = vor.u32 %v9559_v62, %v8669_v44  ;;  %v9327_v19 = vld [vmem:[%s15541_s7 + $0x8] sm:$0xff] }
 0x373   : > { %v4734_v59 = vpop.f32.mrf.mxu2 }
 0x374   : > { %v11913_v23 = vadd.f32 %v4734_v59, %v11265_v8  ;;  %4530 = vmatmul.bf16.gmra.mxu0 %v8776_v3  ;;  %4679 = vmatmul.bf16.gmra.mxu1 %v8636_v4  ;;  %v9429_v8 = vld [vmem:[%s15543_s9 + $0x2f8] sm:$0xf0]  ;;  %v11948_v20 = vpop.permute.xlu2 %6137 }
 0x375   : > { %2028 = vmatmul.bf16.vlgmr.msrb.gmra.mxu3 %v9326_v51  ;;  %v8136_v5 = vor.u32 %v9429_v8, %v8135_v13  ;;  %15668 = vst [vmem:[#allocation63_spill] sm:$0xff] %v11948_v20  ;;  %v2107_v13 = vpack.c.bf16 %v1190_v42, %v1189_v16  ;;  %v1179_v20 = vld [vmem:[%s10355_s21 + $0x210] sm:$0xff] }
 0x377   : > { %5059 = vmatpush.bf16.msrb.mxu0 %v2107_v13 }
 0x379   : > { %v11919_v54 = vpop.f32.mrf.mxu0  ;;  %v4642_v58 = vpop.f32.mrf.mxu1 }
 0x37a   : > { %v11927_v45 = vadd.f32 %v4642_v58, %v4474_v6  ;;  %v11964_v58 = vpop.permute.xlu1 %6232 }
 0x37b   : > { %v4736_v15 = vpop.f32.mrf.mxu2  ;;  %15669 = vst [vmem:[#allocation64_spill] sm:$0xff] %v11964_v58  ;;  %5060 = vmatpush.bf16.msrb.mxu0 %v2106_v0  ;;  %v1205_v0 = vld [vmem:[%s10355_s21 + $0x2e0] sm:$0xff] }
 0x37c   : > { %v11932_v48 = vadd.f32 %v4736_v15, %v11290_v21  ;;  %v11946_v21 = vpop.permute.xlu0 %6227  ;;  %v4479_v15 = vadd.f32 %v11774_v28, %v11544_v26  ;;  %v11978_v62 = vpop.permute.xlu2 %6222  ;;  %v8847_v28 = vld [vmem:[%s15543_s9 + $0x870] sm:$0xf] }
 0x37d   : > { %15667 = vst [vmem:[#allocation62_spill] sm:$0xff] %v11946_v21 }
 0x37e   : > { %15671 = vst [vmem:[#allocation66_spill] sm:$0xff] %v11978_v62 }
 0x380   : > { %4778 = vmatmul.bf16.gmra.mxu2 %v8136_v5 }
 0x381   : > { %v11952_v3 = vpop.f32.mrf.mxu0  ;;  %v4645_v4 = vpop.f32.mrf.mxu1 }
 0x382   : > { %v11957_v51 = vadd.f32 %v4645_v4, %v4477_v47  ;;  %v9568_v4 = vld [vmem:[%s15543_s9 + $0x754] sm:$0xf] }
 0x383   : > { %v4739_v59 = vpop.f32.mrf.mxu2 }
 0x384   : > { %v11960_v6 = vadd.f32 %v4739_v59, %v11325_v29  ;;  %4535 = vmatmul.bf16.gmra.mxu0 %v8812_v27  ;;  %4684 = vmatmul.bf16.gmra.mxu1 %v8672_v2  ;;  %v11966_v8 = vpop.permute.xlu0 %6142  ;;  %v8171_v29 = vld [vmem:[%s15543_s9 + $0x320] sm:$0xf]  ;;  %v9608_v2 = vld [vmem:[%s15543_s9 + $0x890] sm:$0xf0]  ;;  %v11997_v59 = vpop.permute.xlu1 %6217 }
 0x385   : > { %2033 = vmatmul.bf16.gmra.mxu3 %v9327_v19  ;;  %15670 = vst [vmem:[#allocation65_spill] sm:$0xff] %v11966_v8  ;;  %v8172_v26 = vor.u32 %v9438_v46, %v8171_v29  ;;  %v8705_v19 = vld [vmem:[%s15543_s9 + $0x774] sm:$0xf0]  ;;  %v8848_v16 = vor.u32 %v9608_v2, %v8847_v28  ;;  %v12010_v62 = vpop.permute.xlu2 %6207  ;;  %v8207_v28 = vld [vmem:[%s15543_s9 + $0x368] sm:$0xf] }
 0x386   : > { %15672 = vst [vmem:[#allocation67_spill] sm:$0xff] %v11997_v59  ;;  %v8708_v42 = vor.u32 %v9568_v4, %v8705_v19  ;;  %v9447_v2 = vld [vmem:[%s15543_s9 + $0x388] sm:$0xf0]  ;;  %v1172_v8 = vld [vmem:[%s10355_s21 + $0x1d8] sm:$0xff] }
 0x387   : > { %15674 = vst [vmem:[#allocation69_spill] sm:$0xff] %v12010_v62  ;;  %v1169_v59 = vld [vmem:[%s10355_s21 + $0x1c0] sm:$0xff]  ;;  %v1170_v62 = vld [vmem:[%s10355_s21 + $0x1c8] sm:$0xff] }
 0x388   : > { %v2097_v31 = vpack.c.bf16 %v1170_v62, %v1169_v59  ;;  %v1167_v62 = vld [vmem:[%s10355_s21 + $0x1b0] sm:$0xff]  ;;  %v1168_v59 = vld [vmem:[%s10355_s21 + $0x1b8] sm:$0xff] }
 0x389   : > { %v11970_v5 = vpop.f32.mrf.mxu0  ;;  %v4647_v17 = vpop.f32.mrf.mxu1 }
 0x38a   : > { %v11980_v44 = vadd.f32 %v4647_v17, %v4479_v15  ;;  %v9328_v17 = vld [vmem:[%s15541_s7 + $0x10] sm:$0xff] }
 0x38b   : > { %v4741_v47 = vpop.f32.mrf.mxu2 }
 0x38c   : > { %v11983_v27 = vadd.f32 %v4741_v47, %v11342_v10  ;;  %v4482_v10 = vadd.f32 %v11804_v33, %v11656_v24  ;;  %v12006_v29 = vpop.permute.xlu0 %6127  ;;  %v4484_v24 = vadd.f32 %v11816_v12, %v11500_v39  ;;  %v12025_v4 = vpop.permute.xlu1 %6132  ;;  %v8208_v12 = vor.u32 %v9447_v2, %v8207_v28  ;;  %v9329_v2 = vld [vmem:[%s15541_s7 + $0x18] sm:$0xff] }
 0x38d   : > { %15673 = vst [vmem:[#allocation68_spill] sm:$0xff] %v12006_v29  ;;  %v1177_v29 = vld [vmem:[%s10355_s21 + $0x200] sm:$0xff] }
 0x38e   : > { %15675 = vst [vmem:[#allocation70_spill] sm:$0xff] %v12025_v4 }
 0x390   : > { %4783 = vmatmul.bf16.gmra.mxu2 %v8172_v26 }
 0x391   : > { %v12001_v13 = vpop.f32.mrf.mxu0  ;;  %v4650_v15 = vpop.f32.mrf.mxu1 }
 0x392   : > { %v12008_v46 = vadd.f32 %v4650_v15, %v4482_v10  ;;  %v9577_v15 = vld [vmem:[%s15543_s9 + $0x79c] sm:$0xf] }
 0x393   : > { %v4744_v47 = vpop.f32.mrf.mxu2 }
 0x394   : > { %v12013_v21 = vadd.f32 %v4744_v47, %v11381_v32  ;;  %4540 = vmatmul.bf16.gmra.mxu0 %v8848_v16  ;;  %4689 = vmatmul.bf16.gmra.mxu1 %v8708_v42  ;;  %v12029_v10 = vpop.permute.xlu0 %6212  ;;  %v8883_v16 = vld [vmem:[%s15543_s9 + $0x8b8] sm:$0xf]  ;;  %v9617_v42 = vld [vmem:[%s15543_s9 + $0x8d8] sm:$0xf0]  ;;  %v12046_v47 = vpop.permute.xlu2 %6122 }
 0x395   : > { %2038 = vmatmul.bf16.gmra.mxu3 %v9328_v17  ;;  %15676 = vst [vmem:[#allocation71_spill] sm:$0xff] %v12029_v10  ;;  %v8741_v17 = vld [vmem:[%s15543_s9 + $0x7bc] sm:$0xf0]  ;;  %v12057_v61 = vpop.permute.xlu1 %6117  ;;  %v1175_v10 = vld [vmem:[%s10355_s21 + $0x1f0] sm:$0xff] }
 0x396   : > { %15677 = vst [vmem:[#allocation72_spill] sm:$0xff] %v12046_v47  ;;  %v15705_v47 = vld [vmem:[#allocation45_spill] sm:$0xff] }
 0x397   : > { %15678 = vst [vmem:[#allocation73_spill] sm:$0xff] %v12057_v61 }
 0x399   : > { %v12017_v33 = vpop.f32.mrf.mxu0  ;;  %v4652_v26 = vpop.f32.mrf.mxu1 }
 0x39a   : > { %v12027_v32 = vadd.f32 %v4652_v26, %v4484_v24  ;;  %v8884_v24 = vor.u32 %v9617_v42, %v8883_v16  ;;  %v8744_v26 = vor.u32 %v9577_v15, %v8741_v17  ;;  %v8243_v42 = vld [vmem:[%s15543_s9 + $0x3b0] sm:$0xf] }
 0x39b   : > { %v4746_v19 = vpop.f32.mrf.mxu2 }
 0x39c   : > { %v12032_v39 = vadd.f32 %v4746_v19, %v11398_v60  ;;  %v4487_v60 = vadd.f32 %v11850_v50, %v11611_v34  ;;  %v12062_v34 = vpop.permute.xlu0 %6197  ;;  %v12064_v50 = vpop.permute.xlu2 %6107 }
 0x39d   : > { %15679 = vst [vmem:[#allocation74_spill] sm:$0xff] %v12062_v34 }
 0x39e   : > { %15680 = vst [vmem:[#allocation75_spill] sm:$0xff] %v12064_v50  ;;  %v7855_v50 = vld [vmem:[%s15543_s9 + $0xa0] sm:$0xf] }
 0x3a0   : > { %4788 = vmatmul.bf16.gmra.mxu2 %v8208_v12  ;;  %v4489_v12 = vadd.f32 %v11869_v41, %v11446_v37  ;;  %v9586_v37 = vld [vmem:[%s15543_s9 + $0x7e4] sm:$0xf]  ;;  %v8777_v41 = vld [vmem:[%s15543_s9 + $0x804] sm:$0xf0] }
 0x3a1   : > { %v4655_v28 = vpop.f32.mrf.mxu1  ;;  %v12053_v19 = vpop.f32.mrf.mxu0 }
 0x3a2   : > { %v12055_v58 = vadd.f32 %v4655_v28, %v4487_v60 }
 0x3a3   : > { %v4749_v55 = vpop.f32.mrf.mxu2 }
 0x3a4   : > { %v12060_v56 = vadd.f32 %v4749_v55, %v11430_v22  ;;  %4545 = vmatmul.bf16.gmra.mxu0 %v8884_v24  ;;  %4694 = vmatmul.bf16.gmra.mxu1 %v8744_v26  ;;  %v9456_v22 = vld [vmem:[%s15543_s9 + $0x3d0] sm:$0xf0]  ;;  %v12087_v26 = vpop.permute.xlu1 %6202  ;;  %v12089_v28 = vpop.permute.xlu0 %6112 }
 0x3a5   : > { %2043 = vmatmul.bf16.gmra.mxu3 %v9329_v2  ;;  %v8244_v24 = vor.u32 %v9456_v22, %v8243_v42  ;;  %15681 = vst [vmem:[#allocation76_spill] sm:$0xff] %v12087_v26  ;;  %v4492_v2 = vadd.f32 %v11900_v30, %v11577_v11  ;;  %v12096_v42 = vpop.permute.xlu2 %6192  ;;  %v1176_v11 = vld [vmem:[%s10355_s21 + $0x1f8] sm:$0xff] }
 0x3a6   : > { %15682 = vst [vmem:[#allocation77_spill] sm:$0xff] %v12089_v28  ;;  %v2100_v30 = vpack.c.bf16 %v1176_v11, %v1175_v10  ;;  %v9465_v10 = vld [vmem:[%s15543_s9 + $0x418] sm:$0xf0] }
 0x3a7   : > { %15683 = vst [vmem:[#allocation78_spill] sm:$0xff] %v12096_v42  ;;  %v1171_v42 = vld [vmem:[%s10355_s21 + $0x1d0] sm:$0xff] }
 0x3a8   : > { %4889 = vmatpush.bf16.msra.mxu3 %v2100_v30 }
 0x3a9   : > { %v4657_v16 = vpop.f32.mrf.mxu1  ;;  %v12076_v17 = vpop.f32.mrf.mxu0 }
 0x3aa   : > { %v12074_v55 = vadd.f32 %v4657_v16, %v4489_v12  ;;  %v9330_v16 = vld [vmem:[%s15541_s7 + $0x20] sm:$0xff] }
 0x3ab   : > { %v4751_v15 = vpop.f32.mrf.mxu2 }
 0x3ac   : > { %v12079_v60 = vadd.f32 %v4751_v15, %v11442_v40  ;;  %v8780_v40 = vor.u32 %v9586_v37, %v8777_v41  ;;  %v12107_v37 = vpop.permute.xlu1 %6187  ;;  %v1173_v41 = vld [vmem:[%s10355_s21 + $0x1e0] sm:$0xff] }
 0x3ad   : > { %15684 = vst [vmem:[#allocation79_spill] sm:$0xff] %v12107_v37  ;;  %v12121_v11 = vpop.permute.xlu2 %6177  ;;  %v15692_v37 = vld [vmem:[#allocation40_spill] sm:$0xff] }
 0x3ae   : > { %15686 = vst [vmem:[#allocation81_spill] sm:$0xff] %v12121_v11 }
 0x3b0   : > { %4793 = vmatmul.bf16.gmra.mxu2 %v8244_v24 }
 0x3b1   : > { %v4660_v12 = vpop.f32.mrf.mxu1  ;;  %v12105_v24 = vpop.f32.mrf.mxu0 }
 0x3b2   : > { %v12098_v22 = vadd.f32 %v4660_v12, %v4492_v2  ;;  %v1174_v2 = vld [vmem:[%s10355_s21 + $0x1e8] sm:$0xff] }
 0x3b3   : > { %v4754_v15 = vpop.f32.mrf.mxu2 }
 0x3b4   : > { %v12101_v35 = vadd.f32 %v4754_v15, %v11469_v43  ;;  %4699 = vmatmul.bf16.gmra.mxu1 %v8780_v40  ;;  %v8279_v43 = vld [vmem:[%s15543_s9 + $0x3f8] sm:$0xf]  ;;  %v2099_v40 = vpack.c.bf16 %v1174_v2, %v1173_v41  ;;  %v9595_v41 = vld [vmem:[%s15543_s9 + $0x82c] sm:$0xf]  ;;  %v8813_v2 = vld [vmem:[%s15543_s9 + $0x84c] sm:$0xf0] }
 0x3b5   : > { %2048 = vmatmul.bf16.gmra.mxu3 %v9330_v16  ;;  %v12119_v16 = vpop.permute.xlu0 %6097  ;;  %v8280_v26 = vor.u32 %v9465_v10, %v8279_v43  ;;  %v1208_v43 = vld [vmem:[%s10355_s21 + $0x2f8] sm:$0xff]  ;;  %v8816_v38 = vor.u32 %v9595_v41, %v8813_v2  ;;  %v1206_v41 = vld [vmem:[%s10355_s21 + $0x2e8] sm:$0xff] }
 0x3b6   : > { %15685 = vst [vmem:[#allocation80_spill] sm:$0xff] %v12119_v16  ;;  %4890 = vmatpush.bf16.msra.mxu3 %v2099_v40  ;;  %v2098_v40 = vpack.c.bf16 %v1172_v8, %v1171_v42  ;;  %v1185_v8 = vld [vmem:[%s10355_s21 + $0x240] sm:$0xff]  ;;  %v15714_v16 = vld [vmem:[#allocation48_spill] sm:$0xff] }
 0x3b9   : > { %v12111_v12 = vpop.f32.mrf.mxu1  ;;  %v12140_v25 = vpop.f32.mrf.mxu0 }
 0x3ba   : > { %4891 = vmatpush.bf16.msra.mxu3 %v2098_v40 }
 0x3bb   : > { %v4756_v15 = vpop.f32.mrf.mxu2 }
 0x3bc   : > { %v12124_v30 = vadd.f32 %v4756_v15, %v11481_v1  ;;  %v1207_v1 = vld [vmem:[%s10355_s21 + $0x2f0] sm:$0xff]  ;;  %v4497_v15 = vadd.f32 %v11952_v3, %v11536_v9  ;;  %v1186_v9 = vld [vmem:[%s10355_s21 + $0x248] sm:$0xff]  ;;  %v12149_v3 = vpop.permute.xlu1 %6102 }
 0x3bd   : > { %v2116_v10 = vpack.c.bf16 %v1208_v43, %v1207_v1  ;;  %15687 = vst [vmem:[#allocation82_spill] sm:$0xff] %v12149_v3  ;;  %v2115_v1 = vpack.c.bf16 %v1206_v41, %v1205_v0  ;;  %v12155_v43 = vpop.permute.xlu0 %6182  ;;  %v1204_v41 = vld [vmem:[%s10355_s21 + $0x2d8] sm:$0xff] }
 0x3be   : > { %4892 = vmatpush.bf16.msra.mxu3 %v2097_v31  ;;  %15688 = vst [vmem:[#allocation83_spill] sm:$0xff] %v12155_v43  ;;  %v1203_v31 = vld [vmem:[%s10355_s21 + $0x2d0] sm:$0xff] }
 0x3bf   : > { %5227 = vmatpush.bf16.msra.mxu1 %v2116_v10  ;;  %v15689_v10 = vld [vmem:[#allocation37_spill] sm:$0xff] }
 0x3c0   : > { %4798 = vmatmul.bf16.gmra.mxu2 %v8280_v26  ;;  %v2105_v26 = vpack.c.bf16 %v1186_v9, %v1185_v8  ;;  %v1183_v8 = vld [vmem:[%s10355_s21 + $0x230] sm:$0xff]  ;;  %v12165_v9 = vpop.permute.xlu2 %7088 }
 0x3c1   : > { %v4665_v42 = vpop.f32.mrf.mxu1  ;;  %15690 = vst [vmem:[#allocation37_spill] sm:$0xff] %v12165_v9 }
 0x3c2   : > { %v12151_v40 = vadd.f32 %v4665_v42, %v4497_v15  ;;  %5061 = vmatpush.bf16.msrb.mxu0 %v2105_v26  ;;  %v2096_v15 = vpack.c.bf16 %v1168_v59, %v1167_v62  ;;  %v1184_v42 = vld [vmem:[%s10355_s21 + $0x238] sm:$0xff]  ;;  %v1165_v26 = vld [vmem:[%s10355_s21 + $0x1a0] sm:$0xff]  ;;  %v1182_v59 = vld [vmem:[%s10355_s21 + $0x228] sm:$0xff] }
 0x3c3   : > { %v4759_v2 = vpop.f32.mrf.mxu2  ;;  %5228 = vmatpush.bf16.msra.mxu1 %v2115_v1  ;;  %v2104_v0 = vpack.c.bf16 %v1184_v42, %v1183_v8  ;;  %v9474_v1 = vld [vmem:[%s15543_s9 + $0x460] sm:$0xf0] }
 0x3c4   : > { %v12158_v34 = vadd.f32 %v4759_v2, %v15689_v10  ;;  %4704 = vmatmul.bf16.gmra.mxu1 %v8816_v38  ;;  %4893 = vmatpush.bf16.msra.mxu3 %v2096_v15  ;;  %v2114_v38 = vpack.c.bf16 %v1204_v41, %v1203_v31  ;;  %v1166_v2 = vld [vmem:[%s10355_s21 + $0x1a8] sm:$0xff]  ;;  %v1181_v10 = vld [vmem:[%s10355_s21 + $0x220] sm:$0xff]  ;;  %v12180_v15 = vpop.f32.mrf.mxu0  ;;  %v12184_v9 = vpop.permute.xlu1 %7083 }
 0x3c5   : > { %2053 = vmatmul.bf16.gmra.mxu3 %v9331_v49  ;;  %v8315_v49 = vld [vmem:[%s15543_s9 + $0x440] sm:$0xf]  ;;  %v2095_v62 = vpack.c.bf16 %v1166_v2, %v1165_v26  ;;  %v2103_v8 = vpack.c.bf16 %v1182_v59, %v1181_v10  ;;  %v1202_v31 = vld [vmem:[%s10355_s21 + $0x2c8] sm:$0xff]  ;;  %15691 = vst [vmem:[#allocation84_spill] sm:$0xff] %v12184_v9  ;;  %v1163_v26 = vld [vmem:[%s10355_s21 + $0x190] sm:$0xff] }
 0x3c6   : > { %5062 = vmatpush.bf16.msrb.mxu0 %v2104_v0  ;;  %v1201_v42 = vld [vmem:[%s10355_s21 + $0x2c0] sm:$0xff]  ;;  %v1164_v2 = vld [vmem:[%s10355_s21 + $0x198] sm:$0xff]  ;;  %v9604_v10 = vld [vmem:[%s15543_s9 + $0x874] sm:$0xf] }
 0x3c7   : > { %5229 = vmatpush.bf16.msra.mxu1 %v2114_v38  ;;  %v2113_v41 = vpack.c.bf16 %v1202_v31, %v1201_v42  ;;  %v8316_v38 = vor.u32 %v9474_v1, %v8315_v49  ;;  %v2094_v59 = vpack.c.bf16 %v1164_v2, %v1163_v26  ;;  %v12199_v42 = vpop.permute.xlu0 %7073  ;;  %v1199_v1 = vld [vmem:[%s10355_s21 + $0x2b0] sm:$0xff]  ;;  %v1161_v26 = vld [vmem:[%s10355_s21 + $0x180] sm:$0xff]  ;;  %v1162_v2 = vld [vmem:[%s10355_s21 + $0x188] sm:$0xff] }
 0x3c8   : > { %4894 = vmatpush.bf16.msra.mxu3 %v2095_v62  ;;  %v8849_v62 = vld [vmem:[%s15543_s9 + $0x894] sm:$0xf0]  ;;  %15693 = vst [vmem:[#allocation40_spill] sm:$0xff] %v12199_v42  ;;  %v15695_v9 = vld [vmem:[#allocation31_spill] sm:$0xff] }
 0x3c9   : > { %v12171_v43 = vpop.f32.mrf.mxu1  ;;  %v4502_v4 = vadd.f32 %v12001_v13, %v15695_v9  ;;  %v1198_v13 = vld [vmem:[%s10355_s21 + $0x2a8] sm:$0xff] }
 0x3ca   : > { %5063 = vmatpush.bf16.msrb.mxu0 %v2103_v8  ;;  %v1200_v8 = vld [vmem:[%s10355_s21 + $0x2b8] sm:$0xff] }
 0x3cb   : > { %v4761_v0 = vpop.f32.mrf.mxu2  ;;  %5230 = vmatpush.bf16.msra.mxu1 %v2113_v41  ;;  %v2112_v31 = vpack.c.bf16 %v1200_v8, %v1199_v1  ;;  %v8852_v41 = vor.u32 %v9604_v10, %v8849_v62  ;;  %v7783_v10 = vld [vmem:[%s15543_s9 + $0x10] sm:$0xf] }
 0x3cc   : > { %v12187_v11 = vadd.f32 %v4761_v0, %v15692_v37  ;;  %v1180_v37 = vld [vmem:[%s10355_s21 + $0x218] sm:$0xff]  ;;  %4895 = vmatpush.bf16.msra.mxu3 %v2094_v59  ;;  %v12203_v0 = vpop.permute.xlu2 %7063  ;;  %v2093_v59 = vpack.c.bf16 %v1162_v2, %v1161_v26  ;;  %v12221_v62 = vpop.f32.mrf.mxu0 }
 0x3cd   : > { %v2102_v49 = vpack.c.bf16 %v1180_v37, %v1179_v20  ;;  %15694 = vst [vmem:[#allocation85_spill] sm:$0xff] %v12203_v0  ;;  %v9332_v20 = vld [vmem:[%s15541_s7 + $0x30] sm:$0xff]  ;;  %v1197_v0 = vld [vmem:[%s10355_s21 + $0x2a0] sm:$0xff]  ;;  %v1196_v26 = vld [vmem:[%s10355_s21 + $0x298] sm:$0xff] }
 0x3ce   : > { %v1178_v37 = vld [vmem:[%s10355_s21 + $0x208] sm:$0xff] }
 0x3cf   : > { %5064 = vmatpush.bf16.msrb.mxu0 %v2102_v49  ;;  %5231 = vmatpush.bf16.msra.mxu1 %v2112_v31  ;;  %v2101_v8 = vpack.c.bf16 %v1178_v37, %v1177_v29  ;;  %v15696_v49 = vld [vmem:[#allocation41_spill] sm:$0xff]  ;;  %v9340_v29 = vld [vmem:[%s15543_s9 + $0x30] sm:$0xf0] }
 0x3d0   : > { %4803 = vmatmul.bf16.gmra.mxu2 %v8316_v38  ;;  %4896 = vmatpush.bf16.msra.mxu3 %v2093_v59  ;;  %v2111_v38 = vpack.c.bf16 %v1198_v13, %v1197_v0  ;;  %v1195_v0 = vld [vmem:[%s10355_s21 + $0x290] sm:$0xff]  ;;  %v12233_v59 = vpop.permute.xlu0 %7068  ;;  %v1193_v13 = vld [vmem:[%s10355_s21 + $0x280] sm:$0xff] }
 0x3d1   : > { %v4670_v42 = vpop.f32.mrf.mxu1  ;;  %v2110_v2 = vpack.c.bf16 %v1196_v26, %v1195_v0  ;;  %15698 = vst [vmem:[#allocation41_spill] sm:$0xff] %v12233_v59  ;;  %v9613_v0 = vld [vmem:[%s15543_s9 + $0x8bc] sm:$0xf]  ;;  %v8885_v26 = vld [vmem:[%s15543_s9 + $0x8dc] sm:$0xf0] }
 0x3d2   : > { %v12214_v1 = vadd.f32 %v4670_v42, %v4502_v4  ;;  %v7784_v4 = vor.u32 %v9340_v29, %v7783_v10  ;;  %v12229_v42 = vpop.permute.xlu1 %7078  ;;  %v15702_v59 = vld [vmem:[#allocation29_spill] sm:$0xff] }
 0x3d3   : > { %v4764_v9 = vpop.f32.mrf.mxu2  ;;  %5065 = vmatpush.bf16.msrb.mxu0 %v2101_v8  ;;  %5232 = vmatpush.bf16.msra.mxu1 %v2111_v38  ;;  %15697 = vst [vmem:[#allocation31_spill] sm:$0xff] %v12229_v42 }
 0x3d4   : > { %v12224_v31 = vadd.f32 %v4764_v9, %v15696_v49  ;;  %4709 = vmatmul.bf16.gmra.mxu1 %v8852_v41  ;;  %v8351_v41 = vld [vmem:[%s15543_s9 + $0x488] sm:$0xf]  ;;  %v12243_v8 = vpop.permute.xlu2 %7058  ;;  %v15700_v49 = vld [vmem:[#allocation43_spill] sm:$0xff] }
 0x3d5   : > { %2058 = vmatmul.bf16.gmra.mxu3 %v9332_v20  ;;  %v9483_v20 = vld [vmem:[%s15543_s9 + $0x4a8] sm:$0xf0]  ;;  %15699 = vst [vmem:[#allocation86_spill] sm:$0xff] %v12243_v8 }
 0x3d6   : > { %5066 = vmatmul.bf16.vlgmr.msrb.gmra.mxu0 %v7784_v4  ;;  %v1194_v9 = vld [vmem:[%s10355_s21 + $0x288] sm:$0xff]  ;;  %v8352_v4 = vor.u32 %v9483_v20, %v8351_v41  ;;  %v9333_v41 = vld [vmem:[%s15541_s7 + $0x38] sm:$0xff] }
 0x3d7   : > { %5233 = vmatpush.bf16.msra.mxu1 %v2110_v2  ;;  %v2109_v10 = vpack.c.bf16 %v1194_v9, %v1193_v13  ;;  %v12256_v2 = vpop.f32.mrf.mxu0  ;;  %v4507_v13 = vadd.f32 %v12053_v19, %v15702_v59  ;;  %v8888_v9 = vor.u32 %v9613_v0, %v8885_v26  ;;  %v9349_v59 = vld [vmem:[%s15543_s9 + $0x78] sm:$0xf0] }
 0x3d8   : > { %v12265_v20 = vpop.permute.xlu0 %7043 }
 0x3d9   : > { %v12235_v37 = vpop.f32.mrf.mxu1  ;;  %15703 = vst [vmem:[#allocation29_spill] sm:$0xff] %v12265_v20  ;;  %v7785_v20 = vld [vmem:[%s15543_s9 + $0x34] sm:$0xf0] }
 0x3da   : > { %v12258_v8 = vpop.permute.xlu1 %7053 }
 0x3db   : > { %v4766_v38 = vpop.f32.mrf.mxu2  ;;  %5234 = vmatpush.bf16.msra.mxu1 %v2109_v10  ;;  %15701 = vst [vmem:[#allocation43_spill] sm:$0xff] %v12258_v8  ;;  %v7819_v10 = vld [vmem:[%s15543_s9 + $0x58] sm:$0xf] }
 0x3dc   : > { %v12248_v29 = vadd.f32 %v4766_v38, %v15700_v49  ;;  %v12272_v8 = vpop.permute.xlu2 %7033 }
 0x3dd   : > { %15704 = vst [vmem:[#allocation87_spill] sm:$0xff] %v12272_v8 }
 0x3df   : > { %v12280_v0 = vpop.f32.mrf.mxu0 }
 0x3e0   : > { %4808 = vmatmul.bf16.gmra.mxu2 %v8352_v4  ;;  %v7820_v4 = vor.u32 %v9349_v59, %v7819_v10  ;;  %15707 = vst [vmem:[#allocation88_spill] sm:$0xff] %v12280_v0 }
 0x3e1   : > { %v4675_v38 = vpop.f32.mrf.mxu1 }
 0x3e2   : > { %v12267_v49 = vadd.f32 %v4675_v38, %v4507_v13  ;;  %v8387_v13 = vld [vmem:[%s15543_s9 + $0x4d0] sm:$0xf]  ;;  %v12292_v38 = vpop.permute.xlu0 %7038 }
 0x3e3   : > { %v4769_v42 = vpop.f32.mrf.mxu2  ;;  %15709 = vst [vmem:[#allocation90_spill] sm:$0xff] %v12292_v38 }
 0x3e4   : > { %v12275_v19 = vadd.f32 %v4769_v42, %v15705_v47  ;;  %4714 = vmatmul.bf16.gmra.mxu1 %v8888_v9  ;;  %v9492_v47 = vld [vmem:[%s15543_s9 + $0x4f0] sm:$0xf0]  ;;  %v12290_v42 = vpop.permute.xlu1 %7048  ;;  %v12303_v8 = vpop.permute.xlu2 %7028 }
 0x3e5   : > { %2063 = vmatmul.bf16.gmra.mxu3 %v9333_v41  ;;  %15708 = vst [vmem:[#allocation89_spill] sm:$0xff] %v12290_v42  ;;  %v15710_v41 = vld [vmem:[#allocation46_spill] sm:$0xff]  ;;  %v8388_v59 = vor.u32 %v9492_v47, %v8387_v13  ;;  %v4512_v13 = vadd.f32 %v12105_v24, %v11810_v53  ;;  %v9358_v53 = vld [vmem:[%s15543_s9 + $0xc0] sm:$0xf0] }
 0x3e6   : > { %15706 = vst [vmem:[#allocation45_spill] sm:$0xff] %v12275_v19  ;;  %5071 = vmatmul.bf16.gmra.mxu0 %v7820_v4  ;;  %v9336_v4 = vld [vmem:[%s15543_s9 + $0x14] sm:$0xf]  ;;  %v9335_v42 = vld [vmem:[%s15543_s9 + $0xc] sm:$0xf]  ;;  %v7856_v24 = vor.u32 %v9358_v53, %v7855_v50 }
 0x3e7   : > { %15712 = vst [vmem:[#allocation91_spill] sm:$0xff] %v12303_v8  ;;  %v7788_v47 = vor.u32 %v9336_v4, %v7785_v20  ;;  %v12313_v61 = vpop.f32.mrf.mxu0  ;;  %v9345_v53 = vld [vmem:[%s15543_s9 + $0x5c] sm:$0xf]  ;;  %v7891_v19 = vld [vmem:[%s15543_s9 + $0xe8] sm:$0xf] }
 0x3e9   : > { %v12282_v26 = vpop.f32.mrf.mxu1 }
 0x3ea   : > { %v12329_v20 = vpop.permute.xlu0 %7013 }
 0x3eb   : > { %v4771_v9 = vpop.f32.mrf.mxu2  ;;  %15716 = vst [vmem:[#allocation93_spill] sm:$0xff] %v12329_v20 }
 0x3ec   : > { %v12295_v10 = vadd.f32 %v4771_v9, %v15710_v41  ;;  %v7777_v9 = vld [vmem:[%s15543_s9 + $0x2c] sm:$0xf0]  ;;  %v12320_v3 = vpop.permute.xlu1 %7023 }
 0x3ed   : > { %v7780_v38 = vor.u32 %v9335_v42, %v7777_v9  ;;  %15713 = vst [vmem:[#allocation92_spill] sm:$0xff] %v12320_v3  ;;  %v1895_v42 = vpop.permute.xlu2 %1894 }
 0x3ee   : > { %15711 = vst [vmem:[#allocation46_spill] sm:$0xff] %v12295_v10 }
 0x3f0   : > { %4813 = vmatmul.bf16.gmra.mxu2 %v8388_v59 }
 0x3f1   : > { %v4680_v41 = vpop.f32.mrf.mxu1 }
 0x3f2   : > { %v12315_v28 = vadd.f32 %v4680_v41, %v4512_v13  ;;  %v15718_v13 = vld [vmem:[#allocation49_spill] sm:$0xff] }
 0x3f3   : > { %v4774_v8 = vpop.f32.mrf.mxu2 }
 0x3f4   : > { %v12323_v0 = vadd.f32 %v4774_v8, %v15714_v16  ;;  %5235 = vmatmul.bf16.vlgmr.msra.gmra.mxu1 %v7788_v47  ;;  %v8423_v16 = vld [vmem:[%s15543_s9 + $0x518] sm:$0xf]  ;;  %v9501_v8 = vld [vmem:[%s15543_s9 + $0x538] sm:$0xf0] }
 0x3f5   : > { %4897 = vmatmul.bf16.vlgmr.msra.gmra.mxu3 %v7780_v38  ;;  %v12342_v38 = vpop.f32.mrf.mxu0  ;;  %v8424_v41 = vor.u32 %v9501_v8, %v8423_v16  ;;  %v4517_v16 = vadd.f32 %v12180_v15, %v11808_v63  ;;  %v9367_v63 = vld [vmem:[%s15543_s9 + $0x108] sm:$0xf0] }
 0x3f6   : > { %15715 = vst [vmem:[#allocation48_spill] sm:$0xff] %v12323_v0  ;;  %5076 = vmatmul.bf16.gmra.mxu0 %v7856_v24  ;;  %v7821_v24 = vld [vmem:[%s15543_s9 + $0x7c] sm:$0xf0]  ;;  %v15721_v0 = vld [vmem:[#allocation51_spill] sm:$0xff]  ;;  %v7892_v15 = vor.u32 %v9367_v63, %v7891_v19  ;;  %v1910_v63 = vpop.permute.xlu2 %1909 }
 0x3f7   : > { %15717 = vst [vmem:[#allocation94_spill] sm:$0xff] %v12342_v38 }
 0x3f8   : > { %v2029_v59 = vpop.f32.mrf.mxu3 }
 0x3f9   : > { %v2030_v4 = vadd.f32 %v2029_v59, %v1895_v42  ;;  %v12331_v9 = vpop.f32.mrf.mxu1  ;;  %v12353_v42 = vpop.permute.xlu1 %7018  ;;  %v9344_v59 = vld [vmem:[%s15543_s9 + $0x54] sm:$0xf] }
 0x3fa   : > { %15720 = vst [vmem:[#allocation95_spill] sm:$0xff] %v12353_v42 }
 0x3fb   : > { %7502 = vst [vmem:[%s12339_s18] sm:$0xff] %v2030_v4  ;;  %v4776_v50 = vpop.f32.mrf.mxu2  ;;  %v7813_v4 = vld [vmem:[%s15543_s9 + $0x74] sm:$0xf0] }
 0x3fc   : > { %v12345_v47 = vadd.f32 %v4776_v50, %v15718_v13  ;;  %v1900_v50 = vpop.permute.xlu0 %1899  ;;  %v7824_v13 = vor.u32 %v9345_v53, %v7821_v24  ;;  %v7816_v38 = vor.u32 %v9344_v59, %v7813_v4 }
 0x3fe   : > { %15719 = vst [vmem:[#allocation49_spill] sm:$0xff] %v12345_v47 }
 0x400   : > { %v2031_v8 = vpop.f32.mrf.mxu3  ;;  %4818 = vmatmul.bf16.gmra.mxu2 %v8424_v41  ;;  %v12375_v41 = vpop.f32.mrf.mxu0 }
 0x401   : > { %v2032_v3 = vadd.f32 %v2031_v8, %v1900_v50  ;;  %v4685_v20 = vpop.f32.mrf.mxu1  ;;  %v9354_v50 = vld [vmem:[%s15543_s9 + $0xa4] sm:$0xf]  ;;  %v9353_v8 = vld [vmem:[%s15543_s9 + $0x9c] sm:$0xf] }
 0x402   : > { %v12363_v47 = vadd.f32 %v4685_v20, %v4517_v16  ;;  %v7857_v16 = vld [vmem:[%s15543_s9 + $0xc4] sm:$0xf0] }
 0x403   : > { %7503 = vst [vmem:[%s12339_s18 + $0x8] sm:$0xff] %v2032_v3  ;;  %v4779_v42 = vpop.f32.mrf.mxu2  ;;  %v1905_v3 = vpop.permute.xlu1 %1904 }
 0x404   : > { %v12367_v10 = vadd.f32 %v4779_v42, %v15721_v0  ;;  %5240 = vmatmul.bf16.gmra.mxu1 %v7824_v13  ;;  %v8459_v0 = vld [vmem:[%s15543_s9 + $0x560] sm:$0xf]  ;;  %v9510_v42 = vld [vmem:[%s15543_s9 + $0x580] sm:$0xf0] }
 0x405   : > { %4902 = vmatmul.bf16.gmra.mxu3 %v7816_v38  ;;  %v15724_v38 = vld [vmem:[#allocation52_spill] sm:$0xff]  ;;  %v8460_v4 = vor.u32 %v9510_v42, %v8459_v0  ;;  %v7849_v13 = vld [vmem:[%s15543_s9 + $0xbc] sm:$0xf0] }
 0x406   : > { %15722 = vst [vmem:[#allocation51_spill] sm:$0xff] %v12367_v10  ;;  %5081 = vmatmul.bf16.gmra.mxu0 %v7892_v15  ;;  %v4522_v15 = vadd.f32 %v12256_v2, %v11768_v52  ;;  %v15728_v10 = vld [vmem:[#allocation53_spill] sm:$0xff]  ;;  %v7927_v52 = vld [vmem:[%s15543_s9 + $0x130] sm:$0xf]  ;;  %v9376_v2 = vld [vmem:[%s15543_s9 + $0x150] sm:$0xf0] }
 0x408   : > { %v2034_v20 = vpop.f32.mrf.mxu3 }
 0x409   : > { %v2035_v53 = vadd.f32 %v2034_v20, %v1905_v3  ;;  %v12377_v24 = vpop.f32.mrf.mxu1  ;;  %v12403_v3 = vpop.f32.mrf.mxu0 }
 0x40a   : > { %15723 = vst [vmem:[#allocation96_spill] sm:$0xff] %v12377_v24 }
 0x40b   : > { %7504 = vst [vmem:[%s12339_s18 + $0x10] sm:$0xff] %v2035_v53  ;;  %v4781_v59 = vpop.f32.mrf.mxu2  ;;  %v7860_v53 = vor.u32 %v9354_v50, %v7857_v16  ;;  %v1915_v50 = vpop.permute.xlu0 %1914 }
 0x40c   : > { %v12387_v19 = vadd.f32 %v4781_v59, %v15724_v38  ;;  %15726 = vst [vmem:[#allocation97_spill] sm:$0xff] %v12403_v3  ;;  %v7852_v59 = vor.u32 %v9353_v8, %v7849_v13 }
 0x40e   : > { %15725 = vst [vmem:[#allocation52_spill] sm:$0xff] %v12387_v19 }
 0x410   : > { %v2036_v20 = vpop.f32.mrf.mxu3  ;;  %4823 = vmatmul.bf16.gmra.mxu2 %v8460_v4  ;;  %v7928_v4 = vor.u32 %v9376_v2, %v7927_v52  ;;  %v9362_v52 = vld [vmem:[%s15543_s9 + $0xe4] sm:$0xf]  ;;  %v7885_v2 = vld [vmem:[%s15543_s9 + $0x104] sm:$0xf0] }
 0x411   : > { %v2037_v0 = vadd.f32 %v2036_v20, %v1910_v63  ;;  %v4690_v42 = vpop.f32.mrf.mxu1  ;;  %v12425_v63 = vpop.f32.mrf.mxu0  ;;  %v15731_v20 = vld [vmem:[#allocation55_spill] sm:$0xff] }
 0x412   : > { %v12405_v38 = vadd.f32 %v4690_v42, %v4522_v15  ;;  %v9363_v42 = vld [vmem:[%s15543_s9 + $0xec] sm:$0xf] }
 0x413   : > { %7505 = vst [vmem:[%s12339_s18 + $0x18] sm:$0xff] %v2037_v0  ;;  %v4784_v19 = vpop.f32.mrf.mxu2 }
 0x414   : > { %15727 = vst [vmem:[#allocation98_spill] sm:$0xff] %v12405_v38  ;;  %v12409_v24 = vadd.f32 %v4784_v19, %v15728_v10  ;;  %5245 = vmatmul.bf16.gmra.mxu1 %v7860_v53  ;;  %v8495_v10 = vld [vmem:[%s15543_s9 + $0x5a8] sm:$0xf]  ;;  %v9519_v19 = vld [vmem:[%s15543_s9 + $0x5c8] sm:$0xf0] }
 0x415   : > { %4907 = vmatmul.bf16.gmra.mxu3 %v7852_v59  ;;  %v8496_v0 = vor.u32 %v9519_v19, %v8495_v10  ;;  %v7893_v59 = vld [vmem:[%s15543_s9 + $0x10c] sm:$0xf0] }
 0x416   : > { %15729 = vst [vmem:[#allocation53_spill] sm:$0xff] %v12409_v24  ;;  %5086 = vmatmul.bf16.gmra.mxu0 %v7928_v4  ;;  %v1920_v4 = vpop.permute.xlu1 %1919  ;;  %v7896_v10 = vor.u32 %v9363_v42, %v7893_v59  ;;  %v1925_v59 = vpop.permute.xlu2 %1924 }
 0x418   : > { %v2039_v16 = vpop.f32.mrf.mxu3 }
 0x419   : > { %v2040_v8 = vadd.f32 %v2039_v16, %v1915_v50  ;;  %v12417_v13 = vpop.f32.mrf.mxu1  ;;  %v15733_v50 = vld [vmem:[#allocation44_spill] sm:$0xff]  ;;  %v12448_v3 = vpop.f32.mrf.mxu0 }
 0x41a   : > { %15730 = vst [vmem:[#allocation99_spill] sm:$0xff] %v12417_v13  ;;  %v4527_v16 = vadd.f32 %v12313_v61, %v15733_v50  ;;  %v15736_v13 = vld [vmem:[#allocation56_spill] sm:$0xff] }
 0x41b   : > { %7506 = vst [vmem:[%s12339_s18 + $0x20] sm:$0xff] %v2040_v8  ;;  %v4786_v15 = vpop.f32.mrf.mxu2  ;;  %v7963_v61 = vld [vmem:[%s15543_s9 + $0x178] sm:$0xf] }
 0x41c   : > { %v12429_v53 = vadd.f32 %v4786_v15, %v15731_v20  ;;  %v7888_v20 = vor.u32 %v9362_v52, %v7885_v2  ;;  %15735 = vst [vmem:[#allocation100_spill] sm:$0xff] %v12448_v3  ;;  %v15742_v3 = vld [vmem:[#allocation16_spill] sm:$0xff] }
 0x41e   : > { %15732 = vst [vmem:[#allocation55_spill] sm:$0xff] %v12429_v53 }
 0x420   : > { %v2041_v8 = vpop.f32.mrf.mxu3  ;;  %4828 = vmatmul.bf16.gmra.mxu2 %v8496_v0  ;;  %v9385_v0 = vld [vmem:[%s15543_s9 + $0x198] sm:$0xf0] }
 0x421   : > { %v2042_v19 = vadd.f32 %v2041_v8, %v1920_v4  ;;  %v4695_v15 = vpop.f32.mrf.mxu1  ;;  %v7964_v42 = vor.u32 %v9385_v0, %v7963_v61  ;;  %v9371_v61 = vld [vmem:[%s15543_s9 + $0x12c] sm:$0xf]  ;;  %v7921_v0 = vld [vmem:[%s15543_s9 + $0x14c] sm:$0xf0] }
 0x422   : > { %v12445_v53 = vadd.f32 %v4695_v15, %v4527_v16  ;;  %v15739_v16 = vld [vmem:[#allocation58_spill] sm:$0xff]  ;;  %v7929_v15 = vld [vmem:[%s15543_s9 + $0x154] sm:$0xf0] }
 0x423   : > { %7507 = vst [vmem:[%s12339_s18 + $0x28] sm:$0xff] %v2042_v19  ;;  %v4789_v24 = vpop.f32.mrf.mxu2  ;;  %v9372_v19 = vld [vmem:[%s15543_s9 + $0x134] sm:$0xf] }
 0x424   : > { %15734 = vst [vmem:[#allocation44_spill] sm:$0xff] %v12445_v53  ;;  %v12451_v38 = vadd.f32 %v4789_v24, %v15736_v13  ;;  %5250 = vmatmul.bf16.gmra.mxu1 %v7896_v10  ;;  %v8531_v24 = vld [vmem:[%s15543_s9 + $0x5f0] sm:$0xf]  ;;  %v9528_v13 = vld [vmem:[%s15543_s9 + $0x610] sm:$0xf0] }
 0x425   : > { %4912 = vmatmul.bf16.gmra.mxu3 %v7888_v20  ;;  %v8532_v10 = vor.u32 %v9528_v13, %v8531_v24  ;;  %v12477_v20 = vpop.f32.mrf.mxu0  ;;  %v7932_v24 = vor.u32 %v9372_v19, %v7929_v15  ;;  %v7999_v53 = vld [vmem:[%s15543_s9 + $0x1c0] sm:$0xf]  ;;  %v1935_v19 = vpop.permute.xlu1 %1934 }
 0x426   : > { %15737 = vst [vmem:[#allocation56_spill] sm:$0xff] %v12451_v38  ;;  %5091 = vmatmul.bf16.gmra.mxu0 %v7964_v42  ;;  %v1930_v42 = vpop.permute.xlu0 %1929 }
 0x428   : > { %v2044_v52 = vpop.f32.mrf.mxu3 }
 0x429   : > { %v2045_v2 = vadd.f32 %v2044_v52, %v1925_v59  ;;  %v12459_v4 = vpop.f32.mrf.mxu1  ;;  %v15741_v59 = vld [vmem:[#allocation39_spill] sm:$0xff] }
 0x42a   : > { %15738 = vst [vmem:[#allocation101_spill] sm:$0xff] %v12459_v4  ;;  %v4532_v52 = vadd.f32 %v12375_v41, %v15741_v59  ;;  %v9394_v41 = vld [vmem:[%s15543_s9 + $0x1e0] sm:$0xf0] }
 0x42b   : > { %7508 = vst [vmem:[%s12339_s18 + $0x30] sm:$0xff] %v2045_v2  ;;  %v4791_v50 = vpop.f32.mrf.mxu2 }
 0x42c   : > { %v12469_v8 = vadd.f32 %v4791_v50, %v15739_v16  ;;  %v7924_v16 = vor.u32 %v9371_v61, %v7921_v0 }
 0x42d   : > { %v12499_v15 = vpop.f32.mrf.mxu0 }
 0x42e   : > { %15740 = vst [vmem:[#allocation58_spill] sm:$0xff] %v12469_v8 }
 0x42f   : > { %15744 = vst [vmem:[#allocation16_spill] sm:$0xff] %v12499_v15  ;;  %v15749_v15 = vld [vmem:[#allocation20_spill] sm:$0xff] }
 0x430   : > { %v2046_v2 = vpop.f32.mrf.mxu3  ;;  %4833 = vmatmul.bf16.gmra.mxu2 %v8532_v10  ;;  %v8000_v10 = vor.u32 %v9394_v41, %v7999_v53  ;;  %v1940_v41 = vpop.permute.xlu2 %1939 }
 0x431   : > { %v2047_v13 = vadd.f32 %v2046_v2, %v1930_v42  ;;  %v4700_v50 = vpop.f32.mrf.mxu1 }
 0x432   : > { %v12487_v8 = vadd.f32 %v4700_v50, %v4532_v52  ;;  %v15746_v52 = vld [vmem:[#allocation19_spill] sm:$0xff] }
 0x433   : > { %7509 = vst [vmem:[%s12339_s18 + $0x38] sm:$0xff] %v2047_v13  ;;  %v4794_v38 = vpop.f32.mrf.mxu2  ;;  %v7965_v13 = vld [vmem:[%s15543_s9 + $0x19c] sm:$0xf0]  ;;  %v9380_v50 = vld [vmem:[%s15543_s9 + $0x174] sm:$0xf] }
 0x434   : > { %v12491_v4 = vadd.f32 %v4794_v38, %v15742_v3  ;;  %5255 = vmatmul.bf16.gmra.mxu1 %v7932_v24  ;;  %v8567_v3 = vld [vmem:[%s15543_s9 + $0x638] sm:$0xf]  ;;  %v9537_v38 = vld [vmem:[%s15543_s9 + $0x658] sm:$0xf0] }
 0x435   : > { %4917 = vmatmul.bf16.gmra.mxu3 %v7924_v16  ;;  %v8568_v2 = vor.u32 %v9537_v38, %v8567_v3  ;;  %v9381_v24 = vld [vmem:[%s15543_s9 + $0x17c] sm:$0xf]  ;;  %v7957_v16 = vld [vmem:[%s15543_s9 + $0x194] sm:$0xf0] }
 0x436   : > { %15743 = vst [vmem:[#allocation39_spill] sm:$0xff] %v12491_v4  ;;  %5096 = vmatmul.bf16.gmra.mxu0 %v8000_v10  ;;  %v15748_v10 = vld [vmem:[#allocation36_spill] sm:$0xff] }
 0x438   : > { %v2049_v61 = vpop.f32.mrf.mxu3 }
 0x439   : > { %v2050_v0 = vadd.f32 %v2049_v61, %v1935_v19  ;;  %v12501_v42 = vpop.f32.mrf.mxu1  ;;  %v4537_v19 = vadd.f32 %v12425_v63, %v15748_v10  ;;  %v8035_v63 = vld [vmem:[%s15543_s9 + $0x208] sm:$0xf] }
 0x43a   : > { %15745 = vst [vmem:[#allocation102_spill] sm:$0xff] %v12501_v42 }
 0x43b   : > { %7510 = vst [vmem:[%s12339_s18 + $0x40] sm:$0xff] %v2050_v0  ;;  %v4796_v59 = vpop.f32.mrf.mxu2  ;;  %v7968_v0 = vor.u32 %v9381_v24, %v7965_v13  ;;  %v1945_v13 = vpop.permute.xlu0 %1944 }
 0x43c   : > { %v12511_v53 = vadd.f32 %v4796_v59, %v15746_v52  ;;  %v7960_v59 = vor.u32 %v9380_v50, %v7957_v16  ;;  %v4546_v52 = vpop.f32.mrf.mxu0 }
 0x43e   : > { %15747 = vst [vmem:[#allocation19_spill] sm:$0xff] %v12511_v53 }
 0x440   : > { %v2051_v61 = vpop.f32.mrf.mxu3  ;;  %4838 = vmatmul.bf16.gmra.mxu2 %v8568_v2  ;;  %v9403_v2 = vld [vmem:[%s15543_s9 + $0x228] sm:$0xf0] }
 0x441   : > { %v2052_v3 = vadd.f32 %v2051_v61, %v1940_v41  ;;  %v4705_v38 = vpop.f32.mrf.mxu1  ;;  %v8036_v24 = vor.u32 %v9403_v2, %v8035_v63  ;;  %v15753_v61 = vld [vmem:[#allocation22_spill] sm:$0xff]  ;;  %v9389_v63 = vld [vmem:[%s15543_s9 + $0x1bc] sm:$0xf]  ;;  %v7993_v2 = vld [vmem:[%s15543_s9 + $0x1dc] sm:$0xf0] }
 0x442   : > { %v12527_v53 = vadd.f32 %v4705_v38, %v4537_v19  ;;  %v9390_v38 = vld [vmem:[%s15543_s9 + $0x1c4] sm:$0xf] }
 0x443   : > { %7511 = vst [vmem:[%s12339_s18 + $0x48] sm:$0xff] %v2052_v3  ;;  %v4799_v4 = vpop.f32.mrf.mxu2 }
 0x444   : > { %v12531_v42 = vadd.f32 %v4799_v4, %v15749_v15  ;;  %5260 = vmatmul.bf16.gmra.mxu1 %v7968_v0  ;;  %v8603_v4 = vld [vmem:[%s15543_s9 + $0x680] sm:$0xf]  ;;  %v9546_v15 = vld [vmem:[%s15543_s9 + $0x6a0] sm:$0xf0]  ;;  %v12548_v19 = vpop.f32.mrf.mxu0 }
 0x445   : > { %4922 = vmatmul.bf16.gmra.mxu3 %v7960_v59  ;;  %15752 = vst [vmem:[#allocation103_spill] sm:$0xff] %v12548_v19  ;;  %v8604_v3 = vor.u32 %v9546_v15, %v8603_v4  ;;  %v8001_v59 = vld [vmem:[%s15543_s9 + $0x1e4] sm:$0xf0] }
 0x446   : > { %15750 = vst [vmem:[#allocation36_spill] sm:$0xff] %v12531_v42  ;;  %5101 = vmatmul.bf16.gmra.mxu0 %v8036_v24  ;;  %v1950_v24 = vpop.permute.xlu1 %1949  ;;  %v8004_v4 = vor.u32 %v9390_v38, %v8001_v59  ;;  %v1955_v59 = vpop.permute.xlu2 %1954 }
 0x448   : > { %v2054_v50 = vpop.f32.mrf.mxu3 }
 0x449   : > { %v2055_v16 = vadd.f32 %v2054_v50, %v1945_v13  ;;  %v12539_v41 = vpop.f32.mrf.mxu1  ;;  %v15755_v13 = vld [vmem:[#allocation35_spill] sm:$0xff] }
 0x44a   : > { %15751 = vst [vmem:[#allocation20_spill] sm:$0xff] %v12539_v41  ;;  %v4542_v50 = vadd.f32 %v12477_v20, %v15755_v13  ;;  %v8071_v20 = vld [vmem:[%s15543_s9 + $0x250] sm:$0xf] }
 0x44b   : > { %7512 = vst [vmem:[%s12339_s18 + $0x50] sm:$0xff] %v2055_v16  ;;  %v4801_v10 = vpop.f32.mrf.mxu2 }
 0x44c   : > { %v12551_v0 = vadd.f32 %v4801_v10, %v15753_v61  ;;  %v7996_v61 = vor.u32 %v9389_v63, %v7993_v2 }
 0x44e   : > { %15754 = vst [vmem:[#allocation22_spill] sm:$0xff] %v12551_v0 }
 0x450   : > { %v2056_v16 = vpop.f32.mrf.mxu3  ;;  %4843 = vmatmul.bf16.gmra.mxu2 %v8604_v3  ;;  %v9412_v3 = vld [vmem:[%s15543_s9 + $0x270] sm:$0xf0] }
 0x451   : > { %v2057_v15 = vadd.f32 %v2056_v16, %v1950_v24  ;;  %v4710_v10 = vpop.f32.mrf.mxu1  ;;  %v8072_v38 = vor.u32 %v9412_v3, %v8071_v20  ;;  %v1960_v20 = vpop.permute.xlu0 %1959  ;;  %v15759_v3 = vld [vmem:[#allocation33_spill] sm:$0xff] }
 0x452   : > { %v12567_v0 = vadd.f32 %v4710_v10, %v4542_v50  ;;  %v8037_v10 = vld [vmem:[%s15543_s9 + $0x22c] sm:$0xf0] }
 0x453   : > { %7513 = vst [vmem:[%s12339_s18 + $0x58] sm:$0xff] %v2057_v15  ;;  %v4804_v42 = vpop.f32.mrf.mxu2  ;;  %v12573_v41 = vpop.f32.mrf.mxu0  ;;  %v9399_v15 = vld [vmem:[%s15543_s9 + $0x20c] sm:$0xf] }
 0x454   : > { %v12571_v19 = vadd.f32 %v4804_v42, %v11856_v7  ;;  %5265 = vmatmul.bf16.gmra.mxu1 %v8004_v4  ;;  %v8639_v7 = vld [vmem:[%s15543_s9 + $0x6c8] sm:$0xf]  ;;  %v9555_v42 = vld [vmem:[%s15543_s9 + $0x6e8] sm:$0xf0] }
 0x455   : > { %4927 = vmatmul.bf16.gmra.mxu3 %v7996_v61  ;;  %v8640_v16 = vor.u32 %v9555_v42, %v8639_v7  ;;  %v9398_v61 = vld [vmem:[%s15543_s9 + $0x204] sm:$0xf] }
 0x456   : > { %15756 = vst [vmem:[#allocation35_spill] sm:$0xff] %v12571_v19  ;;  %5106 = vmatmul.bf16.gmra.mxu0 %v8072_v38  ;;  %v4547_v38 = vadd.f32 %v4546_v52, %v15759_v3  ;;  %v8107_v52 = vld [vmem:[%s15543_s9 + $0x298] sm:$0xf] }
 0x458   : > { %v2059_v63 = vpop.f32.mrf.mxu3 }
 0x459   : > { %v2060_v2 = vadd.f32 %v2059_v63, %v1955_v59  ;;  %v12581_v24 = vpop.f32.mrf.mxu1  ;;  %v8040_v63 = vor.u32 %v9399_v15, %v8037_v10  ;;  %v1965_v10 = vpop.permute.xlu1 %1964 }
 0x45a   : > { %15757 = vst [vmem:[#allocation104_spill] sm:$0xff] %v12581_v24 }
 0x45b   : > { %7514 = vst [vmem:[%s12339_s18 + $0x60] sm:$0xff] %v2060_v2  ;;  %v4806_v13 = vpop.f32.mrf.mxu2  ;;  %v12593_v4 = vpop.f32.mrf.mxu0 }
 0x45c   : > { %v12591_v50 = vadd.f32 %v4806_v13, %v11879_v18  ;;  %v8029_v18 = vld [vmem:[%s15543_s9 + $0x224] sm:$0xf0] }
 0x45d   : > { %v8032_v42 = vor.u32 %v9398_v61, %v8029_v18 }
 0x45e   : > { %15758 = vst [vmem:[#allocation105_spill] sm:$0xff] %v12591_v50 }
 0x460   : > { %v2061_v59 = vpop.f32.mrf.mxu3  ;;  %4848 = vmatmul.bf16.gmra.mxu2 %v8640_v16  ;;  %v9421_v16 = vld [vmem:[%s15543_s9 + $0x2b8] sm:$0xf0] }
 0x461   : > { %v2062_v2 = vadd.f32 %v2061_v59, %v1960_v20  ;;  %v4715_v7 = vpop.f32.mrf.mxu1  ;;  %v8108_v15 = vor.u32 %v9421_v16, %v8107_v52  ;;  %v1970_v52 = vpop.permute.xlu2 %1969 }
 0x462   : > { %v12608_v13 = vadd.f32 %v4715_v7, %v4547_v38  ;;  %v8073_v7 = vld [vmem:[%s15543_s9 + $0x274] sm:$0xf0] }
 0x463   : > { %7515 = vst [vmem:[%s12339_s18 + $0x68] sm:$0xff] %v2062_v2  ;;  %v4809_v50 = vpop.f32.mrf.mxu2  ;;  %v12614_v24 = vpop.f32.mrf.mxu0  ;;  %v9408_v2 = vld [vmem:[%s15543_s9 + $0x254] sm:$0xf] }
 0x464   : > { %v12612_v19 = vadd.f32 %v4809_v50, %v11908_v36  ;;  %5270 = vmatmul.bf16.gmra.mxu1 %v8040_v63  ;;  %v8675_v36 = vld [vmem:[%s15543_s9 + $0x710] sm:$0xf]  ;;  %v9564_v50 = vld [vmem:[%s15543_s9 + $0x730] sm:$0xf0] }
 0x465   : > { %4932 = vmatmul.bf16.gmra.mxu3 %v8032_v42  ;;  %v8676_v59 = vor.u32 %v9564_v50, %v8675_v36  ;;  %v9407_v42 = vld [vmem:[%s15543_s9 + $0x24c] sm:$0xf] }
 0x466   : > { %5111 = vmatmul.bf16.gmra.mxu0 %v8108_v15  ;;  %v8076_v15 = vor.u32 %v9408_v2, %v8073_v7 }
 0x468   : > { %v2064_v61 = vpop.f32.mrf.mxu3 }
 0x469   : > { %v2065_v18 = vadd.f32 %v2064_v61, %v1965_v10  ;;  %v12622_v20 = vpop.f32.mrf.mxu1 }
 0x46b   : > { %7516 = vst [vmem:[%s12339_s18 + $0x70] sm:$0xff] %v2065_v18  ;;  %v4811_v3 = vpop.f32.mrf.mxu2  ;;  %v12634_v63 = vpop.f32.mrf.mxu0 }
 0x46c   : > { %v12632_v38 = vadd.f32 %v4811_v3, %v11927_v45  ;;  %v8065_v45 = vld [vmem:[%s15543_s9 + $0x26c] sm:$0xf0] }
 0x46d   : > { %v8068_v61 = vor.u32 %v9407_v42, %v8065_v45  ;;  %v9573_v45 = vld [vmem:[%s15543_s9 + $0x778] sm:$0xf0] }
 0x46e   : > { %15760 = vst [vmem:[#allocation33_spill] sm:$0xff] %v12632_v38  ;;  %v8143_v38 = vld [vmem:[%s15543_s9 + $0x2e0] sm:$0xf] }
 0x470   : > { %v2066_v16 = vpop.f32.mrf.mxu3  ;;  %4853 = vmatmul.bf16.gmra.mxu2 %v8676_v59  ;;  %v9430_v59 = vld [vmem:[%s15543_s9 + $0x300] sm:$0xf0] }
 0x471   : > { %v2067_v10 = vadd.f32 %v2066_v16, %v1970_v52  ;;  %v5236_v18 = vpop.f32.mrf.mxu1  ;;  %v8144_v2 = vor.u32 %v9430_v59, %v8143_v38  ;;  %v8109_v59 = vld [vmem:[%s15543_s9 + $0x2bc] sm:$0xf0] }
 0x473   : > { %7517 = vst [vmem:[%s12339_s18 + $0x78] sm:$0xff] %v2067_v10  ;;  %v4814_v36 = vpop.f32.mrf.mxu2  ;;  %v12652_v3 = vpop.f32.mrf.mxu0 }
 0x474   : > { %v12650_v50 = vadd.f32 %v4814_v36, %v11957_v51  ;;  %5275 = vmatmul.bf16.gmra.mxu1 %v8076_v15  ;;  %v8711_v51 = vld [vmem:[%s15543_s9 + $0x758] sm:$0xf] }
 0x475   : > { %4937 = vmatmul.bf16.gmra.mxu3 %v8068_v61  ;;  %v8712_v38 = vor.u32 %v9573_v45, %v8711_v51 }
 0x476   : > { %15761 = vst [vmem:[#allocation106_spill] sm:$0xff] %v12650_v50  ;;  %5116 = vmatmul.bf16.gmra.mxu0 %v8144_v2 }
 0x478   : > { %v4898_v7 = vpop.f32.mrf.mxu3 }
 0x479   : > { %v4899_v42 = vadd.f32 %v4898_v7, %v11861_v57  ;;  %v5238_v52 = vpop.f32.mrf.mxu1  ;;  %v9417_v57 = vld [vmem:[%s15543_s9 + $0x29c] sm:$0xf] }
 0x47b   : > { %v4816_v16 = vpop.f32.mrf.mxu2  ;;  %v5068_v15 = vadd.f32 %v12573_v41, %v4899_v42  ;;  %v12671_v61 = vpop.f32.mrf.mxu0  ;;  %v9416_v41 = vld [vmem:[%s15543_s9 + $0x294] sm:$0xf] }
 0x47c   : > { %v12669_v10 = vadd.f32 %v4816_v16, %v11980_v44  ;;  %v8101_v44 = vld [vmem:[%s15543_s9 + $0x2b4] sm:$0xf0] }
 0x47d   : > { %v12673_v36 = vadd.f32 %v5236_v18, %v5068_v15  ;;  %v8112_v18 = vor.u32 %v9417_v57, %v8109_v59  ;;  %v8104_v42 = vor.u32 %v9416_v41, %v8101_v44  ;;  %v8179_v15 = vld [vmem:[%s15543_s9 + $0x328] sm:$0xf]  ;;  %v9582_v41 = vld [vmem:[%s15543_s9 + $0x7c0] sm:$0xf0] }
 0x47e   : > { %15762 = vst [vmem:[#allocation107_spill] sm:$0xff] %v12669_v10 }
 0x480   : > { %4858 = vmatmul.bf16.gmra.mxu2 %v8712_v38  ;;  %v4900_v2 = vpop.f32.mrf.mxu3  ;;  %v9439_v38 = vld [vmem:[%s15543_s9 + $0x348] sm:$0xf0] }
 0x481   : > { %v4901_v7 = vadd.f32 %v4900_v2, %v11884_v14  ;;  %v5241_v51 = vpop.f32.mrf.mxu1  ;;  %v8180_v57 = vor.u32 %v9439_v38, %v8179_v15 }
 0x483   : > { %v4819_v45 = vpop.f32.mrf.mxu2  ;;  %v5070_v16 = vadd.f32 %v12593_v4, %v4901_v7  ;;  %v12695_v50 = vpop.f32.mrf.mxu0 }
 0x484   : > { %v12693_v10 = vadd.f32 %v4819_v45, %v12008_v46  ;;  %5280 = vmatmul.bf16.gmra.mxu1 %v8112_v18  ;;  %v8747_v46 = vld [vmem:[%s15543_s9 + $0x7a0] sm:$0xf] }
 0x485   : > { %v12700_v14 = vadd.f32 %v5238_v52, %v5070_v16  ;;  %4942 = vmatmul.bf16.gmra.mxu3 %v8104_v42  ;;  %v8748_v7 = vor.u32 %v9582_v41, %v8747_v46  ;;  %v8145_v16 = vld [vmem:[%s15543_s9 + $0x304] sm:$0xf0]  ;;  %v8215_v41 = vld [vmem:[%s15543_s9 + $0x370] sm:$0xf] }
 0x486   : > { %5121 = vmatmul.bf16.gmra.mxu0 %v8180_v57 }
 0x488   : > { %v4903_v4 = vpop.f32.mrf.mxu3 }
 0x489   : > { %v4904_v59 = vadd.f32 %v4903_v4, %v11913_v23  ;;  %v5243_v44 = vpop.f32.mrf.mxu1  ;;  %v9426_v23 = vld [vmem:[%s15543_s9 + $0x2e4] sm:$0xf] }
 0x48b   : > { %v4821_v2 = vpop.f32.mrf.mxu2  ;;  %v5073_v18 = vadd.f32 %v12614_v24, %v4904_v59  ;;  %v12713_v42 = vpop.f32.mrf.mxu0  ;;  %v9425_v24 = vld [vmem:[%s15543_s9 + $0x2dc] sm:$0xf] }
 0x48c   : > { %v12711_v52 = vadd.f32 %v4821_v2, %v12027_v32  ;;  %v8137_v32 = vld [vmem:[%s15543_s9 + $0x2fc] sm:$0xf0] }
 0x48d   : > { %v12715_v45 = vadd.f32 %v5241_v51, %v5073_v18  ;;  %v8148_v51 = vor.u32 %v9426_v23, %v8145_v16  ;;  %v8140_v57 = vor.u32 %v9425_v24, %v8137_v32  ;;  %v9591_v24 = vld [vmem:[%s15543_s9 + $0x808] sm:$0xf0] }
 0x490   : > { %4863 = vmatmul.bf16.gmra.mxu2 %v8748_v7  ;;  %v4905_v15 = vpop.f32.mrf.mxu3  ;;  %v9448_v7 = vld [vmem:[%s15543_s9 + $0x390] sm:$0xf0] }
 0x491   : > { %v4906_v38 = vadd.f32 %v4905_v15, %v11932_v48  ;;  %v5246_v4 = vpop.f32.mrf.mxu1  ;;  %v8216_v23 = vor.u32 %v9448_v7, %v8215_v41  ;;  %v1223_v41 = vld [vmem:[%s10355_s21 + $0x370] sm:$0xff]  ;;  %v1224_v7 = vld [vmem:[%s10355_s21 + $0x378] sm:$0xff] }
 0x493   : > { %v4824_v59 = vpop.f32.mrf.mxu2  ;;  %v5075_v46 = vadd.f32 %v12634_v63, %v4906_v38  ;;  %v12737_v18 = vpop.f32.mrf.mxu0 }
 0x494   : > { %v12735_v2 = vadd.f32 %v4824_v59, %v12055_v58  ;;  %5285 = vmatmul.bf16.gmra.mxu1 %v8148_v51  ;;  %v8783_v58 = vld [vmem:[%s15543_s9 + $0x7e8] sm:$0xf] }
 0x495   : > { %v12742_v48 = vadd.f32 %v5243_v44, %v5075_v46  ;;  %4947 = vmatmul.bf16.gmra.mxu3 %v8140_v57  ;;  %v8784_v38 = vor.u32 %v9591_v24, %v8783_v58  ;;  %v8181_v46 = vld [vmem:[%s15543_s9 + $0x34c] sm:$0xf0] }
 0x496   : > { %5126 = vmatmul.bf16.gmra.mxu0 %v8216_v23 }
 0x498   : > { %v4908_v63 = vpop.f32.mrf.mxu3 }
 0x499   : > { %v4909_v16 = vadd.f32 %v4908_v63, %v11960_v6  ;;  %v5248_v32 = vpop.f32.mrf.mxu1  ;;  %v9435_v6 = vld [vmem:[%s15543_s9 + $0x32c] sm:$0xf]  ;;  %v2124_v63 = vpack.c.bf16 %v1224_v7, %v1223_v41  ;;  %v1220_v7 = vld [vmem:[%s10355_s21 + $0x358] sm:$0xff] }
 0x49a   : > { %v8184_v23 = vor.u32 %v9435_v6, %v8181_v46  ;;  %v1221_v46 = vld [vmem:[%s10355_s21 + $0x360] sm:$0xff] }
 0x49b   : > { %v4826_v15 = vpop.f32.mrf.mxu2  ;;  %v5078_v44 = vadd.f32 %v12652_v3, %v4909_v16  ;;  %v12755_v57 = vpop.f32.mrf.mxu0  ;;  %v9434_v3 = vld [vmem:[%s15543_s9 + $0x324] sm:$0xf]  ;;  %5396 = vmatpush.bf16.msra.mxu2 %v2124_v63 }
 0x49c   : > { %v12753_v51 = vadd.f32 %v4826_v15, %v12074_v55  ;;  %v8173_v55 = vld [vmem:[%s15543_s9 + $0x344] sm:$0xf0] }
 0x49d   : > { %v12757_v59 = vadd.f32 %v5246_v4, %v5078_v44  ;;  %v8176_v58 = vor.u32 %v9434_v3, %v8173_v55  ;;  %v1222_v3 = vld [vmem:[%s10355_s21 + $0x368] sm:$0xff] }
 0x49e   : > { %15763 = vst [vmem:[#allocation108_spill] sm:$0xff] %v12753_v51  ;;  %v8251_v51 = vld [vmem:[%s15543_s9 + $0x3b8] sm:$0xf]  ;;  %v2123_v41 = vpack.c.bf16 %v1222_v3, %v1221_v46  ;;  %v1217_v46 = vld [vmem:[%s10355_s21 + $0x340] sm:$0xff]  ;;  %v1218_v3 = vld [vmem:[%s10355_s21 + $0x348] sm:$0xff] }
 0x4a0   : > { %4868 = vmatmul.bf16.gmra.mxu2 %v8784_v38  ;;  %v4910_v4 = vpop.f32.mrf.mxu3 }
 0x4a1   : > { %v4911_v16 = vadd.f32 %v4910_v4, %v11983_v27  ;;  %v5251_v24 = vpop.f32.mrf.mxu1  ;;  %v9457_v27 = vld [vmem:[%s15543_s9 + $0x3d8] sm:$0xf0]  ;;  %5397 = vmatpush.bf16.msra.mxu2 %v2123_v41  ;;  %v15764_v4 = vld [vmem:[#allocation34_spill] sm:$0xff] }
 0x4a3   : > { %v4829_v15 = vpop.f32.mrf.mxu2  ;;  %v5080_v44 = vadd.f32 %v12671_v61, %v4911_v16  ;;  %v12781_v6 = vpop.f32.mrf.mxu0  ;;  %v8252_v61 = vor.u32 %v9457_v27, %v8251_v51  ;;  %v9600_v51 = vld [vmem:[%s15543_s9 + $0x850] sm:$0xf0] }
 0x4a4   : > { %v12779_v38 = vadd.f32 %v4829_v15, %v12098_v22  ;;  %5290 = vmatmul.bf16.gmra.mxu1 %v8184_v23  ;;  %v1219_v22 = vld [vmem:[%s10355_s21 + $0x350] sm:$0xff]  ;;  %v4494_v23 = vadd.f32 %v11919_v54, %v15764_v4 }
 0x4a5   : > { %v12788_v55 = vadd.f32 %v5248_v32, %v5080_v44  ;;  %4952 = vmatmul.bf16.gmra.mxu3 %v8176_v58  ;;  %v2122_v16 = vpack.c.bf16 %v1220_v7, %v1219_v22  ;;  %v8819_v32 = vld [vmem:[%s15543_s9 + $0x830] sm:$0xf]  ;;  %v2121_v22 = vpack.c.bf16 %v1218_v3, %v1217_v46  ;;  %v8217_v4 = vld [vmem:[%s15543_s9 + $0x394] sm:$0xf0]  ;;  %v8287_v3 = vld [vmem:[%s15543_s9 + $0x400] sm:$0xf] }
 0x4a6   : > { %5131 = vmatmul.bf16.gmra.mxu0 %v8252_v61  ;;  %v4663_v44 = vadd.f32 %v12111_v12, %v4494_v23  ;;  %v8820_v61 = vor.u32 %v9600_v51, %v8819_v32  ;;  %v9444_v12 = vld [vmem:[%s15543_s9 + $0x374] sm:$0xf]  ;;  %v8209_v23 = vld [vmem:[%s15543_s9 + $0x38c] sm:$0xf0] }
 0x4a7   : > { %5398 = vmatpush.bf16.msra.mxu2 %v2122_v16 }
 0x4a8   : > { %v4913_v63 = vpop.f32.mrf.mxu3 }
 0x4a9   : > { %v4914_v15 = vadd.f32 %v4913_v63, %v12013_v21  ;;  %v5253_v58 = vpop.f32.mrf.mxu1  ;;  %v1215_v63 = vld [vmem:[%s10355_s21 + $0x330] sm:$0xff] }
 0x4ab   : > { %v4831_v27 = vpop.f32.mrf.mxu2  ;;  %v5083_v54 = vadd.f32 %v12695_v50, %v4914_v15  ;;  %v12807_v41 = vpop.f32.mrf.mxu0  ;;  %v9443_v50 = vld [vmem:[%s15543_s9 + $0x36c] sm:$0xf]  ;;  %5399 = vmatpush.bf16.msra.mxu2 %v2121_v22  ;;  %v8220_v15 = vor.u32 %v9444_v12, %v8217_v4 }
 0x4ac   : > { %v12805_v21 = vadd.f32 %v4831_v27, %v4663_v44  ;;  %v8212_v44 = vor.u32 %v9443_v50, %v8209_v23  ;;  %v1213_v12 = vld [vmem:[%s10355_s21 + $0x320] sm:$0xff]  ;;  %v1214_v4 = vld [vmem:[%s10355_s21 + $0x328] sm:$0xff] }
 0x4ad   : > { %v12809_v7 = vadd.f32 %v5251_v24, %v5083_v54  ;;  %v1216_v24 = vld [vmem:[%s10355_s21 + $0x338] sm:$0xff]  ;;  %v2119_v23 = vpack.c.bf16 %v1214_v4, %v1213_v12  ;;  %v1210_v12 = vld [vmem:[%s10355_s21 + $0x308] sm:$0xff] }
 0x4ae   : > { %v2120_v32 = vpack.c.bf16 %v1216_v24, %v1215_v63  ;;  %v1212_v63 = vld [vmem:[%s10355_s21 + $0x318] sm:$0xff] }
 0x4af   : > { %v15765_v24 = vld [vmem:[#allocation32_spill] sm:$0xff] }
 0x4b0   : > { %4873 = vmatmul.bf16.gmra.mxu2 %v8820_v61  ;;  %v4915_v16 = vpop.f32.mrf.mxu3 }
 0x4b1   : > { %v4916_v51 = vadd.f32 %v4915_v16, %v12032_v39  ;;  %v5256_v27 = vpop.f32.mrf.mxu1  ;;  %5400 = vmatpush.bf16.msra.mxu2 %v2120_v32  ;;  %v9466_v39 = vld [vmem:[%s15543_s9 + $0x420] sm:$0xf0]  ;;  %v4499_v16 = vadd.f32 %v11970_v5, %v15765_v24  ;;  %v8245_v24 = vld [vmem:[%s15543_s9 + $0x3d4] sm:$0xf0] }
 0x4b2   : > { %v1209_v5 = vld [vmem:[%s10355_s21 + $0x300] sm:$0xff] }
 0x4b3   : > { %v4834_v54 = vpop.f32.mrf.mxu2  ;;  %v5085_v46 = vadd.f32 %v12713_v42, %v4916_v51  ;;  %v12833_v22 = vpop.f32.mrf.mxu0  ;;  %v8288_v42 = vor.u32 %v9466_v39, %v8287_v3 }
 0x4b4   : > { %v12831_v61 = vadd.f32 %v4834_v54, %v12151_v40  ;;  %5295 = vmatmul.bf16.gmra.mxu1 %v8220_v15  ;;  %v1211_v40 = vld [vmem:[%s10355_s21 + $0x310] sm:$0xff] }
 0x4b5   : > { %v12840_v50 = vadd.f32 %v5253_v58, %v5085_v46  ;;  %4957 = vmatmul.bf16.gmra.mxu3 %v8212_v44  ;;  %5401 = vmatpush.bf16.msra.mxu2 %v2119_v23  ;;  %v2118_v32 = vpack.c.bf16 %v1212_v63, %v1211_v40  ;;  %v8855_v58 = vld [vmem:[%s15543_s9 + $0x878] sm:$0xf]  ;;  %v9609_v44 = vld [vmem:[%s15543_s9 + $0x898] sm:$0xf0]  ;;  %v4668_v46 = vadd.f32 %v12171_v43, %v4499_v16  ;;  %v8253_v43 = vld [vmem:[%s15543_s9 + $0x3dc] sm:$0xf0] }
 0x4b6   : > { %5136 = vmatmul.bf16.gmra.mxu0 %v8288_v42  ;;  %v2117_v23 = vpack.c.bf16 %v1210_v12, %v1209_v5  ;;  %v9453_v63 = vld [vmem:[%s15543_s9 + $0x3bc] sm:$0xf]  ;;  %v9475_v5 = vld [vmem:[%s15543_s9 + $0x468] sm:$0xf0] }
 0x4b7   : > { %v8256_v16 = vor.u32 %v9453_v63, %v8253_v43  ;;  %v9618_v43 = vld [vmem:[%s15543_s9 + $0x8e0] sm:$0xf0] }
 0x4b8   : > { %v4918_v15 = vpop.f32.mrf.mxu3 }
 0x4b9   : > { %v4919_v51 = vadd.f32 %v4918_v15, %v12060_v56  ;;  %v5258_v54 = vpop.f32.mrf.mxu1  ;;  %5402 = vmatpush.bf16.msra.mxu2 %v2118_v32  ;;  %v8856_v56 = vor.u32 %v9609_v44, %v8855_v58 }
 0x4bb   : > { %v4836_v3 = vpop.f32.mrf.mxu2  ;;  %v5088_v39 = vadd.f32 %v12737_v18, %v4919_v51  ;;  %v12859_v42 = vpop.f32.mrf.mxu0  ;;  %v9452_v18 = vld [vmem:[%s15543_s9 + $0x3b4] sm:$0xf] }
 0x4bc   : > { %v12857_v4 = vadd.f32 %v4836_v3, %v4668_v46  ;;  %v8248_v32 = vor.u32 %v9452_v18, %v8245_v24  ;;  %v8323_v46 = vld [vmem:[%s15543_s9 + $0x448] sm:$0xf] }
 0x4bd   : > { %v12861_v40 = vadd.f32 %v5256_v27, %v5088_v39  ;;  %5403 = vmatpush.bf16.msra.mxu2 %v2117_v23  ;;  %v8324_v12 = vor.u32 %v9475_v5, %v8323_v46 }
 0x4c0   : > { %4878 = vmatmul.bf16.gmra.mxu2 %v8856_v56  ;;  %v4920_v27 = vpop.f32.mrf.mxu3 }
 0x4c1   : > { %v4921_v15 = vadd.f32 %v4920_v27, %v12079_v60  ;;  %v5261_v51 = vpop.f32.mrf.mxu1 }
 0x4c3   : > { %v4839_v58 = vpop.f32.mrf.mxu2  ;;  %v5090_v44 = vadd.f32 %v12755_v57, %v4921_v15  ;;  %v12883_v39 = vpop.f32.mrf.mxu0  ;;  %v15766_v57 = vld [vmem:[#allocation38_spill] sm:$0xff] }
 0x4c4   : > { %v12881_v3 = vadd.f32 %v4839_v58, %v12214_v1  ;;  %5300 = vmatmul.bf16.gmra.mxu1 %v8256_v16  ;;  %v4504_v56 = vadd.f32 %v12017_v33, %v15766_v57  ;;  %v8891_v1 = vld [vmem:[%s15543_s9 + $0x8c0] sm:$0xf]  ;;  %v8289_v58 = vld [vmem:[%s15543_s9 + $0x424] sm:$0xf0] }
 0x4c5   : > { %v12888_v60 = vadd.f32 %v5258_v54, %v5090_v44  ;;  %4962 = vmatmul.bf16.gmra.mxu3 %v8248_v32  ;;  %v8892_v33 = vor.u32 %v9618_v43, %v8891_v1  ;;  %v9462_v32 = vld [vmem:[%s15543_s9 + $0x404] sm:$0xf]  ;;  %v9484_v43 = vld [vmem:[%s15543_s9 + $0x4b0] sm:$0xf0] }
 0x4c6   : > { %5141 = vmatmul.bf16.gmra.mxu0 %v8324_v12  ;;  %v4673_v54 = vadd.f32 %v12235_v37, %v4504_v56  ;;  %v9461_v37 = vld [vmem:[%s15543_s9 + $0x3fc] sm:$0xf] }
 0x4c8   : > { %v4923_v23 = vpop.f32.mrf.mxu3 }
 0x4c9   : > { %v4924_v63 = vadd.f32 %v4923_v23, %v12101_v35  ;;  %v5263_v18 = vpop.f32.mrf.mxu1  ;;  %v8359_v23 = vld [vmem:[%s15543_s9 + $0x490] sm:$0xf] }
 0x4cb   : > { %v4841_v24 = vpop.f32.mrf.mxu2  ;;  %v5093_v27 = vadd.f32 %v12781_v6, %v4924_v63  ;;  %v12903_v15 = vpop.f32.mrf.mxu0  ;;  %v8281_v6 = vld [vmem:[%s15543_s9 + $0x41c] sm:$0xf0] }
 0x4cc   : > { %v12901_v16 = vadd.f32 %v4841_v24, %v4673_v54  ;;  %v8284_v5 = vor.u32 %v9461_v37, %v8281_v6  ;;  %v8360_v54 = vor.u32 %v9484_v43, %v8359_v23 }
 0x4cd   : > { %v12905_v35 = vadd.f32 %v5261_v51, %v5093_v27  ;;  %v8292_v51 = vor.u32 %v9462_v32, %v8289_v58  ;;  %v9341_v32 = vld [vmem:[%s15543_s9 + $0x38] sm:$0xf0] }
 0x4d0   : > { %4883 = vmatmul.bf16.gmra.mxu2 %v8892_v33  ;;  %v4925_v44 = vpop.f32.mrf.mxu3 }
 0x4d1   : > { %v4926_v46 = vadd.f32 %v4925_v44, %v12124_v30  ;;  %v5266_v12 = vpop.f32.mrf.mxu1 }
 0x4d3   : > { %v4844_v57 = vpop.f32.mrf.mxu2  ;;  %v5095_v56 = vadd.f32 %v12807_v41, %v4926_v46  ;;  %v12927_v1 = vpop.f32.mrf.mxu0  ;;  %v15767_v41 = vld [vmem:[#allocation30_spill] sm:$0xff] }
 0x4d4   : > { %v12925_v63 = vadd.f32 %v4844_v57, %v12267_v49  ;;  %5305 = vmatmul.bf16.gmra.mxu1 %v8292_v51  ;;  %v4509_v24 = vadd.f32 %v12076_v17, %v15767_v41  ;;  %v7791_v49 = vld [vmem:[%s15543_s9 + $0x18] sm:$0xf]  ;;  %v9471_v46 = vld [vmem:[%s15543_s9 + $0x44c] sm:$0xf] }
 0x4d5   : > { %v12932_v30 = vadd.f32 %v5263_v18, %v5095_v56  ;;  %4967 = vmatmul.bf16.gmra.mxu3 %v8284_v5  ;;  %v7792_v17 = vor.u32 %v9341_v32, %v7791_v49  ;;  %v8325_v5 = vld [vmem:[%s15543_s9 + $0x46c] sm:$0xf0]  ;;  %v9493_v49 = vld [vmem:[%s15543_s9 + $0x4f8] sm:$0xf0] }
 0x4d6   : > { %5146 = vmatmul.bf16.gmra.mxu0 %v8360_v54  ;;  %v4678_v18 = vadd.f32 %v12282_v26, %v4509_v24  ;;  %v9470_v26 = vld [vmem:[%s15543_s9 + $0x444] sm:$0xf]  ;;  %v8395_v24 = vld [vmem:[%s15543_s9 + $0x4d8] sm:$0xf] }
 0x4d7   : > { %v8396_v32 = vor.u32 %v9493_v49, %v8395_v24 }
 0x4d8   : > { %v4928_v27 = vpop.f32.mrf.mxu3 }
 0x4d9   : > { %v4929_v33 = vadd.f32 %v4928_v27, %v12158_v34  ;;  %v5268_v58 = vpop.f32.mrf.mxu1 }
 0x4db   : > { %v4846_v37 = vpop.f32.mrf.mxu2  ;;  %v5098_v6 = vadd.f32 %v12833_v22, %v4929_v33  ;;  %v12947_v51 = vpop.f32.mrf.mxu0  ;;  %v8317_v22 = vld [vmem:[%s15543_s9 + $0x464] sm:$0xf0] }
 0x4dc   : > { %v12945_v44 = vadd.f32 %v4846_v37, %v4678_v18  ;;  %v8320_v23 = vor.u32 %v9470_v26, %v8317_v22 }
 0x4dd   : > { %v12949_v34 = vadd.f32 %v5266_v12, %v5098_v6  ;;  %v8328_v12 = vor.u32 %v9471_v46, %v8325_v5 }
 0x4e0   : > { %v4930_v57 = vpop.f32.mrf.mxu3  ;;  %5404 = vmatmul.bf16.vlgmr.msra.gmra.mxu2 %v7792_v17  ;;  %v9350_v17 = vld [vmem:[%s15543_s9 + $0x80] sm:$0xf0] }
 0x4e1   : > { %v4931_v56 = vadd.f32 %v4930_v57, %v12187_v11  ;;  %v5271_v43 = vpop.f32.mrf.mxu1 }
 0x4e3   : > { %v4849_v54 = vpop.f32.mrf.mxu2  ;;  %v5100_v41 = vadd.f32 %v12859_v42, %v4931_v56  ;;  %v12971_v33 = vpop.f32.mrf.mxu0  ;;  %v15768_v42 = vld [vmem:[#allocation25_spill] sm:$0xff]  ;;  %v8361_v56 = vld [vmem:[%s15543_s9 + $0x4b4] sm:$0xf0] }
 0x4e4   : > { %v12969_v27 = vadd.f32 %v4849_v54, %v12315_v28  ;;  %5310 = vmatmul.bf16.gmra.mxu1 %v8328_v12  ;;  %v4514_v18 = vadd.f32 %v12140_v25, %v15768_v42  ;;  %v7827_v28 = vld [vmem:[%s15543_s9 + $0x60] sm:$0xf]  ;;  %v9480_v12 = vld [vmem:[%s15543_s9 + $0x494] sm:$0xf] }
 0x4e5   : > { %v12976_v11 = vadd.f32 %v5268_v58, %v5100_v41  ;;  %4972 = vmatmul.bf16.gmra.mxu3 %v8320_v23  ;;  %v7828_v25 = vor.u32 %v9350_v17, %v7827_v28  ;;  %v8431_v42 = vld [vmem:[%s15543_s9 + $0x520] sm:$0xf] }
 0x4e6   : > { %5151 = vmatmul.bf16.gmra.mxu0 %v8396_v32  ;;  %v4683_v58 = vadd.f32 %v12331_v9, %v4514_v18  ;;  %v9479_v9 = vld [vmem:[%s15543_s9 + $0x48c] sm:$0xf] }
 0x4e8   : > { %v4933_v37 = vpop.f32.mrf.mxu3 }
 0x4e9   : > { %v4934_v6 = vadd.f32 %v4933_v37, %v12224_v31  ;;  %v5273_v46 = vpop.f32.mrf.mxu1 }
 0x4eb   : > { %v4851_v5 = vpop.f32.mrf.mxu2  ;;  %v5103_v26 = vadd.f32 %v12883_v39, %v4934_v6  ;;  %v12991_v57 = vpop.f32.mrf.mxu0  ;;  %v8353_v39 = vld [vmem:[%s15543_s9 + $0x4ac] sm:$0xf0]  ;;  %v9502_v6 = vld [vmem:[%s15543_s9 + $0x540] sm:$0xf0] }
 0x4ec   : > { %v12989_v22 = vadd.f32 %v4851_v5, %v4683_v58  ;;  %v8356_v41 = vor.u32 %v9479_v9, %v8353_v39  ;;  %v8432_v28 = vor.u32 %v9502_v6, %v8431_v42  ;;  %v15770_v5 = vld [vmem:[#allocation45_spill] sm:$0xff]  ;;  %v15773_v6 = vld [vmem:[#allocation46_spill] sm:$0xff] }
 0x4ed   : > { %v12993_v31 = vadd.f32 %v5271_v43, %v5103_v26  ;;  %v8364_v43 = vor.u32 %v9480_v12, %v8361_v56 }
 0x4f0   : > { %v4935_v23 = vpop.f32.mrf.mxu3  ;;  %5409 = vmatmul.bf16.gmra.mxu2 %v7828_v25  ;;  %v9359_v25 = vld [vmem:[%s15543_s9 + $0xc8] sm:$0xf0] }
 0x4f1   : > { %v4936_v54 = vadd.f32 %v4935_v23, %v12248_v29  ;;  %v5276_v24 = vpop.f32.mrf.mxu1 }
 0x4f3   : > { %v4854_v49 = vpop.f32.mrf.mxu2  ;;  %v5105_v32 = vadd.f32 %v12903_v15, %v4936_v54  ;;  %v13015_v37 = vpop.f32.mrf.mxu0  ;;  %v15769_v15 = vld [vmem:[#allocation17_spill] sm:$0xff] }
 0x4f4   : > { %v13013_v18 = vadd.f32 %v4854_v49, %v12363_v47  ;;  %5315 = vmatmul.bf16.gmra.mxu1 %v8364_v43  ;;  %v4519_v17 = vadd.f32 %v12221_v62, %v15769_v15  ;;  %v7863_v47 = vld [vmem:[%s15543_s9 + $0xa8] sm:$0xf]  ;;  %v8397_v49 = vld [vmem:[%s15543_s9 + $0x4fc] sm:$0xf0] }
 0x4f5   : > { %v13020_v29 = vadd.f32 %v5273_v46, %v5105_v32  ;;  %4977 = vmatmul.bf16.gmra.mxu3 %v8356_v41  ;;  %v15771_v46 = vld [vmem:[#allocation96_spill] sm:$0xff]  ;;  %v7864_v62 = vor.u32 %v9359_v25, %v7863_v47  ;;  %v9488_v32 = vld [vmem:[%s15543_s9 + $0x4d4] sm:$0xf]  ;;  %v15774_v47 = vld [vmem:[#allocation98_spill] sm:$0xff] }
 0x4f6   : > { %5156 = vmatmul.bf16.gmra.mxu0 %v8432_v28  ;;  %v4688_v56 = vadd.f32 %v15771_v46, %v4519_v17  ;;  %v9489_v41 = vld [vmem:[%s15543_s9 + $0x4dc] sm:$0xf] }
 0x4f8   : > { %v4938_v58 = vpop.f32.mrf.mxu3 }
 0x4f9   : > { %v4939_v26 = vadd.f32 %v4938_v58, %v15770_v5  ;;  %v5278_v12 = vpop.f32.mrf.mxu1 }
 0x4fb   : > { %v4856_v9 = vpop.f32.mrf.mxu2  ;;  %v5108_v39 = vadd.f32 %v12927_v1, %v4939_v26  ;;  %v13035_v43 = vpop.f32.mrf.mxu0  ;;  %v8389_v1 = vld [vmem:[%s15543_s9 + $0x4f4] sm:$0xf0]  ;;  %v8467_v26 = vld [vmem:[%s15543_s9 + $0x568] sm:$0xf] }
 0x4fc   : > { %v13033_v23 = vadd.f32 %v4856_v9, %v4688_v56  ;;  %v8392_v15 = vor.u32 %v9488_v32, %v8389_v1  ;;  %v9511_v56 = vld [vmem:[%s15543_s9 + $0x588] sm:$0xf0]  ;;  %v15778_v32 = vld [vmem:[#allocation48_spill] sm:$0xff] }
 0x4fd   : > { %v13037_v54 = vadd.f32 %v5276_v24, %v5108_v39  ;;  %v8400_v24 = vor.u32 %v9489_v41, %v8397_v49  ;;  %v8468_v39 = vor.u32 %v9511_v56, %v8467_v26 }
 0x4fe   : > { %15772 = vst [vmem:[#allocation34_spill] sm:$0xff] %v13033_v23 }
 0x500   : > { %v4940_v42 = vpop.f32.mrf.mxu3  ;;  %5414 = vmatmul.bf16.gmra.mxu2 %v7864_v62  ;;  %v15777_v62 = vld [vmem:[#allocation88_spill] sm:$0xff] }
 0x501   : > { %v4941_v28 = vadd.f32 %v4940_v42, %v15773_v6  ;;  %v5281_v17 = vpop.f32.mrf.mxu1  ;;  %v7899_v42 = vld [vmem:[%s15543_s9 + $0xf0] sm:$0xf] }
 0x503   : > { %v4859_v58 = vpop.f32.mrf.mxu2  ;;  %v5110_v5 = vadd.f32 %v12947_v51, %v4941_v28  ;;  %v13059_v46 = vpop.f32.mrf.mxu0  ;;  %v15776_v51 = vld [vmem:[#allocation15_spill] sm:$0xff] }
 0x504   : > { %v13057_v25 = vadd.f32 %v4859_v58, %v15774_v47  ;;  %5320 = vmatmul.bf16.gmra.mxu1 %v8400_v24  ;;  %v4524_v41 = vadd.f32 %v15777_v62, %v15776_v51  ;;  %v9368_v24 = vld [vmem:[%s15543_s9 + $0x110] sm:$0xf0]  ;;  %v8433_v51 = vld [vmem:[%s15543_s9 + $0x544] sm:$0xf0]  ;;  %v9497_v62 = vld [vmem:[%s15543_s9 + $0x51c] sm:$0xf] }
 0x505   : > { %v13064_v9 = vadd.f32 %v5278_v12, %v5110_v5  ;;  %4982 = vmatmul.bf16.gmra.mxu3 %v8392_v15  ;;  %v15779_v12 = vld [vmem:[#allocation99_spill] sm:$0xff]  ;;  %v7900_v26 = vor.u32 %v9368_v24, %v7899_v42 }
 0x506   : > { %15775 = vst [vmem:[#allocation32_spill] sm:$0xff] %v13057_v25  ;;  %5161 = vmatmul.bf16.gmra.mxu0 %v8468_v39  ;;  %v4693_v28 = vadd.f32 %v15779_v12, %v4524_v41  ;;  %v9498_v39 = vld [vmem:[%s15543_s9 + $0x524] sm:$0xf] }
 0x508   : > { %v4943_v49 = vpop.f32.mrf.mxu3 }
 0x509   : > { %v4944_v1 = vadd.f32 %v4943_v49, %v15778_v32  ;;  %v5283_v6 = vpop.f32.mrf.mxu1  ;;  %v15781_v49 = vld [vmem:[#allocation49_spill] sm:$0xff] }
 0x50b   : > { %v4861_v15 = vpop.f32.mrf.mxu2  ;;  %v5113_v58 = vadd.f32 %v12971_v33, %v4944_v1  ;;  %v13079_v47 = vpop.f32.mrf.mxu0  ;;  %v8425_v33 = vld [vmem:[%s15543_s9 + $0x53c] sm:$0xf0] }
 0x50c   : > { %v13077_v5 = vadd.f32 %v4861_v15, %v4693_v28  ;;  %v8428_v1 = vor.u32 %v9497_v62, %v8425_v33  ;;  %v8503_v28 = vld [vmem:[%s15543_s9 + $0x5b0] sm:$0xf]  ;;  %v15782_v15 = vld [vmem:[#allocation44_spill] sm:$0xff]  ;;  %v15785_v62 = vld [vmem:[#allocation94_spill] sm:$0xff] }
 0x50d   : > { %v13081_v56 = vadd.f32 %v5281_v17, %v5113_v58  ;;  %v8436_v17 = vor.u32 %v9498_v39, %v8433_v51 }
 0x50e   : > { %15780 = vst [vmem:[#allocation38_spill] sm:$0xff] %v13077_v5 }
 0x510   : > { %v4945_v41 = vpop.f32.mrf.mxu3  ;;  %5419 = vmatmul.bf16.gmra.mxu2 %v7900_v26  ;;  %v9520_v26 = vld [vmem:[%s15543_s9 + $0x5d0] sm:$0xf0] }
 0x511   : > { %v4946_v32 = vadd.f32 %v4945_v41, %v15781_v49  ;;  %v5286_v42 = vpop.f32.mrf.mxu1  ;;  %v8504_v51 = vor.u32 %v9520_v26, %v8503_v28  ;;  %v15786_v49 = vld [vmem:[#allocation51_spill] sm:$0xff] }
 0x513   : > { %v4864_v24 = vpop.f32.mrf.mxu2  ;;  %v5115_v12 = vadd.f32 %v12991_v57, %v4946_v32  ;;  %v13103_v5 = vpop.f32.mrf.mxu0  ;;  %v15784_v57 = vld [vmem:[#allocation57_spill] sm:$0xff] }
 0x514   : > { %v13101_v58 = vadd.f32 %v4864_v24, %v15782_v15  ;;  %5325 = vmatmul.bf16.gmra.mxu1 %v8436_v17  ;;  %v4529_v33 = vadd.f32 %v15785_v62, %v15784_v57  ;;  %v7935_v17 = vld [vmem:[%s15543_s9 + $0x138] sm:$0xf]  ;;  %v9377_v24 = vld [vmem:[%s15543_s9 + $0x158] sm:$0xf0] }
 0x515   : > { %v13108_v39 = vadd.f32 %v5283_v6, %v5115_v12  ;;  %4987 = vmatmul.bf16.gmra.mxu3 %v8428_v1  ;;  %v15787_v6 = vld [vmem:[#allocation101_spill] sm:$0xff] }
 0x516   : > { %15783 = vst [vmem:[#allocation30_spill] sm:$0xff] %v13101_v58  ;;  %5166 = vmatmul.bf16.gmra.mxu0 %v8504_v51  ;;  %v4698_v12 = vadd.f32 %v15787_v6, %v4529_v33  ;;  %v7936_v51 = vor.u32 %v9377_v24, %v7935_v17  ;;  %v9506_v33 = vld [vmem:[%s15543_s9 + $0x564] sm:$0xf]  ;;  %v15789_v17 = vld [vmem:[#allocation52_spill] sm:$0xff] }
 0x518   : > { %v4948_v41 = vpop.f32.mrf.mxu3 }
 0x519   : > { %v4949_v32 = vadd.f32 %v4948_v41, %v15786_v49  ;;  %v5288_v15 = vpop.f32.mrf.mxu1  ;;  %v9507_v41 = vld [vmem:[%s15543_s9 + $0x56c] sm:$0xf]  ;;  %v8469_v49 = vld [vmem:[%s15543_s9 + $0x58c] sm:$0xf0] }
 0x51b   : > { %v4866_v1 = vpop.f32.mrf.mxu2  ;;  %v5118_v28 = vadd.f32 %v13015_v37, %v4949_v32  ;;  %v13123_v57 = vpop.f32.mrf.mxu0  ;;  %v8461_v37 = vld [vmem:[%s15543_s9 + $0x584] sm:$0xf0] }
 0x51c   : > { %v13121_v26 = vadd.f32 %v4866_v1, %v4698_v12  ;;  %v8464_v6 = vor.u32 %v9506_v33, %v8461_v37  ;;  %v15792_v33 = vld [vmem:[#allocation97_spill] sm:$0xff] }
 0x51d   : > { %v13125_v62 = vadd.f32 %v5286_v42, %v5118_v28  ;;  %v8472_v42 = vor.u32 %v9507_v41, %v8469_v49 }
 0x51e   : > { %15788 = vst [vmem:[#allocation25_spill] sm:$0xff] %v13121_v26  ;;  %v8539_v26 = vld [vmem:[%s15543_s9 + $0x5f8] sm:$0xf] }
 0x520   : > { %v4950_v32 = vpop.f32.mrf.mxu3  ;;  %5424 = vmatmul.bf16.gmra.mxu2 %v7936_v51  ;;  %v9529_v51 = vld [vmem:[%s15543_s9 + $0x618] sm:$0xf0] }
 0x521   : > { %v4951_v24 = vadd.f32 %v4950_v32, %v15789_v17  ;;  %v5291_v12 = vpop.f32.mrf.mxu1  ;;  %v8540_v49 = vor.u32 %v9529_v51, %v8539_v26  ;;  %v15793_v17 = vld [vmem:[#allocation53_spill] sm:$0xff] }
 0x523   : > { %v4869_v1 = vpop.f32.mrf.mxu2  ;;  %v5120_v28 = vadd.f32 %v13035_v43, %v4951_v24  ;;  %v13147_v25 = vpop.f32.mrf.mxu0  ;;  %v15791_v43 = vld [vmem:[#allocation54_spill] sm:$0xff] }
 0x524   : > { %v13145_v58 = vadd.f32 %v4869_v1, %v12487_v8  ;;  %5330 = vmatmul.bf16.gmra.mxu1 %v8472_v42  ;;  %v4534_v37 = vadd.f32 %v15792_v33, %v15791_v43  ;;  %v7971_v8 = vld [vmem:[%s15543_s9 + $0x180] sm:$0xf]  ;;  %v9386_v42 = vld [vmem:[%s15543_s9 + $0x1a0] sm:$0xf0] }
 0x525   : > { %v13152_v41 = vadd.f32 %v5288_v15, %v5120_v28  ;;  %4992 = vmatmul.bf16.gmra.mxu3 %v8464_v6  ;;  %v15794_v15 = vld [vmem:[#allocation102_spill] sm:$0xff] }
 0x526   : > { %15790 = vst [vmem:[#allocation17_spill] sm:$0xff] %v13145_v58  ;;  %5171 = vmatmul.bf16.gmra.mxu0 %v8540_v49  ;;  %v4703_v28 = vadd.f32 %v15794_v15, %v4534_v37  ;;  %v7972_v49 = vor.u32 %v9386_v42, %v7971_v8  ;;  %v9515_v37 = vld [vmem:[%s15543_s9 + $0x5ac] sm:$0xf]  ;;  %v15797_v8 = vld [vmem:[#allocation55_spill] sm:$0xff] }
 0x528   : > { %v4953_v32 = vpop.f32.mrf.mxu3 }
 0x529   : > { %v4954_v24 = vadd.f32 %v4953_v32, %v15793_v17  ;;  %v5293_v1 = vpop.f32.mrf.mxu1  ;;  %v9516_v32 = vld [vmem:[%s15543_s9 + $0x5b4] sm:$0xf]  ;;  %v8505_v17 = vld [vmem:[%s15543_s9 + $0x5d4] sm:$0xf0] }
 0x52b   : > { %v4871_v6 = vpop.f32.mrf.mxu2  ;;  %v5123_v26 = vadd.f32 %v13059_v46, %v4954_v24  ;;  %v13167_v43 = vpop.f32.mrf.mxu0  ;;  %v8497_v46 = vld [vmem:[%s15543_s9 + $0x5cc] sm:$0xf0] }
 0x52c   : > { %v13165_v51 = vadd.f32 %v4871_v6, %v4703_v28  ;;  %v8500_v15 = vor.u32 %v9515_v37, %v8497_v46  ;;  %v15801_v37 = vld [vmem:[#allocation100_spill] sm:$0xff] }
 0x52d   : > { %v13169_v33 = vadd.f32 %v5291_v12, %v5123_v26  ;;  %v8508_v12 = vor.u32 %v9516_v32, %v8505_v17 }
 0x52e   : > { %15795 = vst [vmem:[#allocation45_spill] sm:$0xff] %v13165_v51  ;;  %v8575_v51 = vld [vmem:[%s15543_s9 + $0x640] sm:$0xf] }
 0x52f   : > { %15796 = vst [vmem:[#allocation96_spill] sm:$0xff] %v13169_v33 }
 0x530   : > { %v4955_v24 = vpop.f32.mrf.mxu3  ;;  %5429 = vmatmul.bf16.gmra.mxu2 %v7972_v49  ;;  %v9538_v49 = vld [vmem:[%s15543_s9 + $0x660] sm:$0xf0] }
 0x531   : > { %v4956_v42 = vadd.f32 %v4955_v24, %v15797_v8  ;;  %v5296_v28 = vpop.f32.mrf.mxu1  ;;  %v8576_v17 = vor.u32 %v9538_v49, %v8575_v51 }
 0x533   : > { %v4874_v6 = vpop.f32.mrf.mxu2  ;;  %v5125_v26 = vadd.f32 %v13079_v47, %v4956_v42  ;;  %v13191_v33 = vpop.f32.mrf.mxu0  ;;  %v15800_v47 = vld [vmem:[#allocation50_spill] sm:$0xff] }
 0x534   : > { %v13189_v58 = vadd.f32 %v4874_v6, %v12527_v53  ;;  %5335 = vmatmul.bf16.gmra.mxu1 %v8508_v12  ;;  %v4539_v46 = vadd.f32 %v15801_v37, %v15800_v47  ;;  %v15802_v53 = vld [vmem:[#allocation56_spill] sm:$0xff]  ;;  %v8007_v12 = vld [vmem:[%s15543_s9 + $0x1c8] sm:$0xf] }
 0x535   : > { %v13196_v32 = vadd.f32 %v5293_v1, %v5125_v26  ;;  %4997 = vmatmul.bf16.gmra.mxu3 %v8500_v15  ;;  %v9395_v1 = vld [vmem:[%s15543_s9 + $0x1e8] sm:$0xf0]  ;;  %v15803_v15 = vld [vmem:[#allocation20_spill] sm:$0xff] }
 0x536   : > { %15798 = vst [vmem:[#allocation46_spill] sm:$0xff] %v13189_v58  ;;  %5176 = vmatmul.bf16.gmra.mxu0 %v8576_v17  ;;  %v4708_v51 = vadd.f32 %v15803_v15, %v4539_v46  ;;  %v8008_v17 = vor.u32 %v9395_v1, %v8007_v12  ;;  %v9525_v47 = vld [vmem:[%s15543_s9 + $0x5fc] sm:$0xf]  ;;  %v15806_v15 = vld [vmem:[#allocation58_spill] sm:$0xff] }
 0x537   : > { %15799 = vst [vmem:[#allocation98_spill] sm:$0xff] %v13196_v32  ;;  %v1239_v58 = vld [vmem:[%s10355_s21 + $0x3f0] sm:$0xff]  ;;  %v1240_v46 = vld [vmem:[%s10355_s21 + $0x3f8] sm:$0xff]  ;;  %v8611_v32 = vld [vmem:[%s15543_s9 + $0x688] sm:$0xf] }
 0x538   : > { %v4958_v24 = vpop.f32.mrf.mxu3  ;;  %v2132_v12 = vpack.c.bf16 %v1240_v46, %v1239_v58  ;;  %v1241_v46 = vld [vmem:[%s10355_s21 + $0x400] sm:$0x7] }
 0x539   : > { %v4959_v8 = vadd.f32 %v4958_v24, %v15802_v53  ;;  %v5298_v42 = vpop.f32.mrf.mxu1  ;;  %v8541_v53 = vld [vmem:[%s15543_s9 + $0x61c] sm:$0xf0] }
 0x53a   : > { %5565 = vmatpush.bf16.msrb.mxu3 %v2132_v12 }
 0x53b   : > { %v4876_v6 = vpop.f32.mrf.mxu2  ;;  %v5128_v26 = vadd.f32 %v13103_v5, %v4959_v8  ;;  %v13214_v37 = vpop.f32.mrf.mxu0  ;;  %v9524_v5 = vld [vmem:[%s15543_s9 + $0x5f4] sm:$0xf]  ;;  %v8533_v8 = vld [vmem:[%s15543_s9 + $0x614] sm:$0xf0] }
 0x53c   : > { %v13209_v49 = vadd.f32 %v4876_v6, %v4708_v51  ;;  %v8536_v6 = vor.u32 %v9524_v5, %v8533_v8  ;;  %v9901_v5 = vmov 65535  }
 0x53d   : > { %v13216_v24 = vadd.f32 %v5296_v28, %v5128_v26  ;;  %v8544_v28 = vor.u32 %v9525_v47, %v8541_v53  ;;  %v4377_v8 = vsel %vm4375_vm3, 4294967295, %v9901_v5 }
 0x53e   : > { %15804 = vst [vmem:[#allocation15_spill] sm:$0xff] %v13209_v49 }
 0x53f   : > { %15805 = vst [vmem:[#allocation88_spill] sm:$0xff] %v13216_v24 }
 0x540   : > { %v4960_v1 = vpop.f32.mrf.mxu3  ;;  %5434 = vmatmul.bf16.gmra.mxu2 %v8008_v17  ;;  %v9547_v17 = vld [vmem:[%s15543_s9 + $0x6a8] sm:$0xf0] }
 0x541   : > { %v4961_v51 = vadd.f32 %v4960_v1, %v15806_v15  ;;  %v5301_v26 = vpop.f32.mrf.mxu1  ;;  %v8612_v53 = vor.u32 %v9547_v17, %v8611_v32  ;;  %v15809_v15 = vld [vmem:[#allocation39_spill] sm:$0xff]  ;;  %v15810_v17 = vld [vmem:[#allocation104_spill] sm:$0xff] }
 0x542   : > { %v9404_v32 = vld [vmem:[%s15543_s9 + $0x230] sm:$0xf0] }
 0x543   : > { %v4879_v49 = vpop.f32.mrf.mxu2  ;;  %v5130_v24 = vadd.f32 %v13123_v57, %v4961_v51  ;;  %v13237_v58 = vpop.f32.mrf.mxu0  ;;  %v2133_v57 = vpack.c.bf16 %v1241_v46, %v1241_v46 }
 0x544   : > { %v13235_v23 = vadd.f32 %v4879_v49, %v12567_v0  ;;  %5340 = vmatmul.bf16.gmra.mxu1 %v8544_v28  ;;  %v15807_v0 = vld [vmem:[#allocation47_spill] sm:$0xff]  ;;  %v15808_v49 = vld [vmem:[#allocation16_spill] sm:$0xff]  ;;  %v4378_v28 = vsel %vm4376_vm4, %v4377_v8, 0 }
 0x545   : > { %v13242_v47 = vadd.f32 %v5298_v42, %v5130_v24  ;;  %5002 = vmatmul.bf16.gmra.mxu3 %v8536_v6  ;;  %v4544_v12 = vadd.f32 %v15808_v49, %v15807_v0  ;;  %v8043_v42 = vld [vmem:[%s15543_s9 + $0x210] sm:$0xf]  ;;  %v4380_v6 = vand.u32 %v4378_v28, %v2133_v57  ;;  %v8577_v57 = vld [vmem:[%s15543_s9 + $0x664] sm:$0xf0] }
 0x546   : > { %5181 = vmatmul.bf16.gmra.mxu0 %v8612_v53  ;;  %v8044_v8 = vor.u32 %v9404_v32, %v8043_v42 }
 0x547   : > { %v4713_v53 = vadd.f32 %v15810_v17, %v4544_v12  ;;  %5741 = vmatpush.bf16.msra.mxu0 %v4380_v6  ;;  %v8569_v12 = vld [vmem:[%s15543_s9 + $0x65c] sm:$0xf0] }
 0x548   : > { %v4963_v1 = vpop.f32.mrf.mxu3 }
 0x549   : > { %v4964_v51 = vadd.f32 %v4963_v1, %v15809_v15  ;;  %v5303_v24 = vpop.f32.mrf.mxu1  ;;  %v9534_v15 = vld [vmem:[%s15543_s9 + $0x644] sm:$0xf] }
 0x54b   : > { %v4881_v46 = vpop.f32.mrf.mxu2  ;;  %v5133_v5 = vadd.f32 %v13147_v25, %v4964_v51  ;;  %v13258_v49 = vpop.f32.mrf.mxu0  ;;  %v9533_v25 = vld [vmem:[%s15543_s9 + $0x63c] sm:$0xf]  ;;  %v15812_v51 = vld [vmem:[#allocation19_spill] sm:$0xff] }
 0x54c   : > { %v13256_v0 = vadd.f32 %v4881_v46, %v4713_v53  ;;  %v8572_v32 = vor.u32 %v9533_v25, %v8569_v12  ;;  %v8647_v46 = vld [vmem:[%s15543_s9 + $0x6d0] sm:$0xf] }
 0x54d   : > { %v13260_v1 = vadd.f32 %v5301_v26, %v5133_v5  ;;  %v8580_v26 = vor.u32 %v9534_v15, %v8577_v57  ;;  %v15815_v25 = vld [vmem:[#allocation103_spill] sm:$0xff] }
 0x54e   : > { %15811 = vst [vmem:[#allocation48_spill] sm:$0xff] %v13256_v0 }
 0x550   : > { %v4965_v28 = vpop.f32.mrf.mxu3  ;;  %5439 = vmatmul.bf16.gmra.mxu2 %v8044_v8  ;;  %v9556_v8 = vld [vmem:[%s15543_s9 + $0x6f0] sm:$0xf0] }
 0x551   : > { %v4966_v42 = vadd.f32 %v4965_v28, %v15812_v51  ;;  %v5306_v6 = vpop.f32.mrf.mxu1  ;;  %v8648_v57 = vor.u32 %v9556_v8, %v8647_v46  ;;  %v15816_v51 = vld [vmem:[#allocation36_spill] sm:$0xff] }
 0x553   : > { %v4884_v17 = vpop.f32.mrf.mxu2  ;;  %v5135_v53 = vadd.f32 %v13167_v43, %v4966_v42  ;;  %v13282_v0 = vpop.f32.mrf.mxu0  ;;  %v15814_v43 = vld [vmem:[#allocation42_spill] sm:$0xff] }
 0x554   : > { %v13280_v5 = vadd.f32 %v4884_v17, %v12608_v13  ;;  %5345 = vmatmul.bf16.gmra.mxu1 %v8580_v26  ;;  %v4549_v12 = vadd.f32 %v15815_v25, %v15814_v43  ;;  %v8079_v13 = vld [vmem:[%s15543_s9 + $0x258] sm:$0xf]  ;;  %v9413_v26 = vld [vmem:[%s15543_s9 + $0x278] sm:$0xf0]  ;;  %v9543_v25 = vld [vmem:[%s15543_s9 + $0x68c] sm:$0xf] }
 0x555   : > { %v13287_v15 = vadd.f32 %v5303_v24, %v5135_v53  ;;  %5007 = vmatmul.bf16.gmra.mxu3 %v8572_v32  ;;  %v8080_v8 = vor.u32 %v9413_v26, %v8079_v13 }
 0x556   : > { %15813 = vst [vmem:[#allocation99_spill] sm:$0xff] %v13280_v5  ;;  %5186 = vmatmul.bf16.gmra.mxu0 %v8648_v57  ;;  %v4718_v24 = vadd.f32 %v12622_v20, %v4549_v12  ;;  %v9542_v20 = vld [vmem:[%s15543_s9 + $0x684] sm:$0xf] }
 0x558   : > { %v4968_v28 = vpop.f32.mrf.mxu3 }
 0x559   : > { %v4969_v42 = vadd.f32 %v4968_v28, %v15816_v51  ;;  %v5308_v17 = vpop.f32.mrf.mxu1  ;;  %v8613_v28 = vld [vmem:[%s15543_s9 + $0x6ac] sm:$0xf0]  ;;  %v15818_v51 = vld [vmem:[#allocation22_spill] sm:$0xff] }
 0x55b   : > { %v4886_v32 = vpop.f32.mrf.mxu2  ;;  %v5138_v53 = vadd.f32 %v13191_v33, %v4969_v42  ;;  %v13302_v57 = vpop.f32.mrf.mxu0  ;;  %v8605_v33 = vld [vmem:[%s15543_s9 + $0x6a4] sm:$0xf0] }
 0x55c   : > { %v13300_v46 = vadd.f32 %v4886_v32, %v4718_v24  ;;  %v8608_v13 = vor.u32 %v9542_v20, %v8605_v33  ;;  %v15820_v20 = vld [vmem:[#allocation35_spill] sm:$0xff] }
 0x55d   : > { %v13304_v43 = vadd.f32 %v5306_v6, %v5138_v53  ;;  %v8616_v6 = vor.u32 %v9543_v25, %v8613_v28  ;;  %v8683_v53 = vld [vmem:[%s15543_s9 + $0x718] sm:$0xf] }
 0x55e   : > { %15817 = vst [vmem:[#allocation49_spill] sm:$0xff] %v13300_v46 }
 0x560   : > { %v4970_v12 = vpop.f32.mrf.mxu3  ;;  %5444 = vmatmul.bf16.gmra.mxu2 %v8080_v8  ;;  %v9565_v8 = vld [vmem:[%s15543_s9 + $0x738] sm:$0xf0] }
 0x561   : > { %v4971_v42 = vadd.f32 %v4970_v12, %v15818_v51  ;;  %v5311_v26 = vpop.f32.mrf.mxu1  ;;  %v8684_v28 = vor.u32 %v9565_v8, %v8683_v53  ;;  %v9422_v12 = vld [vmem:[%s15543_s9 + $0x2c0] sm:$0xf0]  ;;  %v9552_v53 = vld [vmem:[%s15543_s9 + $0x6d4] sm:$0xf]  ;;  %v8649_v8 = vld [vmem:[%s15543_s9 + $0x6f4] sm:$0xf0] }
 0x563   : > { %v5405_v24 = vpop.f32.mrf.mxu2  ;;  %v5140_v32 = vadd.f32 %v13214_v37, %v4971_v42  ;;  %v13326_v5 = vpop.f32.mrf.mxu0 }
 0x564   : > { %v13324_v46 = vadd.f32 %v5405_v24, %v12673_v36  ;;  %5350 = vmatmul.bf16.gmra.mxu1 %v8616_v6  ;;  %v8115_v36 = vld [vmem:[%s15543_s9 + $0x2a0] sm:$0xf] }
 0x565   : > { %v13331_v25 = vadd.f32 %v5308_v17, %v5140_v32  ;;  %5012 = vmatmul.bf16.gmra.mxu3 %v8608_v13  ;;  %v8116_v13 = vor.u32 %v9422_v12, %v8115_v36 }
 0x566   : > { %15819 = vst [vmem:[#allocation44_spill] sm:$0xff] %v13324_v46  ;;  %5191 = vmatmul.bf16.gmra.mxu0 %v8684_v28 }
 0x568   : > { %v4973_v37 = vpop.f32.mrf.mxu3 }
 0x569   : > { %v4974_v33 = vadd.f32 %v4973_v37, %v15820_v20  ;;  %v5313_v6 = vpop.f32.mrf.mxu1  ;;  %v15822_v37 = vld [vmem:[#allocation105_spill] sm:$0xff] }
 0x56b   : > { %v5407_v51 = vpop.f32.mrf.mxu2  ;;  %v5143_v42 = vadd.f32 %v13237_v58, %v4974_v33  ;;  %v13344_v24 = vpop.f32.mrf.mxu0  ;;  %v9551_v58 = vld [vmem:[%s15543_s9 + $0x6cc] sm:$0xf] }
 0x56c   : > { %v13342_v17 = vadd.f32 %v5407_v51, %v12700_v14  ;;  %v8641_v14 = vld [vmem:[%s15543_s9 + $0x6ec] sm:$0xf0] }
 0x56d   : > { %v13346_v32 = vadd.f32 %v5311_v26, %v5143_v42  ;;  %v8652_v26 = vor.u32 %v9552_v53, %v8649_v8  ;;  %v8644_v33 = vor.u32 %v9551_v58, %v8641_v14  ;;  %v8719_v42 = vld [vmem:[%s15543_s9 + $0x760] sm:$0xf]  ;;  %v9431_v14 = vld [vmem:[%s15543_s9 + $0x308] sm:$0xf0] }
 0x56e   : > { %15821 = vst [vmem:[#allocation57_spill] sm:$0xff] %v13342_v17 }
 0x570   : > { %v4975_v28 = vpop.f32.mrf.mxu3  ;;  %5449 = vmatmul.bf16.gmra.mxu2 %v8116_v13  ;;  %v9574_v13 = vld [vmem:[%s15543_s9 + $0x780] sm:$0xf0] }
 0x571   : > { %v4976_v20 = vadd.f32 %v4975_v28, %v15822_v37  ;;  %v5316_v36 = vpop.f32.mrf.mxu1  ;;  %v8720_v8 = vor.u32 %v9574_v13, %v8719_v42  ;;  %v1237_v42 = vld [vmem:[%s10355_s21 + $0x3e0] sm:$0xff]  ;;  %v1238_v13 = vld [vmem:[%s10355_s21 + $0x3e8] sm:$0xff] }
 0x573   : > { %v5410_v12 = vpop.f32.mrf.mxu2  ;;  %v5145_v51 = vadd.f32 %v13258_v49, %v4976_v20  ;;  %v13368_v46 = vpop.f32.mrf.mxu0 }
 0x574   : > { %v13366_v17 = vadd.f32 %v5410_v12, %v12715_v45  ;;  %5355 = vmatmul.bf16.gmra.mxu1 %v8652_v26  ;;  %v8151_v45 = vld [vmem:[%s15543_s9 + $0x2e8] sm:$0xf] }
 0x575   : > { %v13373_v53 = vadd.f32 %v5313_v6, %v5145_v51  ;;  %5017 = vmatmul.bf16.gmra.mxu3 %v8644_v33  ;;  %v8152_v20 = vor.u32 %v9431_v14, %v8151_v45  ;;  %v8685_v51 = vld [vmem:[%s15543_s9 + $0x73c] sm:$0xf0] }
 0x576   : > { %15823 = vst [vmem:[#allocation94_spill] sm:$0xff] %v13366_v17  ;;  %5196 = vmatmul.bf16.gmra.mxu0 %v8720_v8  ;;  %v2131_v8 = vpack.c.bf16 %v1238_v13, %v1237_v42  ;;  %v8755_v17 = vld [vmem:[%s15543_s9 + $0x7a8] sm:$0xf] }
 0x577   : > { %v15827_v13 = vld [vmem:[#allocation106_spill] sm:$0xff] }
 0x578   : > { %v4978_v49 = vpop.f32.mrf.mxu3  ;;  %5566 = vmatpush.bf16.msrb.mxu3 %v2131_v8 }
 0x579   : > { %v4979_v58 = vadd.f32 %v4978_v49, %v12612_v19  ;;  %v5318_v28 = vpop.f32.mrf.mxu1  ;;  %v9561_v19 = vld [vmem:[%s15543_s9 + $0x71c] sm:$0xf] }
 0x57b   : > { %v5412_v26 = vpop.f32.mrf.mxu2  ;;  %v5148_v6 = vadd.f32 %v13282_v0, %v4979_v58  ;;  %v13389_v33 = vpop.f32.mrf.mxu0  ;;  %v8677_v0 = vld [vmem:[%s15543_s9 + $0x734] sm:$0xf0]  ;;  %v8688_v58 = vor.u32 %v9561_v19, %v8685_v51 }
 0x57c   : > { %v13384_v37 = vadd.f32 %v5412_v26, %v12742_v48  ;;  %v9560_v48 = vld [vmem:[%s15543_s9 + $0x714] sm:$0xf] }
 0x57d   : > { %v13391_v12 = vadd.f32 %v5316_v36, %v5148_v6  ;;  %v15826_v36 = vld [vmem:[#allocation33_spill] sm:$0xff]  ;;  %v8680_v14 = vor.u32 %v9560_v48, %v8677_v0  ;;  %v9440_v0 = vld [vmem:[%s15543_s9 + $0x350] sm:$0xf0] }
 0x57e   : > { %15824 = vst [vmem:[#allocation51_spill] sm:$0xff] %v13384_v37 }
 0x57f   : > { %15825 = vst [vmem:[#allocation101_spill] sm:$0xff] %v13391_v12 }
 0x580   : > { %v4980_v49 = vpop.f32.mrf.mxu3  ;;  %5454 = vmatmul.bf16.gmra.mxu2 %v8152_v20  ;;  %v9583_v20 = vld [vmem:[%s15543_s9 + $0x7c8] sm:$0xf0] }
 0x581   : > { %v4981_v45 = vadd.f32 %v4980_v49, %v15826_v36  ;;  %v5321_v26 = vpop.f32.mrf.mxu1  ;;  %v8756_v51 = vor.u32 %v9583_v20, %v8755_v17  ;;  %v15828_v20 = vld [vmem:[#allocation107_spill] sm:$0xff] }
 0x583   : > { %v5415_v6 = vpop.f32.mrf.mxu2  ;;  %v5150_v37 = vadd.f32 %v13302_v57, %v4981_v45  ;;  %v13412_v42 = vpop.f32.mrf.mxu0  ;;  %v9570_v45 = vld [vmem:[%s15543_s9 + $0x764] sm:$0xf] }
 0x584   : > { %v13410_v12 = vadd.f32 %v5415_v6, %v12757_v59  ;;  %5360 = vmatmul.bf16.gmra.mxu1 %v8688_v58  ;;  %v8187_v59 = vld [vmem:[%s15543_s9 + $0x330] sm:$0xf] }
 0x585   : > { %v13417_v19 = vadd.f32 %v5318_v28, %v5150_v37  ;;  %5022 = vmatmul.bf16.gmra.mxu3 %v8680_v14  ;;  %v8188_v17 = vor.u32 %v9440_v0, %v8187_v59  ;;  %v8721_v14 = vld [vmem:[%s15543_s9 + $0x784] sm:$0xf0]  ;;  %v8791_v0 = vld [vmem:[%s15543_s9 + $0x7f0] sm:$0xf] }
 0x586   : > { %5201 = vmatmul.bf16.gmra.mxu0 %v8756_v51 }
 0x588   : > { %v4983_v57 = vpop.f32.mrf.mxu3 }
 0x589   : > { %v4984_v48 = vadd.f32 %v4983_v57, %v15827_v13  ;;  %v5323_v8 = vpop.f32.mrf.mxu1 }
 0x58b   : > { %v5417_v49 = vpop.f32.mrf.mxu2  ;;  %v5153_v58 = vadd.f32 %v13326_v5, %v4984_v48  ;;  %v13430_v37 = vpop.f32.mrf.mxu0  ;;  %v9569_v5 = vld [vmem:[%s15543_s9 + $0x75c] sm:$0xf] }
 0x58c   : > { %v13428_v28 = vadd.f32 %v5417_v49, %v12788_v55  ;;  %v8713_v55 = vld [vmem:[%s15543_s9 + $0x77c] sm:$0xf0] }
 0x58d   : > { %v13432_v36 = vadd.f32 %v5321_v26, %v5153_v58  ;;  %v8724_v26 = vor.u32 %v9570_v45, %v8721_v14  ;;  %v8716_v57 = vor.u32 %v9569_v5, %v8713_v55  ;;  %v9449_v55 = vld [vmem:[%s15543_s9 + $0x398] sm:$0xf0] }
 0x590   : > { %v4985_v6 = vpop.f32.mrf.mxu3  ;;  %5459 = vmatmul.bf16.gmra.mxu2 %v8188_v17  ;;  %v9592_v17 = vld [vmem:[%s15543_s9 + $0x810] sm:$0xf0] }
 0x591   : > { %v4986_v51 = vadd.f32 %v4985_v6, %v15828_v20  ;;  %v5326_v13 = vpop.f32.mrf.mxu1  ;;  %v8792_v14 = vor.u32 %v9592_v17, %v8791_v0 }
 0x593   : > { %v5420_v48 = vpop.f32.mrf.mxu2  ;;  %v5155_v59 = vadd.f32 %v13344_v24, %v4986_v51  ;;  %v13454_v58 = vpop.f32.mrf.mxu0 }
 0x594   : > { %v13452_v49 = vadd.f32 %v5420_v48, %v12809_v7  ;;  %5365 = vmatmul.bf16.gmra.mxu1 %v8724_v26  ;;  %v8223_v7 = vld [vmem:[%s15543_s9 + $0x378] sm:$0xf] }
 0x595   : > { %v13459_v45 = vadd.f32 %v5323_v8, %v5155_v59  ;;  %5027 = vmatmul.bf16.gmra.mxu3 %v8716_v57  ;;  %v8224_v51 = vor.u32 %v9449_v55, %v8223_v7  ;;  %v8757_v59 = vld [vmem:[%s15543_s9 + $0x7cc] sm:$0xf0]  ;;  %v8827_v55 = vld [vmem:[%s15543_s9 + $0x838] sm:$0xf] }
 0x596   : > { %5206 = vmatmul.bf16.gmra.mxu0 %v8792_v14 }
 0x598   : > { %v4988_v24 = vpop.f32.mrf.mxu3 }
 0x599   : > { %v4989_v5 = vadd.f32 %v4988_v24, %v12693_v10  ;;  %v5328_v6 = vpop.f32.mrf.mxu1  ;;  %v9579_v10 = vld [vmem:[%s15543_s9 + $0x7ac] sm:$0xf] }
 0x59b   : > { %v5422_v26 = vpop.f32.mrf.mxu2  ;;  %v5158_v20 = vadd.f32 %v13368_v46, %v4989_v5  ;;  %v13472_v57 = vpop.f32.mrf.mxu0  ;;  %v9578_v46 = vld [vmem:[%s15543_s9 + $0x7a4] sm:$0xf] }
 0x59c   : > { %v13470_v8 = vadd.f32 %v5422_v26, %v12840_v50  ;;  %v8749_v50 = vld [vmem:[%s15543_s9 + $0x7c4] sm:$0xf0] }
 0x59d   : > { %v13474_v48 = vadd.f32 %v5326_v13, %v5158_v20  ;;  %v8760_v13 = vor.u32 %v9579_v10, %v8757_v59  ;;  %v8752_v14 = vor.u32 %v9578_v46, %v8749_v50  ;;  %v9458_v46 = vld [vmem:[%s15543_s9 + $0x3e0] sm:$0xf0] }
 0x5a0   : > { %v4990_v0 = vpop.f32.mrf.mxu3  ;;  %5464 = vmatmul.bf16.gmra.mxu2 %v8224_v51  ;;  %v9601_v51 = vld [vmem:[%s15543_s9 + $0x858] sm:$0xf0] }
 0x5a1   : > { %v4991_v17 = vadd.f32 %v4990_v0, %v12711_v52  ;;  %v5331_v24 = vpop.f32.mrf.mxu1  ;;  %v8828_v10 = vor.u32 %v9601_v51, %v8827_v55  ;;  %v15830_v51 = vld [vmem:[#allocation108_spill] sm:$0xff] }
 0x5a3   : > { %v5425_v5 = vpop.f32.mrf.mxu2  ;;  %v5160_v7 = vadd.f32 %v13389_v33, %v4991_v17  ;;  %v13496_v20 = vpop.f32.mrf.mxu0 }
 0x5a4   : > { %v13494_v26 = vadd.f32 %v5425_v5, %v12861_v40  ;;  %5370 = vmatmul.bf16.gmra.mxu1 %v8760_v13  ;;  %v8259_v40 = vld [vmem:[%s15543_s9 + $0x3c0] sm:$0xf] }
 0x5a5   : > { %v13501_v52 = vadd.f32 %v5328_v6, %v5160_v7  ;;  %5032 = vmatmul.bf16.gmra.mxu3 %v8752_v14  ;;  %v8260_v17 = vor.u32 %v9458_v46, %v8259_v40  ;;  %v8793_v7 = vld [vmem:[%s15543_s9 + $0x814] sm:$0xf0] }
 0x5a6   : > { %5211 = vmatmul.bf16.gmra.mxu0 %v8828_v10 }
 0x5a8   : > { %v4993_v33 = vpop.f32.mrf.mxu3 }
 0x5a9   : > { %v4994_v59 = vadd.f32 %v4993_v33, %v12735_v2  ;;  %v5333_v50 = vpop.f32.mrf.mxu1  ;;  %v9588_v2 = vld [vmem:[%s15543_s9 + $0x7f4] sm:$0xf] }
 0x5ab   : > { %v5427_v0 = vpop.f32.mrf.mxu2  ;;  %v5163_v13 = vadd.f32 %v13412_v42, %v4994_v59  ;;  %v13514_v14 = vpop.f32.mrf.mxu0  ;;  %v9587_v42 = vld [vmem:[%s15543_s9 + $0x7ec] sm:$0xf] }
 0x5ac   : > { %v13512_v6 = vadd.f32 %v5427_v0, %v12888_v60  ;;  %v8785_v60 = vld [vmem:[%s15543_s9 + $0x80c] sm:$0xf0]  ;;  %v8863_v0 = vld [vmem:[%s15543_s9 + $0x880] sm:$0xf] }
 0x5ad   : > { %v13516_v5 = vadd.f32 %v5331_v24, %v5163_v13  ;;  %v8796_v24 = vor.u32 %v9588_v2, %v8793_v7  ;;  %v8788_v33 = vor.u32 %v9587_v42, %v8785_v60  ;;  %v9467_v60 = vld [vmem:[%s15543_s9 + $0x428] sm:$0xf0] }
 0x5ae   : > { %15829 = vst [vmem:[#allocation52_spill] sm:$0xff] %v13512_v6 }
 0x5b0   : > { %v4995_v55 = vpop.f32.mrf.mxu3  ;;  %5469 = vmatmul.bf16.gmra.mxu2 %v8260_v17  ;;  %v9610_v17 = vld [vmem:[%s15543_s9 + $0x8a0] sm:$0xf0] }
 0x5b1   : > { %v4996_v10 = vadd.f32 %v4995_v55, %v15830_v51  ;;  %v5336_v59 = vpop.f32.mrf.mxu1 }
 0x5b3   : > { %v5430_v40 = vpop.f32.mrf.mxu2  ;;  %v5165_v46 = vadd.f32 %v13430_v37, %v4996_v10  ;;  %v13538_v6 = vpop.f32.mrf.mxu0  ;;  %v8864_v37 = vor.u32 %v9610_v17, %v8863_v0  ;;  %v9597_v0 = vld [vmem:[%s15543_s9 + $0x83c] sm:$0xf] }
 0x5b4   : > { %v13536_v13 = vadd.f32 %v5430_v40, %v12905_v35  ;;  %5375 = vmatmul.bf16.gmra.mxu1 %v8796_v24  ;;  %v8295_v35 = vld [vmem:[%s15543_s9 + $0x408] sm:$0xf]  ;;  %v1236_v40 = vld [vmem:[%s10355_s21 + $0x3d8] sm:$0xff] }
 0x5b5   : > { %v13543_v2 = vadd.f32 %v5333_v50, %v5165_v46  ;;  %5037 = vmatmul.bf16.gmra.mxu3 %v8788_v33  ;;  %v8296_v10 = vor.u32 %v9467_v60, %v8295_v35  ;;  %v1235_v33 = vld [vmem:[%s10355_s21 + $0x3d0] sm:$0xff]  ;;  %v1234_v35 = vld [vmem:[%s10355_s21 + $0x3c8] sm:$0xff] }
 0x5b6   : > { %5216 = vmatmul.bf16.gmra.mxu0 %v8864_v37  ;;  %v2130_v17 = vpack.c.bf16 %v1236_v40, %v1235_v33  ;;  %v8821_v37 = vld [vmem:[%s15543_s9 + $0x854] sm:$0xf0] }
 0x5b8   : > { %v4998_v7 = vpop.f32.mrf.mxu3  ;;  %5567 = vmatpush.bf16.msrb.mxu3 %v2130_v17  ;;  %v1231_v17 = vld [vmem:[%s10355_s21 + $0x3b0] sm:$0xff] }
 0x5b9   : > { %v4999_v42 = vadd.f32 %v4998_v7, %v12779_v38  ;;  %v13552_v55 = vpop.f32.mrf.mxu1 }
 0x5ba   : > { %15831 = vst [vmem:[#allocation54_spill] sm:$0xff] %v13552_v55 }
 0x5bb   : > { %v5432_v24 = vpop.f32.mrf.mxu2  ;;  %v5168_v50 = vadd.f32 %v13454_v58, %v4999_v42  ;;  %v13558_v38 = vpop.f32.mrf.mxu0  ;;  %v8829_v58 = vld [vmem:[%s15543_s9 + $0x85c] sm:$0xf0] }
 0x5bc   : > { %v13556_v51 = vadd.f32 %v5432_v24, %v12932_v30  ;;  %v9596_v30 = vld [vmem:[%s15543_s9 + $0x834] sm:$0xf]  ;;  %v8832_v7 = vor.u32 %v9597_v0, %v8829_v58  ;;  %v1233_v42 = vld [vmem:[%s10355_s21 + $0x3c0] sm:$0xff] }
 0x5bd   : > { %v13562_v46 = vadd.f32 %v5336_v59, %v5168_v50  ;;  %v8824_v24 = vor.u32 %v9596_v30, %v8821_v37  ;;  %v2129_v33 = vpack.c.bf16 %v1234_v35, %v1233_v42  ;;  %v1232_v30 = vld [vmem:[%s10355_s21 + $0x3b8] sm:$0xff]  ;;  %v1229_v42 = vld [vmem:[%s10355_s21 + $0x3a0] sm:$0xff]  ;;  %v8331_v35 = vld [vmem:[%s15543_s9 + $0x450] sm:$0xf] }
 0x5be   : > { %v2128_v37 = vpack.c.bf16 %v1232_v30, %v1231_v17  ;;  %v1227_v30 = vld [vmem:[%s10355_s21 + $0x390] sm:$0xff] }
 0x5bf   : > { %5568 = vmatpush.bf16.msrb.mxu3 %v2129_v33 }
 0x5c0   : > { %v5000_v59 = vpop.f32.mrf.mxu3  ;;  %5474 = vmatmul.bf16.gmra.mxu2 %v8296_v10  ;;  %v8899_v10 = vld [vmem:[%s15543_s9 + $0x8c8] sm:$0xf] }
 0x5c1   : > { %v5001_v60 = vadd.f32 %v5000_v59, %v12805_v21  ;;  %v5341_v50 = vpop.f32.mrf.mxu1  ;;  %v9619_v21 = vld [vmem:[%s15543_s9 + $0x8e8] sm:$0xf0] }
 0x5c3   : > { %v5435_v40 = vpop.f32.mrf.mxu2  ;;  %v13580_v55 = vadd.f32 %v13472_v57, %v5001_v60  ;;  %v13588_v58 = vpop.f32.mrf.mxu0  ;;  %v8900_v57 = vor.u32 %v9619_v21, %v8899_v10  ;;  %5569 = vmatpush.bf16.msrb.mxu3 %v2128_v37  ;;  %v9476_v60 = vld [vmem:[%s15543_s9 + $0x470] sm:$0xf0] }
 0x5c4   : > { %v13586_v0 = vadd.f32 %v5435_v40, %v12949_v34  ;;  %5380 = vmatmul.bf16.gmra.mxu1 %v8832_v7  ;;  %v1230_v34 = vld [vmem:[%s10355_s21 + $0x3a8] sm:$0xff] }
 0x5c5   : > { %15832 = vst [vmem:[#allocation97_spill] sm:$0xff] %v13580_v55  ;;  %5042 = vmatmul.bf16.gmra.mxu3 %v8824_v24  ;;  %v2127_v33 = vpack.c.bf16 %v1230_v34, %v1229_v42  ;;  %v8857_v34 = vld [vmem:[%s15543_s9 + $0x89c] sm:$0xf0] }
 0x5c6   : > { %5221 = vmatmul.bf16.gmra.mxu0 %v8900_v57  ;;  %v1228_v57 = vld [vmem:[%s10355_s21 + $0x398] sm:$0xff] }
 0x5c7   : > { %5570 = vmatpush.bf16.msrb.mxu3 %v2127_v33  ;;  %v2126_v42 = vpack.c.bf16 %v1228_v57, %v1227_v30  ;;  %v7799_v55 = vld [vmem:[%s15543_s9 + $0x20] sm:$0xf] }
 0x5c8   : > { %v5003_v59 = vpop.f32.mrf.mxu3 }
 0x5c9   : > { %v5004_v7 = vadd.f32 %v5003_v59, %v12831_v61  ;;  %v13604_v24 = vpop.f32.mrf.mxu1  ;;  %v8332_v61 = vor.u32 %v9476_v60, %v8331_v35  ;;  %v9606_v59 = vld [vmem:[%s15543_s9 + $0x884] sm:$0xf]  ;;  %v1226_v60 = vld [vmem:[%s10355_s21 + $0x388] sm:$0xff] }
 0x5ca   : > { %15833 = vst [vmem:[#allocation53_spill] sm:$0xff] %v13604_v24  ;;  %v1225_v35 = vld [vmem:[%s10355_s21 + $0x380] sm:$0xff]  ;;  %s15972_s21 = sld [smem:[#allocation116_spill]] }
 0x5cb   : > { %v5437_v40 = vpop.f32.mrf.mxu2  ;;  %v5173_v10 = vadd.f32 %v13496_v20, %v5004_v7  ;;  %v13610_v17 = vpop.f32.mrf.mxu0  ;;  %v8865_v20 = vld [vmem:[%s15543_s9 + $0x8a4] sm:$0xf0]  ;;  %5571 = vmatpush.bf16.msrb.mxu3 %v2126_v42  ;;  %v2125_v24 = vpack.c.bf16 %v1226_v60, %v1225_v35  ;;  %v9615_v60 = vld [vmem:[%s15543_s9 + $0x8cc] sm:$0xf] }
 0x5cc   : > { %v13608_v21 = vadd.f32 %v5437_v40, %v12976_v11  ;;  %v9605_v11 = vld [vmem:[%s15543_s9 + $0x87c] sm:$0xf]  ;;  %v8868_v7 = vor.u32 %v9606_v59, %v8865_v20 }
 0x5cd   : > { %v13614_v37 = vadd.f32 %v5341_v50, %v5173_v10  ;;  %v8860_v40 = vor.u32 %v9605_v11, %v8857_v34  ;;  %v9485_v20 = vld [vmem:[%s15543_s9 + $0x4b8] sm:$0xf0] }
 0x5cf   : > { %5572 = vmatpush.bf16.msrb.mxu3 %v2125_v24 }
 0x5d0   : > { %v5005_v50 = vpop.f32.mrf.mxu3  ;;  %5479 = vmatmul.bf16.gmra.mxu2 %v8332_v61 }
 0x5d1   : > { %v5006_v33 = vadd.f32 %v5005_v50, %v12857_v4  ;;  %v5346_v10 = vpop.f32.mrf.mxu1  ;;  %v9342_v4 = vld [vmem:[%s15543_s9 + $0x40] sm:$0xf0] }
 0x5d2   : > { %v7800_v59 = vor.u32 %v9342_v4, %v7799_v55 }
 0x5d3   : > { %v5440_v30 = vpop.f32.mrf.mxu2  ;;  %v13632_v57 = vadd.f32 %v13514_v14, %v5006_v33  ;;  %v13640_v61 = vpop.f32.mrf.mxu0  ;;  %v8901_v33 = vld [vmem:[%s15543_s9 + $0x8ec] sm:$0xf0] }
 0x5d4   : > { %v13638_v42 = vadd.f32 %v5440_v30, %v12993_v31  ;;  %5385 = vmatmul.bf16.gmra.mxu1 %v8868_v7  ;;  %v8367_v31 = vld [vmem:[%s15543_s9 + $0x498] sm:$0xf] }
 0x5d5   : > { %15834 = vst [vmem:[#allocation102_spill] sm:$0xff] %v13632_v57  ;;  %5047 = vmatmul.bf16.gmra.mxu3 %v8860_v40  ;;  %v8368_v7 = vor.u32 %v9485_v20, %v8367_v31  ;;  %v7835_v31 = vld [vmem:[%s15543_s9 + $0x68] sm:$0xf]  ;;  %v15871_v57 = vld [vmem:[#allocation49_spill] sm:$0xff] }
 0x5d6   : > { %8917 = vmatmul.msk.bf16.vlgmr.msra.gmra.mxu0 %vm4278_vm5, %v7800_v59 }
 0x5d8   : > { %v5008_v14 = vpop.f32.mrf.mxu3 }
 0x5d9   : > { %v5009_v24 = vadd.f32 %v5008_v14, %v12881_v3  ;;  %v13653_v11 = vpop.f32.mrf.mxu1 }
 0x5da   : > { %15835 = vst [vmem:[#allocation55_spill] sm:$0xff] %v13653_v11 }
 0x5db   : > { %v5442_v34 = vpop.f32.mrf.mxu2  ;;  %v5178_v50 = vadd.f32 %v13538_v6, %v5009_v24  ;;  %v13659_v35 = vpop.f32.mrf.mxu0  ;;  %v9614_v6 = vld [vmem:[%s15543_s9 + $0x8c4] sm:$0xf] }
 0x5dc   : > { %v13657_v55 = vadd.f32 %v5442_v34, %v13020_v29  ;;  %v8893_v29 = vld [vmem:[%s15543_s9 + $0x8e4] sm:$0xf0] }
 0x5dd   : > { %v13661_v3 = vadd.f32 %v5346_v10, %v5178_v50  ;;  %v8904_v10 = vor.u32 %v9615_v60, %v8901_v33  ;;  %v8896_v4 = vor.u32 %v9614_v6, %v8893_v29  ;;  %v8403_v60 = vld [vmem:[%s15543_s9 + $0x4e0] sm:$0xf] }
 0x5e0   : > { %v5010_v40 = vpop.f32.mrf.mxu3  ;;  %5484 = vmatmul.bf16.gmra.mxu2 %v8368_v7 }
 0x5e1   : > { %v5011_v30 = vadd.f32 %v5010_v40, %v12901_v16  ;;  %v5351_v59 = vpop.f32.mrf.mxu1  ;;  %v9351_v16 = vld [vmem:[%s15543_s9 + $0x88] sm:$0xf0] }
 0x5e2   : > { %v7836_v50 = vor.u32 %v9351_v16, %v7835_v31 }
 0x5e3   : > { %v5445_v14 = vpop.f32.mrf.mxu2  ;;  %v13677_v24 = vadd.f32 %v13558_v38, %v5011_v30  ;;  %v13685_v34 = vpop.f32.mrf.mxu0 }
 0x5e4   : > { %v13683_v20 = vadd.f32 %v5445_v14, %v13037_v54  ;;  %5390 = vmatmul.bf16.gmra.mxu1 %v8904_v10  ;;  %v9494_v54 = vld [vmem:[%s15543_s9 + $0x500] sm:$0xf0]  ;;  %v7793_v14 = vld [vmem:[%s15543_s9 + $0x3c] sm:$0xf0] }
 0x5e5   : > { %15836 = vst [vmem:[#allocation50_spill] sm:$0xff] %v13677_v24  ;;  %5052 = vmatmul.bf16.gmra.mxu3 %v8896_v4  ;;  %v8404_v10 = vor.u32 %v9494_v54, %v8403_v60  ;;  %v9337_v4 = vld [vmem:[%s15543_s9 + $0x1c] sm:$0xf]  ;;  %v9360_v54 = vld [vmem:[%s15543_s9 + $0xd0] sm:$0xf0] }
 0x5e6   : > { %8918 = vmatmul.msk.bf16.gmra.mxu0 %vm4278_vm5, %v7836_v50  ;;  %v7796_v16 = vor.u32 %v9337_v4, %v7793_v14 }
 0x5e8   : > { %v5013_v38 = vpop.f32.mrf.mxu3 }
 0x5e9   : > { %v5014_v7 = vadd.f32 %v5013_v38, %v12925_v63  ;;  %v13698_v33 = vpop.f32.mrf.mxu1 }
 0x5ea   : > { %15837 = vst [vmem:[#allocation100_spill] sm:$0xff] %v13698_v33 }
 0x5eb   : > { %v5447_v6 = vpop.f32.mrf.mxu2  ;;  %v5183_v29 = vadd.f32 %v13588_v58, %v5014_v7  ;;  %v13704_v30 = vpop.f32.mrf.mxu0 }
 0x5ec   : > { %v13702_v40 = vadd.f32 %v5447_v6, %v13064_v9 }
 0x5ed   : > { %v13706_v63 = vadd.f32 %v5351_v59, %v5183_v29  ;;  %v7871_v59 = vld [vmem:[%s15543_s9 + $0xb0] sm:$0xf]  ;;  %v8439_v29 = vld [vmem:[%s15543_s9 + $0x528] sm:$0xf] }
 0x5ef   : > { %15838 = vst [vmem:[#allocation56_spill] sm:$0xff] %v13706_v63  ;;  %v15858_v63 = vld [vmem:[#allocation45_spill] sm:$0xff] }
 0x5f0   : > { %v5015_v31 = vpop.f32.mrf.mxu3  ;;  %5489 = vmatmul.bf16.gmra.mxu2 %v8404_v10 }
 0x5f1   : > { %v5016_v58 = vadd.f32 %v5015_v31, %v12945_v44  ;;  %v5356_v9 = vpop.f32.mrf.mxu1  ;;  %v7872_v44 = vor.u32 %v9360_v54, %v7871_v59  ;;  %v7829_v59 = vld [vmem:[%s15543_s9 + $0x84] sm:$0xf0] }
 0x5f3   : > { %v5450_v50 = vpop.f32.mrf.mxu2  ;;  %v13716_v38 = vadd.f32 %v13610_v17, %v5016_v58  ;;  %v13724_v60 = vpop.f32.mrf.mxu0 }
 0x5f4   : > { %v13722_v7 = vadd.f32 %v5450_v50, %v13081_v56  ;;  %v9503_v56 = vld [vmem:[%s15543_s9 + $0x548] sm:$0xf0]  ;;  %v9346_v50 = vld [vmem:[%s15543_s9 + $0x64] sm:$0xf] }
 0x5f5   : > { %15839 = vst [vmem:[#allocation20_spill] sm:$0xff] %v13716_v38  ;;  %5573 = vmatmul.bf16.vlgmr.msrb.gmra.mxu3 %v7796_v16  ;;  %v8440_v58 = vor.u32 %v9503_v56, %v8439_v29  ;;  %v15854_v38 = vld [vmem:[#allocation25_spill] sm:$0xff] }
 0x5f6   : > { %8919 = vmatmul.msk.bf16.gmra.mxu0 %vm4278_vm5, %v7872_v44  ;;  %v7832_v44 = vor.u32 %v9346_v50, %v7829_v59 }
 0x5f8   : > { %v5018_v6 = vpop.f32.mrf.mxu3 }
 0x5f9   : > { %v5019_v17 = vadd.f32 %v5018_v6, %v12969_v27  ;;  %v13737_v10 = vpop.f32.mrf.mxu1 }
 0x5fa   : > { %15840 = vst [vmem:[#allocation58_spill] sm:$0xff] %v13737_v10  ;;  %v7901_v10 = vld [vmem:[%s15543_s9 + $0x114] sm:$0xf0] }
 0x5fb   : > { %v5452_v4 = vpop.f32.mrf.mxu2  ;;  %v5188_v14 = vadd.f32 %v13640_v61, %v5019_v17  ;;  %v13743_v16 = vpop.f32.mrf.mxu0 }
 0x5fc   : > { %v13741_v31 = vadd.f32 %v5452_v4, %v13108_v39  ;;  %v9369_v4 = vld [vmem:[%s15543_s9 + $0x118] sm:$0xf0] }
 0x5fd   : > { %v13745_v27 = vadd.f32 %v5356_v9, %v5188_v14  ;;  %v7907_v9 = vld [vmem:[%s15543_s9 + $0xf8] sm:$0xf] }
 0x600   : > { %v5020_v54 = vpop.f32.mrf.mxu3  ;;  %5494 = vmatmul.bf16.gmra.mxu2 %v8440_v58  ;;  %v8475_v58 = vld [vmem:[%s15543_s9 + $0x570] sm:$0xf] }
 0x601   : > { %v5021_v61 = vadd.f32 %v5020_v54, %v12989_v22  ;;  %v5361_v39 = vpop.f32.mrf.mxu1  ;;  %v7908_v22 = vor.u32 %v9369_v4, %v7907_v9  ;;  %v9355_v9 = vld [vmem:[%s15543_s9 + $0xac] sm:$0xf]  ;;  %v7865_v4 = vld [vmem:[%s15543_s9 + $0xcc] sm:$0xf0] }
 0x603   : > { %v5455_v6 = vpop.f32.mrf.mxu2  ;;  %v13755_v17 = vadd.f32 %v13659_v35, %v5021_v61  ;;  %v13763_v56 = vpop.f32.mrf.mxu0 }
 0x604   : > { %v13761_v29 = vadd.f32 %v5455_v6, %v13125_v62  ;;  %v9512_v62 = vld [vmem:[%s15543_s9 + $0x590] sm:$0xf0] }
 0x605   : > { %15841 = vst [vmem:[#allocation47_spill] sm:$0xff] %v13755_v17  ;;  %5578 = vmatmul.bf16.gmra.mxu3 %v7832_v44  ;;  %v8476_v44 = vor.u32 %v9512_v62, %v8475_v58  ;;  %v15845_v62 = vld [vmem:[#allocation96_spill] sm:$0xff]  ;;  %v15849_v17 = vld [vmem:[#allocation38_spill] sm:$0xff] }
 0x606   : > { %8920 = vmatmul.msk.bf16.gmra.mxu0 %vm4278_vm5, %v7908_v22 }
 0x608   : > { %v5023_v14 = vpop.f32.mrf.mxu3 }
 0x609   : > { %v5024_v35 = vadd.f32 %v5023_v14, %v13013_v18  ;;  %v13776_v50 = vpop.f32.mrf.mxu1  ;;  %v15843_v14 = vld [vmem:[#allocation34_spill] sm:$0xff] }
 0x60a   : > { %15842 = vst [vmem:[#allocation16_spill] sm:$0xff] %v13776_v50 }
 0x60b   : > { %v5457_v59 = vpop.f32.mrf.mxu2  ;;  %v5193_v54 = vadd.f32 %v13685_v34, %v5024_v35  ;;  %v13782_v6 = vpop.f32.mrf.mxu0  ;;  %v7868_v35 = vor.u32 %v9355_v9, %v7865_v4 }
 0x60c   : > { %v13780_v61 = vadd.f32 %v5457_v59, %v13152_v41 }
 0x60d   : > { %v13784_v18 = vadd.f32 %v5361_v39, %v5193_v54  ;;  %v7943_v39 = vld [vmem:[%s15543_s9 + $0x140] sm:$0xf] }
 0x610   : > { %v5025_v22 = vpop.f32.mrf.mxu3  ;;  %5499 = vmatmul.bf16.gmra.mxu2 %v8476_v44  ;;  %v9378_v44 = vld [vmem:[%s15543_s9 + $0x160] sm:$0xf0] }
 0x611   : > { %v5026_v34 = vadd.f32 %v5025_v22, %v15843_v14  ;;  %v5366_v41 = vpop.f32.mrf.mxu1  ;;  %v7944_v9 = vor.u32 %v9378_v44, %v7943_v39  ;;  %v8511_v14 = vld [vmem:[%s15543_s9 + $0x5b8] sm:$0xf] }
 0x613   : > { %v5460_v59 = vpop.f32.mrf.mxu2  ;;  %v13794_v58 = vadd.f32 %v13704_v30, %v5026_v34  ;;  %v13802_v50 = vpop.f32.mrf.mxu0  ;;  %v15846_v30 = vld [vmem:[#allocation32_spill] sm:$0xff] }
 0x614   : > { %v13800_v54 = vadd.f32 %v5460_v59, %v15845_v62  ;;  %v9521_v34 = vld [vmem:[%s15543_s9 + $0x5d8] sm:$0xf0] }
 0x615   : > { %15844 = vst [vmem:[#allocation39_spill] sm:$0xff] %v13794_v58  ;;  %5583 = vmatmul.bf16.gmra.mxu3 %v7868_v35  ;;  %v15848_v35 = vld [vmem:[#allocation98_spill] sm:$0xff]  ;;  %v8512_v44 = vor.u32 %v9521_v34, %v8511_v14 }
 0x616   : > { %8921 = vmatmul.msk.bf16.gmra.mxu0 %vm4278_vm5, %v7944_v9 }
 0x618   : > { %v5028_v4 = vpop.f32.mrf.mxu3 }
 0x619   : > { %v5029_v22 = vadd.f32 %v5028_v4, %v15846_v30  ;;  %v13815_v59 = vpop.f32.mrf.mxu1  ;;  %v9364_v30 = vld [vmem:[%s15543_s9 + $0xf4] sm:$0xf] }
 0x61a   : > { %15847 = vst [vmem:[#allocation104_spill] sm:$0xff] %v13815_v59 }
 0x61b   : > { %v5462_v62 = vpop.f32.mrf.mxu2  ;;  %v5198_v58 = vadd.f32 %v13724_v60, %v5029_v22  ;;  %v13821_v9 = vpop.f32.mrf.mxu0  ;;  %v7904_v22 = vor.u32 %v9364_v30, %v7901_v10  ;;  %v8547_v30 = vld [vmem:[%s15543_s9 + $0x600] sm:$0xf] }
 0x61c   : > { %v13819_v39 = vadd.f32 %v5462_v62, %v15848_v35 }
 0x61d   : > { %v13823_v4 = vadd.f32 %v5366_v41, %v5198_v58  ;;  %v7979_v41 = vld [vmem:[%s15543_s9 + $0x188] sm:$0xf]  ;;  %v15851_v58 = vld [vmem:[#allocation88_spill] sm:$0xff] }
 0x620   : > { %v5030_v59 = vpop.f32.mrf.mxu3  ;;  %5504 = vmatmul.bf16.gmra.mxu2 %v8512_v44  ;;  %v9387_v44 = vld [vmem:[%s15543_s9 + $0x1a8] sm:$0xf0] }
 0x621   : > { %v5031_v60 = vadd.f32 %v5030_v59, %v15849_v17  ;;  %v5371_v62 = vpop.f32.mrf.mxu1  ;;  %v7980_v10 = vor.u32 %v9387_v44, %v7979_v41 }
 0x623   : > { %v5465_v35 = vpop.f32.mrf.mxu2  ;;  %v13833_v14 = vadd.f32 %v13743_v16, %v5031_v60  ;;  %v13841_v33 = vpop.f32.mrf.mxu0  ;;  %v15852_v16 = vld [vmem:[#allocation30_spill] sm:$0xff]  ;;  %v9530_v60 = vld [vmem:[%s15543_s9 + $0x620] sm:$0xf0] }
 0x624   : > { %v13839_v34 = vadd.f32 %v5465_v35, %v15851_v58  ;;  %v8548_v41 = vor.u32 %v9530_v60, %v8547_v30 }
 0x625   : > { %15850 = vst [vmem:[#allocation19_spill] sm:$0xff] %v13833_v14  ;;  %5588 = vmatmul.bf16.gmra.mxu3 %v7904_v22 }
 0x626   : > { %8922 = vmatmul.msk.bf16.gmra.mxu0 %vm4278_vm5, %v7980_v10 }
 0x628   : > { %v5033_v17 = vpop.f32.mrf.mxu3 }
 0x629   : > { %v5034_v59 = vadd.f32 %v5033_v17, %v15852_v16  ;;  %v13854_v35 = vpop.f32.mrf.mxu1  ;;  %v9373_v17 = vld [vmem:[%s15543_s9 + $0x13c] sm:$0xf]  ;;  %v7937_v16 = vld [vmem:[%s15543_s9 + $0x15c] sm:$0xf0] }
 0x62a   : > { %15853 = vst [vmem:[#allocation42_spill] sm:$0xff] %v13854_v35 }
 0x62b   : > { %v5467_v58 = vpop.f32.mrf.mxu2  ;;  %v5203_v14 = vadd.f32 %v13763_v56, %v5034_v59  ;;  %v13860_v44 = vpop.f32.mrf.mxu0  ;;  %v7940_v59 = vor.u32 %v9373_v17, %v7937_v16  ;;  %v8583_v16 = vld [vmem:[%s15543_s9 + $0x648] sm:$0xf] }
 0x62c   : > { %v13858_v22 = vadd.f32 %v5467_v58, %v13242_v47 }
 0x62d   : > { %v13862_v10 = vadd.f32 %v5371_v62, %v5203_v14  ;;  %v8015_v62 = vld [vmem:[%s15543_s9 + $0x1d0] sm:$0xf] }
 0x630   : > { %v5035_v35 = vpop.f32.mrf.mxu3  ;;  %5509 = vmatmul.bf16.gmra.mxu2 %v8548_v41  ;;  %v9396_v41 = vld [vmem:[%s15543_s9 + $0x1f0] sm:$0xf0] }
 0x631   : > { %v5036_v56 = vadd.f32 %v5035_v35, %v15854_v38  ;;  %v5376_v47 = vpop.f32.mrf.mxu1  ;;  %v8016_v38 = vor.u32 %v9396_v41, %v8015_v62 }
 0x633   : > { %v5470_v58 = vpop.f32.mrf.mxu2  ;;  %v13872_v30 = vadd.f32 %v13782_v6, %v5036_v56  ;;  %v13880_v60 = vpop.f32.mrf.mxu0  ;;  %v15856_v6 = vld [vmem:[#allocation17_spill] sm:$0xff] }
 0x634   : > { %v13878_v14 = vadd.f32 %v5470_v58, %v13260_v1  ;;  %v9539_v1 = vld [vmem:[%s15543_s9 + $0x668] sm:$0xf0] }
 0x635   : > { %15855 = vst [vmem:[#allocation103_spill] sm:$0xff] %v13872_v30  ;;  %5593 = vmatmul.bf16.gmra.mxu3 %v7940_v59  ;;  %v8584_v62 = vor.u32 %v9539_v1, %v8583_v16 }
 0x636   : > { %8923 = vmatmul.msk.bf16.gmra.mxu0 %vm4278_vm5, %v8016_v38 }
 0x638   : > { %v5038_v35 = vpop.f32.mrf.mxu3 }
 0x639   : > { %v5039_v17 = vadd.f32 %v5038_v35, %v15856_v6  ;;  %v13893_v56 = vpop.f32.mrf.mxu1  ;;  %v9382_v35 = vld [vmem:[%s15543_s9 + $0x184] sm:$0xf]  ;;  %v7973_v6 = vld [vmem:[%s15543_s9 + $0x1a4] sm:$0xf0] }
 0x63a   : > { %15857 = vst [vmem:[#allocation36_spill] sm:$0xff] %v13893_v56 }
 0x63b   : > { %v5472_v58 = vpop.f32.mrf.mxu2  ;;  %v5208_v30 = vadd.f32 %v13802_v50, %v5039_v17  ;;  %v13899_v41 = vpop.f32.mrf.mxu0  ;;  %v7976_v17 = vor.u32 %v9382_v35, %v7973_v6  ;;  %v8619_v6 = vld [vmem:[%s15543_s9 + $0x690] sm:$0xf] }
 0x63c   : > { %v13897_v59 = vadd.f32 %v5472_v58, %v13287_v15 }
 0x63d   : > { %v13901_v38 = vadd.f32 %v5376_v47, %v5208_v30  ;;  %v8051_v47 = vld [vmem:[%s15543_s9 + $0x218] sm:$0xf] }
 0x640   : > { %v5040_v56 = vpop.f32.mrf.mxu3  ;;  %5514 = vmatmul.bf16.gmra.mxu2 %v8584_v62  ;;  %v9405_v62 = vld [vmem:[%s15543_s9 + $0x238] sm:$0xf0] }
 0x641   : > { %v5041_v50 = vadd.f32 %v5040_v56, %v15858_v63  ;;  %v5381_v15 = vpop.f32.mrf.mxu1  ;;  %v8052_v63 = vor.u32 %v9405_v62, %v8051_v47 }
 0x643   : > { %v5475_v58 = vpop.f32.mrf.mxu2  ;;  %v13911_v16 = vadd.f32 %v13821_v9, %v5041_v50  ;;  %v13919_v1 = vpop.f32.mrf.mxu0  ;;  %v15860_v9 = vld [vmem:[#allocation46_spill] sm:$0xff] }
 0x644   : > { %v13917_v30 = vadd.f32 %v5475_v58, %v13304_v43  ;;  %v9548_v43 = vld [vmem:[%s15543_s9 + $0x6b0] sm:$0xf0] }
 0x645   : > { %15859 = vst [vmem:[#allocation22_spill] sm:$0xff] %v13911_v16  ;;  %5598 = vmatmul.bf16.gmra.mxu3 %v7976_v17  ;;  %v8620_v17 = vor.u32 %v9548_v43, %v8619_v6 }
 0x646   : > { %8924 = vmatmul.msk.bf16.gmra.mxu0 %vm4278_vm5, %v8052_v63 }
 0x648   : > { %v5043_v56 = vpop.f32.mrf.mxu3 }
 0x649   : > { %v5044_v35 = vadd.f32 %v5043_v56, %v15860_v9  ;;  %v13936_v47 = vpop.f32.mrf.mxu1  ;;  %v9391_v56 = vld [vmem:[%s15543_s9 + $0x1cc] sm:$0xf]  ;;  %v8009_v9 = vld [vmem:[%s15543_s9 + $0x1ec] sm:$0xf0] }
 0x64a   : > { %15861 = vst [vmem:[#allocation35_spill] sm:$0xff] %v13936_v47  ;;  %v9414_v47 = vld [vmem:[%s15543_s9 + $0x280] sm:$0xf0] }
 0x64b   : > { %v5477_v50 = vpop.f32.mrf.mxu2  ;;  %v5213_v58 = vadd.f32 %v13841_v33, %v5044_v35  ;;  %v5224_v62 = vpop.f32.mrf.mxu0  ;;  %v15862_v33 = vld [vmem:[#allocation15_spill] sm:$0xff] }
 0x64c   : > { %v13934_v16 = vadd.f32 %v5477_v50, %v13331_v25  ;;  %v8012_v25 = vor.u32 %v9391_v56, %v8009_v9  ;;  %v8655_v9 = vld [vmem:[%s15543_s9 + $0x6d8] sm:$0xf] }
 0x64d   : > { %v13938_v63 = vadd.f32 %v5381_v15, %v5213_v58  ;;  %v8087_v15 = vld [vmem:[%s15543_s9 + $0x260] sm:$0xf] }
 0x650   : > { %v5045_v11 = vpop.f32.mrf.mxu3  ;;  %5519 = vmatmul.bf16.gmra.mxu2 %v8620_v17  ;;  %v8088_v17 = vor.u32 %v9414_v47, %v8087_v15 }
 0x651   : > { %v5046_v35 = vadd.f32 %v5045_v11, %v15862_v33  ;;  %v5386_v11 = vpop.f32.mrf.mxu1 }
 0x653   : > { %v5480_v50 = vpop.f32.mrf.mxu2  ;;  %v13948_v6 = vadd.f32 %v13860_v44, %v5046_v35  ;;  %v5743_v58 = vpop.f32.mrf.mxu0 }
 0x654   : > { %v13954_v43 = vadd.f32 %v5480_v50, %v13346_v32  ;;  %v9557_v32 = vld [vmem:[%s15543_s9 + $0x6f8] sm:$0xf0] }
 0x655   : > { %15863 = vst [vmem:[#allocation105_spill] sm:$0xff] %v13948_v6  ;;  %5603 = vmatmul.bf16.gmra.mxu3 %v8012_v25  ;;  %v8656_v47 = vor.u32 %v9557_v32, %v8655_v9  ;;  %v15867_v32 = vld [vmem:[#allocation101_spill] sm:$0xff] }
 0x656   : > { %8925 = vmatmul.msk.bf16.gmra.mxu0 %vm4278_vm5, %v8088_v17  ;;  %v8045_v17 = vld [vmem:[%s15543_s9 + $0x234] sm:$0xf0] }
 0x658   : > { %v5048_v56 = vpop.f32.mrf.mxu3 }
 0x659   : > { %v5049_v44 = vadd.f32 %v5048_v56, %v13235_v23  ;;  %v9400_v23 = vld [vmem:[%s15543_s9 + $0x214] sm:$0xf]  ;;  %v13979_v6 = vpop.f32.mrf.mxu1 }
 0x65a   : > { %15864 = vst [vmem:[#allocation33_spill] sm:$0xff] %v13979_v6 }
 0x65b   : > { %v5482_v33 = vpop.f32.mrf.mxu2  ;;  %v5218_v35 = vadd.f32 %v13880_v60, %v5049_v44  ;;  %v5745_v50 = vpop.f32.mrf.mxu0  ;;  %v15865_v60 = vld [vmem:[#allocation48_spill] sm:$0xff] }
 0x65c   : > { %v13969_v25 = vadd.f32 %v5482_v33, %v13373_v53  ;;  %v8048_v53 = vor.u32 %v9400_v23, %v8045_v17  ;;  %v15869_v17 = vld [vmem:[#allocation99_spill] sm:$0xff] }
 0x65d   : > { %v13971_v15 = vadd.f32 %v5386_v11, %v5218_v35  ;;  %v8123_v11 = vld [vmem:[%s15543_s9 + $0x2a8] sm:$0xf] }
 0x660   : > { %v5050_v56 = vpop.f32.mrf.mxu3  ;;  %5524 = vmatmul.bf16.gmra.mxu2 %v8656_v47  ;;  %v9423_v47 = vld [vmem:[%s15543_s9 + $0x2c8] sm:$0xf0] }
 0x661   : > { %v5051_v44 = vadd.f32 %v5050_v56, %v15865_v60  ;;  %v8124_v6 = vor.u32 %v9423_v47, %v8123_v11  ;;  %v8691_v56 = vld [vmem:[%s15543_s9 + $0x720] sm:$0xf]  ;;  %v9566_v60 = vld [vmem:[%s15543_s9 + $0x740] sm:$0xf0] }
 0x662   : > { %v8692_v11 = vor.u32 %v9566_v60, %v8691_v56  ;;  %v8159_v56 = vld [vmem:[%s15543_s9 + $0x2f0] sm:$0xf] }
 0x663   : > { %v5485_v33 = vpop.f32.mrf.mxu2  ;;  %v13983_v9 = vadd.f32 %v13899_v41, %v5051_v44  ;;  %v5748_v24 = vpop.f32.mrf.mxu0 }
 0x664   : > { %v13989_v35 = vadd.f32 %v5485_v33, %v15867_v32  ;;  %v5391_v44 = vpop.f32.mrf.mxu1 }
 0x665   : > { %15866 = vst [vmem:[#allocation106_spill] sm:$0xff] %v13983_v9  ;;  %5608 = vmatmul.bf16.gmra.mxu3 %v8048_v53 }
 0x666   : > { %15868 = vst [vmem:[#allocation107_spill] sm:$0xff] %v13989_v35  ;;  %8926 = vmatmul.msk.bf16.gmra.mxu0 %vm4278_vm5, %v8124_v6 }
 0x668   : > { %v5053_v23 = vpop.f32.mrf.mxu3 }
 0x669   : > { %v5054_v41 = vadd.f32 %v5053_v23, %v15869_v17  ;;  %v9409_v23 = vld [vmem:[%s15543_s9 + $0x25c] sm:$0xf]  ;;  %v8081_v17 = vld [vmem:[%s15543_s9 + $0x27c] sm:$0xf0] }
 0x66b   : > { %v5487_v33 = vpop.f32.mrf.mxu2  ;;  %v5223_v32 = vadd.f32 %v13919_v1, %v5054_v41  ;;  %v5750_v6 = vpop.f32.mrf.mxu0  ;;  %v8084_v1 = vor.u32 %v9409_v23, %v8081_v17 }
 0x66c   : > { %v14004_v53 = vadd.f32 %v5487_v33, %v13417_v19  ;;  %v9432_v33 = vld [vmem:[%s15543_s9 + $0x310] sm:$0xf0] }
 0x66d   : > { %v14006_v47 = vadd.f32 %v5391_v44, %v5223_v32  ;;  %v8160_v32 = vor.u32 %v9432_v33, %v8159_v56  ;;  %v9418_v56 = vld [vmem:[%s15543_s9 + $0x2a4] sm:$0xf]  ;;  %v8117_v33 = vld [vmem:[%s15543_s9 + $0x2c4] sm:$0xf0] }
 0x66f   : > { %15870 = vst [vmem:[#allocation108_spill] sm:$0xff] %v14006_v47 }
 0x670   : > { %v5055_v9 = vpop.f32.mrf.mxu3  ;;  %5529 = vmatmul.bf16.gmra.mxu2 %v8692_v11 }
 0x671   : > { %v5056_v35 = vadd.f32 %v5055_v9, %v15871_v57 }
 0x673   : > { %v5490_v41 = vpop.f32.mrf.mxu2  ;;  %v14015_v19 = vadd.f32 %v5224_v62, %v5056_v35  ;;  %v14023_v44 = vpop.f32.mrf.mxu0  ;;  %v15873_v62 = vld [vmem:[#allocation44_spill] sm:$0xff]  ;;  %v8727_v35 = vld [vmem:[%s15543_s9 + $0x768] sm:$0xf] }
 0x674   : > { %v14021_v60 = vadd.f32 %v5490_v41, %v13432_v36  ;;  %v9575_v36 = vld [vmem:[%s15543_s9 + $0x788] sm:$0xf0] }
 0x675   : > { %15872 = vst [vmem:[#allocation34_spill] sm:$0xff] %v14015_v19  ;;  %5613 = vmatmul.bf16.gmra.mxu3 %v8084_v1  ;;  %v8728_v1 = vor.u32 %v9575_v36, %v8727_v35  ;;  %v8120_v19 = vor.u32 %v9418_v56, %v8117_v33  ;;  %v15875_v33 = vld [vmem:[#allocation94_spill] sm:$0xff] }
 0x676   : > { %8927 = vmatmul.msk.bf16.gmra.mxu0 %vm4278_vm5, %v8160_v32 }
 0x678   : > { %v5574_v57 = vpop.f32.mrf.mxu3 }
 0x679   : > { %v5575_v9 = vadd.f32 %v5574_v57, %v15873_v62  ;;  %v15874_v57 = vld [vmem:[#allocation57_spill] sm:$0xff] }
 0x67b   : > { %v5744_v11 = vadd.f32 %v5743_v58, %v5575_v9  ;;  %v5492_v23 = vpop.f32.mrf.mxu2  ;;  %v5755_v41 = vpop.f32.mrf.mxu0 }
 0x67c   : > { %v14037_v17 = vadd.f32 %v5492_v23, %v13459_v45  ;;  %v8195_v45 = vld [vmem:[%s15543_s9 + $0x338] sm:$0xf]  ;;  %v9441_v23 = vld [vmem:[%s15543_s9 + $0x358] sm:$0xf0] }
 0x680   : > { %5534 = vmatmul.bf16.gmra.mxu2 %v8728_v1  ;;  %v5576_v32 = vpop.f32.mrf.mxu3  ;;  %v5903_v1 = vmax.f32 %v5744_v11, 0.0 }
 0x681   : > { %v5577_v62 = vadd.f32 %v5576_v32, %v15874_v57  ;;  %v8196_v32 = vor.u32 %v9441_v23, %v8195_v45  ;;  %v8153_v23 = vld [vmem:[%s15543_s9 + $0x30c] sm:$0xf0] }
 0x683   : > { %v5746_v58 = vadd.f32 %v5745_v50, %v5577_v62  ;;  %v5495_v9 = vpop.f32.mrf.mxu2  ;;  %v14052_v36 = vpop.f32.mrf.mxu0  ;;  %v9584_v62 = vld [vmem:[%s15543_s9 + $0x7d0] sm:$0xf0] }
 0x684   : > { %v14050_v35 = vadd.f32 %v5495_v9, %v13474_v48  ;;  %v8763_v48 = vld [vmem:[%s15543_s9 + $0x7b0] sm:$0xf] }
 0x685   : > { %v5904_v47 = vmax.f32 %v5746_v58, 0.0  ;;  %5618 = vmatmul.bf16.gmra.mxu3 %v8120_v19  ;;  %v8764_v58 = vor.u32 %v9584_v62, %v8763_v48 }
 0x686   : > { %8928 = vmatmul.msk.bf16.gmra.mxu0 %vm4278_vm5, %v8196_v32  ;;  %v15877_v32 = vld [vmem:[#allocation51_spill] sm:$0xff] }
 0x687   : > { %v14058_v50 = vpack.c.bf16 %v5904_v47, %v5903_v1  ;;  %v9427_v47 = vld [vmem:[%s15543_s9 + $0x2ec] sm:$0xf] }
 0x688   : > { %v5579_v56 = vpop.f32.mrf.mxu3 }
 0x689   : > { %v5580_v57 = vadd.f32 %v5579_v56, %v15875_v33  ;;  %v8156_v33 = vor.u32 %v9427_v47, %v8153_v23 }
 0x68b   : > { %v5749_v9 = vadd.f32 %v5748_v24, %v5580_v57  ;;  %v5497_v11 = vpop.f32.mrf.mxu2  ;;  %v5760_v45 = vpop.f32.mrf.mxu0 }
 0x68c   : > { %v14068_v19 = vadd.f32 %v5497_v11, %v13501_v52  ;;  %v8231_v52 = vld [vmem:[%s15543_s9 + $0x380] sm:$0xf]  ;;  %v9450_v11 = vld [vmem:[%s15543_s9 + $0x3a0] sm:$0xf0] }
 0x68e   : > { %15876 = vst [vmem:[#allocation96_spill] sm:$0xff] %v14068_v19 }
 0x690   : > { %5539 = vmatmul.bf16.gmra.mxu2 %v8764_v58  ;;  %v5581_v1 = vpop.f32.mrf.mxu3  ;;  %v5905_v58 = vmax.f32 %v5749_v9, 0.0 }
 0x691   : > { %v5582_v56 = vadd.f32 %v5581_v1, %v15877_v32  ;;  %v8232_v1 = vor.u32 %v9450_v11, %v8231_v52  ;;  %v9593_v32 = vld [vmem:[%s15543_s9 + $0x818] sm:$0xf0] }
 0x693   : > { %v5751_v24 = vadd.f32 %v5750_v6, %v5582_v56  ;;  %v5500_v57 = vpop.f32.mrf.mxu2  ;;  %v14083_v62 = vpop.f32.mrf.mxu0 }
 0x694   : > { %v14081_v48 = vadd.f32 %v5500_v57, %v13516_v5  ;;  %v8799_v5 = vld [vmem:[%s15543_s9 + $0x7f8] sm:$0xf] }
 0x695   : > { %v5906_v19 = vmax.f32 %v5751_v24, 0.0  ;;  %5623 = vmatmul.bf16.gmra.mxu3 %v8156_v33  ;;  %v8800_v24 = vor.u32 %v9593_v32, %v8799_v5  ;;  %v8189_v57 = vld [vmem:[%s15543_s9 + $0x354] sm:$0xf0]  ;;  %v9459_v5 = vld [vmem:[%s15543_s9 + $0x3e8] sm:$0xf0] }
 0x696   : > { %8929 = vmatmul.msk.bf16.gmra.mxu0 %vm4278_vm5, %v8232_v1 }
 0x697   : > { %v14089_v6 = vpack.c.bf16 %v5906_v19, %v5905_v58 }
 0x698   : > { %v5584_v47 = vpop.f32.mrf.mxu3 }
 0x699   : > { %v5585_v23 = vadd.f32 %v5584_v47, %v13410_v12  ;;  %v9436_v12 = vld [vmem:[%s15543_s9 + $0x334] sm:$0xf] }
 0x69a   : > { %v8192_v58 = vor.u32 %v9436_v12, %v8189_v57  ;;  %v9602_v57 = vld [vmem:[%s15543_s9 + $0x860] sm:$0xf0] }
 0x69b   : > { %v5754_v9 = vadd.f32 %v14023_v44, %v5585_v23  ;;  %v5502_v56 = vpop.f32.mrf.mxu2  ;;  %v5765_v19 = vpop.f32.mrf.mxu0 }
 0x69c   : > { %v14100_v33 = vadd.f32 %v5502_v56, %v13543_v2  ;;  %v8267_v2 = vld [vmem:[%s15543_s9 + $0x3c8] sm:$0xf] }
 0x69d   : > { %v5907_v32 = vmax.f32 %v5754_v9, 0.0 }
 0x6a0   : > { %5544 = vmatmul.bf16.gmra.mxu2 %v8800_v24  ;;  %v5586_v52 = vpop.f32.mrf.mxu3 }
 0x6a1   : > { %v5587_v11 = vadd.f32 %v5586_v52, %v13428_v28  ;;  %v8268_v28 = vor.u32 %v9459_v5, %v8267_v2 }
 0x6a3   : > { %v5756_v44 = vadd.f32 %v5755_v41, %v5587_v11  ;;  %v5505_v1 = vpop.f32.mrf.mxu2  ;;  %v14115_v23 = vpop.f32.mrf.mxu0 }
 0x6a4   : > { %v14113_v47 = vadd.f32 %v5505_v1, %v13562_v46  ;;  %v8835_v46 = vld [vmem:[%s15543_s9 + $0x840] sm:$0xf] }
 0x6a5   : > { %v5908_v56 = vmax.f32 %v5756_v44, 0.0  ;;  %5628 = vmatmul.bf16.gmra.mxu3 %v8192_v58  ;;  %v8836_v11 = vor.u32 %v9602_v57, %v8835_v46  ;;  %v9445_v44 = vld [vmem:[%s15543_s9 + $0x37c] sm:$0xf] }
 0x6a6   : > { %8930 = vmatmul.msk.bf16.gmra.mxu0 %vm4278_vm5, %v8268_v28 }
 0x6a7   : > { %v14121_v41 = vpack.c.bf16 %v5908_v56, %v5907_v32 }
 0x6a8   : > { %v5589_v24 = vpop.f32.mrf.mxu3 }
 0x6a9   : > { %v5590_v12 = vadd.f32 %v5589_v24, %v13452_v49  ;;  %v8225_v49 = vld [vmem:[%s15543_s9 + $0x39c] sm:$0xf0] }
 0x6aa   : > { %v8228_v5 = vor.u32 %v9445_v44, %v8225_v49  ;;  %v9611_v49 = vld [vmem:[%s15543_s9 + $0x8a8] sm:$0xf0] }
 0x6ab   : > { %v5759_v9 = vadd.f32 %v14052_v36, %v5590_v12  ;;  %v14131_v52 = vpop.f32.mrf.mxu2  ;;  %v5770_v58 = vpop.f32.mrf.mxu0  ;;  %v8303_v36 = vld [vmem:[%s15543_s9 + $0x410] sm:$0xf]  ;;  %v9468_v12 = vld [vmem:[%s15543_s9 + $0x430] sm:$0xf0] }
 0x6ad   : > { %v5909_v46 = vmax.f32 %v5759_v9, 0.0 }
 0x6b0   : > { %5549 = vmatmul.bf16.gmra.mxu2 %v8836_v11  ;;  %v5591_v1 = vpop.f32.mrf.mxu3 }
 0x6b1   : > { %v5592_v2 = vadd.f32 %v5591_v1, %v13470_v8  ;;  %v8304_v8 = vor.u32 %v9468_v12, %v8303_v36  ;;  %v15879_v36 = vld [vmem:[#allocation52_spill] sm:$0xff] }
 0x6b3   : > { %v5761_v32 = vadd.f32 %v5760_v45, %v5592_v2  ;;  %v5510_v56 = vpop.f32.mrf.mxu2  ;;  %v14146_v24 = vpop.f32.mrf.mxu0 }
 0x6b4   : > { %v14144_v28 = vadd.f32 %v5510_v56, %v13614_v37  ;;  %v8871_v37 = vld [vmem:[%s15543_s9 + $0x888] sm:$0xf] }
 0x6b5   : > { %v5910_v57 = vmax.f32 %v5761_v32, 0.0  ;;  %5633 = vmatmul.bf16.gmra.mxu3 %v8228_v5  ;;  %v8872_v2 = vor.u32 %v9611_v49, %v8871_v37  ;;  %v9454_v32 = vld [vmem:[%s15543_s9 + $0x3c4] sm:$0xf]  ;;  %v9477_v37 = vld [vmem:[%s15543_s9 + $0x478] sm:$0xf0] }
 0x6b6   : > { %8931 = vmatmul.msk.bf16.gmra.mxu0 %vm4278_vm5, %v8304_v8 }
 0x6b7   : > { %v14152_v45 = vpack.c.bf16 %v5910_v57, %v5909_v46 }
 0x6b8   : > { %v5594_v11 = vpop.f32.mrf.mxu3 }
 0x6b9   : > { %v5595_v44 = vadd.f32 %v5594_v11, %v13494_v26  ;;  %v8261_v26 = vld [vmem:[%s15543_s9 + $0x3e4] sm:$0xf0] }
 0x6ba   : > { %v8264_v46 = vor.u32 %v9454_v32, %v8261_v26  ;;  %v8907_v26 = vld [vmem:[%s15543_s9 + $0x8d0] sm:$0xf] }
 0x6bb   : > { %v5764_v9 = vadd.f32 %v14083_v62, %v5595_v44  ;;  %v14162_v1 = vpop.f32.mrf.mxu2  ;;  %v5775_v5 = vpop.f32.mrf.mxu0  ;;  %v8339_v62 = vld [vmem:[%s15543_s9 + $0x458] sm:$0xf] }
 0x6bc   : > { %15878 = vst [vmem:[#allocation32_spill] sm:$0xff] %v14162_v1  ;;  %v8340_v1 = vor.u32 %v9477_v37, %v8339_v62 }
 0x6bd   : > { %v5911_v49 = vmax.f32 %v5764_v9, 0.0 }
 0x6c0   : > { %5554 = vmatmul.bf16.gmra.mxu2 %v8872_v2  ;;  %v5596_v56 = vpop.f32.mrf.mxu3 }
 0x6c1   : > { %v5597_v12 = vadd.f32 %v5596_v56, %v15879_v36 }
 0x6c3   : > { %v5766_v57 = vadd.f32 %v5765_v19, %v5597_v12  ;;  %v5515_v8 = vpop.f32.mrf.mxu2  ;;  %v5778_v44 = vpop.f32.mrf.mxu0 }
 0x6c4   : > { %v14175_v11 = vadd.f32 %v5515_v8, %v13661_v3  ;;  %v9620_v3 = vld [vmem:[%s15543_s9 + $0x8f0] sm:$0xf0] }
 0x6c5   : > { %v5912_v2 = vmax.f32 %v5766_v57, 0.0  ;;  %5638 = vmatmul.bf16.gmra.mxu3 %v8264_v46  ;;  %v8908_v36 = vor.u32 %v9620_v3, %v8907_v26  ;;  %v8297_v46 = vld [vmem:[%s15543_s9 + $0x42c] sm:$0xf0]  ;;  %v9486_v26 = vld [vmem:[%s15543_s9 + $0x4c0] sm:$0xf0] }
 0x6c6   : > { %8932 = vmatmul.msk.bf16.gmra.mxu0 %vm4278_vm5, %v8340_v1  ;;  %v9463_v1 = vld [vmem:[%s15543_s9 + $0x40c] sm:$0xf] }
 0x6c7   : > { %v14181_v19 = vpack.c.bf16 %v5912_v2, %v5911_v49  ;;  %v8300_v37 = vor.u32 %v9463_v1, %v8297_v46  ;;  %v9472_v46 = vld [vmem:[%s15543_s9 + $0x454] sm:$0xf] }
 0x6c8   : > { %v5599_v32 = vpop.f32.mrf.mxu3 }
 0x6c9   : > { %v5600_v12 = vadd.f32 %v5599_v32, %v13536_v13  ;;  %v8375_v13 = vld [vmem:[%s15543_s9 + $0x4a0] sm:$0xf] }
 0x6cb   : > { %v14189_v56 = vpop.f32.mrf.mxu2  ;;  %v5780_v9 = vpop.f32.mrf.mxu0  ;;  %v5769_v8 = vadd.f32 %v14115_v23, %v5600_v12 }
 0x6cc   : > { %15880 = vst [vmem:[#allocation98_spill] sm:$0xff] %v14189_v56  ;;  %v8376_v56 = vor.u32 %v9486_v26, %v8375_v13 }
 0x6cd   : > { %v5913_v3 = vmax.f32 %v5769_v8, 0.0 }
 0x6d0   : > { %5559 = vmatmul.bf16.gmra.mxu2 %v8908_v36  ;;  %v5601_v57 = vpop.f32.mrf.mxu3 }
 0x6d1   : > { %v5602_v62 = vadd.f32 %v5601_v57, %v13556_v51  ;;  %v8333_v57 = vld [vmem:[%s15543_s9 + $0x474] sm:$0xf0] }
 0x6d3   : > { %v5771_v49 = vadd.f32 %v5770_v58, %v5602_v62  ;;  %v14200_v2 = vpop.f32.mrf.mxu2  ;;  %v5783_v32 = vpop.f32.mrf.mxu0 }
 0x6d5   : > { %v5914_v36 = vmax.f32 %v5771_v49, 0.0  ;;  %5643 = vmatmul.bf16.gmra.mxu3 %v8300_v37  ;;  %v8336_v37 = vor.u32 %v9472_v46, %v8333_v57 }
 0x6d6   : > { %8933 = vmatmul.msk.bf16.gmra.mxu0 %vm4278_vm5, %v8376_v56 }
 0x6d7   : > { %v6068_v51 = vpack.c.bf16 %v5914_v36, %v5913_v3  ;;  %v9495_v36 = vld [vmem:[%s15543_s9 + $0x508] sm:$0xf0] }
 0x6d8   : > { %v5604_v23 = vpop.f32.mrf.mxu3 }
 0x6d9   : > { %v5605_v1 = vadd.f32 %v5604_v23, %v13586_v0  ;;  %v8411_v0 = vld [vmem:[%s15543_s9 + $0x4e8] sm:$0xf] }
 0x6db   : > { %v14209_v58 = vpop.f32.mrf.mxu2  ;;  %v5785_v12 = vpop.f32.mrf.mxu0  ;;  %v5774_v62 = vadd.f32 %v14146_v24, %v5605_v1  ;;  %v8412_v24 = vor.u32 %v9495_v36, %v8411_v0  ;;  %v8447_v0 = vld [vmem:[%s15543_s9 + $0x530] sm:$0xf] }
 0x6dc   : > { %15881 = vst [vmem:[#allocation38_spill] sm:$0xff] %v14209_v58 }
 0x6dd   : > { %v5915_v23 = vmax.f32 %v5774_v62, 0.0 }
 0x6e0   : > { %v5606_v8 = vpop.f32.mrf.mxu3 }
 0x6e1   : > { %v5607_v56 = vadd.f32 %v5606_v8, %v13608_v21  ;;  %v8369_v8 = vld [vmem:[%s15543_s9 + $0x4bc] sm:$0xf0] }
 0x6e3   : > { %v5776_v49 = vadd.f32 %v5775_v5, %v5607_v56  ;;  %v5525_v13 = vpop.f32.mrf.mxu2  ;;  %v5788_v3 = vpop.f32.mrf.mxu0 }
 0x6e4   : > { %v14224_v26 = vadd.f32 %v5525_v13, %v13745_v27  ;;  %v9481_v27 = vld [vmem:[%s15543_s9 + $0x49c] sm:$0xf] }
 0x6e5   : > { %v5916_v58 = vmax.f32 %v5776_v49, 0.0  ;;  %5648 = vmatmul.bf16.gmra.mxu3 %v8336_v37  ;;  %v8372_v37 = vor.u32 %v9481_v27, %v8369_v8 }
 0x6e6   : > { %8934 = vmatmul.msk.bf16.gmra.mxu0 %vm4278_vm5, %v8412_v24 }
 0x6e7   : > { %v6069_v21 = vpack.c.bf16 %v5916_v58, %v5915_v23  ;;  %v9504_v23 = vld [vmem:[%s15543_s9 + $0x550] sm:$0xf0] }
 0x6e8   : > { %v5609_v5 = vpop.f32.mrf.mxu3 }
 0x6e9   : > { %v5610_v57 = vadd.f32 %v5609_v5, %v13638_v42 }
 0x6eb   : > { %v14230_v1 = vpop.f32.mrf.mxu2  ;;  %v5790_v46 = vpop.f32.mrf.mxu0  ;;  %v5779_v56 = vadd.f32 %v5778_v44, %v5610_v57 }
 0x6ed   : > { %v5917_v24 = vmax.f32 %v5779_v56, 0.0  ;;  %v8405_v56 = vld [vmem:[%s15543_s9 + $0x504] sm:$0xf0] }
 0x6f0   : > { %v5611_v62 = vpop.f32.mrf.mxu3 }
 0x6f1   : > { %v5612_v58 = vadd.f32 %v5611_v62, %v13657_v55  ;;  %v8448_v55 = vor.u32 %v9504_v23, %v8447_v0  ;;  %v9490_v62 = vld [vmem:[%s15543_s9 + $0x4e4] sm:$0xf]  ;;  %v9513_v23 = vld [vmem:[%s15543_s9 + $0x598] sm:$0xf0] }
 0x6f3   : > { %v5781_v49 = vadd.f32 %v5780_v9, %v5612_v58  ;;  %v5530_v13 = vpop.f32.mrf.mxu2  ;;  %v14246_v36 = vpop.f32.mrf.mxu0 }
 0x6f4   : > { %v14244_v42 = vadd.f32 %v5530_v13, %v13784_v18  ;;  %v8483_v13 = vld [vmem:[%s15543_s9 + $0x578] sm:$0xf] }
 0x6f5   : > { %v5918_v44 = vmax.f32 %v5781_v49, 0.0  ;;  %5653 = vmatmul.bf16.gmra.mxu3 %v8372_v37 }
 0x6f6   : > { %8935 = vmatmul.msk.bf16.gmra.mxu0 %vm4278_vm5, %v8448_v55 }
 0x6f7   : > { %v6070_v5 = vpack.c.bf16 %v5918_v44, %v5917_v24 }
 0x6f8   : > { %v5614_v9 = vpop.f32.mrf.mxu3 }
 0x6f9   : > { %v5615_v57 = vadd.f32 %v5614_v9, %v13683_v20  ;;  %6575 = vmatpush.bf16.msrb.mxu1 %v6070_v5  ;;  %v8408_v20 = vor.u32 %v9490_v62, %v8405_v56 }
 0x6fb   : > { %v5784_v27 = vadd.f32 %v5783_v32, %v5615_v57  ;;  %v14253_v18 = vpop.f32.mrf.mxu2  ;;  %v14255_v8 = vpop.f32.mrf.mxu0  ;;  %v8441_v57 = vld [vmem:[%s15543_s9 + $0x54c] sm:$0xf0] }
 0x6fd   : > { %6576 = vmatpush.bf16.msrb.mxu1 %v6069_v21  ;;  %v5919_v24 = vmax.f32 %v5784_v27, 0.0 }
 0x700   : > { %v5616_v58 = vpop.f32.mrf.mxu3 }
 0x701   : > { %v5617_v37 = vadd.f32 %v5616_v58, %v13702_v40  ;;  %6577 = vmatpush.bf16.msrb.mxu1 %v6068_v51  ;;  %v8484_v40 = vor.u32 %v9513_v23, %v8483_v13  ;;  %v8519_v58 = vld [vmem:[%s15543_s9 + $0x5c0] sm:$0xf] }
 0x703   : > { %v5786_v49 = vadd.f32 %v5785_v12, %v5617_v37  ;;  %v5535_v32 = vpop.f32.mrf.mxu2  ;;  %v14270_v0 = vpop.f32.mrf.mxu0 }
 0x704   : > { %v14268_v21 = vadd.f32 %v5535_v32, %v13823_v4 }
 0x705   : > { %v5920_v44 = vmax.f32 %v5786_v49, 0.0  ;;  %5658 = vmatmul.bf16.gmra.mxu3 %v8408_v20  ;;  %6578 = vmatpush.bf16.msrb.mxu1 %v14181_v19  ;;  %v9499_v19 = vld [vmem:[%s15543_s9 + $0x52c] sm:$0xf]  ;;  %v9522_v20 = vld [vmem:[%s15543_s9 + $0x5e0] sm:$0xf0] }
 0x706   : > { %8936 = vmatmul.msk.bf16.gmra.mxu0 %vm4278_vm5, %v8484_v40 }
 0x707   : > { %v14277_v51 = vpack.c.bf16 %v5920_v44, %v5919_v24 }
 0x708   : > { %v5619_v12 = vpop.f32.mrf.mxu3 }
 0x709   : > { %v5620_v4 = vadd.f32 %v5619_v12, %v13722_v7  ;;  %6579 = vmatpush.bf16.msrb.mxu1 %v14152_v45  ;;  %v8444_v45 = vor.u32 %v9499_v19, %v8441_v57  ;;  %v9508_v12 = vld [vmem:[%s15543_s9 + $0x574] sm:$0xf] }
 0x70b   : > { %v5789_v55 = vadd.f32 %v5788_v3, %v5620_v4  ;;  %v14281_v5 = vpop.f32.mrf.mxu2  ;;  %v14283_v9 = vpop.f32.mrf.mxu0  ;;  %v8951_v3 = vld [vmem:[%s15545_s11] sm:$0xf] }
 0x70d   : > { %6580 = vmatpush.bf16.msrb.mxu1 %v14121_v41  ;;  %v9624_v41 = vld [vmem:[%s15545_s11 + $0xc] sm:$0xf0]  ;;  %v5921_v49 = vmax.f32 %v5789_v55, 0.0 }
 0x710   : > { %v5621_v27 = vpop.f32.mrf.mxu3 }
 0x711   : > { %v5622_v7 = vadd.f32 %v5621_v27, %v13741_v31  ;;  %6581 = vmatpush.bf16.msrb.mxu1 %v14089_v6  ;;  %v8952_v31 = vor.u32 %v9624_v41, %v8951_v3  ;;  %v9531_v41 = vld [vmem:[%s15543_s9 + $0x628] sm:$0xf0] }
 0x713   : > { %v5791_v62 = vadd.f32 %v5790_v46, %v5622_v7  ;;  %v5540_v56 = vpop.f32.mrf.mxu2  ;;  %v14306_v6 = vpop.f32.mrf.mxu0  ;;  %v8520_v46 = vor.u32 %v9522_v20, %v8519_v58  ;;  %v8555_v7 = vld [vmem:[%s15543_s9 + $0x608] sm:$0xf] }
 0x714   : > { %v14304_v37 = vadd.f32 %v5540_v56, %v13862_v10  ;;  %v8556_v58 = vor.u32 %v9531_v41, %v8555_v7 }
 0x715   : > { %v5922_v32 = vmax.f32 %v5791_v62, 0.0  ;;  %5663 = vmatmul.bf16.gmra.mxu3 %v8444_v45  ;;  %6582 = vmatpush.bf16.msrb.mxu1 %v14058_v50  ;;  %v8477_v50 = vld [vmem:[%s15543_s9 + $0x594] sm:$0xf0] }
 0x716   : > { %8937 = vmatmul.msk.bf16.gmra.mxu0 %vm4278_vm5, %v8520_v46  ;;  %v8480_v19 = vor.u32 %v9508_v12, %v8477_v50  ;;  %v9517_v46 = vld [vmem:[%s15543_s9 + $0x5bc] sm:$0xf] }
 0x717   : > { %v14313_v13 = vpack.c.bf16 %v5922_v32, %v5921_v49 }
 0x718   : > { %v5624_v23 = vpop.f32.mrf.mxu3  ;;  %6583 = vmatmul.bf16.vlgmr.msrb.gmra.mxu1 %v8952_v31 }
 0x719   : > { %v5625_v10 = vadd.f32 %v5624_v23, %v13761_v29  ;;  %v8967_v29 = vld [vmem:[%s15545_s11 + $0x20] sm:$0xf] }
 0x71a   : > { %v8513_v23 = vld [vmem:[%s15543_s9 + $0x5dc] sm:$0xf0] }
 0x71b   : > { %v5794_v24 = vadd.f32 %v14246_v36, %v5625_v10  ;;  %v14317_v44 = vpop.f32.mrf.mxu2  ;;  %v5805_v40 = vpop.f32.mrf.mxu0  ;;  %v9628_v36 = vld [vmem:[%s15545_s11 + $0x2c] sm:$0xf0]  ;;  %v8516_v12 = vor.u32 %v9517_v46, %v8513_v23 }
 0x71d   : > { %v5923_v62 = vmax.f32 %v5794_v24, 0.0 }
 0x720   : > { %v5626_v4 = vpop.f32.mrf.mxu3 }
 0x721   : > { %v5627_v55 = vadd.f32 %v5626_v4, %v13780_v61  ;;  %v8968_v61 = vor.u32 %v9628_v36, %v8967_v29  ;;  %v9540_v36 = vld [vmem:[%s15543_s9 + $0x670] sm:$0xf0] }
 0x723   : > { %v5796_v57 = vadd.f32 %v14255_v8, %v5627_v55  ;;  %v5545_v27 = vpop.f32.mrf.mxu2  ;;  %v14339_v3 = vpop.f32.mrf.mxu0  ;;  %v8591_v55 = vld [vmem:[%s15543_s9 + $0x650] sm:$0xf] }
 0x724   : > { %v14337_v45 = vadd.f32 %v5545_v27, %v13901_v38  ;;  %v8592_v7 = vor.u32 %v9540_v36, %v8591_v55 }
 0x725   : > { %v5924_v56 = vmax.f32 %v5796_v57, 0.0  ;;  %5668 = vmatmul.bf16.gmra.mxu3 %v8480_v19 }
 0x726   : > { %8938 = vmatmul.msk.bf16.gmra.mxu0 %vm4278_vm5, %v8556_v58  ;;  %v9526_v58 = vld [vmem:[%s15543_s9 + $0x604] sm:$0xf] }
 0x727   : > { %v14345_v8 = vpack.c.bf16 %v5924_v56, %v5923_v62 }
 0x728   : > { %v5629_v31 = vpop.f32.mrf.mxu3  ;;  %6588 = vmatmul.bf16.gmra.mxu1 %v8968_v61 }
 0x729   : > { %v5630_v38 = vadd.f32 %v5629_v31, %v13800_v54  ;;  %v8983_v54 = vld [vmem:[%s15545_s11 + $0x40] sm:$0xf]  ;;  %v8549_v31 = vld [vmem:[%s15543_s9 + $0x624] sm:$0xf0] }
 0x72a   : > { %v8552_v46 = vor.u32 %v9526_v58, %v8549_v31  ;;  %v9015_v58 = vld [vmem:[%s15545_s11 + $0x80] sm:$0xf] }
 0x72b   : > { %v5799_v20 = vadd.f32 %v14270_v0, %v5630_v38  ;;  %v14349_v49 = vpop.f32.mrf.mxu2  ;;  %v5810_v32 = vpop.f32.mrf.mxu0  ;;  %v9632_v0 = vld [vmem:[%s15545_s11 + $0x4c] sm:$0xf0] }
 0x72d   : > { %v5925_v57 = vmax.f32 %v5799_v20, 0.0 }
 0x730   : > { %v5631_v10 = vpop.f32.mrf.mxu3 }
 0x731   : > { %v5632_v24 = vadd.f32 %v5631_v10, %v13819_v39  ;;  %v8984_v39 = vor.u32 %v9632_v0, %v8983_v54  ;;  %v9549_v0 = vld [vmem:[%s15543_s9 + $0x6b8] sm:$0xf0] }
 0x733   : > { %v5801_v50 = vadd.f32 %v14283_v9, %v5632_v24  ;;  %v5550_v4 = vpop.f32.mrf.mxu2  ;;  %v14371_v29 = vpop.f32.mrf.mxu0  ;;  %v8627_v24 = vld [vmem:[%s15543_s9 + $0x698] sm:$0xf] }
 0x734   : > { %v14369_v19 = vadd.f32 %v5550_v4, %v13938_v63  ;;  %v8628_v55 = vor.u32 %v9549_v0, %v8627_v24  ;;  %v8621_v0 = vld [vmem:[%s15543_s9 + $0x6b4] sm:$0xf0] }
 0x735   : > { %v5926_v27 = vmax.f32 %v5801_v50, 0.0  ;;  %5673 = vmatmul.bf16.gmra.mxu3 %v8516_v12 }
 0x736   : > { %8939 = vmatmul.msk.bf16.gmra.mxu0 %vm4278_vm5, %v8592_v7 }
 0x737   : > { %v14377_v9 = vpack.c.bf16 %v5926_v27, %v5925_v57  ;;  %v9535_v57 = vld [vmem:[%s15543_s9 + $0x64c] sm:$0xf]  ;;  %v8585_v27 = vld [vmem:[%s15543_s9 + $0x66c] sm:$0xf0] }
 0x738   : > { %v5634_v61 = vpop.f32.mrf.mxu3  ;;  %6593 = vmatmul.bf16.gmra.mxu1 %v8984_v39 }
 0x739   : > { %v5635_v63 = vadd.f32 %v5634_v61, %v13839_v34  ;;  %v8999_v34 = vld [vmem:[%s15545_s11 + $0x60] sm:$0xf] }
 0x73b   : > { %v5804_v41 = vadd.f32 %v14306_v6, %v5635_v63  ;;  %v14381_v62 = vpop.f32.mrf.mxu2  ;;  %v5815_v56 = vpop.f32.mrf.mxu0  ;;  %v9636_v6 = vld [vmem:[%s15545_s11 + $0x6c] sm:$0xf0] }
 0x73c   : > { %v9000_v54 = vor.u32 %v9636_v6, %v8999_v34 }
 0x73d   : > { %v5927_v50 = vmax.f32 %v5804_v41, 0.0  ;;  %v8588_v41 = vor.u32 %v9535_v57, %v8585_v27  ;;  %v8699_v27 = vld [vmem:[%s15543_s9 + $0x728] sm:$0xf] }
 0x740   : > { %v5636_v38 = vpop.f32.mrf.mxu3 }
 0x741   : > { %v5637_v20 = vadd.f32 %v5636_v38, %v13858_v22  ;;  %v8663_v38 = vld [vmem:[%s15543_s9 + $0x6e0] sm:$0xf] }
 0x743   : > { %v5806_v23 = vadd.f32 %v5805_v40, %v5637_v20  ;;  %v5555_v10 = vpop.f32.mrf.mxu2  ;;  %v5818_v22 = vpop.f32.mrf.mxu0 }
 0x744   : > { %v14400_v12 = vadd.f32 %v5555_v10, %v13971_v15 }
 0x745   : > { %v5928_v4 = vmax.f32 %v5806_v23, 0.0  ;;  %5678 = vmatmul.bf16.gmra.mxu3 %v8552_v46 }
 0x746   : > { %8940 = vmatmul.msk.bf16.gmra.mxu0 %vm4278_vm5, %v8628_v55 }
 0x747   : > { %v14406_v40 = vpack.c.bf16 %v5928_v4, %v5927_v50 }
 0x748   : > { %v5639_v39 = vpop.f32.mrf.mxu3  ;;  %6598 = vmatmul.bf16.gmra.mxu1 %v9000_v54  ;;  %v9544_v54 = vld [vmem:[%s15543_s9 + $0x694] sm:$0xf] }
 0x749   : > { %v5640_v15 = vadd.f32 %v5639_v39, %v13878_v14  ;;  %v9640_v14 = vld [vmem:[%s15545_s11 + $0x8c] sm:$0xf0]  ;;  %v8624_v39 = vor.u32 %v9544_v54, %v8621_v0 }
 0x74a   : > { %v9016_v20 = vor.u32 %v9640_v14, %v9015_v58  ;;  %v8735_v54 = vld [vmem:[%s15543_s9 + $0x770] sm:$0xf] }
 0x74b   : > { %v5820_v36 = vpop.f32.mrf.mxu0  ;;  %v5809_v61 = vadd.f32 %v14339_v3, %v5640_v15  ;;  %v9031_v15 = vld [vmem:[%s15545_s11 + $0xa0] sm:$0xf] }
 0x74d   : > { %v5929_v3 = vmax.f32 %v5809_v61, 0.0 }
 0x750   : > { %v5641_v7 = vpop.f32.mrf.mxu3 }
 0x751   : > { %v5642_v63 = vadd.f32 %v5641_v7, %v13897_v59  ;;  %v9558_v59 = vld [vmem:[%s15543_s9 + $0x700] sm:$0xf0] }
 0x752   : > { %v8664_v6 = vor.u32 %v9558_v59, %v8663_v38  ;;  %v9553_v38 = vld [vmem:[%s15543_s9 + $0x6dc] sm:$0xf] }
 0x753   : > { %v5811_v31 = vadd.f32 %v5810_v32, %v5642_v63  ;;  %v5823_v46 = vpop.f32.mrf.mxu0 }
 0x755   : > { %v5930_v34 = vmax.f32 %v5811_v31, 0.0  ;;  %5683 = vmatmul.bf16.gmra.mxu3 %v8588_v41 }
 0x756   : > { %8941 = vmatmul.msk.bf16.gmra.mxu0 %vm4278_vm5, %v8664_v6 }
 0x757   : > { %v6076_v23 = vpack.c.bf16 %v5930_v34, %v5929_v3 }
 0x758   : > { %v5644_v10 = vpop.f32.mrf.mxu3  ;;  %6603 = vmatmul.bf16.gmra.mxu1 %v9016_v20  ;;  %v8657_v20 = vld [vmem:[%s15543_s9 + $0x6fc] sm:$0xf0] }
 0x759   : > { %v5645_v24 = vadd.f32 %v5644_v10, %v13917_v30  ;;  %v9644_v30 = vld [vmem:[%s15545_s11 + $0xac] sm:$0xf0]  ;;  %v8660_v6 = vor.u32 %v9553_v38, %v8657_v20  ;;  %v9047_v10 = vld [vmem:[%s15545_s11 + $0xc0] sm:$0xf] }
 0x75a   : > { %v9032_v7 = vor.u32 %v9644_v30, %v9031_v15 }
 0x75b   : > { %v5825_v32 = vpop.f32.mrf.mxu0  ;;  %v5814_v4 = vadd.f32 %v14371_v29, %v5645_v24 }
 0x75d   : > { %v5931_v29 = vmax.f32 %v5814_v4, 0.0 }
 0x760   : > { %v5646_v50 = vpop.f32.mrf.mxu3 }
 0x761   : > { %v5647_v55 = vadd.f32 %v5646_v50, %v13934_v16  ;;  %v9567_v16 = vld [vmem:[%s15543_s9 + $0x748] sm:$0xf0] }
 0x762   : > { %v8700_v41 = vor.u32 %v9567_v16, %v8699_v27  ;;  %v8693_v16 = vld [vmem:[%s15543_s9 + $0x744] sm:$0xf0] }
 0x763   : > { %v5816_v57 = vadd.f32 %v5815_v56, %v5647_v55  ;;  %v5828_v61 = vpop.f32.mrf.mxu0 }
 0x765   : > { %v5932_v63 = vmax.f32 %v5816_v57, 0.0  ;;  %5688 = vmatmul.bf16.gmra.mxu3 %v8624_v39 }
 0x766   : > { %8942 = vmatmul.msk.bf16.gmra.mxu0 %vm4278_vm5, %v8700_v41 }
 0x767   : > { %v6077_v58 = vpack.c.bf16 %v5932_v63, %v5931_v29 }
 0x768   : > { %v5649_v14 = vpop.f32.mrf.mxu3  ;;  %6608 = vmatmul.bf16.gmra.mxu1 %v9032_v7  ;;  %v9562_v7 = vld [vmem:[%s15543_s9 + $0x724] sm:$0xf] }
 0x769   : > { %v5650_v31 = vadd.f32 %v5649_v14, %v13954_v43  ;;  %v9648_v43 = vld [vmem:[%s15545_s11 + $0xcc] sm:$0xf0]  ;;  %v8696_v41 = vor.u32 %v9562_v7, %v8693_v16 }
 0x76a   : > { %v9048_v0 = vor.u32 %v9648_v43, %v9047_v10 }
 0x76b   : > { %v14452_v56 = vpop.f32.mrf.mxu0  ;;  %v5819_v3 = vadd.f32 %v5818_v22, %v5650_v31  ;;  %v8771_v31 = vld [vmem:[%s15543_s9 + $0x7b8] sm:$0xf] }
 0x76d   : > { %v5933_v22 = vmax.f32 %v5819_v3, 0.0 }
 0x770   : > { %v5651_v59 = vpop.f32.mrf.mxu3 }
 0x771   : > { %v5652_v34 = vadd.f32 %v5651_v59, %v13969_v25  ;;  %v9576_v25 = vld [vmem:[%s15543_s9 + $0x790] sm:$0xf0] }
 0x772   : > { %v8736_v55 = vor.u32 %v9576_v25, %v8735_v54  ;;  %v8953_v25 = vld [vmem:[%s15545_s11 + $0x10] sm:$0xf0] }
 0x773   : > { %v5821_v24 = vadd.f32 %v5820_v36, %v5652_v34  ;;  %v14471_v50 = vpop.f32.mrf.mxu0  ;;  %v15882_v36 = vld [vmem:[#allocation107_spill] sm:$0xff] }
 0x775   : > { %v5934_v4 = vmax.f32 %v5821_v24, 0.0  ;;  %5693 = vmatmul.bf16.gmra.mxu3 %v8660_v6  ;;  %v8729_v24 = vld [vmem:[%s15543_s9 + $0x78c] sm:$0xf0] }
 0x776   : > { %8943 = vmatmul.msk.bf16.gmra.mxu0 %vm4278_vm5, %v8736_v55 }
 0x777   : > { %v6078_v39 = vpack.c.bf16 %v5934_v4, %v5933_v22 }
 0x778   : > { %v5654_v15 = vpop.f32.mrf.mxu3  ;;  %6613 = vmatmul.bf16.gmra.mxu1 %v9048_v0  ;;  %v9622_v0 = vld [vmem:[%s15545_s11 + $0x4] sm:$0xf] }
 0x779   : > { %v5655_v30 = vadd.f32 %v5654_v15, %v15882_v36  ;;  %6664 = vmatpush.bf16.msrb.mxu2 %v6078_v39  ;;  %v8956_v4 = vor.u32 %v9622_v0, %v8953_v25  ;;  %v9594_v39 = vld [vmem:[%s15543_s9 + $0x820] sm:$0xf0]  ;;  %v8801_v0 = vld [vmem:[%s15543_s9 + $0x81c] sm:$0xf0] }
 0x77b   : > { %v5824_v57 = vadd.f32 %v5823_v46, %v5655_v30  ;;  %v14478_v27 = vpop.f32.mrf.mxu0  ;;  %v9063_v46 = vld [vmem:[%s15545_s11 + $0xe0] sm:$0xf] }
 0x77d   : > { %6665 = vmatpush.bf16.msrb.mxu2 %v6077_v58  ;;  %v9652_v58 = vld [vmem:[%s15545_s11 + $0xec] sm:$0xf0] }
 0x77e   : > { %v9064_v38 = vor.u32 %v9652_v58, %v9063_v46  ;;  %v9095_v46 = vld [vmem:[%s15545_s11 + $0x120] sm:$0xf]  ;;  %v15883_v58 = vld [vmem:[#allocation96_spill] sm:$0xff] }
 0x780   : > { %v5656_v29 = vpop.f32.mrf.mxu3 }
 0x781   : > { %v5657_v63 = vadd.f32 %v5656_v29, %v14004_v53  ;;  %6666 = vmatpush.bf16.msrb.mxu2 %v6076_v23  ;;  %v9585_v53 = vld [vmem:[%s15543_s9 + $0x7d8] sm:$0xf0]  ;;  %v5935_v23 = vmax.f32 %v5824_v57, 0.0 }
 0x782   : > { %v8772_v3 = vor.u32 %v9585_v53, %v8771_v31  ;;  %v9626_v31 = vld [vmem:[%s15545_s11 + $0x24] sm:$0xf] }
 0x783   : > { %v5826_v14 = vadd.f32 %v5825_v32, %v5657_v63  ;;  %v14496_v20 = vpop.f32.mrf.mxu0  ;;  %v9580_v63 = vld [vmem:[%s15543_s9 + $0x7b4] sm:$0xf] }
 0x785   : > { %v5936_v59 = vmax.f32 %v5826_v14, 0.0  ;;  %5698 = vmatmul.bf16.gmra.mxu3 %v8696_v41  ;;  %6667 = vmatpush.bf16.msrb.mxu2 %v14406_v40  ;;  %v9571_v40 = vld [vmem:[%s15543_s9 + $0x76c] sm:$0xf] }
 0x786   : > { %8944 = vmatmul.msk.bf16.gmra.mxu0 %vm4278_vm5, %v8772_v3 }
 0x787   : > { %v14503_v32 = vpack.c.bf16 %v5936_v59, %v5935_v23  ;;  %v8843_v23 = vld [vmem:[%s15543_s9 + $0x848] sm:$0xf] }
 0x788   : > { %v5659_v34 = vpop.f32.mrf.mxu3  ;;  %6618 = vmatmul.bf16.gmra.mxu1 %v9064_v38  ;;  %v8969_v38 = vld [vmem:[%s15545_s11 + $0x30] sm:$0xf0] }
 0x789   : > { %v5660_v6 = vadd.f32 %v5659_v34, %v14021_v60  ;;  %6668 = vmatpush.bf16.msrb.mxu2 %v14377_v9  ;;  %v9079_v60 = vld [vmem:[%s15545_s11 + $0x100] sm:$0xf]  ;;  %v8972_v3 = vor.u32 %v9626_v31, %v8969_v38  ;;  %v9598_v31 = vld [vmem:[%s15543_s9 + $0x844] sm:$0xf]  ;;  %v8837_v38 = vld [vmem:[%s15543_s9 + $0x864] sm:$0xf0] }
 0x78b   : > { %v5829_v10 = vadd.f32 %v5828_v61, %v5660_v6  ;;  %v14507_v43 = vpop.f32.mrf.mxu0  ;;  %v8732_v61 = vor.u32 %v9571_v40, %v8729_v24  ;;  %v9603_v6 = vld [vmem:[%s15543_s9 + $0x868] sm:$0xf0] }
 0x78c   : > { %v8844_v24 = vor.u32 %v9603_v6, %v8843_v23  ;;  %v9668_v6 = vld [vmem:[%s15545_s11 + $0x16c] sm:$0xf0] }
 0x78d   : > { %6669 = vmatpush.bf16.msrb.mxu2 %v14345_v8  ;;  %v9656_v8 = vld [vmem:[%s15545_s11 + $0x10c] sm:$0xf0]  ;;  %v5937_v15 = vmax.f32 %v5829_v10, 0.0 }
 0x790   : > { %v5661_v54 = vpop.f32.mrf.mxu3 }
 0x791   : > { %v5662_v9 = vadd.f32 %v5661_v54, %v14037_v17  ;;  %6670 = vmatpush.bf16.msrb.mxu2 %v14313_v13  ;;  %v8807_v17 = vld [vmem:[%s15543_s9 + $0x800] sm:$0xf]  ;;  %v9080_v13 = vor.u32 %v9656_v8, %v9079_v60  ;;  %v9589_v8 = vld [vmem:[%s15543_s9 + $0x7fc] sm:$0xf] }
 0x792   : > { %v8808_v30 = vor.u32 %v9594_v39, %v8807_v17 }
 0x793   : > { %v5831_v22 = vadd.f32 %v14452_v56, %v5662_v9  ;;  %v14534_v55 = vpop.f32.mrf.mxu0 }
 0x795   : > { %v5938_v36 = vmax.f32 %v5831_v22, 0.0  ;;  %5703 = vmatmul.bf16.gmra.mxu3 %v8732_v61  ;;  %6671 = vmatpush.bf16.msrb.mxu2 %v14277_v51  ;;  %v8765_v51 = vld [vmem:[%s15543_s9 + $0x7d4] sm:$0xf0]  ;;  %v9111_v22 = vld [vmem:[%s15545_s11 + $0x140] sm:$0xf] }
 0x796   : > { %8945 = vmatmul.msk.bf16.gmra.mxu0 %vm4278_vm5, %v8808_v30 }
 0x797   : > { %v14541_v56 = vpack.c.bf16 %v5938_v36, %v5937_v15  ;;  %v8879_v15 = vld [vmem:[%s15543_s9 + $0x890] sm:$0xf] }
 0x798   : > { %v5664_v57 = vpop.f32.mrf.mxu3  ;;  %6623 = vmatmul.bf16.gmra.mxu1 %v9080_v13  ;;  %6672 = vmatmul.bf16.vlgmr.msrb.gmra.mxu2 %v8956_v4  ;;  %v9630_v13 = vld [vmem:[%s15545_s11 + $0x44] sm:$0xf]  ;;  %v8985_v4 = vld [vmem:[%s15545_s11 + $0x50] sm:$0xf0] }
 0x799   : > { %v5665_v7 = vadd.f32 %v5664_v57, %v14050_v35  ;;  %v8768_v35 = vor.u32 %v9580_v63, %v8765_v51  ;;  %v8988_v36 = vor.u32 %v9630_v13, %v8985_v4  ;;  %v9612_v57 = vld [vmem:[%s15543_s9 + $0x8b0] sm:$0xf0]  ;;  %v15886_v13 = vld [vmem:[#allocation102_spill] sm:$0xff]  ;;  %v15887_v4 = vld [vmem:[#allocation53_spill] sm:$0xff] }
 0x79a   : > { %v8880_v63 = vor.u32 %v9612_v57, %v8879_v15  ;;  %v15888_v57 = vld [vmem:[#allocation32_spill] sm:$0xff] }
 0x79b   : > { %v5834_v16 = vadd.f32 %v14471_v50, %v5665_v7  ;;  %v14545_v29 = vpop.f32.mrf.mxu0  ;;  %v9660_v50 = vld [vmem:[%s15545_s11 + $0x12c] sm:$0xf0] }
 0x79c   : > { %v9096_v59 = vor.u32 %v9660_v50, %v9095_v46  ;;  %v14614_v46 = vpop.f32.mrf.mxu1 }
 0x79d   : > { %v5939_v10 = vmax.f32 %v5834_v16, 0.0 }
 0x7a0   : > { %v5666_v41 = vpop.f32.mrf.mxu3 }
 0x7a1   : > { %v5667_v14 = vadd.f32 %v5666_v41, %v15883_v58 }
 0x7a3   : > { %v5836_v53 = vadd.f32 %v14478_v27, %v5667_v14  ;;  %v14570_v34 = vpop.f32.mrf.mxu0  ;;  %v15884_v14 = vld [vmem:[#allocation97_spill] sm:$0xff] }
 0x7a5   : > { %v5940_v40 = vmax.f32 %v5836_v53, 0.0  ;;  %5708 = vmatmul.bf16.gmra.mxu3 %v8768_v35  ;;  %v15885_v35 = vld [vmem:[#allocation54_spill] sm:$0xff] }
 0x7a6   : > { %8946 = vmatmul.msk.bf16.gmra.mxu0 %vm4278_vm5, %v8844_v24  ;;  %v5339_v50 = vadd.f32 %v15885_v35, %v15884_v14  ;;  %v9638_v14 = vld [vmem:[%s15545_s11 + $0x84] sm:$0xf]  ;;  %v9017_v35 = vld [vmem:[%s15545_s11 + $0x90] sm:$0xf0] }
 0x7a7   : > { %v14576_v54 = vpack.c.bf16 %v5940_v40, %v5939_v10  ;;  %v9634_v10 = vld [vmem:[%s15545_s11 + $0x64] sm:$0xf]  ;;  %v9001_v40 = vld [vmem:[%s15545_s11 + $0x70] sm:$0xf0] }
 0x7a8   : > { %v5669_v27 = vpop.f32.mrf.mxu3  ;;  %6628 = vmatmul.bf16.gmra.mxu1 %v9096_v59  ;;  %6677 = vmatmul.bf16.gmra.mxu2 %v8972_v3  ;;  %v5508_v23 = vadd.f32 %v14131_v52, %v5339_v50  ;;  %v8840_v3 = vor.u32 %v9598_v31, %v8837_v38  ;;  %v14640_v52 = vpop.f32.mrf.mxu1 }
 0x7a9   : > { %v5670_v60 = vadd.f32 %v5669_v27, %v14081_v48  ;;  %v8804_v48 = vor.u32 %v9589_v8, %v8801_v0  ;;  %v8915_v27 = vld [vmem:[%s15543_s9 + $0x8d8] sm:$0xf]  ;;  %v9621_v8 = vld [vmem:[%s15543_s9 + $0x8f8] sm:$0xf0] }
 0x7ab   : > { %v5839_v9 = vadd.f32 %v14496_v20, %v5670_v60  ;;  %v14580_v61 = vpop.f32.mrf.mxu0  ;;  %v9664_v20 = vld [vmem:[%s15545_s11 + $0x14c] sm:$0xf0] }
 0x7ad   : > { %v5941_v7 = vmax.f32 %v5839_v9, 0.0  ;;  %v9004_v9 = vor.u32 %v9634_v10, %v9001_v40  ;;  %v15889_v10 = vld [vmem:[#allocation50_spill] sm:$0xff]  ;;  %v15890_v40 = vld [vmem:[#allocation55_spill] sm:$0xff] }
 0x7b0   : > { %v5671_v25 = vpop.f32.mrf.mxu3 }
 0x7b1   : > { %v5672_v17 = vadd.f32 %v5671_v25, %v14100_v33  ;;  %v9112_v33 = vor.u32 %v9664_v20, %v9111_v22  ;;  %v8916_v22 = vor.u32 %v9621_v8, %v8915_v27  ;;  %v14652_v20 = vpop.f32.mrf.mxu1 }
 0x7b3   : > { %v5841_v39 = vadd.f32 %v14507_v43, %v5672_v17  ;;  %v14605_v30 = vpop.f32.mrf.mxu0 }
 0x7b5   : > { %v5942_v16 = vmax.f32 %v5841_v39, 0.0  ;;  %5713 = vmatmul.bf16.gmra.mxu3 %v8804_v48  ;;  %v5344_v39 = vadd.f32 %v15887_v4, %v15886_v13  ;;  %v9676_v4 = vld [vmem:[%s15545_s11 + $0x1ac] sm:$0xf0] }
 0x7b6   : > { %8947 = vmatmul.msk.bf16.gmra.mxu0 %vm4278_vm5, %v8880_v63  ;;  %v9143_v63 = vld [vmem:[%s15545_s11 + $0x180] sm:$0xf] }
 0x7b7   : > { %v14611_v51 = vpack.c.bf16 %v5942_v16, %v5941_v7  ;;  %v5513_v7 = vadd.f32 %v15888_v57, %v5344_v39  ;;  %v9642_v39 = vld [vmem:[%s15545_s11 + $0xa4] sm:$0xf] }
 0x7b8   : > { %v5674_v43 = vpop.f32.mrf.mxu3  ;;  %6633 = vmatmul.bf16.gmra.mxu1 %v9112_v33  ;;  %6682 = vmatmul.bf16.gmra.mxu2 %v8988_v36  ;;  %v9607_v33 = vld [vmem:[%s15543_s9 + $0x88c] sm:$0xf]  ;;  %v8873_v36 = vld [vmem:[%s15543_s9 + $0x8ac] sm:$0xf0] }
 0x7b9   : > { %v5675_v41 = vadd.f32 %v5674_v43, %v14113_v47 }
 0x7bb   : > { %v5844_v58 = vadd.f32 %v14534_v55, %v5675_v41  ;;  %v14625_v53 = vpop.f32.mrf.mxu0  ;;  %v9127_v55 = vld [vmem:[%s15545_s11 + $0x160] sm:$0xf] }
 0x7bc   : > { %v9128_v60 = vor.u32 %v9668_v6, %v9127_v55  ;;  %v14678_v55 = vpop.f32.mrf.mxu1 }
 0x7bd   : > { %v5943_v0 = vmax.f32 %v5844_v58, 0.0  ;;  %v8876_v58 = vor.u32 %v9607_v33, %v8873_v36 }
 0x7c0   : > { %v5676_v47 = vpop.f32.mrf.mxu3 }
 0x7c1   : > { %v5677_v59 = vadd.f32 %v5676_v47, %v5508_v23  ;;  %v9020_v23 = vor.u32 %v9638_v14, %v9017_v35  ;;  %v15893_v14 = vld [vmem:[#allocation20_spill] sm:$0xff] }
 0x7c2   : > { %v15894_v35 = vld [vmem:[#allocation100_spill] sm:$0xff] }
 0x7c3   : > { %v5846_v24 = vadd.f32 %v14545_v29, %v5677_v59  ;;  %v5858_v29 = vpop.f32.mrf.mxu0 }
 0x7c5   : > { %v5944_v25 = vmax.f32 %v5846_v24, 0.0  ;;  %5718 = vmatmul.bf16.gmra.mxu3 %v8840_v3  ;;  %v5349_v24 = vadd.f32 %v15890_v40, %v15889_v10 }
 0x7c6   : > { %8948 = vmatmul.msk.bf16.gmra.mxu0 %vm4278_vm5, %v8916_v22  ;;  %v9159_v22 = vld [vmem:[%s15545_s11 + $0x1a0] sm:$0xf] }
 0x7c7   : > { %v14650_v17 = vpack.c.bf16 %v5944_v25, %v5943_v0  ;;  %v14692_v0 = vpop.f32.mrf.mxu1  ;;  %v9160_v36 = vor.u32 %v9676_v4, %v9159_v22 }
 0x7c8   : > { %v5679_v48 = vpop.f32.mrf.mxu3  ;;  %6638 = vmatmul.bf16.gmra.mxu1 %v9128_v60  ;;  %6687 = vmatmul.bf16.gmra.mxu2 %v9004_v9  ;;  %v8909_v60 = vld [vmem:[%s15543_s9 + $0x8f4] sm:$0xf0]  ;;  %v15891_v9 = vld [vmem:[#allocation98_spill] sm:$0xff] }
 0x7c9   : > { %v5680_v15 = vadd.f32 %v5679_v48, %v14144_v28  ;;  %v9672_v28 = vld [vmem:[%s15545_s11 + $0x18c] sm:$0xf0]  ;;  %v5518_v8 = vadd.f32 %v15891_v9, %v5349_v24 }
 0x7ca   : > { %v9144_v38 = vor.u32 %v9672_v28, %v9143_v63  ;;  %v9680_v24 = vld [vmem:[%s15545_s11 + $0x1cc] sm:$0xf0] }
 0x7cb   : > { %v5849_v43 = vadd.f32 %v14570_v34, %v5680_v15  ;;  %v5860_v50 = vpop.f32.mrf.mxu0  ;;  %v9033_v15 = vld [vmem:[%s15545_s11 + $0xb0] sm:$0xf0] }
 0x7cc   : > { %v9036_v57 = vor.u32 %v9642_v39, %v9033_v15  ;;  %v15896_v39 = vld [vmem:[#allocation47_spill] sm:$0xff]  ;;  %v15897_v15 = vld [vmem:[#allocation58_spill] sm:$0xff] }
 0x7cd   : > { %v5945_v34 = vmax.f32 %v5849_v43, 0.0 }
 0x7d0   : > { %v5681_v16 = vpop.f32.mrf.mxu3 }
 0x7d1   : > { %v5682_v41 = vadd.f32 %v5681_v16, %v5513_v7 }
 0x7d3   : > { %v5851_v31 = vadd.f32 %v14580_v61, %v5682_v41  ;;  %v5863_v6 = vpop.f32.mrf.mxu0  ;;  %v9616_v61 = vld [vmem:[%s15543_s9 + $0x8d4] sm:$0xf]  ;;  %v14708_v41 = vpop.f32.mrf.mxu1 }
 0x7d4   : > { %v8912_v13 = vor.u32 %v9616_v61, %v8909_v60 }
 0x7d5   : > { %v5946_v47 = vmax.f32 %v5851_v31, 0.0  ;;  %5723 = vmatmul.bf16.gmra.mxu3 %v8876_v58  ;;  %v15892_v58 = vld [vmem:[#allocation56_spill] sm:$0xff]  ;;  %v5354_v31 = vadd.f32 %v15894_v35, %v15893_v14 }
 0x7d6   : > { %v5521_v28 = vadd.f32 %v14200_v2, %v15892_v58  ;;  %v9646_v2 = vld [vmem:[%s15545_s11 + $0xc4] sm:$0xf] }
 0x7d7   : > { %v14680_v59 = vpack.c.bf16 %v5946_v47, %v5945_v34  ;;  %v9175_v47 = vld [vmem:[%s15545_s11 + $0x1c0] sm:$0xf] }
 0x7d8   : > { %v5684_v3 = vpop.f32.mrf.mxu3  ;;  %6643 = vmatmul.bf16.gmra.mxu1 %v9144_v38  ;;  %6692 = vmatmul.bf16.gmra.mxu2 %v9020_v23  ;;  %v9176_v9 = vor.u32 %v9680_v24, %v9175_v47  ;;  %v15898_v47 = vld [vmem:[#allocation39_spill] sm:$0xff] }
 0x7d9   : > { %v5685_v27 = vadd.f32 %v5684_v3, %v14175_v11 }
 0x7db   : > { %v5854_v48 = vadd.f32 %v14605_v30, %v5685_v27  ;;  %v5865_v16 = vpop.f32.mrf.mxu0  ;;  %v9049_v27 = vld [vmem:[%s15545_s11 + $0xd0] sm:$0xf0]  ;;  %v14727_v60 = vpop.f32.mrf.mxu1 }
 0x7dd   : > { %v5947_v7 = vmax.f32 %v5854_v48, 0.0 }
 0x7e0   : > { %v5686_v25 = vpop.f32.mrf.mxu3 }
 0x7e1   : > { %v5687_v11 = vadd.f32 %v5686_v25, %v5518_v8  ;;  %v9052_v8 = vor.u32 %v9646_v2, %v9049_v27  ;;  %v9654_v27 = vld [vmem:[%s15545_s11 + $0x104] sm:$0xf] }
 0x7e3   : > { %v5856_v33 = vadd.f32 %v14625_v53, %v5687_v11  ;;  %v15895_v53 = vld [vmem:[#allocation38_spill] sm:$0xff]  ;;  %v5868_v3 = vpop.f32.mrf.mxu0 }
 0x7e4   : > { %v5523_v23 = vadd.f32 %v15895_v53, %v5354_v31 }
 0x7e5   : > { %v5948_v30 = vmax.f32 %v5856_v33, 0.0  ;;  %5728 = vmatmul.bf16.gmra.mxu3 %v8912_v13  ;;  %v5359_v33 = vadd.f32 %v15897_v15, %v15896_v39 }
 0x7e7   : > { %v6085_v63 = vpack.c.bf16 %v5948_v30, %v5947_v7  ;;  %v9191_v30 = vld [vmem:[%s15545_s11 + $0x1e0] sm:$0xf] }
 0x7e8   : > { %v5689_v43 = vpop.f32.mrf.mxu3  ;;  %6648 = vmatmul.bf16.gmra.mxu1 %v9160_v36  ;;  %6697 = vmatmul.bf16.gmra.mxu2 %v9036_v57  ;;  %v5528_v36 = vadd.f32 %v14230_v1, %v5359_v33  ;;  %v14735_v57 = vpop.f32.mrf.mxu2  ;;  %v9065_v1 = vld [vmem:[%s15545_s11 + $0xf0] sm:$0xf0] }
 0x7e9   : > { %v5690_v38 = vadd.f32 %v5689_v43, %v5521_v28 }
 0x7eb   : > { %v5859_v10 = vadd.f32 %v5858_v29, %v5690_v38  ;;  %v5870_v13 = vpop.f32.mrf.mxu0 }
 0x7ed   : > { %v5949_v25 = vmax.f32 %v5859_v10, 0.0  ;;  %v15899_v10 = vld [vmem:[#allocation16_spill] sm:$0xff] }
 0x7f0   : > { %v5691_v34 = vpop.f32.mrf.mxu3 }
 0x7f1   : > { %v5692_v40 = vadd.f32 %v5691_v34, %v5523_v23  ;;  %v14755_v23 = vpop.f32.mrf.mxu2 }
 0x7f3   : > { %v5861_v61 = vadd.f32 %v5860_v50, %v5692_v40  ;;  %v14732_v50 = vpop.f32.mrf.mxu1  ;;  %v5873_v14 = vpop.f32.mrf.mxu0  ;;  %v5364_v40 = vadd.f32 %v15899_v10, %v15898_v47 }
 0x7f5   : > { %v5950_v29 = vmax.f32 %v5861_v61, 0.0  ;;  %v5533_v24 = vadd.f32 %v14253_v18, %v5364_v40  ;;  %v9625_v18 = vld [vmem:[%s15545_s11 + $0x14] sm:$0xf0] }
 0x7f7   : > { %v6086_v22 = vpack.c.bf16 %v5950_v29, %v5949_v25 }
 0x7f8   : > { %v5694_v48 = vpop.f32.mrf.mxu3  ;;  %6653 = vmatmul.bf16.gmra.mxu1 %v9176_v9  ;;  %6702 = vmatmul.bf16.gmra.mxu2 %v9052_v8 }
 0x7f9   : > { %v5695_v11 = vadd.f32 %v5694_v48, %v14224_v26  ;;  %6753 = vmatpush.bf16.msra.mxu3 %v6086_v22  ;;  %v9684_v26 = vld [vmem:[%s15545_s11 + $0x1ec] sm:$0xf0] }
 0x7fa   : > { %v9192_v58 = vor.u32 %v9684_v26, %v9191_v30  ;;  %v9658_v26 = vld [vmem:[%s15545_s11 + $0x124] sm:$0xf] }
 0x7fb   : > { %v5864_v4 = vadd.f32 %v5863_v6, %v5695_v11  ;;  %v9650_v6 = vld [vmem:[%s15545_s11 + $0xe4] sm:$0xf]  ;;  %v14753_v38 = vpop.f32.mrf.mxu1 }
 0x7fc   : > { %v9068_v28 = vor.u32 %v9650_v6, %v9065_v1  ;;  %v9629_v1 = vld [vmem:[%s15545_s11 + $0x34] sm:$0xf0] }
 0x7fd   : > { %6754 = vmatpush.bf16.msra.mxu3 %v6085_v63  ;;  %v5951_v35 = vmax.f32 %v5864_v4, 0.0  ;;  %v15900_v4 = vld [vmem:[#allocation80_spill] sm:$0xff] }
 0x7fe   : > { %v6585_v39 = vadd.f32 %v14640_v52, %v15900_v4  ;;  %v8975_v52 = vld [vmem:[%s15545_s11 + $0x28] sm:$0xf] }
 0x800   : > { %v5696_v7 = vpop.f32.mrf.mxu3 }
 0x801   : > { %v5697_v43 = vadd.f32 %v5696_v7, %v5528_v36  ;;  %6755 = vmatpush.bf16.msra.mxu3 %v14680_v59  ;;  %v15901_v36 = vld [vmem:[#allocation19_spill] sm:$0xff]  ;;  %v15902_v7 = vld [vmem:[#allocation104_spill] sm:$0xff] }
 0x802   : > { %v5369_v30 = vadd.f32 %v15902_v7, %v15901_v36 }
 0x803   : > { %v5866_v63 = vadd.f32 %v5865_v16, %v5697_v43  ;;  %v14805_v47 = vpop.f32.mrf.mxu1 }
 0x805   : > { %v5952_v31 = vmax.f32 %v5866_v63, 0.0  ;;  %6756 = vmatpush.bf16.msra.mxu3 %v14650_v17  ;;  %v5875_v17 = vpop.f32.mrf.mxu0  ;;  %v15903_v63 = vld [vmem:[#allocation82_spill] sm:$0xff] }
 0x807   : > { %v14751_v59 = vpack.c.bf16 %v5952_v31, %v5951_v35 }
 0x808   : > { %v5699_v53 = vpop.f32.mrf.mxu3  ;;  %6658 = vmatmul.bf16.gmra.mxu1 %v9192_v58  ;;  %6707 = vmatmul.bf16.gmra.mxu2 %v9068_v28 }
 0x809   : > { %v5700_v34 = vadd.f32 %v5699_v53, %v14244_v42  ;;  %6757 = vmatpush.bf16.msra.mxu3 %v14611_v51  ;;  %v9081_v42 = vld [vmem:[%s15545_s11 + $0x110] sm:$0xf0]  ;;  %v8959_v51 = vld [vmem:[%s15545_s11 + $0x8] sm:$0xf]  ;;  %v8976_v53 = vor.u32 %v9629_v1, %v8975_v52 }
 0x80a   : > { %v9084_v9 = vor.u32 %v9654_v27, %v9081_v42  ;;  %v8960_v8 = vor.u32 %v9625_v18, %v8959_v51  ;;  %v15905_v51 = vld [vmem:[#allocation103_spill] sm:$0xff]  ;;  %v15906_v18 = vld [vmem:[#allocation42_spill] sm:$0xff] }
 0x80b   : > { %v5869_v16 = vadd.f32 %v5868_v3, %v5700_v34 }
 0x80d   : > { %6758 = vmatpush.bf16.msra.mxu3 %v14576_v54  ;;  %v14776_v54 = vpop.f32.mrf.mxu2  ;;  %v5953_v25 = vmax.f32 %v5869_v16, 0.0  ;;  %v5878_v48 = vpop.f32.mrf.mxu0 }
 0x810   : > { %v5701_v2 = vpop.f32.mrf.mxu3 }
 0x811   : > { %v5702_v61 = vadd.f32 %v5701_v2, %v5533_v24  ;;  %6759 = vmatpush.bf16.msra.mxu3 %v14541_v56  ;;  %v15904_v2 = vld [vmem:[#allocation75_spill] sm:$0xff] }
 0x813   : > { %v5871_v3 = vadd.f32 %v5870_v13, %v5702_v61 }
 0x815   : > { %v5954_v29 = vmax.f32 %v5871_v3, 0.0  ;;  %6760 = vmatpush.bf16.msra.mxu3 %v14503_v32  ;;  %v5538_v32 = vadd.f32 %v14281_v5, %v5369_v30  ;;  %v6587_v5 = vadd.f32 %v14652_v20, %v15903_v63  ;;  %v5880_v58 = vpop.f32.mrf.mxu0  ;;  %v6590_v20 = vadd.f32 %v14678_v55, %v15904_v2  ;;  %v9113_v55 = vld [vmem:[%s15545_s11 + $0x150] sm:$0xf0] }
 0x816   : > { %v5374_v3 = vadd.f32 %v15906_v18, %v15905_v51 }
 0x817   : > { %v14779_v56 = vpack.c.bf16 %v5954_v29, %v5953_v25 }
 0x818   : > { %v5704_v22 = vpop.f32.mrf.mxu3  ;;  %6712 = vmatmul.bf16.gmra.mxu2 %v9084_v9  ;;  %6761 = vmatmul.bf16.vlgmr.msra.gmra.mxu3 %v8960_v8  ;;  %v5543_v9 = vadd.f32 %v14317_v44, %v5374_v3  ;;  %v14817_v8 = vpop.f32.mrf.mxu1  ;;  %v9633_v44 = vld [vmem:[%s15545_s11 + $0x54] sm:$0xf0] }
 0x819   : > { %v5705_v11 = vadd.f32 %v5704_v22, %v14268_v21  ;;  %v9097_v21 = vld [vmem:[%s15545_s11 + $0x130] sm:$0xf0]  ;;  %v8991_v22 = vld [vmem:[%s15545_s11 + $0x48] sm:$0xf] }
 0x81a   : > { %v9100_v31 = vor.u32 %v9658_v26, %v9097_v21  ;;  %v8992_v36 = vor.u32 %v9633_v44, %v8991_v22  ;;  %v15908_v21 = vld [vmem:[#allocation73_spill] sm:$0xff] }
 0x81b   : > { %v5874_v15 = vadd.f32 %v5873_v14, %v5705_v11  ;;  %v6673_v33 = vpop.f32.mrf.mxu2  ;;  %v6595_v52 = vadd.f32 %v14708_v41, %v15908_v21  ;;  %v9129_v41 = vld [vmem:[%s15545_s11 + $0x170] sm:$0xf0] }
 0x81c   : > { %v14784_v13 = vadd.f32 %v6673_v33, %v6585_v39 }
 0x81d   : > { %v5955_v34 = vmax.f32 %v5874_v15, 0.0  ;;  %v5883_v42 = vpop.f32.mrf.mxu0 }
 0x820   : > { %v5706_v43 = vpop.f32.mrf.mxu3 }
 0x821   : > { %v5707_v6 = vadd.f32 %v5706_v43, %v5538_v32 }
 0x823   : > { %v5876_v28 = vadd.f32 %v5875_v17, %v5707_v6  ;;  %v6675_v14 = vpop.f32.mrf.mxu2 }
 0x824   : > { %v14803_v35 = vadd.f32 %v6675_v14, %v6587_v5 }
 0x825   : > { %v5956_v16 = vmax.f32 %v5876_v28, 0.0  ;;  %v5885_v32 = vpop.f32.mrf.mxu0  ;;  %v15910_v28 = vld [vmem:[#allocation36_spill] sm:$0xff] }
 0x827   : > { %v14807_v10 = vpack.c.bf16 %v5956_v16, %v5955_v34  ;;  %v9666_v34 = vld [vmem:[%s15545_s11 + $0x164] sm:$0xf] }
 0x828   : > { %v5709_v40 = vpop.f32.mrf.mxu3  ;;  %6717 = vmatmul.bf16.gmra.mxu2 %v9100_v31  ;;  %6766 = vmatmul.bf16.gmra.mxu3 %v8976_v53  ;;  %v9132_v51 = vor.u32 %v9666_v34, %v9129_v41  ;;  %v15916_v41 = vld [vmem:[#allocation63_spill] sm:$0xff] }
 0x829   : > { %v5710_v24 = vadd.f32 %v5709_v40, %v14304_v37  ;;  %v9662_v37 = vld [vmem:[%s15545_s11 + $0x144] sm:$0xf]  ;;  %v9007_v40 = vld [vmem:[%s15545_s11 + $0x68] sm:$0xf] }
 0x82a   : > { %v9116_v33 = vor.u32 %v9662_v37, %v9113_v55 }
 0x82b   : > { %v5879_v17 = vadd.f32 %v5878_v48, %v5710_v24  ;;  %v6678_v27 = vpop.f32.mrf.mxu2  ;;  %v15907_v48 = vld [vmem:[#allocation77_spill] sm:$0xff]  ;;  %v9637_v24 = vld [vmem:[%s15545_s11 + $0x74] sm:$0xf0] }
 0x82c   : > { %v14812_v61 = vadd.f32 %v6678_v27, %v6590_v20  ;;  %v6592_v11 = vadd.f32 %v14692_v0, %v15907_v48  ;;  %v14840_v0 = vpop.f32.mrf.mxu1  ;;  %v9008_v18 = vor.u32 %v9637_v24, %v9007_v40  ;;  %v15913_v48 = vld [vmem:[#allocation105_spill] sm:$0xff]  ;;  %v6605_v40 = vadd.f32 %v14805_v47, %v15916_v41  ;;  %v9161_v47 = vld [vmem:[%s15545_s11 + $0x1b0] sm:$0xf0] }
 0x82d   : > { %v5957_v7 = vmax.f32 %v5879_v17, 0.0 }
 0x830   : > { %v5711_v25 = vpop.f32.mrf.mxu3 }
 0x831   : > { %v5712_v29 = vadd.f32 %v5711_v25, %v5543_v9 }
 0x833   : > { %v5881_v4 = vadd.f32 %v5880_v58, %v5712_v29  ;;  %v6680_v39 = vpop.f32.mrf.mxu2  ;;  %v15909_v58 = vld [vmem:[#allocation22_spill] sm:$0xff]  ;;  %v15912_v29 = vld [vmem:[#allocation68_spill] sm:$0xff] }
 0x834   : > { %v14833_v15 = vadd.f32 %v6680_v39, %v6592_v11  ;;  %v5379_v14 = vadd.f32 %v15910_v28, %v15909_v58  ;;  %v14861_v27 = vpop.f32.mrf.mxu1  ;;  %v6600_v55 = vadd.f32 %v14732_v50, %v15912_v29  ;;  %v15914_v11 = vld [vmem:[#allocation35_spill] sm:$0xff] }
 0x835   : > { %v5958_v30 = vmax.f32 %v5881_v4, 0.0  ;;  %v5384_v4 = vadd.f32 %v15914_v11, %v15913_v48 }
 0x836   : > { %v5548_v31 = vadd.f32 %v14349_v49, %v5379_v14  ;;  %v15911_v49 = vld [vmem:[#allocation72_spill] sm:$0xff] }
 0x837   : > { %v14835_v43 = vpack.c.bf16 %v5958_v30, %v5957_v7  ;;  %v6597_v2 = vadd.f32 %v14727_v60, %v15911_v49  ;;  %v9670_v30 = vld [vmem:[%s15545_s11 + $0x184] sm:$0xf]  ;;  %v15917_v49 = vld [vmem:[#allocation106_spill] sm:$0xff] }
 0x838   : > { %v5714_v26 = vpop.f32.mrf.mxu3  ;;  %6722 = vmatmul.bf16.gmra.mxu2 %v9116_v33  ;;  %6771 = vmatmul.bf16.gmra.mxu3 %v8992_v36  ;;  %v5553_v36 = vadd.f32 %v14381_v62, %v5384_v4  ;;  %v15915_v62 = vld [vmem:[#allocation70_spill] sm:$0xff] }
 0x839   : > { %v5715_v6 = vadd.f32 %v5714_v26, %v14337_v45  ;;  %v5888_v45 = vpop.f32.mrf.mxu0  ;;  %v9145_v26 = vld [vmem:[%s15545_s11 + $0x190] sm:$0xf0]  ;;  %v6602_v21 = vadd.f32 %v14753_v38, %v15915_v62 }
 0x83a   : > { %v9148_v58 = vor.u32 %v9670_v30, %v9145_v26 }
 0x83b   : > { %v5884_v1 = vadd.f32 %v5883_v42, %v5715_v6  ;;  %v6683_v63 = vpop.f32.mrf.mxu2  ;;  %v9023_v6 = vld [vmem:[%s15545_s11 + $0x88] sm:$0xf] }
 0x83c   : > { %v14842_v5 = vadd.f32 %v6683_v63, %v6595_v52  ;;  %v14874_v33 = vpop.f32.mrf.mxu1 }
 0x83d   : > { %v5959_v3 = vmax.f32 %v5884_v1, 0.0 }
 0x840   : > { %v5716_v53 = vpop.f32.mrf.mxu3 }
 0x841   : > { %v5717_v16 = vadd.f32 %v5716_v53, %v5548_v31  ;;  %v5890_v22 = vpop.f32.mrf.mxu0 }
 0x843   : > { %v5886_v20 = vadd.f32 %v5885_v32, %v5717_v16  ;;  %v6685_v17 = vpop.f32.mrf.mxu2 }
 0x844   : > { %v14863_v42 = vadd.f32 %v6685_v17, %v6597_v2  ;;  %v15918_v2 = vld [vmem:[#allocation33_spill] sm:$0xff] }
 0x845   : > { %v5960_v9 = vmax.f32 %v5886_v20, 0.0  ;;  %v5389_v20 = vadd.f32 %v15918_v2, %v15917_v49 }
 0x847   : > { %v14865_v25 = vpack.c.bf16 %v5960_v9, %v5959_v3  ;;  %v9674_v9 = vld [vmem:[%s15545_s11 + $0x1a4] sm:$0xf] }
 0x848   : > { %v5719_v37 = vpop.f32.mrf.mxu3  ;;  %6727 = vmatmul.bf16.gmra.mxu2 %v9132_v51  ;;  %6776 = vmatmul.bf16.gmra.mxu3 %v9008_v18  ;;  %v5558_v18 = vadd.f32 %v14735_v57, %v5389_v20  ;;  %v9164_v48 = vor.u32 %v9674_v9, %v9161_v47  ;;  %v9071_v9 = vld [vmem:[%s15545_s11 + $0xe8] sm:$0xf] }
 0x849   : > { %v5720_v39 = vadd.f32 %v5719_v37, %v14369_v19  ;;  %v9641_v19 = vld [vmem:[%s15545_s11 + $0x94] sm:$0xf0]  ;;  %v5893_v14 = vpop.f32.mrf.mxu0 }
 0x84a   : > { %v9024_v28 = vor.u32 %v9641_v19, %v9023_v6  ;;  %v15920_v19 = vld [vmem:[#allocation34_spill] sm:$0xff] }
 0x84b   : > { %v6688_v60 = vpop.f32.mrf.mxu2  ;;  %v5889_v32 = vadd.f32 %v5888_v45, %v5720_v39  ;;  %v14893_v45 = vpop.f32.mrf.mxu1  ;;  %v5394_v62 = vadd.f32 %v14614_v46, %v15920_v19  ;;  %v9649_v46 = vld [vmem:[%s15545_s11 + $0xd4] sm:$0xf0] }
 0x84c   : > { %v14869_v44 = vadd.f32 %v6688_v60, %v6600_v55  ;;  %v9039_v55 = vld [vmem:[%s15545_s11 + $0xa8] sm:$0xf] }
 0x84d   : > { %v5961_v31 = vmax.f32 %v5889_v32, 0.0  ;;  %v15919_v32 = vld [vmem:[#allocation108_spill] sm:$0xff] }
 0x850   : > { %v5721_v7 = vpop.f32.mrf.mxu3 }
 0x851   : > { %v5722_v50 = vadd.f32 %v5721_v7, %v5553_v36  ;;  %v5895_v51 = vpop.f32.mrf.mxu0 }
 0x853   : > { %v5891_v52 = vadd.f32 %v5890_v22, %v5722_v50  ;;  %v6690_v1 = vpop.f32.mrf.mxu2  ;;  %v14915_v57 = vpop.f32.mrf.mxu1  ;;  %v5561_v50 = vadd.f32 %v14755_v23, %v15919_v32  ;;  %v9177_v23 = vld [vmem:[%s15545_s11 + $0x1d0] sm:$0xf0] }
 0x854   : > { %v14891_v63 = vadd.f32 %v6690_v1, %v6602_v21 }
 0x855   : > { %v5962_v53 = vmax.f32 %v5891_v52, 0.0  ;;  %v5563_v52 = vadd.f32 %v14776_v54, %v5394_v62  ;;  %v9103_v62 = vld [vmem:[%s15545_s11 + $0x128] sm:$0xf] }
 0x857   : > { %v6092_v34 = vpack.c.bf16 %v5962_v53, %v5961_v31  ;;  %v9055_v31 = vld [vmem:[%s15545_s11 + $0xc8] sm:$0xf] }
 0x858   : > { %v5724_v16 = vpop.f32.mrf.mxu3  ;;  %6732 = vmatmul.bf16.gmra.mxu2 %v9148_v58  ;;  %6781 = vmatmul.bf16.gmra.mxu3 %v9024_v28  ;;  %v9678_v58 = vld [vmem:[%s15545_s11 + $0x1c4] sm:$0xf] }
 0x859   : > { %v5725_v17 = vadd.f32 %v5724_v16, %v14400_v12  ;;  %v9645_v12 = vld [vmem:[%s15545_s11 + $0xb4] sm:$0xf0]  ;;  %v5898_v30 = vpop.f32.mrf.mxu0  ;;  %v9180_v41 = vor.u32 %v9678_v58, %v9177_v23 }
 0x85a   : > { %v9040_v11 = vor.u32 %v9645_v12, %v9039_v55 }
 0x85b   : > { %v6693_v24 = vpop.f32.mrf.mxu2  ;;  %v5894_v37 = vadd.f32 %v5893_v14, %v5725_v17  ;;  %v14923_v6 = vpop.f32.mrf.mxu1 }
 0x85c   : > { %v14897_v38 = vadd.f32 %v6693_v24, %v6605_v40  ;;  %v9056_v40 = vor.u32 %v9649_v46, %v9055_v31  ;;  %v15922_v31 = vld [vmem:[#allocation79_spill] sm:$0xff] }
 0x85d   : > { %v5963_v4 = vmax.f32 %v5894_v37, 0.0  ;;  %v9653_v37 = vld [vmem:[%s15545_s11 + $0xf4] sm:$0xf0] }
 0x85e   : > { %v9072_v55 = vor.u32 %v9653_v37, %v9071_v9 }
 0x860   : > { %v5726_v3 = vpop.f32.mrf.mxu3 }
 0x861   : > { %v5727_v29 = vadd.f32 %v5726_v3, %v5558_v18  ;;  %v5900_v54 = vpop.f32.mrf.mxu0  ;;  %v9682_v18 = vld [vmem:[%s15545_s11 + $0x1e4] sm:$0xf]  ;;  %v9193_v3 = vld [vmem:[%s15545_s11 + $0x1f0] sm:$0xf0] }
 0x862   : > { %v9196_v47 = vor.u32 %v9682_v18, %v9193_v3 }
 0x863   : > { %v5896_v22 = vadd.f32 %v5895_v51, %v5727_v29  ;;  %v14917_v60 = vpop.f32.mrf.mxu2  ;;  %v6624_v2 = vpop.f32.mrf.mxu1 }
 0x865   : > { %v5964_v39 = vmax.f32 %v5896_v22, 0.0  ;;  %v9087_v22 = vld [vmem:[%s15545_s11 + $0x108] sm:$0xf] }
 0x867   : > { %v6093_v36 = vpack.c.bf16 %v5964_v39, %v5963_v4 }
 0x868   : > { %v5729_v7 = vpop.f32.mrf.mxu3  ;;  %6737 = vmatmul.bf16.gmra.mxu2 %v9164_v48  ;;  %6786 = vmatmul.bf16.gmra.mxu3 %v9040_v11  ;;  %v9657_v48 = vld [vmem:[%s15545_s11 + $0x114] sm:$0xf0] }
 0x869   : > { %v5730_v21 = vadd.f32 %v5729_v7, %v5561_v50  ;;  %v9088_v4 = vor.u32 %v9657_v48, %v9087_v22 }
 0x86b   : > { %v14921_v26 = vpop.f32.mrf.mxu2  ;;  %v5899_v28 = vadd.f32 %v5898_v30, %v5730_v21  ;;  %v14944_v51 = vpop.f32.mrf.mxu1  ;;  %v9627_v21 = vld [vmem:[%s15545_s11 + $0x2c] sm:$0xf] }
 0x86d   : > { %v5965_v24 = vmax.f32 %v5899_v28, 0.0 }
 0x870   : > { %v5731_v1 = vpop.f32.mrf.mxu3 }
 0x871   : > { %v5732_v14 = vadd.f32 %v5731_v1, %v5563_v52  ;;  %v8977_v52 = vld [vmem:[%s15545_s11 + $0x38] sm:$0xf0] }
 0x873   : > { %v5901_v53 = vadd.f32 %v5900_v54, %v5732_v14  ;;  %v14940_v16 = vpop.f32.mrf.mxu2  ;;  %v8980_v14 = vor.u32 %v9627_v21, %v8977_v52 }
 0x875   : > { %v5966_v49 = vmax.f32 %v5901_v53, 0.0 }
 0x877   : > { %v6094_v20 = vpack.c.bf16 %v5966_v49, %v5965_v24  ;;  %v9665_v24 = vld [vmem:[%s15545_s11 + $0x154] sm:$0xf0]  ;;  %v9631_v49 = vld [vmem:[%s15545_s11 + $0x4c] sm:$0xf] }
 0x878   : > { %6742 = vmatmul.bf16.gmra.mxu2 %v9180_v41  ;;  %6791 = vmatmul.bf16.gmra.mxu3 %v9056_v40 }
 0x879   : > { %6842 = vmatpush.bf16.msra.mxu1 %v6094_v20 }
 0x87b   : > { %v14942_v17 = vpop.f32.mrf.mxu2 }
 0x87d   : > { %6843 = vmatpush.bf16.msra.mxu1 %v6093_v36 }
 0x881   : > { %6844 = vmatpush.bf16.msra.mxu1 %v6092_v34  ;;  %v6629_v34 = vpop.f32.mrf.mxu1 }
 0x882   : > { %v6630_v46 = vadd.f32 %v6629_v34, %v15922_v31 }
 0x883   : > { %v14958_v29 = vpop.f32.mrf.mxu2 }
 0x885   : > { %6845 = vmatpush.bf16.msra.mxu1 %v14865_v25  ;;  %v9623_v25 = vld [vmem:[%s15545_s11 + $0xc] sm:$0xf] }
 0x888   : > { %6747 = vmatmul.bf16.gmra.mxu2 %v9196_v47  ;;  %6796 = vmatmul.bf16.gmra.mxu3 %v9072_v55  ;;  %v15923_v47 = vld [vmem:[#allocation74_spill] sm:$0xff] }
 0x889   : > { %6846 = vmatpush.bf16.msra.mxu1 %v14835_v43  ;;  %v8961_v43 = vld [vmem:[%s15545_s11 + $0x18] sm:$0xf0] }
 0x88a   : > { %v8964_v39 = vor.u32 %v9623_v25, %v8961_v43 }
 0x88b   : > { %v14962_v12 = vpop.f32.mrf.mxu2 }
 0x88d   : > { %6847 = vmatpush.bf16.msra.mxu1 %v14807_v10  ;;  %v14980_v10 = vpop.f32.mrf.mxu1 }
 0x891   : > { %6848 = vmatpush.bf16.msra.mxu1 %v14779_v56  ;;  %v15921_v56 = vld [vmem:[#allocation81_spill] sm:$0xff] }
 0x892   : > { %v6625_v36 = vadd.f32 %v6624_v2, %v15921_v56  ;;  %v8993_v2 = vld [vmem:[%s15545_s11 + $0x58] sm:$0xf0] }
 0x893   : > { %v14978_v11 = vpop.f32.mrf.mxu2  ;;  %v8996_v37 = vor.u32 %v9631_v49, %v8993_v2  ;;  %v9009_v56 = vld [vmem:[%s15545_s11 + $0x78] sm:$0xf0] }
 0x895   : > { %6849 = vmatpush.bf16.msra.mxu1 %v14751_v59  ;;  %v6634_v19 = vpop.f32.mrf.mxu1  ;;  %v9661_v59 = vld [vmem:[%s15545_s11 + $0x134] sm:$0xf0] }
 0x896   : > { %v9104_v28 = vor.u32 %v9661_v59, %v9103_v62  ;;  %v6635_v55 = vadd.f32 %v6634_v19, %v15923_v47  ;;  %v15924_v59 = vld [vmem:[#allocation69_spill] sm:$0xff] }
 0x898   : > { %6801 = vmatmul.bf16.gmra.mxu3 %v9088_v4  ;;  %6850 = vmatmul.bf16.vlgmr.msra.gmra.mxu1 %v8964_v39  ;;  %v9669_v4 = vld [vmem:[%s15545_s11 + $0x174] sm:$0xf0]  ;;  %v9635_v39 = vld [vmem:[%s15545_s11 + $0x6c] sm:$0xf] }
 0x899   : > { %v9012_v19 = vor.u32 %v9635_v39, %v9009_v56 }
 0x89b   : > { %v6713_v7 = vpop.f32.mrf.mxu2  ;;  %v6762_v30 = vpop.f32.mrf.mxu3 }
 0x89c   : > { %v14984_v32 = vadd.f32 %v6713_v7, %v6625_v36  ;;  %v14987_v50 = vadd.f32 %v6762_v30, %v14784_v13 }
 0x89d   : > { %v15006_v23 = vpop.f32.mrf.mxu1 }
 0x8a3   : > { %v15001_v1 = vpop.f32.mrf.mxu2  ;;  %v6764_v13 = vpop.f32.mrf.mxu3 }
 0x8a4   : > { %v15004_v58 = vadd.f32 %v6764_v13, %v14803_v35  ;;  %v9119_v35 = vld [vmem:[%s15545_s11 + $0x148] sm:$0xf] }
 0x8a5   : > { %v6639_v20 = vpop.f32.mrf.mxu1  ;;  %v9120_v9 = vor.u32 %v9665_v24, %v9119_v35 }
 0x8a6   : > { %v6640_v21 = vadd.f32 %v6639_v20, %v15924_v59  ;;  %v15926_v20 = vld [vmem:[#allocation67_spill] sm:$0xff]  ;;  %v9681_v59 = vld [vmem:[%s15545_s11 + $0x1d4] sm:$0xf0] }
 0x8a8   : > { %6806 = vmatmul.bf16.gmra.mxu3 %v9104_v28  ;;  %6855 = vmatmul.bf16.gmra.mxu1 %v8980_v14 }
 0x8ab   : > { %v6718_v54 = vpop.f32.mrf.mxu2  ;;  %v6767_v53 = vpop.f32.mrf.mxu3 }
 0x8ac   : > { %v15009_v41 = vadd.f32 %v6718_v54, %v6630_v46  ;;  %v15012_v40 = vadd.f32 %v6767_v53, %v14812_v61  ;;  %v9673_v46 = vld [vmem:[%s15545_s11 + $0x194] sm:$0xf0]  ;;  %v9639_v54 = vld [vmem:[%s15545_s11 + $0x8c] sm:$0xf]  ;;  %v9025_v53 = vld [vmem:[%s15545_s11 + $0x98] sm:$0xf0] }
 0x8ad   : > { %v15032_v48 = vpop.f32.mrf.mxu1  ;;  %v9028_v2 = vor.u32 %v9639_v54, %v9025_v53 }
 0x8b3   : > { %v15026_v18 = vpop.f32.mrf.mxu2  ;;  %v6769_v61 = vpop.f32.mrf.mxu3 }
 0x8b4   : > { %v15029_v3 = vadd.f32 %v6769_v61, %v14833_v15  ;;  %v9135_v15 = vld [vmem:[%s15545_s11 + $0x168] sm:$0xf] }
 0x8b5   : > { %v9136_v30 = vor.u32 %v9669_v4, %v9135_v15  ;;  %v6644_v62 = vpop.f32.mrf.mxu1  ;;  %v9643_v15 = vld [vmem:[%s15545_s11 + $0xac] sm:$0xf]  ;;  %v9041_v4 = vld [vmem:[%s15545_s11 + $0xb8] sm:$0xf0] }
 0x8b6   : > { %v6645_v61 = vadd.f32 %v6644_v62, %v15926_v20  ;;  %v9044_v56 = vor.u32 %v9643_v15, %v9041_v4  ;;  %v9183_v62 = vld [vmem:[%s15545_s11 + $0x1c8] sm:$0xf]  ;;  %v9073_v20 = vld [vmem:[%s15545_s11 + $0xf8] sm:$0xf0]  ;;  %v9655_v4 = vld [vmem:[%s15545_s11 + $0x10c] sm:$0xf] }
 0x8b8   : > { %6811 = vmatmul.bf16.gmra.mxu3 %v9120_v9  ;;  %6860 = vmatmul.bf16.gmra.mxu1 %v8996_v37 }
 0x8bb   : > { %v6723_v34 = vpop.f32.mrf.mxu2  ;;  %v6772_v22 = vpop.f32.mrf.mxu3 }
 0x8bc   : > { %v15034_v25 = vadd.f32 %v6723_v34, %v6635_v55  ;;  %v15037_v43 = vadd.f32 %v6772_v22, %v14842_v5  ;;  %v9677_v22 = vld [vmem:[%s15545_s11 + $0x1b4] sm:$0xf0] }
 0x8bd   : > { %v15062_v31 = vpop.f32.mrf.mxu1 }
 0x8be   : > { %15925 = vst [vmem:[#allocation88_spill] sm:$0xff] %v15062_v31  ;;  %v15933_v31 = vld [vmem:[#allocation28_spill] sm:$0xff] }
 0x8c3   : > { %v15051_v36 = vpop.f32.mrf.mxu2  ;;  %v6774_v5 = vpop.f32.mrf.mxu3 }
 0x8c4   : > { %v15054_v7 = vadd.f32 %v6774_v5, %v14863_v42  ;;  %v9151_v42 = vld [vmem:[%s15545_s11 + $0x188] sm:$0xf] }
 0x8c5   : > { %v9152_v49 = vor.u32 %v9673_v46, %v9151_v42  ;;  %v15082_v9 = vpop.f32.mrf.mxu1  ;;  %v9184_v42 = vor.u32 %v9681_v59, %v9183_v62 }
 0x8c6   : > { %15927 = vst [vmem:[#allocation30_spill] sm:$0xff] %v15082_v9  ;;  %v6617_v9 = vadd.f32 %v14893_v45, %v15933_v31 }
 0x8c8   : > { %6816 = vmatmul.bf16.gmra.mxu3 %v9136_v30  ;;  %6865 = vmatmul.bf16.gmra.mxu1 %v9012_v19 }
 0x8cb   : > { %v6728_v52 = vpop.f32.mrf.mxu2  ;;  %v6777_v13 = vpop.f32.mrf.mxu3 }
 0x8cc   : > { %v15057_v28 = vadd.f32 %v6728_v52, %v6640_v21  ;;  %v15060_v14 = vadd.f32 %v6777_v13, %v14869_v44  ;;  %v9647_v21 = vld [vmem:[%s15545_s11 + $0xcc] sm:$0xf]  ;;  %v9057_v52 = vld [vmem:[%s15545_s11 + $0xd8] sm:$0xf0] }
 0x8cd   : > { %v15103_v5 = vpop.f32.mrf.mxu1  ;;  %v9060_v46 = vor.u32 %v9647_v21, %v9057_v52 }
 0x8ce   : > { %15928 = vst [vmem:[#allocation25_spill] sm:$0xff] %v15103_v5  ;;  %v15935_v5 = vld [vmem:[#allocation24_spill] sm:$0xff] }
 0x8d3   : > { %v15076_v44 = vpop.f32.mrf.mxu2  ;;  %v6779_v35 = vpop.f32.mrf.mxu3 }
 0x8d4   : > { %v15079_v24 = vadd.f32 %v6779_v35, %v14891_v63  ;;  %v9167_v63 = vld [vmem:[%s15545_s11 + $0x1a8] sm:$0xf] }
 0x8d5   : > { %v15107_v19 = vpop.f32.mrf.mxu1  ;;  %v9199_v35 = vld [vmem:[%s15545_s11 + $0x1e8] sm:$0xf] }
 0x8d6   : > { %15929 = vst [vmem:[#allocation17_spill] sm:$0xff] %v15107_v19  ;;  %v6615_v19 = vadd.f32 %v14874_v33, %v15935_v5 }
 0x8d8   : > { %6821 = vmatmul.bf16.gmra.mxu3 %v9152_v49  ;;  %6870 = vmatmul.bf16.gmra.mxu1 %v9028_v2  ;;  %v9685_v49 = vld [vmem:[%s15545_s11 + $0x1f4] sm:$0xf0]  ;;  %v9651_v2 = vld [vmem:[%s15545_s11 + $0xec] sm:$0xf]  ;;  %v6704_v45 = vadd.f32 %v14942_v17, %v6615_v19 }
 0x8db   : > { %v6733_v37 = vpop.f32.mrf.mxu2  ;;  %v6782_v47 = vpop.f32.mrf.mxu3 }
 0x8dc   : > { %v15084_v55 = vadd.f32 %v6733_v37, %v6645_v61  ;;  %v15087_v34 = vadd.f32 %v6782_v47, %v14897_v38  ;;  %v9168_v38 = vor.u32 %v9677_v22, %v9167_v63  ;;  %v9200_v47 = vor.u32 %v9685_v49, %v9199_v35 }
 0x8dd   : > { %v15123_v54 = vpop.f32.mrf.mxu1  ;;  %v9076_v63 = vor.u32 %v9651_v2, %v9073_v20  ;;  %v9659_v20 = vld [vmem:[%s15545_s11 + $0x12c] sm:$0xf] }
 0x8de   : > { %15930 = vst [vmem:[#allocation45_spill] sm:$0xff] %v15123_v54  ;;  %v15936_v54 = vld [vmem:[#allocation60_spill] sm:$0xff] }
 0x8e3   : > { %v15101_v39 = vpop.f32.mrf.mxu3 }
 0x8e5   : > { %v15139_v61 = vpop.f32.mrf.mxu1 }
 0x8e8   : > { %6826 = vmatmul.bf16.gmra.mxu3 %v9168_v38  ;;  %6875 = vmatmul.bf16.gmra.mxu1 %v9044_v56  ;;  %v9089_v38 = vld [vmem:[%s15545_s11 + $0x118] sm:$0xf0] }
 0x8e9   : > { %v9092_v62 = vor.u32 %v9655_v4, %v9089_v38 }
 0x8eb   : > { %v15105_v30 = vpop.f32.mrf.mxu3 }
 0x8ed   : > { %v15145_v15 = vpop.f32.mrf.mxu1 }
 0x8ee   : > { %15931 = vst [vmem:[#allocation46_spill] sm:$0xff] %v15145_v15  ;;  %v6706_v15 = vadd.f32 %v14958_v29, %v6617_v9 }
 0x8f3   : > { %v15121_v13 = vpop.f32.mrf.mxu3 }
 0x8f8   : > { %6831 = vmatmul.bf16.gmra.mxu3 %v9184_v42  ;;  %6880 = vmatmul.bf16.gmra.mxu1 %v9060_v46 }
 0x8fb   : > { %v15125_v53 = vpop.f32.mrf.mxu3 }
 0x903   : > { %v15141_v37 = vpop.f32.mrf.mxu3 }
 0x904   : > { %v6795_v31 = vadd.f32 %v15141_v37, %v6706_v15 }
 0x908   : > { %6836 = vmatmul.bf16.gmra.mxu3 %v9200_v47  ;;  %6885 = vmatmul.bf16.gmra.mxu1 %v9076_v63  ;;  %v9105_v47 = vld [vmem:[%s15545_s11 + $0x138] sm:$0xf0] }
 0x909   : > { %v9108_v4 = vor.u32 %v9659_v20, %v9105_v47 }
 0x90b   : > { %v15143_v22 = vpop.f32.mrf.mxu3 }
 0x913   : > { %v15153_v56 = vpop.f32.mrf.mxu3 }
 0x915   : > { %v6851_v59 = vpop.f32.mrf.mxu1 }
 0x916   : > { %v6852_v21 = vadd.f32 %v6851_v59, %v14987_v50 }
 0x918   : > { %6890 = vmatmul.bf16.gmra.mxu1 %v9092_v62  ;;  %v6931_v49 = vmax.f32 %v6852_v21, 0.0 }
 0x91b   : > { %v6802_v52 = vpop.f32.mrf.mxu3 }
 0x91c   : > { %v15157_v42 = vadd.f32 %v6802_v52, %v14984_v32 }
 0x91d   : > { %v6853_v46 = vpop.f32.mrf.mxu1 }
 0x91e   : > { %v6854_v35 = vadd.f32 %v6853_v46, %v15004_v58 }
 0x920   : > { %v6932_v2 = vmax.f32 %v6854_v35, 0.0  ;;  %v9663_v35 = vld [vmem:[%s15545_s11 + $0x14c] sm:$0xf] }
 0x922   : > { %v15166_v63 = vpack.c.bf16 %v6932_v2, %v6931_v49  ;;  %v9121_v49 = vld [vmem:[%s15545_s11 + $0x158] sm:$0xf0] }
 0x923   : > { %v15168_v50 = vpop.f32.mrf.mxu3  ;;  %v9124_v20 = vor.u32 %v9663_v35, %v9121_v49 }
 0x925   : > { %v6856_v32 = vpop.f32.mrf.mxu1 }
 0x926   : > { %v6857_v38 = vadd.f32 %v6856_v32, %v15012_v40 }
 0x928   : > { %6895 = vmatmul.bf16.gmra.mxu1 %v9108_v4  ;;  %v6933_v52 = vmax.f32 %v6857_v38, 0.0 }
 0x92b   : > { %v6807_v58 = vpop.f32.mrf.mxu3 }
 0x92c   : > { %v15172_v62 = vadd.f32 %v6807_v58, %v15009_v41 }
 0x92d   : > { %v6858_v59 = vpop.f32.mrf.mxu1 }
 0x92e   : > { %v6859_v21 = vadd.f32 %v6858_v59, %v15029_v3 }
 0x930   : > { %v6934_v46 = vmax.f32 %v6859_v21, 0.0  ;;  %v9667_v21 = vld [vmem:[%s15545_s11 + $0x16c] sm:$0xf] }
 0x932   : > { %v15181_v2 = vpack.c.bf16 %v6934_v46, %v6933_v52  ;;  %v9137_v52 = vld [vmem:[%s15545_s11 + $0x178] sm:$0xf0] }
 0x933   : > { %v15183_v40 = vpop.f32.mrf.mxu3  ;;  %v9140_v35 = vor.u32 %v9667_v21, %v9137_v52 }
 0x935   : > { %v6861_v41 = vpop.f32.mrf.mxu1 }
 0x936   : > { %v6862_v47 = vadd.f32 %v6861_v41, %v15037_v43 }
 0x938   : > { %6900 = vmatmul.bf16.gmra.mxu1 %v9124_v20  ;;  %v6935_v58 = vmax.f32 %v6862_v47, 0.0 }
 0x93b   : > { %v6812_v3 = vpop.f32.mrf.mxu3 }
 0x93c   : > { %v15187_v4 = vadd.f32 %v6812_v3, %v15034_v25 }
 0x93d   : > { %v6863_v32 = vpop.f32.mrf.mxu1 }
 0x93e   : > { %v6864_v38 = vadd.f32 %v6863_v32, %v15054_v7 }
 0x940   : > { %v6936_v59 = vmax.f32 %v6864_v38, 0.0  ;;  %v9671_v38 = vld [vmem:[%s15545_s11 + $0x18c] sm:$0xf] }
 0x942   : > { %v15196_v46 = vpack.c.bf16 %v6936_v59, %v6935_v58  ;;  %v9153_v58 = vld [vmem:[%s15545_s11 + $0x198] sm:$0xf0] }
 0x943   : > { %v15198_v43 = vpop.f32.mrf.mxu3  ;;  %v9156_v21 = vor.u32 %v9671_v38, %v9153_v58 }
 0x945   : > { %v6866_v25 = vpop.f32.mrf.mxu1 }
 0x946   : > { %v6867_v49 = vadd.f32 %v6866_v25, %v15060_v14 }
 0x948   : > { %6905 = vmatmul.bf16.gmra.mxu1 %v9140_v35  ;;  %v6937_v3 = vmax.f32 %v6867_v49, 0.0  ;;  %v9675_v49 = vld [vmem:[%s15545_s11 + $0x1ac] sm:$0xf] }
 0x94b   : > { %v6817_v7 = vpop.f32.mrf.mxu3 }
 0x94c   : > { %v15202_v20 = vadd.f32 %v6817_v7, %v15057_v28  ;;  %v9169_v7 = vld [vmem:[%s15545_s11 + $0x1b8] sm:$0xf0] }
 0x94d   : > { %v6868_v41 = vpop.f32.mrf.mxu1 }
 0x94e   : > { %v6869_v47 = vadd.f32 %v6868_v41, %v15079_v24  ;;  %v9172_v41 = vor.u32 %v9675_v49, %v9169_v7  ;;  %v15932_v7 = vld [vmem:[#allocation18_spill] sm:$0xff] }
 0x950   : > { %v6938_v32 = vmax.f32 %v6869_v47, 0.0 }
 0x952   : > { %v15211_v59 = vpack.c.bf16 %v6938_v32, %v6937_v3 }
 0x953   : > { %v15213_v14 = vpop.f32.mrf.mxu3 }
 0x955   : > { %v6871_v28 = vpop.f32.mrf.mxu1 }
 0x956   : > { %v15216_v52 = vadd.f32 %v6871_v28, %v15087_v34  ;;  %v9679_v34 = vld [vmem:[%s15545_s11 + $0x1cc] sm:$0xf]  ;;  %v9201_v28 = vld [vmem:[%s15545_s11 + $0x1f8] sm:$0xf0] }
 0x958   : > { %6910 = vmatmul.bf16.gmra.mxu1 %v9156_v21  ;;  %v9683_v21 = vld [vmem:[%s15545_s11 + $0x1ec] sm:$0xf] }
 0x95b   : > { %v6822_v24 = vpop.f32.mrf.mxu3 }
 0x95c   : > { %v15219_v35 = vadd.f32 %v6822_v24, %v15084_v55  ;;  %v9185_v55 = vld [vmem:[%s15545_s11 + $0x1d8] sm:$0xf0]  ;;  %v9204_v24 = vor.u32 %v9683_v21, %v9201_v28 }
 0x95d   : > { %v6873_v25 = vpop.f32.mrf.mxu1  ;;  %v9188_v32 = vor.u32 %v9679_v34, %v9185_v55  ;;  %v15934_v34 = vld [vmem:[#allocation21_spill] sm:$0xff] }
 0x95e   : > { %v6622_v55 = vadd.f32 %v14923_v6, %v15934_v34 }
 0x960   : > { %v6711_v21 = vadd.f32 %v14978_v11, %v6622_v55  ;;  %v6793_v11 = vadd.f32 %v15125_v53, %v6704_v45 }
 0x962   : > { %v6800_v6 = vadd.f32 %v15153_v56, %v6711_v21 }
 0x965   : > { %v6876_v47 = vpop.f32.mrf.mxu1 }
 0x968   : > { %6915 = vmatmul.bf16.gmra.mxu1 %v9172_v41  ;;  %v6620_v41 = vadd.f32 %v14915_v57, %v15932_v7  ;;  %v6612_v57 = vadd.f32 %v14861_v27, %v15936_v54 }
 0x96a   : > { %v6701_v29 = vadd.f32 %v14940_v16, %v6612_v57 }
 0x96c   : > { %v6790_v19 = vadd.f32 %v15121_v13, %v6701_v29 }
 0x96d   : > { %v6878_v3 = vpop.f32.mrf.mxu1 }
 0x975   : > { %v6881_v38 = vpop.f32.mrf.mxu1 }
 0x976   : > { %v6882_v54 = vadd.f32 %v6881_v38, %v6793_v11  ;;  %v15939_v38 = vld [vmem:[#allocation83_spill] sm:$0xff] }
 0x977   : > { %v6627_v21 = vadd.f32 %v14944_v51, %v15939_v38  ;;  %v9231_v38 = vld [vmem:[%s15547_s13 + $0x30] sm:$0xf] }
 0x978   : > { %6920 = vmatmul.bf16.gmra.mxu1 %v9188_v32  ;;  %v6709_v32 = vadd.f32 %v14962_v12, %v6620_v41  ;;  %v6943_v34 = vmax.f32 %v6882_v54, 0.0 }
 0x97a   : > { %v6798_v28 = vadd.f32 %v15143_v22, %v6709_v32  ;;  %v15938_v22 = vld [vmem:[#allocation65_spill] sm:$0xff] }
 0x97b   : > { %v6607_v27 = vadd.f32 %v14817_v8, %v15938_v22 }
 0x97d   : > { %v6883_v58 = vpop.f32.mrf.mxu1  ;;  %v6696_v56 = vadd.f32 %v14917_v60, %v6607_v27  ;;  %v9215_v27 = vld [vmem:[%s15547_s13 + $0x10] sm:$0xf] }
 0x97e   : > { %v6884_v9 = vadd.f32 %v6883_v58, %v6795_v31 }
 0x97f   : > { %v6785_v53 = vadd.f32 %v15101_v39, %v6696_v56 }
 0x980   : > { %v6944_v16 = vmax.f32 %v6884_v9, 0.0 }
 0x981   : > { %v6874_v55 = vadd.f32 %v6873_v25, %v6785_v53  ;;  %v9691_v53 = vld [vmem:[%s15547_s13 + $0x24] sm:$0xf0] }
 0x982   : > { %v7001_v32 = vpack.c.bf16 %v6944_v16, %v6943_v34 }
 0x985   : > { %v6886_v49 = vpop.f32.mrf.mxu1 }
 0x986   : > { %v6887_v12 = vadd.f32 %v6886_v49, %v6798_v28  ;;  %v6879_v49 = vadd.f32 %v6878_v3, %v6790_v19  ;;  %v6940_v3 = vmax.f32 %v6874_v55, 0.0 }
 0x988   : > { %6925 = vmatmul.bf16.gmra.mxu1 %v9204_v24  ;;  %v15937_v24 = vld [vmem:[#allocation61_spill] sm:$0xff]  ;;  %v6945_v37 = vmax.f32 %v6887_v12, 0.0  ;;  %v15940_v12 = vld [vmem:[#allocation78_spill] sm:$0xff] }
 0x989   : > { %v6610_v7 = vadd.f32 %v14840_v0, %v15937_v24  ;;  %v6632_v24 = vadd.f32 %v14980_v10, %v15940_v12  ;;  %v9247_v12 = vld [vmem:[%s15547_s13 + $0x50] sm:$0xf] }
 0x98b   : > { %v6699_v17 = vadd.f32 %v14921_v26, %v6610_v7  ;;  %v6942_v26 = vmax.f32 %v6879_v49, 0.0  ;;  %v9207_v7 = vld [vmem:[%s15547_s13] sm:$0xf]  ;;  %v15309_v49 = vpop.f32.mrf.mxu2 }
 0x98d   : > { %v6888_v33 = vpop.f32.mrf.mxu1  ;;  %v6788_v0 = vadd.f32 %v15105_v30, %v6699_v17  ;;  %v6716_v30 = vadd.f32 %v15001_v1, %v6627_v21  ;;  %v9693_v21 = vld [vmem:[%s15547_s13 + $0x34] sm:$0xf0] }
 0x98e   : > { %v6889_v5 = vadd.f32 %v6888_v33, %v6800_v6 }
 0x98f   : > { %v6877_v58 = vadd.f32 %v6876_v47, %v6788_v0  ;;  %v6805_v39 = vadd.f32 %v15168_v50, %v6716_v30  ;;  %v6939_v47 = vmax.f32 %v15216_v52, 0.0  ;;  %v6721_v50 = vadd.f32 %v15026_v18, %v6632_v24  ;;  %v9697_v24 = vld [vmem:[%s15547_s13 + $0x54] sm:$0xf0] }
 0x990   : > { %v6946_v15 = vmax.f32 %v6889_v5, 0.0 }
 0x991   : > { %v6941_v60 = vmax.f32 %v6877_v58, 0.0  ;;  %v6999_v25 = vpack.c.bf16 %v6940_v3, %v6939_v47  ;;  %v6810_v52 = vadd.f32 %v15183_v40, %v6721_v50  ;;  %v15318_v58 = vpop.f32.mrf.mxu3  ;;  %v9232_v3 = vor.u32 %v9693_v21, %v9231_v38 }
 0x992   : > { %v7002_v41 = vpack.c.bf16 %v6946_v15, %v6945_v37 }
 0x993   : > { %v7000_v28 = vpack.c.bf16 %v6942_v26, %v6941_v60  ;;  %v6738_v26 = vpop.f32.mrf.mxu2 }
 0x994   : > { %7171 = vmatpush.bf16.msra.mxu2 %v7002_v41  ;;  %v9223_v41 = vld [vmem:[%s15547_s13 + $0x20] sm:$0xf] }
 0x995   : > { %v6891_v8 = vpop.f32.mrf.mxu1 }
 0x996   : > { %v6892_v13 = vadd.f32 %v6891_v8, %v15157_v42  ;;  %v9224_v8 = vor.u32 %v9691_v53, %v9223_v41  ;;  %v9255_v41 = vld [vmem:[%s15547_s13 + $0x60] sm:$0xf]  ;;  %v9699_v53 = vld [vmem:[%s15547_s13 + $0x64] sm:$0xf0] }
 0x998   : > { %7172 = vmatpush.bf16.msra.mxu2 %v7001_v32  ;;  %v6947_v31 = vmax.f32 %v6892_v13, 0.0 }
 0x999   : > { %v6827_v13 = vpop.f32.mrf.mxu3 }
 0x99b   : > { %v6740_v30 = vpop.f32.mrf.mxu2 }
 0x99c   : > { %7173 = vmatpush.bf16.msra.mxu2 %v7000_v28 }
 0x99d   : > { %v6893_v57 = vpop.f32.mrf.mxu1 }
 0x99e   : > { %v6894_v45 = vadd.f32 %v6893_v57, %v6805_v39 }
 0x9a0   : > { %v6948_v6 = vmax.f32 %v6894_v45, 0.0  ;;  %7174 = vmatpush.bf16.msra.mxu2 %v6999_v25  ;;  %v9695_v25 = vld [vmem:[%s15547_s13 + $0x44] sm:$0xf0] }
 0x9a1   : > { %v6829_v28 = vpop.f32.mrf.mxu3 }
 0x9a2   : > { %v15273_v42 = vpack.c.bf16 %v6948_v6, %v6947_v31 }
 0x9a3   : > { %v6743_v47 = vpop.f32.mrf.mxu2 }
 0x9a4   : > { %7175 = vmatpush.bf16.msra.mxu2 %v15211_v59  ;;  %v9687_v59 = vld [vmem:[%s15547_s13 + $0x4] sm:$0xf0] }
 0x9a5   : > { %v6896_v51 = vpop.f32.mrf.mxu1  ;;  %v9208_v29 = vor.u32 %v9687_v59, %v9207_v7  ;;  %v9248_v59 = vor.u32 %v9697_v24, %v9247_v12 }
 0x9a6   : > { %v6897_v1 = vadd.f32 %v6896_v51, %v15172_v62 }
 0x9a8   : > { %7176 = vmatpush.bf16.msra.mxu2 %v15196_v46  ;;  %v6949_v10 = vmax.f32 %v6897_v1, 0.0  ;;  %v15941_v46 = vld [vmem:[#allocation76_spill] sm:$0xff] }
 0x9a9   : > { %v6637_v9 = vadd.f32 %v15006_v23, %v15941_v46  ;;  %v6832_v57 = vpop.f32.mrf.mxu3  ;;  %v15946_v46 = vld [vmem:[#allocation23_spill] sm:$0xff] }
 0x9ab   : > { %v6726_v5 = vadd.f32 %v15051_v36, %v6637_v9  ;;  %v6745_v6 = vpop.f32.mrf.mxu2  ;;  %v15947_v9 = vld [vmem:[#allocation46_spill] sm:$0xff] }
 0x9ac   : > { %7177 = vmatpush.bf16.msra.mxu2 %v15181_v2 }
 0x9ad   : > { %v6898_v62 = vpop.f32.mrf.mxu1  ;;  %v6815_v22 = vadd.f32 %v15198_v43, %v6726_v5  ;;  %v15942_v43 = vld [vmem:[#allocation71_spill] sm:$0xff]  ;;  %v6662_v5 = vadd.f32 %v15947_v9, %v15946_v46  ;;  %v9225_v46 = vld [vmem:[%s15547_s13 + $0x28] sm:$0xf0] }
 0x9ae   : > { %v6899_v33 = vadd.f32 %v6898_v62, %v6810_v52  ;;  %v6642_v56 = vadd.f32 %v15032_v48, %v15942_v43  ;;  %v9692_v9 = vld [vmem:[%s15547_s13 + $0x34] sm:$0xf] }
 0x9b0   : > { %v6950_v11 = vmax.f32 %v6899_v33, 0.0  ;;  %7178 = vmatpush.bf16.msra.mxu2 %v15166_v63  ;;  %v9689_v63 = vld [vmem:[%s15547_s13 + $0x14] sm:$0xf0]  ;;  %v6731_v0 = vadd.f32 %v15076_v44, %v6642_v56  ;;  %v15943_v33 = vld [vmem:[#allocation26_spill] sm:$0xff] }
 0x9b1   : > { %v9216_v54 = vor.u32 %v9689_v63, %v9215_v27  ;;  %v6834_v51 = vpop.f32.mrf.mxu3  ;;  %v15948_v63 = vld [vmem:[#allocation27_spill] sm:$0xff] }
 0x9b2   : > { %v15290_v18 = vpack.c.bf16 %v6950_v11, %v6949_v10  ;;  %v6820_v16 = vadd.f32 %v15213_v14, %v6731_v0  ;;  %v15944_v11 = vld [vmem:[#allocation59_spill] sm:$0xff] }
 0x9b3   : > { %7179 = vmatmul.bf16.vlgmr.msra.gmra.mxu2 %v9208_v29  ;;  %v6748_v50 = vpop.f32.mrf.mxu2  ;;  %v6660_v29 = vadd.f32 %v15139_v61, %v15943_v33 }
 0x9b5   : > { %v6901_v40 = vpop.f32.mrf.mxu1 }
 0x9b6   : > { %v6902_v2 = vadd.f32 %v6901_v40, %v15187_v4  ;;  %v15945_v40 = vld [vmem:[#allocation45_spill] sm:$0xff] }
 0x9b8   : > { %v6951_v37 = vmax.f32 %v6902_v2, 0.0  ;;  %v6657_v2 = vadd.f32 %v15945_v40, %v15944_v11 }
 0x9b9   : > { %v6837_v7 = vpop.f32.mrf.mxu3 }
 0x9bb   : > { %v6750_v10 = vpop.f32.mrf.mxu2 }
 0x9bd   : > { %v6903_v17 = vpop.f32.mrf.mxu1 }
 0x9be   : > { %v6904_v19 = vadd.f32 %v6903_v17, %v6815_v22  ;;  %v6749_v22 = vadd.f32 %v6748_v50, %v6660_v29  ;;  %v15949_v17 = vld [vmem:[#allocation17_spill] sm:$0xff] }
 0x9c0   : > { %v6952_v4 = vmax.f32 %v6904_v19, 0.0  ;;  %v6655_v19 = vadd.f32 %v15949_v17, %v15948_v63  ;;  %v9241_v63 = vld [vmem:[%s15547_s13 + $0x48] sm:$0xf0] }
 0x9c1   : > { %v6839_v27 = vpop.f32.mrf.mxu3 }
 0x9c2   : > { %v15303_v15 = vpack.c.bf16 %v6952_v4, %v6951_v37  ;;  %v6751_v37 = vadd.f32 %v6750_v10, %v6662_v5  ;;  %v6838_v4 = vadd.f32 %v6837_v7, %v6749_v22  ;;  %v6744_v56 = vadd.f32 %v6743_v47, %v6655_v19  ;;  %v15955_v47 = vld [vmem:[#allocation88_spill] sm:$0xff]  ;;  %v9696_v19 = vld [vmem:[%s15547_s13 + $0x54] sm:$0xf] }
 0x9c3   : > { %7184 = vmatmul.bf16.gmra.mxu2 %v9216_v54  ;;  %v6746_v54 = vadd.f32 %v6745_v6, %v6657_v2  ;;  %v9690_v2 = vld [vmem:[%s15547_s13 + $0x24] sm:$0xf]  ;;  %v9233_v5 = vld [vmem:[%s15547_s13 + $0x38] sm:$0xf0] }
 0x9c4   : > { %v6840_v0 = vadd.f32 %v6839_v27, %v6751_v37  ;;  %v9236_v22 = vor.u32 %v9692_v9, %v9233_v5  ;;  %v9694_v27 = vld [vmem:[%s15547_s13 + $0x44] sm:$0xf] }
 0x9c5   : > { %v6906_v23 = vpop.f32.mrf.mxu1  ;;  %v6835_v61 = vadd.f32 %v6834_v51, %v6746_v54  ;;  %v9244_v17 = vor.u32 %v9694_v27, %v9241_v63  ;;  %v9249_v54 = vld [vmem:[%s15547_s13 + $0x58] sm:$0xf0] }
 0x9c6   : > { %v6907_v36 = vadd.f32 %v6906_v23, %v15202_v20  ;;  %v15950_v23 = vld [vmem:[#allocation64_spill] sm:$0xff]  ;;  %v9252_v37 = vor.u32 %v9696_v19, %v9249_v54 }
 0x9c8   : > { %v6953_v48 = vmax.f32 %v6907_v36, 0.0  ;;  %v15951_v36 = vld [vmem:[#allocation25_spill] sm:$0xff] }
 0x9c9   : > { %v6652_v43 = vadd.f32 %v15951_v36, %v15950_v23  ;;  %v9257_v23 = vld [vmem:[%s15547_s13 + $0x68] sm:$0xf0] }
 0x9cd   : > { %v6908_v20 = vpop.f32.mrf.mxu1 }
 0x9ce   : > { %v6909_v34 = vadd.f32 %v6908_v20, %v6820_v16  ;;  %v15952_v20 = vld [vmem:[#allocation62_spill] sm:$0xff] }
 0x9d0   : > { %v6954_v55 = vmax.f32 %v6909_v34, 0.0  ;;  %v15953_v34 = vld [vmem:[#allocation30_spill] sm:$0xff] }
 0x9d2   : > { %v15320_v44 = vpack.c.bf16 %v6954_v55, %v6953_v48  ;;  %v6741_v55 = vadd.f32 %v6740_v30, %v6652_v43 }
 0x9d3   : > { %7189 = vmatmul.bf16.gmra.mxu2 %v9224_v8  ;;  %v6650_v8 = vadd.f32 %v15953_v34, %v15952_v20  ;;  %v15956_v20 = vld [vmem:[#allocation93_spill] sm:$0xff] }
 0x9d4   : > { %v6830_v6 = vadd.f32 %v6829_v28, %v6741_v55 }
 0x9d5   : > { %v6911_v14 = vpop.f32.mrf.mxu1 }
 0x9d6   : > { %v15323_v32 = vadd.f32 %v6911_v14, %v15219_v35  ;;  %v9239_v35 = vld [vmem:[%s15547_s13 + $0x40] sm:$0xf]  ;;  %v6833_v14 = vadd.f32 %v6832_v57, %v6744_v56  ;;  %v9700_v56 = vld [vmem:[%s15547_s13 + $0x74] sm:$0xf] }
 0x9d7   : > { %v9240_v31 = vor.u32 %v9695_v25, %v9239_v35  ;;  %v6739_v25 = vadd.f32 %v6738_v26, %v6650_v8 }
 0x9d9   : > { %v6828_v7 = vadd.f32 %v6827_v13, %v6739_v25  ;;  %v9263_v13 = vld [vmem:[%s15547_s13 + $0x70] sm:$0xf] }
 0x9dd   : > { %v15331_v60 = vpop.f32.mrf.mxu1 }
 0x9e3   : > { %7194 = vmatmul.bf16.gmra.mxu2 %v9232_v3  ;;  %v15954_v3 = vld [vmem:[#allocation66_spill] sm:$0xff] }
 0x9e4   : > { %v6647_v35 = vadd.f32 %v15955_v47, %v15954_v3 }
 0x9e5   : > { %v6916_v39 = vpop.f32.mrf.mxu1 }
 0x9e6   : > { %v6736_v50 = vadd.f32 %v15309_v49, %v6647_v35  ;;  %v6917_v57 = vadd.f32 %v6916_v39, %v6828_v7  ;;  %v6955_v49 = vmax.f32 %v15323_v32, 0.0  ;;  %v9686_v32 = vld [vmem:[%s15547_s13 + $0x4] sm:$0xf] }
 0x9e8   : > { %v6825_v30 = vadd.f32 %v15318_v58, %v6736_v50  ;;  %v6957_v28 = vmax.f32 %v6917_v57, 0.0  ;;  %v9701_v58 = vld [vmem:[%s15547_s13 + $0x74] sm:$0xf0]  ;;  %v15959_v50 = vld [vmem:[#allocation91_spill] sm:$0xff] }
 0x9ea   : > { %v6914_v29 = vadd.f32 %v15331_v60, %v6825_v30  ;;  %v9209_v60 = vld [vmem:[%s15547_s13 + $0x8] sm:$0xf0] }
 0x9eb   : > { %v9212_v40 = vor.u32 %v9686_v32, %v9209_v60 }
 0x9ed   : > { %v6918_v45 = vpop.f32.mrf.mxu1 }
 0x9f3   : > { %7199 = vmatmul.bf16.gmra.mxu2 %v9240_v31  ;;  %v9256_v31 = vor.u32 %v9699_v53, %v9255_v41 }
 0x9f5   : > { %v6921_v1 = vpop.f32.mrf.mxu1 }
 0x9f6   : > { %v6922_v51 = vadd.f32 %v6921_v1, %v6833_v14  ;;  %v6956_v1 = vmax.f32 %v6914_v29, 0.0  ;;  %v15957_v14 = vld [vmem:[#allocation95_spill] sm:$0xff] }
 0x9f7   : > { %v15960_v29 = vld [vmem:[#allocation87_spill] sm:$0xff] }
 0x9f8   : > { %v7007_v39 = vpack.c.bf16 %v6956_v1, %v6955_v49 }
 0x9fd   : > { %v6923_v52 = vpop.f32.mrf.mxu1 }
 0x9fe   : > { %v6924_v38 = vadd.f32 %v6923_v52, %v6835_v61  ;;  %v6959_v52 = vmax.f32 %v6922_v51, 0.0  ;;  %v9265_v61 = vld [vmem:[%s15547_s13 + $0x78] sm:$0xf0] }
 0xa03   : > { %7204 = vmatmul.bf16.gmra.mxu2 %v9248_v59  ;;  %v6919_v59 = vadd.f32 %v6918_v45, %v6830_v6  ;;  %v9264_v45 = vor.u32 %v9701_v58, %v9263_v13 }
 0xa05   : > { %v6926_v62 = vpop.f32.mrf.mxu1  ;;  %v6958_v26 = vmax.f32 %v6919_v59, 0.0 }
 0xa06   : > { %v6927_v16 = vadd.f32 %v6926_v62, %v6838_v4  ;;  %v6960_v62 = vmax.f32 %v6924_v38, 0.0  ;;  %v9698_v4 = vld [vmem:[%s15547_s13 + $0x64] sm:$0xf] }
 0xa07   : > { %v7008_v11 = vpack.c.bf16 %v6958_v26, %v6957_v28  ;;  %v9260_v36 = vor.u32 %v9698_v4, %v9257_v23 }
 0xa08   : > { %v6961_v12 = vmax.f32 %v6927_v16, 0.0  ;;  %v7009_v10 = vpack.c.bf16 %v6960_v62, %v6959_v52  ;;  %v9268_v16 = vor.u32 %v9700_v56, %v9265_v61 }
 0xa0d   : > { %v6928_v48 = vpop.f32.mrf.mxu1 }
 0xa0e   : > { %v6929_v21 = vadd.f32 %v6928_v48, %v6840_v0 }
 0xa10   : > { %v6962_v24 = vmax.f32 %v6929_v21, 0.0 }
 0xa12   : > { %v7010_v33 = vpack.c.bf16 %v6962_v24, %v6961_v12 }
 0xa13   : > { %7209 = vmatmul.bf16.gmra.mxu2 %v9256_v31  ;;  %v15958_v31 = vld [vmem:[#allocation92_spill] sm:$0xff] }
 0xa14   : > { %7220 = vmatpush.bf16.msrb.mxu3 %v7010_v33 }
 0xa18   : > { %7221 = vmatpush.bf16.msrb.mxu3 %v7009_v10 }
 0xa1c   : > { %7222 = vmatpush.bf16.msrb.mxu3 %v7008_v11  ;;  %v15961_v11 = vld [vmem:[#allocation90_spill] sm:$0xff] }
 0xa20   : > { %7223 = vmatpush.bf16.msrb.mxu3 %v7007_v39 }
 0xa23   : > { %7214 = vmatmul.bf16.gmra.mxu2 %v9264_v45 }
 0xa24   : > { %7224 = vmatpush.bf16.msrb.mxu3 %v15320_v44  ;;  %v9688_v44 = vld [vmem:[%s15547_s13 + $0x14] sm:$0xf] }
 0xa28   : > { %7225 = vmatpush.bf16.msrb.mxu3 %v15303_v15 }
 0xa2c   : > { %7226 = vmatpush.bf16.msrb.mxu3 %v15290_v18  ;;  %v9217_v18 = vld [vmem:[%s15547_s13 + $0x18] sm:$0xf0] }
 0xa2d   : > { %v9220_v15 = vor.u32 %v9688_v44, %v9217_v18 }
 0xa30   : > { %7227 = vmatpush.bf16.msrb.mxu3 %v15273_v42  ;;  %v9228_v42 = vor.u32 %v9690_v2, %v9225_v46  ;;  %v15963_v2 = vld [vmem:[#allocation89_spill] sm:$0xff] }
 0xa33   : > { %7228 = vmatmul.bf16.vlgmr.msrb.gmra.mxu3 %v9212_v40  ;;  %v15962_v40 = vld [vmem:[#allocation29_spill] sm:$0xff] }
 0xa36   : > { %v7180_v43 = vpop.f32.mrf.mxu2 }
 0xa37   : > { %v7181_v34 = vadd.f32 %v7180_v43, %v15956_v20 }
 0xa3e   : > { %v7182_v0 = vpop.f32.mrf.mxu2 }
 0xa3f   : > { %v7183_v38 = vadd.f32 %v7182_v0, %v15957_v14 }
 0xa43   : > { %7233 = vmatmul.bf16.gmra.mxu3 %v9220_v15 }
 0xa46   : > { %v7185_v41 = vpop.f32.mrf.mxu2 }
 0xa47   : > { %v7186_v6 = vadd.f32 %v7185_v41, %v15958_v31 }
 0xa4e   : > { %v7187_v53 = vpop.f32.mrf.mxu2 }
 0xa4f   : > { %v7188_v7 = vadd.f32 %v7187_v53, %v15959_v50 }
 0xa53   : > { %7238 = vmatmul.bf16.gmra.mxu3 %v9228_v42 }
 0xa56   : > { %v7190_v55 = vpop.f32.mrf.mxu2 }
 0xa57   : > { %v7191_v26 = vadd.f32 %v7190_v55, %v15960_v29  ;;  %v15966_v55 = vld [vmem:[#allocation31_spill] sm:$0xff] }
 0xa5e   : > { %v7192_v51 = vpop.f32.mrf.mxu2 }
 0xa5f   : > { %v7193_v49 = vadd.f32 %v7192_v51, %v15961_v11 }
 0xa63   : > { %7243 = vmatmul.bf16.gmra.mxu3 %v9236_v22 }
 0xa66   : > { %v7195_v33 = vpop.f32.mrf.mxu2 }
 0xa67   : > { %v7196_v44 = vadd.f32 %v7195_v33, %v15962_v40 }
 0xa6e   : > { %v7197_v1 = vpop.f32.mrf.mxu2 }
 0xa6f   : > { %v7198_v46 = vadd.f32 %v7197_v1, %v15963_v2  ;;  %v9708_v2 = vld [vmem:[%s15972_s21 + $0x30] sm:$0xff] }
 0xa73   : > { %7248 = vmatmul.bf16.gmra.mxu3 %v9244_v17  ;;  %v15964_v17 = vld [vmem:[#allocation43_spill] sm:$0xff] }
 0xa76   : > { %v7200_v60 = vpop.f32.mrf.mxu2 }
 0xa77   : > { %v7201_v19 = vadd.f32 %v7200_v60, %v15964_v17  ;;  %v7338_v17 = vpop.permute.xlu2 %7337 }
 0xa7e   : > { %v7202_v42 = vpop.f32.mrf.mxu2 }
 0xa83   : > { %7253 = vmatmul.bf16.gmra.mxu3 %v9252_v37 }
 0xa86   : > { %v7205_v4 = vpop.f32.mrf.mxu2 }
 0xa93   : > { %7258 = vmatmul.bf16.gmra.mxu3 %v9260_v36  ;;  %v7207_v36 = vpop.f32.mrf.mxu2 }
 0xa9b   : > { %v7210_v56 = vpop.f32.mrf.mxu2 }
 0xaa3   : > { %7263 = vmatmul.bf16.gmra.mxu3 %v9268_v16  ;;  %v7212_v0 = vpop.f32.mrf.mxu2 }
 0xaa4   : > { %v7213_v14 = vadd.f32 %v7212_v0, %v15966_v55 }
 0xaab   : > { %v7215_v53 = vpop.f32.mrf.mxu2 }
 0xab6   : > { %v7229_v8 = vpop.f32.mrf.mxu3 }
 0xab7   : > { %v7230_v48 = vadd.f32 %v7229_v8, %v7181_v34  ;;  %v7217_v34 = vpop.f32.mrf.mxu2  ;;  %v15965_v8 = vld [vmem:[#allocation84_spill] sm:$0xff] }
 0xab9   : > { %v7269_v47 = vmax.f32 %v7230_v48, 0.0  ;;  %v7216_v48 = vadd.f32 %v7215_v53, %v15965_v8 }
 0xabe   : > { %v7231_v21 = vpop.f32.mrf.mxu3 }
 0xabf   : > { %v7232_v3 = vadd.f32 %v7231_v21, %v7183_v38  ;;  %v15967_v38 = vld [vmem:[#allocation37_spill] sm:$0xff] }
 0xac0   : > { %v7218_v21 = vadd.f32 %v7217_v34, %v15967_v38 }
 0xac1   : > { %v7270_v35 = vmax.f32 %v7232_v3, 0.0 }
 0xac3   : > { %v15429_v25 = vpack.c.bf16 %v7270_v35, %v7269_v47  ;;  %v15968_v35 = vld [vmem:[#allocation40_spill] sm:$0xff] }
 0xac4   : > { %v7211_v31 = vadd.f32 %v7210_v56, %v15968_v35 }
 0xac6   : > { %v7234_v12 = vpop.f32.mrf.mxu3 }
 0xac7   : > { %v7235_v24 = vadd.f32 %v7234_v12, %v7186_v6  ;;  %v15969_v12 = vld [vmem:[#allocation41_spill] sm:$0xff] }
 0xac9   : > { %v7271_v30 = vmax.f32 %v7235_v24, 0.0  ;;  %v7208_v24 = vadd.f32 %v7207_v36, %v15969_v12 }
 0xace   : > { %v7236_v59 = vpop.f32.mrf.mxu3 }
 0xacf   : > { %v7237_v62 = vadd.f32 %v7236_v59, %v7188_v7 }
 0xad1   : > { %v7272_v57 = vmax.f32 %v7237_v62, 0.0  ;;  %v15970_v62 = vld [vmem:[#allocation85_spill] sm:$0xff] }
 0xad2   : > { %v7206_v33 = vadd.f32 %v7205_v4, %v15970_v62 }
 0xad3   : > { %v15433_v52 = vpack.c.bf16 %v7272_v57, %v7271_v30 }
 0xad6   : > { %v7239_v10 = vpop.f32.mrf.mxu3 }
 0xad7   : > { %v7240_v28 = vadd.f32 %v7239_v10, %v7191_v26  ;;  %v15971_v26 = vld [vmem:[#allocation86_spill] sm:$0xff] }
 0xad8   : > { %v7203_v10 = vadd.f32 %v7202_v42, %v15971_v26  ;;  %v7328_v42 = vpop.permute.xlu0 %7327 }
 0xad9   : > { %v7273_v39 = vmax.f32 %v7240_v28, 0.0 }
 0xade   : > { %v7241_v13 = vpop.f32.mrf.mxu3 }
 0xadf   : > { %v7242_v58 = vadd.f32 %v7241_v13, %v7193_v49 }
 0xae1   : > { %v7274_v45 = vmax.f32 %v7242_v58, 0.0 }
 0xae3   : > { %v7319_v32 = vpack.c.bf16 %v7274_v45, %v7273_v39 }
 0xae6   : > { %v7244_v18 = vpop.f32.mrf.mxu3 }
 0xae7   : > { %v7245_v15 = vadd.f32 %v7244_v18, %v7196_v44  ;;  %v9702_v44 = vld [vmem:[%s15972_s21] sm:$0xff]  ;;  %v9703_v18 = vld [vmem:[%s15972_s21 + $0x8] sm:$0xff] }
 0xae9   : > { %v7275_v22 = vmax.f32 %v7245_v15, 0.0  ;;  %v9704_v15 = vld [vmem:[%s15972_s21 + $0x10] sm:$0xff] }
 0xaee   : > { %v7246_v9 = vpop.f32.mrf.mxu3 }
 0xaef   : > { %v7247_v5 = vadd.f32 %v7246_v9, %v7198_v46  ;;  %v9709_v46 = vld [vmem:[%s15972_s21 + $0x38] sm:$0xff] }
 0xaf1   : > { %v7276_v27 = vmax.f32 %v7247_v5, 0.0 }
 0xaf3   : > { %v7320_v63 = vpack.c.bf16 %v7276_v27, %v7275_v22  ;;  %v7333_v22 = vpop.permute.xlu1 %7332 }
 0xaf6   : > { %v7249_v54 = vpop.f32.mrf.mxu3 }
 0xaf7   : > { %v7250_v37 = vadd.f32 %v7249_v54, %v7201_v19 }
 0xaf9   : > { %v7277_v60 = vmax.f32 %v7250_v37, 0.0  ;;  %v7343_v37 = vpop.permute.xlu0 %7342 }
 0xafb   : > { %v7348_v36 = vpop.permute.xlu1 %7347 }
 0xafe   : > { %v7251_v23 = vpop.f32.mrf.mxu3 }
 0xaff   : > { %v7252_v11 = vadd.f32 %v7251_v23, %v7203_v10 }
 0xb01   : > { %v7278_v39 = vmax.f32 %v7252_v11, 0.0 }
 0xb03   : > { %v7321_v40 = vpack.c.bf16 %v7278_v39, %v7277_v60  ;;  %v7363_v34 = vpop.permute.xlu1 %7362 }
 0xb06   : > { %v7254_v43 = vpop.f32.mrf.mxu3 }
 0xb07   : > { %v7255_v28 = vadd.f32 %v7254_v43, %v7206_v33 }
 0xb09   : > { %v7279_v58 = vmax.f32 %v7255_v28, 0.0 }
 0xb0b   : > { %v7378_v35 = vpop.permute.xlu1 %7377 }
 0xb0e   : > { %v7256_v61 = vpop.f32.mrf.mxu3 }
 0xb0f   : > { %v7257_v30 = vadd.f32 %v7256_v61, %v7208_v24  ;;  %v7353_v61 = vpop.permute.xlu2 %7352 }
 0xb11   : > { %v7280_v49 = vmax.f32 %v7257_v30, 0.0 }
 0xb13   : > { %v7322_v45 = vpack.c.bf16 %v7280_v49, %v7279_v58  ;;  %v7393_v62 = vpop.permute.xlu1 %7392 }
 0xb16   : > { %v7259_v16 = vpop.f32.mrf.mxu3 }
 0xb17   : > { %v7260_v50 = vadd.f32 %v7259_v16, %v7211_v31  ;;  %v7368_v55 = vpop.permute.xlu2 %7367 }
 0xb19   : > { %v7281_v1 = vmax.f32 %v7260_v50, 0.0 }
 0xb1e   : > { %v7261_v41 = vpop.f32.mrf.mxu3 }
 0xb1f   : > { %v7262_v6 = vadd.f32 %v7261_v41, %v7213_v14  ;;  %v7358_v41 = vpop.permute.xlu0 %7357 }
 0xb21   : > { %v7282_v57 = vmax.f32 %v7262_v6, 0.0 }
 0xb23   : > { %v7323_v13 = vpack.c.bf16 %v7282_v57, %v7281_v1 }
 0xb26   : > { %v7264_v20 = vpop.f32.mrf.mxu3 }
 0xb27   : > { %v7265_v3 = vadd.f32 %v7264_v20, %v7216_v48 }
 0xb29   : > { %v7283_v7 = vmax.f32 %v7265_v3, 0.0 }
 0xb2e   : > { %v7266_v47 = vpop.f32.mrf.mxu3 }
 0xb2f   : > { %v7267_v51 = vadd.f32 %v7266_v47, %v7218_v21  ;;  %v7373_v21 = vpop.permute.xlu0 %7372 }
 0xb31   : > { %v7284_v59 = vmax.f32 %v7267_v51, 0.0  ;;  %v7383_v51 = vpop.permute.xlu2 %7382 }
 0xb33   : > { %v7324_v29 = vpack.c.bf16 %v7284_v59, %v7283_v7 }
 0xb35   : > { %7453 = vmatpush.bf16.msrb.mxu2 %v7324_v29 }
 0xb37   : > { %v7388_v50 = vpop.permute.xlu0 %7387 }
 0xb39   : > { %7454 = vmatpush.bf16.msrb.mxu2 %v7323_v13  ;;  %v7398_v57 = vpop.permute.xlu2 %7397 }
 0xb3d   : > { %7455 = vmatpush.bf16.msrb.mxu2 %v7322_v45 }
 0xb3f   : > { %v7403_v10 = vpop.permute.xlu0 %7402 }
 0xb41   : > { %7456 = vmatpush.bf16.msrb.mxu2 %v7321_v40 }
 0xb45   : > { %7457 = vmatpush.bf16.msrb.mxu2 %v7320_v63 }
 0xb49   : > { %7458 = vmatpush.bf16.msrb.mxu2 %v7319_v32  ;;  %v9707_v32 = vld [vmem:[%s15972_s21 + $0x28] sm:$0xff] }
 0xb4d   : > { %7459 = vmatpush.bf16.msrb.mxu2 %v15433_v52  ;;  %v9705_v52 = vld [vmem:[%s15972_s21 + $0x18] sm:$0xff] }
 0xb51   : > { %7460 = vmatpush.bf16.msrb.mxu2 %v15429_v25  ;;  %v9706_v25 = vld [vmem:[%s15972_s21 + $0x20] sm:$0xff] }
 0xb54   : > { %7461 = vmatmul.bf16.vlgmr.msrb.gmra.mxu2 %v9702_v44 }
 0xb64   : > { %7466 = vmatmul.bf16.gmra.mxu2 %v9703_v18 }
 0xb74   : > { %7471 = vmatmul.bf16.gmra.mxu2 %v9704_v15 }
 0xb84   : > { %7476 = vmatmul.bf16.gmra.mxu2 %v9705_v52 }
 0xb94   : > { %7481 = vmatmul.bf16.gmra.mxu2 %v9706_v25 }
 0xba4   : > { %7486 = vmatmul.bf16.gmra.mxu2 %v9707_v32 }
 0xbb4   : > { %7491 = vmatmul.bf16.gmra.mxu2 %v9708_v2 }
 0xbc4   : > { %7496 = vmatmul.bf16.gmra.mxu2 %v9709_v46 }
 0xbd7   : > { %v7462_v9 = vpop.f32.mrf.mxu2 }
 0xbd8   : > { %v7463_v5 = vadd.f32 %v7462_v9, %v7328_v42 }
 0xbda   : > { %7518 = vst [vmem:[%s12339_s18 + $0x80] sm:$0xff] %v7463_v5 }
 0xbdf   : > { %v7464_v27 = vpop.f32.mrf.mxu2 }
 0xbe0   : > { %v7465_v63 = vadd.f32 %v7464_v27, %v7333_v22 }
 0xbe2   : > { %7519 = vst [vmem:[%s12339_s18 + $0x88] sm:$0xff] %v7465_v63 }
 0xbe7   : > { %v7467_v19 = vpop.f32.mrf.mxu2 }
 0xbe8   : > { %v7468_v54 = vadd.f32 %v7467_v19, %v7338_v17 }
 0xbea   : > { %7520 = vst [vmem:[%s12339_s18 + $0x90] sm:$0xff] %v7468_v54 }
 0xbef   : > { %v7469_v4 = vpop.f32.mrf.mxu2 }
 0xbf0   : > { %v7470_v23 = vadd.f32 %v7469_v4, %v7343_v37 }
 0xbf2   : > { %7521 = vst [vmem:[%s12339_s18 + $0x98] sm:$0xff] %v7470_v23 }
 0xbf7   : > { %v7472_v43 = vpop.f32.mrf.mxu2 }
 0xbf8   : > { %v7473_v56 = vadd.f32 %v7472_v43, %v7348_v36 }
 0xbfa   : > { %7522 = vst [vmem:[%s12339_s18 + $0xa0] sm:$0xff] %v7473_v56 }
 0xbff   : > { %v7474_v0 = vpop.f32.mrf.mxu2 }
 0xc00   : > { %v7475_v16 = vadd.f32 %v7474_v0, %v7353_v61 }
 0xc02   : > { %7523 = vst [vmem:[%s12339_s18 + $0xa8] sm:$0xff] %v7475_v16 }
 0xc07   : > { %v7477_v53 = vpop.f32.mrf.mxu2 }
 0xc08   : > { %v7478_v20 = vadd.f32 %v7477_v53, %v7358_v41 }
 0xc0a   : > { %7524 = vst [vmem:[%s12339_s18 + $0xb0] sm:$0xff] %v7478_v20 }
 0xc0f   : > { %v7479_v8 = vpop.f32.mrf.mxu2 }
 0xc10   : > { %v7480_v48 = vadd.f32 %v7479_v8, %v7363_v34 }
 0xc12   : > { %7525 = vst [vmem:[%s12339_s18 + $0xb8] sm:$0xff] %v7480_v48 }
 0xc17   : > { %v7482_v14 = vpop.f32.mrf.mxu2 }
 0xc18   : > { %v7483_v38 = vadd.f32 %v7482_v14, %v7368_v55 }
 0xc1a   : > { %7526 = vst [vmem:[%s12339_s18 + $0xc0] sm:$0xff] %v7483_v38 }
 0xc1f   : > { %v7484_v3 = vpop.f32.mrf.mxu2 }
 0xc20   : > { %v7485_v47 = vadd.f32 %v7484_v3, %v7373_v21 }
 0xc22   : > { %7527 = vst [vmem:[%s12339_s18 + $0xc8] sm:$0xff] %v7485_v47 }
 0xc27   : > { %v7487_v31 = vpop.f32.mrf.mxu2 }
 0xc28   : > { %v7488_v6 = vadd.f32 %v7487_v31, %v7378_v35 }
 0xc2a   : > { %7528 = vst [vmem:[%s12339_s18 + $0xd0] sm:$0xff] %v7488_v6 }
 0xc2f   : > { %v7489_v12 = vpop.f32.mrf.mxu2 }
 0xc30   : > { %v7490_v24 = vadd.f32 %v7489_v12, %v7383_v51 }
 0xc32   : > { %7529 = vst [vmem:[%s12339_s18 + $0xd8] sm:$0xff] %v7490_v24 }
 0xc37   : > { %v7492_v7 = vpop.f32.mrf.mxu2 }
 0xc38   : > { %v7493_v59 = vadd.f32 %v7492_v7, %v7388_v50 }
 0xc3a   : > { %7530 = vst [vmem:[%s12339_s18 + $0xe0] sm:$0xff] %v7493_v59 }
 0xc3f   : > { %v7494_v33 = vpop.f32.mrf.mxu2 }
 0xc40   : > { %v7495_v30 = vadd.f32 %v7494_v33, %v7393_v62 }
 0xc42   : > { %7531 = vst [vmem:[%s12339_s18 + $0xe8] sm:$0xff] %v7495_v30 }
 0xc47   : > { %v7497_v29 = vpop.f32.mrf.mxu2 }
 0xc48   : > { %v7498_v26 = vadd.f32 %v7497_v29, %v7398_v57 }
 0xc4a   : > { %7532 = vst [vmem:[%s12339_s18 + $0xf0] sm:$0xff] %v7498_v26 }
 0xc4f   : > { %v7499_v28 = vpop.f32.mrf.mxu2 }
 0xc50   : > { %v7500_v1 = vadd.f32 %v7499_v28, %v7403_v10 }
 0xc52   : > { %7533 = vst [vmem:[%s12339_s18 + $0xf8] sm:$0xff] %v7500_v1 }
 0xc53   : > { %9831 = shalt.err (!%p9828_p7)
}
 0xc54   : > { %s9902_s19 = smov 128   ;;  %s9903_s18 = smov 512  }
 0xc55   : > { %s9904_s4 = smov 8  }
 0xc56   : > { %9725 = dma.vmem_to_hbm [thread:$0]  (%p10055_p8), %s7549_s28, 4096, %s7551_s3, %s7535_s17, %s9902_s19, %s9903_s18, %s9904_s4  }
 0xc57 PF: > { %s15977_s5 = sld [smem:[#allocation6_spill]]  ;;  %p9731_p10 = scmp.ge.s32.totalorder %s9898_s30, 2 }
 0xc59   : > { %p9728_p11 = pnand %p9731_p10, %p10059_p9 }
 0xc5b   : > { %p9729_p12 = pneg %p9728_p11 }
 0xc5d   : > { %s7565_s22 = sand.u32 1, %s15977_s5  }
 0xc5e   : > { %s7566_s24 = scalar_lea.sflag [#allocation4], %s7565_s22 }
 0xc5f   : > { %9865 = dma.done.wait (%p9729_p12), %s7566_s24, 4096  }
 0xc60   : > { %9867 = vsyncadd (%p9729_p12), %s7566_s24, 4294963200  ;;  %s30_s30 = sadd.s32 1, %s9898_s30   ;;  %s15979_s27 = sld [smem:[#allocation9_spill]] }
 0xc61   : > { %p27_p13 = scmp.ge.s32.totalorder %s30_s30, 10   ;;  %s15980_s28 = sld [smem:[#allocation10_spill]] }
 0xc62   : > { %s15981_s29 = sld [smem:[#allocation11_spill]]  ;;  %s15983_s24 = smov %s9874_s25 }
 0xc63   : > { %s15982_s0 = sld [smem:[#allocation12_spill]]  ;;  %s15984_s25 = smov %s9878_s26 }
 0xc64   : > { %s15985_s26 = smov %s10067_s15  ;;  %29 = sbr.rel (!%p27_p13) target bundleno = 15 (0xf), region = 166 }
 0xc69   :  { %7572 = vsyncpa [#allocation4], 1 }
 0xc6a   :  { %7574 = vsyncpa [#allocation4 + $0x1], 1 }

</bundles_post_ra>
